<compile_context>
chip_gen: v6e
topology: v6e:2x2x1
jax: 0.10.0
libtpu: 0.0.40
codegen_flags: <defaults>
</compile_context>

<pallas_src>
import numpy as np
import jax
import jax.numpy as jnp
from jax.experimental import pallas as pl
from jax.experimental.pallas import tpu as pltpu

INPUT_DIM = 79
CIN_PAD = 128            # input channels zero-padded to a lane-dense 128
LATENT_DIM = 16
LATENT_SEQ_LEN = 5
OUT_PAD = 128            # latent dim padded to 128 lanes -> unmasked stores
C1, C2, C3 = 128, 256, 256
LN_EPS = 1e-5


# ---------------------------------- kernel -----------------------------------
def encoder_kernel(x_ref,
                   w1_ref, b1_ref, g1_ref, be1_ref,
                   w2_ref, b2_ref, g2_ref, be2_ref,
                   w3_ref, b3_ref, g3_ref, be3_ref,
                   wih0_ref, whh0_ref, bih0_ref, bhh0_ref,
                   wih1_ref, whh1_ref, bih1_ref, bhh1_ref,
                   gg_ref, gb_ref, pool_ref, pad_ref,
                   out_ref):
    bblk, L, _ = x_ref.shape
    T = LATENT_SEQ_LEN
    H = LATENT_DIM
    rows = bblk * L

    # Per-row time index within its example (for zeroing conv taps that would
    # otherwise read across example boundaries in the flattened slab).
    t_idx = jax.lax.broadcasted_iota(jnp.int32, (rows, 1), 0) % L
    is_first = t_idx == 0
    is_last = t_idx == (L - 1)

    def layernorm(h, g, be):
        mu = jnp.mean(h, axis=-1, keepdims=True)
        var = jnp.mean(jnp.square(h - mu), axis=-1, keepdims=True)
        return (h - mu) * jax.lax.rsqrt(var + LN_EPS) * g + be

    def conv_block(h, wf_ref, b_ref, g_ref, be_ref):
        # h: (bblk*L, Cin); kernel-3 'same' conv fused into one matmul.
        cin = h.shape[-1]
        zrow = jnp.zeros((1, cin), jnp.float32)
        h_prev = jnp.concatenate([zrow, h[:-1]], axis=0)
        h_prev = jnp.where(is_first, 0.0, h_prev)          # zero tap at t == 0
        h_next = jnp.concatenate([h[1:], zrow], axis=0)
        h_next = jnp.where(is_last, 0.0, h_next)           # zero tap at t == L-1
        h_win = jnp.concatenate([h_prev, h, h_next], axis=-1)   # (rows, 3*cin)
        w = wf_ref[...].astype(jnp.float32)                 # bf16 storage -> f32
        y = jnp.dot(h_win, w, preferred_element_type=jnp.float32) + b_ref[...]
        y = jnp.maximum(y, 0.0)                             # ReLU (dropout == id)
        return layernorm(y, g_ref[...], be_ref[...])

    def gru_layer(x_seq, wih_ref, whh_ref, bih_ref, bhh_ref):
        # x_seq: (T*bblk, Din), time-major blocks of bblk rows.
        wih = wih_ref[...].astype(jnp.float32)
        whh = whh_ref[...].astype(jnp.float32)
        gx_all = jnp.dot(x_seq, wih, preferred_element_type=jnp.float32) + bih_ref[...]
        h = jnp.zeros((bblk, H), jnp.float32)
        outs = []
        for t in range(T):                                  # statically unrolled (T == 5)
            gx = gx_all[t * bblk:(t + 1) * bblk]            # (bblk, 3H)
            gh = jnp.dot(h, whh, preferred_element_type=jnp.float32) + bhh_ref[...]
            r = jax.nn.sigmoid(gx[:, 0:H] + gh[:, 0:H])
            z = jax.nn.sigmoid(gx[:, H:2 * H] + gh[:, H:2 * H])
            n = jnp.tanh(gx[:, 2 * H:3 * H] + r * gh[:, 2 * H:3 * H])
            h = (1.0 - z) * n + z * h
            outs.append(h)
        return jnp.concatenate(outs, axis=0)                # (T*bblk, H), time-major

    x = x_ref[...].astype(jnp.float32).reshape(rows, CIN_PAD)

    h = conv_block(x, w1_ref, b1_ref, g1_ref, be1_ref)      # (rows, 128)
    h = conv_block(h, w2_ref, b2_ref, g2_ref, be2_ref)      # (rows, 256)
    h = conv_block(h, w3_ref, b3_ref, g3_ref, be3_ref)      # (rows, 256)

    # AdaptiveAvgPool1d as one matmul with a constant block-diagonal matrix.
    pooled = jnp.dot(pool_ref[...], h, preferred_element_type=jnp.float32)  # (T*bblk, 256)

    z0 = gru_layer(pooled, wih0_ref, whh0_ref, bih0_ref, bhh0_ref)
    z1 = gru_layer(z0, wih1_ref, whh1_ref, bih1_ref, bhh1_ref)

    z = layernorm(z1, gg_ref[...], gb_ref[...])             # (T*bblk, 16)
    # Lane-dense store: pad 16 -> 128 via an identity-embed matmul (no masked vst).
    z_pad = jnp.dot(z, pad_ref[...], preferred_element_type=jnp.float32)    # (T*bblk, 128)
    out_ref[...] = z_pad.reshape(T, bblk, OUT_PAD).astype(out_ref.dtype)


# --------------------------------- wrapper -----------------------------------
def _pick_bblk(L):
    # Big enough that bblk*L >= 256 MXU rows, multiple of 8, capped for VMEM.
    bblk = max(8, min(64, pl.cdiv(256, L)))
    return ((bblk + 7) // 8) * 8


def _pool_matrix(L, bblk):
    # PyTorch AdaptiveAvgPool1d(LATENT_SEQ_LEN) boundaries, block-diagonal over
    # bblk examples: (T*bblk, bblk*L) so that (P @ h_flat) is the pooled slab.
    T = LATENT_SEQ_LEN
    pm = np.zeros((T, L), np.float32)
    for o in range(T):
        s = (o * L) // T
        e = -((-(o + 1) * L) // T)          # ceil((o+1)*L / T)
        pm[o, s:e] = 1.0 / float(e - s)
    eye = np.eye(bblk, dtype=np.float32)
    blk = pm[:, None, None, :] * eye[None, :, :, None]      # (T, bblk, bblk, L)
    return jnp.asarray(blk.reshape(T * bblk, bblk * L))


def encoder_forward(x_ncl, params, bblk=None):
    B, cin, L = x_ncl.shape
    assert cin == INPUT_DIM
    if bblk is None:
        bblk = _pick_bblk(L)
    n_blocks = pl.cdiv(B, bblk)
    B_pad = n_blocks * bblk
    T = LATENT_SEQ_LEN

    # NCL -> NLC; pad channels 79 -> 128 and batch up to a multiple of bblk.
    x = jnp.transpose(x_ncl, (0, 2, 1)).astype(jnp.float32)
    x = jnp.pad(x, ((0, B_pad - B), (0, 0), (0, CIN_PAD - INPUT_DIM)))

    # Fuse the 3 conv taps into a single (3*Cin, Cout) weight (bf16 storage).
    w1f = jnp.pad(params["w1"], ((0, 0), (0, CIN_PAD - INPUT_DIM), (0, 0))).reshape(3 * CIN_PAD, C1)
    w2f = params["w2"].reshape(3 * C1, C2)
    w3f = params["w3"].reshape(3 * C2, C3)

    pool = _pool_matrix(L, bblk)                                        # f32
    pad_emb = jnp.asarray(np.eye(LATENT_DIM, OUT_PAD, dtype=np.float32))

    plist = [
        w1f, params["b1"], params["g1"], params["be1"],
        w2f, params["b2"], params["g2"], params["be2"],
        w3f, params["b3"], params["g3"], params["be3"],
        params["wih0"], params["whh0"], params["bih0"], params["bhh0"],
        params["wih1"], params["whh1"], params["bih1"], params["bhh1"],
        params["gg"], params["gb"], pool, pad_emb,
    ]

    def const_spec(p):
        nd = p.ndim
        return pl.BlockSpec(p.shape, lambda b, _nd=nd: (0,) * _nd)      # stays resident

    in_specs = [pl.BlockSpec((bblk, L, CIN_PAD), lambda b: (b, 0, 0))]
    in_specs += [const_spec(p) for p in plist]

    out = pl.pallas_call(
        encoder_kernel,
        out_shape=jax.ShapeDtypeStruct((T, B_pad, OUT_PAD), jnp.float32),
        grid=(n_blocks,),
        in_specs=in_specs,
        out_specs=pl.BlockSpec((T, bblk, OUT_PAD), lambda b: (0, b, 0)),
        compiler_params=pltpu.CompilerParams(
            dimension_semantics=("parallel",),        # shard batch blocks across TCs (v7x)
            vmem_limit_bytes=32 * 1024 * 1024,
        ),
    )(x, *plist)

    # (T, B_pad, 128) -> (B, latent_dim, latent_seq_len)
    return jnp.transpose(out[:, :B, :LATENT_DIM], (1, 2, 0))


# ------------------------------ parameter init --------------------------------
def init_params(key):
    ks = jax.random.split(key, 16)
    bf = jnp.bfloat16
    H = LATENT_DIM

    def u(k, shape, fan_in, dtype=jnp.float32):
        bound = 1.0 / np.sqrt(float(fan_in))
        return jax.random.uniform(k, shape, jnp.float32, -bound, bound).astype(dtype)

    return {
        # conv weights stored as (3, Cin, Cout) == PyTorch (Cout, Cin, 3) transposed
        "w1": u(ks[0], (3, INPUT_DIM, C1), INPUT_DIM * 3, bf),
        "b1": u(ks[1], (1, C1), INPUT_DIM * 3),
        "g1": jnp.ones((1, C1), jnp.float32), "be1": jnp.zeros((1, C1), jnp.float32),
        "w2": u(ks[2], (3, C1, C2), C1 * 3, bf),
        "b2": u(ks[3], (1, C2), C1 * 3),
        "g2": jnp.ones((1, C2), jnp.float32), "be2": jnp.zeros((1, C2), jnp.float32),
        "w3": u(ks[4], (3, C2, C3), C2 * 3, bf),
        "b3": u(ks[5], (1, C3), C2 * 3),
        "g3": jnp.ones((1, C3), jnp.float32), "be3": jnp.zeros((1, C3), jnp.float32),
        # GRU layer 0: W_ih^T (256, 3H), W_hh^T (H, 3H), biases (1, 3H)
        "wih0": u(ks[6], (C3, 3 * H), H, bf),
        "whh0": u(ks[7], (H, 3 * H), H, bf),
        "bih0": u(ks[8], (1, 3 * H), H),
        "bhh0": u(ks[9], (1, 3 * H), H),
        # GRU layer 1
        "wih1": u(ks[10], (H, 3 * H), H, bf),
        "whh1": u(ks[11], (H, 3 * H), H, bf),
        "bih1": u(ks[12], (1, 3 * H), H),
        "bhh1": u(ks[13], (1, 3 * H), H),
        # final layernorm over latent_dim
        "gg": jnp.ones((1, H), jnp.float32),
        "gb": jnp.zeros((1, H), jnp.float32),
    }


# ----------------------------- pure-JAX reference ------------------------------
def _ref_layernorm(x, g, b):
    mu = jnp.mean(x, axis=-1, keepdims=True)
    var = jnp.mean((x - mu) ** 2, axis=-1, keepdims=True)
    return (x - mu) * jax.lax.rsqrt(var + LN_EPS) * g + b


def _ref_conv1d_k3(x, w, b):
    w = w.astype(jnp.float32)
    zeros = jnp.zeros((1, x.shape[1]), x.dtype)
    x_prev = jnp.concatenate([zeros, x[:-1]], axis=0)
    x_next = jnp.concatenate([x[1:], zeros], axis=0)
    return x_prev @ w[0] + x @ w[1] + x_next @ w[2] + b


def _ref_adaptive_pool(h, t_out):
    L = h.shape[0]
    rows = []
    for i in range(t_out):
        s = (i * L) // t_out
        e = -((-(i + 1) * L) // t_out)
        rows.append(jnp.mean(h[s:e], axis=0, keepdims=True))
    return jnp.concatenate(rows, axis=0)


def _ref_gru_layer(x_seq, w_ih, w_hh, b_ih, b_hh, hidden):
    w_ih = w_ih.astype(jnp.float32)
    w_hh = w_hh.astype(jnp.float32)
    T, H = x_seq.shape[0], hidden
    gx_all = x_seq @ w_ih + b_ih
    h = jnp.zeros((1, H), jnp.float32)
    outs = []
    for t in range(T):
        gx = gx_all[t:t + 1]
        gh = h @ w_hh + b_hh
        r = jax.nn.sigmoid(gx[:, :H] + gh[:, :H])
        z = jax.nn.sigmoid(gx[:, H:2 * H] + gh[:, H:2 * H])
        n = jnp.tanh(gx[:, 2 * H:] + r * gh[:, 2 * H:])
        h = (1.0 - z) * n + z * h
        outs.append(h)
    return jnp.concatenate(outs, axis=0)


def reference_forward(x_ncl, params):
    def single(xb):                       # xb: (INPUT_DIM, L)
        x = xb.T.astype(jnp.float32)
        h = jnp.maximum(_ref_conv1d_k3(x, params["w1"], params["b1"]), 0.0)
        h = _ref_layernorm(h, params["g1"], params["be1"])
        h = jnp.maximum(_ref_conv1d_k3(h, params["w2"], params["b2"]), 0.0)
        h = _ref_layernorm(h, params["g2"], params["be2"])
        h = jnp.maximum(_ref_conv1d_k3(h, params["w3"], params["b3"]), 0.0)
        h = _ref_layernorm(h, params["g3"], params["be3"])
        p = _ref_adaptive_pool(h, LATENT_SEQ_LEN)
        z0 = _ref_gru_layer(p, params["wih0"], params["whh0"],
                            params["bih0"], params["bhh0"], LATENT_DIM)
        z1 = _ref_gru_layer(z0, params["wih1"], params["whh1"],
                            params["bih1"], params["bhh1"], LATENT_DIM)
        z = _ref_layernorm(z1, params["gg"], params["gb"])
        return z.T                        # (latent_dim, latent_seq_len)
    return jax.vmap(single)(x_ncl)


# ----------------------------------- main --------------------------------------
if __name__ == "__main__":
    key = jax.random.PRNGKey(0)
    kx, kp = jax.random.split(key)

    B, L = 2, 16                                    # small shapes
    x = jax.random.normal(kx, (B, INPUT_DIM, L), jnp.float32)
    params = init_params(kp)

    z = jax.block_until_ready(encoder_forward(x, params))
    assert z.shape == (B, LATENT_DIM, LATENT_SEQ_LEN), z.shape

    z_ref = jax.block_until_ready(reference_forward(x, params))
    assert jnp.allclose(z, z_ref, rtol=1e-2, atol=1e-2), \
        float(jnp.max(jnp.abs(z - z_ref)))

    print("KERNEL_OK")
</pallas_src>

<mosaic_0001>
module attributes {stable_mosaic.version = 11 : i64} {
  func.func @encoder_kernel(%arg0: i32, %arg1: memref<16x16x128xf32, #tpu.memory_space<vmem>>, %arg2: memref<384x128xbf16, #tpu.memory_space<vmem>>, %arg3: memref<1x128xf32, #tpu.memory_space<vmem>>, %arg4: memref<1x128xf32, #tpu.memory_space<vmem>>, %arg5: memref<1x128xf32, #tpu.memory_space<vmem>>, %arg6: memref<384x256xbf16, #tpu.memory_space<vmem>>, %arg7: memref<1x256xf32, #tpu.memory_space<vmem>>, %arg8: memref<1x256xf32, #tpu.memory_space<vmem>>, %arg9: memref<1x256xf32, #tpu.memory_space<vmem>>, %arg10: memref<768x256xbf16, #tpu.memory_space<vmem>>, %arg11: memref<1x256xf32, #tpu.memory_space<vmem>>, %arg12: memref<1x256xf32, #tpu.memory_space<vmem>>, %arg13: memref<1x256xf32, #tpu.memory_space<vmem>>, %arg14: memref<256x48xbf16, #tpu.memory_space<vmem>>, %arg15: memref<16x48xbf16, #tpu.memory_space<vmem>>, %arg16: memref<1x48xf32, #tpu.memory_space<vmem>>, %arg17: memref<1x48xf32, #tpu.memory_space<vmem>>, %arg18: memref<16x48xbf16, #tpu.memory_space<vmem>>, %arg19: memref<16x48xbf16, #tpu.memory_space<vmem>>, %arg20: memref<1x48xf32, #tpu.memory_space<vmem>>, %arg21: memref<1x48xf32, #tpu.memory_space<vmem>>, %arg22: memref<1x16xf32, #tpu.memory_space<vmem>>, %arg23: memref<1x16xf32, #tpu.memory_space<vmem>>, %arg24: memref<80x256xf32, #tpu.memory_space<vmem>>, %arg25: memref<16x128xf32, #tpu.memory_space<vmem>>, %arg26: memref<5x16x128xf32, #tpu.memory_space<vmem>>) attributes {dimension_semantics = [#tpu.dimension_semantics<parallel>], iteration_bounds = array<i64: 1>, scalar_prefetch = 0 : i64, scratch_operands = 0 : i64, tpu.core_type = #tpu.core_type<tc>, window_params = [{transform_indices = @transform_0, window_bounds = array<i64: 16, 16, 128>}, {pipeline_mode = #tpu.pipeline_mode<synchronous>, transform_indices = @transform_1, window_bounds = array<i64: 384, 128>}, {pipeline_mode = #tpu.pipeline_mode<synchronous>, transform_indices = @transform_2, window_bounds = array<i64: 1, 128>}, {pipeline_mode = #tpu.pipeline_mode<synchronous>, transform_indices = @transform_3, window_bounds = array<i64: 1, 128>}, {pipeline_mode = #tpu.pipeline_mode<synchronous>, transform_indices = @transform_4, window_bounds = array<i64: 1, 128>}, {pipeline_mode = #tpu.pipeline_mode<synchronous>, transform_indices = @transform_5, window_bounds = array<i64: 384, 256>}, {pipeline_mode = #tpu.pipeline_mode<synchronous>, transform_indices = @transform_6, window_bounds = array<i64: 1, 256>}, {pipeline_mode = #tpu.pipeline_mode<synchronous>, transform_indices = @transform_7, window_bounds = array<i64: 1, 256>}, {pipeline_mode = #tpu.pipeline_mode<synchronous>, transform_indices = @transform_8, window_bounds = array<i64: 1, 256>}, {pipeline_mode = #tpu.pipeline_mode<synchronous>, transform_indices = @transform_9, window_bounds = array<i64: 768, 256>}, {pipeline_mode = #tpu.pipeline_mode<synchronous>, transform_indices = @transform_10, window_bounds = array<i64: 1, 256>}, {pipeline_mode = #tpu.pipeline_mode<synchronous>, transform_indices = @transform_11, window_bounds = array<i64: 1, 256>}, {pipeline_mode = #tpu.pipeline_mode<synchronous>, transform_indices = @transform_12, window_bounds = array<i64: 1, 256>}, {pipeline_mode = #tpu.pipeline_mode<synchronous>, transform_indices = @transform_13, window_bounds = array<i64: 256, 48>}, {pipeline_mode = #tpu.pipeline_mode<synchronous>, transform_indices = @transform_14, window_bounds = array<i64: 16, 48>}, {pipeline_mode = #tpu.pipeline_mode<synchronous>, transform_indices = @transform_15, window_bounds = array<i64: 1, 48>}, {pipeline_mode = #tpu.pipeline_mode<synchronous>, transform_indices = @transform_16, window_bounds = array<i64: 1, 48>}, {pipeline_mode = #tpu.pipeline_mode<synchronous>, transform_indices = @transform_17, window_bounds = array<i64: 16, 48>}, {pipeline_mode = #tpu.pipeline_mode<synchronous>, transform_indices = @transform_18, window_bounds = array<i64: 16, 48>}, {pipeline_mode = #tpu.pipeline_mode<synchronous>, transform_indices = @transform_19, window_bounds = array<i64: 1, 48>}, {pipeline_mode = #tpu.pipeline_mode<synchronous>, transform_indices = @transform_20, window_bounds = array<i64: 1, 48>}, {pipeline_mode = #tpu.pipeline_mode<synchronous>, transform_indices = @transform_21, window_bounds = array<i64: 1, 16>}, {pipeline_mode = #tpu.pipeline_mode<synchronous>, transform_indices = @transform_22, window_bounds = array<i64: 1, 16>}, {pipeline_mode = #tpu.pipeline_mode<synchronous>, transform_indices = @transform_23, window_bounds = array<i64: 80, 256>}, {pipeline_mode = #tpu.pipeline_mode<synchronous>, transform_indices = @transform_24, window_bounds = array<i64: 16, 128>}, {transform_indices = @transform_25, window_bounds = array<i64: 5, 16, 128>}]} {
    %0 = tpu.iota {dimensions = array<i32: 0>} : vector<256x1xi32>
    %c16_i32 = arith.constant 16 : i32
    %c0_i32 = arith.constant 0 : i32
    %1 = arith.cmpi eq, %c16_i32, %c0_i32 : i32
    %c1_i32 = arith.constant 1 : i32
    %2 = arith.select %1, %c1_i32, %c16_i32 : i32
    %3 = vector.broadcast %2 : i32 to vector<256x1xi32>
    %4 = arith.remsi %0, %3 : vector<256x1xi32>
    %c0_i32_0 = arith.constant 0 : i32
    %5 = vector.broadcast %c0_i32_0 : i32 to vector<256x1xi32>
    %6 = arith.cmpi ne, %4, %5 : vector<256x1xi32>
    %c0_i32_1 = arith.constant 0 : i32
    %7 = vector.broadcast %c0_i32_1 : i32 to vector<256x1xi32>
    %8 = arith.cmpi slt, %4, %7 : vector<256x1xi32>
    %c0_i32_2 = arith.constant 0 : i32
    %9 = arith.cmpi slt, %2, %c0_i32_2 : i32
    %10 = vector.broadcast %9 : i1 to vector<256x1xi1>
    %11 = vector.broadcast %10 : vector<256x1xi1> to vector<256x1xi1>
    %12 = arith.xori %8, %11 : vector<256x1xi1>
    %13 = arith.andi %12, %6 : vector<256x1xi1>
    %14 = vector.broadcast %2 : i32 to vector<256x1xi32>
    %15 = arith.addi %4, %14 : vector<256x1xi32>
    %16 = arith.select %13, %15, %4 : vector<256x1xi1>, vector<256x1xi32>
    %c0_i32_3 = arith.constant 0 : i32
    %17 = vector.broadcast %c0_i32_3 : i32 to vector<256x1xi32>
    %18 = arith.cmpi eq, %16, %17 : vector<256x1xi32>
    %c15_i32 = arith.constant 15 : i32
    %19 = vector.broadcast %c15_i32 : i32 to vector<256x1xi32>
    %20 = arith.cmpi eq, %16, %19 : vector<256x1xi32>
    %c0 = arith.constant 0 : index
    %c0_4 = arith.constant 0 : index
    %c0_5 = arith.constant 0 : index
    %21 = vector.load %arg1[%c0, %c0_4, %c0_5] : memref<16x16x128xf32, #tpu.memory_space<vmem>>, vector<16x16x128xf32>
    %22 = vector.shape_cast %21 : vector<16x16x128xf32> to vector<256x128xf32>
    %cst = arith.constant 0.000000e+00 : f32
    %23 = vector.broadcast %cst : f32 to vector<1x128xf32>
    %24 = vector.extract_strided_slice %22 {offsets = [0, 0], sizes = [255, 128], strides = [1, 1]} : vector<256x128xf32> to vector<255x128xf32>
    %25 = tpu.concatenate %23, %24 in 0 : vector<1x128xf32>, vector<255x128xf32> -> vector<256x128xf32>
    %cst_6 = arith.constant 0.000000e+00 : f32
    %26 = vector.shape_cast %18 : vector<256x1xi1> to vector<256x1xi1>
    %27 = vector.broadcast %26 : vector<256x1xi1> to vector<256x128xi1>
    %28 = vector.broadcast %cst_6 : f32 to vector<256x128xf32>
    %29 = arith.select %27, %28, %25 : vector<256x128xi1>, vector<256x128xf32>
    %30 = vector.extract_strided_slice %22 {offsets = [1, 0], sizes = [255, 128], strides = [1, 1]} : vector<256x128xf32> to vector<255x128xf32>
    %31 = tpu.concatenate %30, %23 in 0 : vector<255x128xf32>, vector<1x128xf32> -> vector<256x128xf32>
    %cst_7 = arith.constant 0.000000e+00 : f32
    %32 = vector.shape_cast %20 : vector<256x1xi1> to vector<256x1xi1>
    %33 = vector.broadcast %32 : vector<256x1xi1> to vector<256x128xi1>
    %34 = vector.broadcast %cst_7 : f32 to vector<256x128xf32>
    %35 = arith.select %33, %34, %31 : vector<256x128xi1>, vector<256x128xf32>
    %36 = tpu.concatenate %29, %22, %35 in 1 : vector<256x128xf32>, vector<256x128xf32>, vector<256x128xf32> -> vector<256x384xf32>
    %c0_8 = arith.constant 0 : index
    %c0_9 = arith.constant 0 : index
    %37 = vector.load %arg2[%c0_8, %c0_9] : memref<384x128xbf16, #tpu.memory_space<vmem>>, vector<384x128xbf16>
    %38 = arith.extf %37 : vector<384x128xbf16> to vector<384x128xf32>
    %cst_10 = arith.constant dense<0.000000e+00> : vector<256x128xf32>
    %39 = tpu.matmul %36, %38, %cst_10 {dimension_numbers = #tpu.dot_dimension_numbers<[1], [0], [0], [1], [0, 0, 1, 1], [], []>} : vector<256x384xf32>, vector<384x128xf32>, vector<256x128xf32> -> vector<256x128xf32>
    %c0_11 = arith.constant 0 : index
    %c0_12 = arith.constant 0 : index
    %40 = vector.load %arg3[%c0_11, %c0_12] : memref<1x128xf32, #tpu.memory_space<vmem>>, vector<1x128xf32>
    %41 = vector.broadcast %40 : vector<1x128xf32> to vector<256x128xf32>
    %42 = arith.addf %39, %41 : vector<256x128xf32>
    %cst_13 = arith.constant 0.000000e+00 : f32
    %43 = vector.broadcast %cst_13 : f32 to vector<256x128xf32>
    %44 = arith.maximumf %42, %43 : vector<256x128xf32>
    %c0_14 = arith.constant 0 : index
    %c0_15 = arith.constant 0 : index
    %45 = vector.load %arg4[%c0_14, %c0_15] : memref<1x128xf32, #tpu.memory_space<vmem>>, vector<1x128xf32>
    %c0_16 = arith.constant 0 : index
    %c0_17 = arith.constant 0 : index
    %46 = vector.load %arg5[%c0_16, %c0_17] : memref<1x128xf32, #tpu.memory_space<vmem>>, vector<1x128xf32>
    %cst_18 = arith.constant dense<0.000000e+00> : vector<256xf32>
    %47 = vector.multi_reduction <add>, %44, %cst_18 [1] : vector<256x128xf32> to vector<256xf32>
    %48 = vector.shape_cast %47 : vector<256xf32> to vector<256x1xf32>
    %cst_19 = arith.constant 1.280000e+02 : f32
    %49 = vector.broadcast %cst_19 : f32 to vector<256x1xf32>
    %50 = arith.divf %48, %49 : vector<256x1xf32>
    %51 = vector.broadcast %50 : vector<256x1xf32> to vector<256x128xf32>
    %52 = arith.subf %44, %51 : vector<256x128xf32>
    %53 = arith.mulf %52, %52 : vector<256x128xf32>
    %cst_20 = arith.constant dense<0.000000e+00> : vector<256xf32>
    %54 = vector.multi_reduction <add>, %53, %cst_20 [1] : vector<256x128xf32> to vector<256xf32>
    %55 = vector.shape_cast %54 : vector<256xf32> to vector<256x1xf32>
    %cst_21 = arith.constant 1.280000e+02 : f32
    %56 = vector.broadcast %cst_21 : f32 to vector<256x1xf32>
    %57 = arith.divf %55, %56 : vector<256x1xf32>
    %58 = vector.broadcast %50 : vector<256x1xf32> to vector<256x128xf32>
    %59 = arith.subf %44, %58 : vector<256x128xf32>
    %cst_22 = arith.constant 9.99999974E-6 : f32
    %60 = vector.broadcast %cst_22 : f32 to vector<256x1xf32>
    %61 = arith.addf %57, %60 : vector<256x1xf32>
    %62 = math.rsqrt %61 : vector<256x1xf32>
    %63 = vector.broadcast %62 : vector<256x1xf32> to vector<256x128xf32>
    %64 = arith.mulf %59, %63 : vector<256x128xf32>
    %65 = vector.broadcast %45 : vector<1x128xf32> to vector<256x128xf32>
    %66 = arith.mulf %64, %65 : vector<256x128xf32>
    %67 = vector.broadcast %46 : vector<1x128xf32> to vector<256x128xf32>
    %68 = arith.addf %66, %67 : vector<256x128xf32>
    %cst_23 = arith.constant 0.000000e+00 : f32
    %69 = vector.broadcast %cst_23 : f32 to vector<1x128xf32>
    %70 = vector.extract_strided_slice %68 {offsets = [0, 0], sizes = [255, 128], strides = [1, 1]} : vector<256x128xf32> to vector<255x128xf32>
    %71 = tpu.concatenate %69, %70 in 0 : vector<1x128xf32>, vector<255x128xf32> -> vector<256x128xf32>
    %cst_24 = arith.constant 0.000000e+00 : f32
    %72 = vector.shape_cast %18 : vector<256x1xi1> to vector<256x1xi1>
    %73 = vector.broadcast %72 : vector<256x1xi1> to vector<256x128xi1>
    %74 = vector.broadcast %cst_24 : f32 to vector<256x128xf32>
    %75 = arith.select %73, %74, %71 : vector<256x128xi1>, vector<256x128xf32>
    %76 = vector.extract_strided_slice %68 {offsets = [1, 0], sizes = [255, 128], strides = [1, 1]} : vector<256x128xf32> to vector<255x128xf32>
    %77 = tpu.concatenate %76, %69 in 0 : vector<255x128xf32>, vector<1x128xf32> -> vector<256x128xf32>
    %cst_25 = arith.constant 0.000000e+00 : f32
    %78 = vector.shape_cast %20 : vector<256x1xi1> to vector<256x1xi1>
    %79 = vector.broadcast %78 : vector<256x1xi1> to vector<256x128xi1>
    %80 = vector.broadcast %cst_25 : f32 to vector<256x128xf32>
    %81 = arith.select %79, %80, %77 : vector<256x128xi1>, vector<256x128xf32>
    %82 = tpu.concatenate %75, %68, %81 in 1 : vector<256x128xf32>, vector<256x128xf32>, vector<256x128xf32> -> vector<256x384xf32>
    %c0_26 = arith.constant 0 : index
    %c0_27 = arith.constant 0 : index
    %83 = vector.load %arg6[%c0_26, %c0_27] : memref<384x256xbf16, #tpu.memory_space<vmem>>, vector<384x256xbf16>
    %84 = arith.extf %83 : vector<384x256xbf16> to vector<384x256xf32>
    %cst_28 = arith.constant dense<0.000000e+00> : vector<256x256xf32>
    %85 = tpu.matmul %82, %84, %cst_28 {dimension_numbers = #tpu.dot_dimension_numbers<[1], [0], [0], [1], [0, 0, 1, 1], [], []>} : vector<256x384xf32>, vector<384x256xf32>, vector<256x256xf32> -> vector<256x256xf32>
    %c0_29 = arith.constant 0 : index
    %c0_30 = arith.constant 0 : index
    %86 = vector.load %arg7[%c0_29, %c0_30] : memref<1x256xf32, #tpu.memory_space<vmem>>, vector<1x256xf32>
    %87 = vector.broadcast %86 : vector<1x256xf32> to vector<256x256xf32>
    %88 = arith.addf %85, %87 : vector<256x256xf32>
    %cst_31 = arith.constant 0.000000e+00 : f32
    %89 = vector.broadcast %cst_31 : f32 to vector<256x256xf32>
    %90 = arith.maximumf %88, %89 : vector<256x256xf32>
    %c0_32 = arith.constant 0 : index
    %c0_33 = arith.constant 0 : index
    %91 = vector.load %arg8[%c0_32, %c0_33] : memref<1x256xf32, #tpu.memory_space<vmem>>, vector<1x256xf32>
    %c0_34 = arith.constant 0 : index
    %c0_35 = arith.constant 0 : index
    %92 = vector.load %arg9[%c0_34, %c0_35] : memref<1x256xf32, #tpu.memory_space<vmem>>, vector<1x256xf32>
    %cst_36 = arith.constant dense<0.000000e+00> : vector<256xf32>
    %93 = vector.multi_reduction <add>, %90, %cst_36 [1] : vector<256x256xf32> to vector<256xf32>
    %94 = vector.shape_cast %93 : vector<256xf32> to vector<256x1xf32>
    %cst_37 = arith.constant 2.560000e+02 : f32
    %95 = vector.broadcast %cst_37 : f32 to vector<256x1xf32>
    %96 = arith.divf %94, %95 : vector<256x1xf32>
    %97 = vector.broadcast %96 : vector<256x1xf32> to vector<256x256xf32>
    %98 = arith.subf %90, %97 : vector<256x256xf32>
    %99 = arith.mulf %98, %98 : vector<256x256xf32>
    %cst_38 = arith.constant dense<0.000000e+00> : vector<256xf32>
    %100 = vector.multi_reduction <add>, %99, %cst_38 [1] : vector<256x256xf32> to vector<256xf32>
    %101 = vector.shape_cast %100 : vector<256xf32> to vector<256x1xf32>
    %cst_39 = arith.constant 2.560000e+02 : f32
    %102 = vector.broadcast %cst_39 : f32 to vector<256x1xf32>
    %103 = arith.divf %101, %102 : vector<256x1xf32>
    %104 = vector.broadcast %96 : vector<256x1xf32> to vector<256x256xf32>
    %105 = arith.subf %90, %104 : vector<256x256xf32>
    %cst_40 = arith.constant 9.99999974E-6 : f32
    %106 = vector.broadcast %cst_40 : f32 to vector<256x1xf32>
    %107 = arith.addf %103, %106 : vector<256x1xf32>
    %108 = math.rsqrt %107 : vector<256x1xf32>
    %109 = vector.broadcast %108 : vector<256x1xf32> to vector<256x256xf32>
    %110 = arith.mulf %105, %109 : vector<256x256xf32>
    %111 = vector.broadcast %91 : vector<1x256xf32> to vector<256x256xf32>
    %112 = arith.mulf %110, %111 : vector<256x256xf32>
    %113 = vector.broadcast %92 : vector<1x256xf32> to vector<256x256xf32>
    %114 = arith.addf %112, %113 : vector<256x256xf32>
    %cst_41 = arith.constant 0.000000e+00 : f32
    %115 = vector.broadcast %cst_41 : f32 to vector<1x256xf32>
    %116 = vector.extract_strided_slice %114 {offsets = [0, 0], sizes = [255, 256], strides = [1, 1]} : vector<256x256xf32> to vector<255x256xf32>
    %117 = tpu.concatenate %115, %116 in 0 : vector<1x256xf32>, vector<255x256xf32> -> vector<256x256xf32>
    %cst_42 = arith.constant 0.000000e+00 : f32
    %118 = vector.shape_cast %18 : vector<256x1xi1> to vector<256x1xi1>
    %119 = vector.broadcast %118 : vector<256x1xi1> to vector<256x256xi1>
    %120 = vector.broadcast %cst_42 : f32 to vector<256x256xf32>
    %121 = arith.select %119, %120, %117 : vector<256x256xi1>, vector<256x256xf32>
    %122 = vector.extract_strided_slice %114 {offsets = [1, 0], sizes = [255, 256], strides = [1, 1]} : vector<256x256xf32> to vector<255x256xf32>
    %123 = tpu.concatenate %122, %115 in 0 : vector<255x256xf32>, vector<1x256xf32> -> vector<256x256xf32>
    %cst_43 = arith.constant 0.000000e+00 : f32
    %124 = vector.shape_cast %20 : vector<256x1xi1> to vector<256x1xi1>
    %125 = vector.broadcast %124 : vector<256x1xi1> to vector<256x256xi1>
    %126 = vector.broadcast %cst_43 : f32 to vector<256x256xf32>
    %127 = arith.select %125, %126, %123 : vector<256x256xi1>, vector<256x256xf32>
    %128 = tpu.concatenate %121, %114, %127 in 1 : vector<256x256xf32>, vector<256x256xf32>, vector<256x256xf32> -> vector<256x768xf32>
    %c0_44 = arith.constant 0 : index
    %c0_45 = arith.constant 0 : index
    %129 = vector.load %arg10[%c0_44, %c0_45] : memref<768x256xbf16, #tpu.memory_space<vmem>>, vector<768x256xbf16>
    %130 = arith.extf %129 : vector<768x256xbf16> to vector<768x256xf32>
    %cst_46 = arith.constant dense<0.000000e+00> : vector<256x256xf32>
    %131 = tpu.matmul %128, %130, %cst_46 {dimension_numbers = #tpu.dot_dimension_numbers<[1], [0], [0], [1], [0, 0, 1, 1], [], []>} : vector<256x768xf32>, vector<768x256xf32>, vector<256x256xf32> -> vector<256x256xf32>
    %c0_47 = arith.constant 0 : index
    %c0_48 = arith.constant 0 : index
    %132 = vector.load %arg11[%c0_47, %c0_48] : memref<1x256xf32, #tpu.memory_space<vmem>>, vector<1x256xf32>
    %133 = vector.broadcast %132 : vector<1x256xf32> to vector<256x256xf32>
    %134 = arith.addf %131, %133 : vector<256x256xf32>
    %cst_49 = arith.constant 0.000000e+00 : f32
    %135 = vector.broadcast %cst_49 : f32 to vector<256x256xf32>
    %136 = arith.maximumf %134, %135 : vector<256x256xf32>
    %c0_50 = arith.constant 0 : index
    %c0_51 = arith.constant 0 : index
    %137 = vector.load %arg12[%c0_50, %c0_51] : memref<1x256xf32, #tpu.memory_space<vmem>>, vector<1x256xf32>
    %c0_52 = arith.constant 0 : index
    %c0_53 = arith.constant 0 : index
    %138 = vector.load %arg13[%c0_52, %c0_53] : memref<1x256xf32, #tpu.memory_space<vmem>>, vector<1x256xf32>
    %cst_54 = arith.constant dense<0.000000e+00> : vector<256xf32>
    %139 = vector.multi_reduction <add>, %136, %cst_54 [1] : vector<256x256xf32> to vector<256xf32>
    %140 = vector.shape_cast %139 : vector<256xf32> to vector<256x1xf32>
    %cst_55 = arith.constant 2.560000e+02 : f32
    %141 = vector.broadcast %cst_55 : f32 to vector<256x1xf32>
    %142 = arith.divf %140, %141 : vector<256x1xf32>
    %143 = vector.broadcast %142 : vector<256x1xf32> to vector<256x256xf32>
    %144 = arith.subf %136, %143 : vector<256x256xf32>
    %145 = arith.mulf %144, %144 : vector<256x256xf32>
    %cst_56 = arith.constant dense<0.000000e+00> : vector<256xf32>
    %146 = vector.multi_reduction <add>, %145, %cst_56 [1] : vector<256x256xf32> to vector<256xf32>
    %147 = vector.shape_cast %146 : vector<256xf32> to vector<256x1xf32>
    %cst_57 = arith.constant 2.560000e+02 : f32
    %148 = vector.broadcast %cst_57 : f32 to vector<256x1xf32>
    %149 = arith.divf %147, %148 : vector<256x1xf32>
    %150 = vector.broadcast %142 : vector<256x1xf32> to vector<256x256xf32>
    %151 = arith.subf %136, %150 : vector<256x256xf32>
    %cst_58 = arith.constant 9.99999974E-6 : f32
    %152 = vector.broadcast %cst_58 : f32 to vector<256x1xf32>
    %153 = arith.addf %149, %152 : vector<256x1xf32>
    %154 = math.rsqrt %153 : vector<256x1xf32>
    %155 = vector.broadcast %154 : vector<256x1xf32> to vector<256x256xf32>
    %156 = arith.mulf %151, %155 : vector<256x256xf32>
    %157 = vector.broadcast %137 : vector<1x256xf32> to vector<256x256xf32>
    %158 = arith.mulf %156, %157 : vector<256x256xf32>
    %159 = vector.broadcast %138 : vector<1x256xf32> to vector<256x256xf32>
    %160 = arith.addf %158, %159 : vector<256x256xf32>
    %c0_59 = arith.constant 0 : index
    %c0_60 = arith.constant 0 : index
    %161 = vector.load %arg24[%c0_59, %c0_60] : memref<80x256xf32, #tpu.memory_space<vmem>>, vector<80x256xf32>
    %cst_61 = arith.constant dense<0.000000e+00> : vector<80x256xf32>
    %162 = tpu.matmul %161, %160, %cst_61 {dimension_numbers = #tpu.dot_dimension_numbers<[1], [0], [0], [1], [0, 0, 1, 1], [], []>} : vector<80x256xf32>, vector<256x256xf32>, vector<80x256xf32> -> vector<80x256xf32>
    %c0_62 = arith.constant 0 : index
    %c0_63 = arith.constant 0 : index
    %163 = vector.load %arg14[%c0_62, %c0_63] : memref<256x48xbf16, #tpu.memory_space<vmem>>, vector<256x48xbf16>
    %164 = arith.extf %163 : vector<256x48xbf16> to vector<256x48xf32>
    %c0_64 = arith.constant 0 : index
    %c0_65 = arith.constant 0 : index
    %165 = vector.load %arg15[%c0_64, %c0_65] : memref<16x48xbf16, #tpu.memory_space<vmem>>, vector<16x48xbf16>
    %166 = arith.extf %165 : vector<16x48xbf16> to vector<16x48xf32>
    %cst_66 = arith.constant dense<0.000000e+00> : vector<80x48xf32>
    %167 = tpu.matmul %162, %164, %cst_66 {dimension_numbers = #tpu.dot_dimension_numbers<[1], [0], [0], [1], [0, 0, 1, 1], [], []>} : vector<80x256xf32>, vector<256x48xf32>, vector<80x48xf32> -> vector<80x48xf32>
    %c0_67 = arith.constant 0 : index
    %c0_68 = arith.constant 0 : index
    %168 = vector.load %arg16[%c0_67, %c0_68] : memref<1x48xf32, #tpu.memory_space<vmem>>, vector<1x48xf32>
    %169 = vector.broadcast %168 : vector<1x48xf32> to vector<80x48xf32>
    %170 = arith.addf %167, %169 : vector<80x48xf32>
    %cst_69 = arith.constant 0.000000e+00 : f32
    %171 = vector.broadcast %cst_69 : f32 to vector<16x16xf32>
    %172 = vector.extract_strided_slice %170 {offsets = [0, 0], sizes = [16, 48], strides = [1, 1]} : vector<80x48xf32> to vector<16x48xf32>
    %cst_70 = arith.constant dense<0.000000e+00> : vector<16x48xf32>
    %173 = tpu.matmul %171, %166, %cst_70 {dimension_numbers = #tpu.dot_dimension_numbers<[1], [0], [0], [1], [0, 0, 1, 1], [], []>} : vector<16x16xf32>, vector<16x48xf32>, vector<16x48xf32> -> vector<16x48xf32>
    %c0_71 = arith.constant 0 : index
    %c0_72 = arith.constant 0 : index
    %174 = vector.load %arg17[%c0_71, %c0_72] : memref<1x48xf32, #tpu.memory_space<vmem>>, vector<1x48xf32>
    %175 = vector.broadcast %174 : vector<1x48xf32> to vector<16x48xf32>
    %176 = arith.addf %173, %175 : vector<16x48xf32>
    %177 = vector.extract_strided_slice %172 {offsets = [0, 0], sizes = [16, 16], strides = [1, 1]} : vector<16x48xf32> to vector<16x16xf32>
    %178 = vector.extract_strided_slice %176 {offsets = [0, 0], sizes = [16, 16], strides = [1, 1]} : vector<16x48xf32> to vector<16x16xf32>
    %179 = arith.addf %177, %178 : vector<16x16xf32>
    %180 = arith.negf %179 : vector<16x16xf32>
    %181 = math.exp %180 : vector<16x16xf32>
    %cst_73 = arith.constant 1.000000e+00 : f32
    %182 = vector.broadcast %cst_73 : f32 to vector<16x16xf32>
    %183 = arith.addf %182, %181 : vector<16x16xf32>
    %184 = arith.divf %182, %183 : vector<16x16xf32>
    %185 = vector.extract_strided_slice %172 {offsets = [0, 16], sizes = [16, 16], strides = [1, 1]} : vector<16x48xf32> to vector<16x16xf32>
    %186 = vector.extract_strided_slice %176 {offsets = [0, 16], sizes = [16, 16], strides = [1, 1]} : vector<16x48xf32> to vector<16x16xf32>
    %187 = arith.addf %185, %186 : vector<16x16xf32>
    %188 = arith.negf %187 : vector<16x16xf32>
    %189 = math.exp %188 : vector<16x16xf32>
    %cst_74 = arith.constant 1.000000e+00 : f32
    %190 = vector.broadcast %cst_74 : f32 to vector<16x16xf32>
    %191 = arith.addf %190, %189 : vector<16x16xf32>
    %192 = arith.divf %190, %191 : vector<16x16xf32>
    %193 = vector.extract_strided_slice %172 {offsets = [0, 32], sizes = [16, 16], strides = [1, 1]} : vector<16x48xf32> to vector<16x16xf32>
    %194 = vector.extract_strided_slice %176 {offsets = [0, 32], sizes = [16, 16], strides = [1, 1]} : vector<16x48xf32> to vector<16x16xf32>
    %195 = arith.mulf %184, %194 : vector<16x16xf32>
    %196 = arith.addf %193, %195 : vector<16x16xf32>
    %197 = math.tanh %196 : vector<16x16xf32>
    %cst_75 = arith.constant 1.000000e+00 : f32
    %198 = vector.broadcast %cst_75 : f32 to vector<16x16xf32>
    %199 = arith.subf %198, %192 : vector<16x16xf32>
    %200 = arith.mulf %199, %197 : vector<16x16xf32>
    %201 = arith.mulf %192, %171 : vector<16x16xf32>
    %202 = arith.addf %200, %201 : vector<16x16xf32>
    %203 = vector.extract_strided_slice %170 {offsets = [16, 0], sizes = [16, 48], strides = [1, 1]} : vector<80x48xf32> to vector<16x48xf32>
    %cst_76 = arith.constant dense<0.000000e+00> : vector<16x48xf32>
    %204 = tpu.matmul %202, %166, %cst_76 {dimension_numbers = #tpu.dot_dimension_numbers<[1], [0], [0], [1], [0, 0, 1, 1], [], []>} : vector<16x16xf32>, vector<16x48xf32>, vector<16x48xf32> -> vector<16x48xf32>
    %c0_77 = arith.constant 0 : index
    %c0_78 = arith.constant 0 : index
    %205 = vector.load %arg17[%c0_77, %c0_78] : memref<1x48xf32, #tpu.memory_space<vmem>>, vector<1x48xf32>
    %206 = vector.broadcast %205 : vector<1x48xf32> to vector<16x48xf32>
    %207 = arith.addf %204, %206 : vector<16x48xf32>
    %208 = vector.extract_strided_slice %203 {offsets = [0, 0], sizes = [16, 16], strides = [1, 1]} : vector<16x48xf32> to vector<16x16xf32>
    %209 = vector.extract_strided_slice %207 {offsets = [0, 0], sizes = [16, 16], strides = [1, 1]} : vector<16x48xf32> to vector<16x16xf32>
    %210 = arith.addf %208, %209 : vector<16x16xf32>
    %211 = arith.negf %210 : vector<16x16xf32>
    %212 = math.exp %211 : vector<16x16xf32>
    %cst_79 = arith.constant 1.000000e+00 : f32
    %213 = vector.broadcast %cst_79 : f32 to vector<16x16xf32>
    %214 = arith.addf %213, %212 : vector<16x16xf32>
    %215 = arith.divf %213, %214 : vector<16x16xf32>
    %216 = vector.extract_strided_slice %203 {offsets = [0, 16], sizes = [16, 16], strides = [1, 1]} : vector<16x48xf32> to vector<16x16xf32>
    %217 = vector.extract_strided_slice %207 {offsets = [0, 16], sizes = [16, 16], strides = [1, 1]} : vector<16x48xf32> to vector<16x16xf32>
    %218 = arith.addf %216, %217 : vector<16x16xf32>
    %219 = arith.negf %218 : vector<16x16xf32>
    %220 = math.exp %219 : vector<16x16xf32>
    %cst_80 = arith.constant 1.000000e+00 : f32
    %221 = vector.broadcast %cst_80 : f32 to vector<16x16xf32>
    %222 = arith.addf %221, %220 : vector<16x16xf32>
    %223 = arith.divf %221, %222 : vector<16x16xf32>
    %224 = vector.extract_strided_slice %203 {offsets = [0, 32], sizes = [16, 16], strides = [1, 1]} : vector<16x48xf32> to vector<16x16xf32>
    %225 = vector.extract_strided_slice %207 {offsets = [0, 32], sizes = [16, 16], strides = [1, 1]} : vector<16x48xf32> to vector<16x16xf32>
    %226 = arith.mulf %215, %225 : vector<16x16xf32>
    %227 = arith.addf %224, %226 : vector<16x16xf32>
    %228 = math.tanh %227 : vector<16x16xf32>
    %cst_81 = arith.constant 1.000000e+00 : f32
    %229 = vector.broadcast %cst_81 : f32 to vector<16x16xf32>
    %230 = arith.subf %229, %223 : vector<16x16xf32>
    %231 = arith.mulf %230, %228 : vector<16x16xf32>
    %232 = arith.mulf %223, %202 : vector<16x16xf32>
    %233 = arith.addf %231, %232 : vector<16x16xf32>
    %234 = vector.extract_strided_slice %170 {offsets = [32, 0], sizes = [16, 48], strides = [1, 1]} : vector<80x48xf32> to vector<16x48xf32>
    %cst_82 = arith.constant dense<0.000000e+00> : vector<16x48xf32>
    %235 = tpu.matmul %233, %166, %cst_82 {dimension_numbers = #tpu.dot_dimension_numbers<[1], [0], [0], [1], [0, 0, 1, 1], [], []>} : vector<16x16xf32>, vector<16x48xf32>, vector<16x48xf32> -> vector<16x48xf32>
    %c0_83 = arith.constant 0 : index
    %c0_84 = arith.constant 0 : index
    %236 = vector.load %arg17[%c0_83, %c0_84] : memref<1x48xf32, #tpu.memory_space<vmem>>, vector<1x48xf32>
    %237 = vector.broadcast %236 : vector<1x48xf32> to vector<16x48xf32>
    %238 = arith.addf %235, %237 : vector<16x48xf32>
    %239 = vector.extract_strided_slice %234 {offsets = [0, 0], sizes = [16, 16], strides = [1, 1]} : vector<16x48xf32> to vector<16x16xf32>
    %240 = vector.extract_strided_slice %238 {offsets = [0, 0], sizes = [16, 16], strides = [1, 1]} : vector<16x48xf32> to vector<16x16xf32>
    %241 = arith.addf %239, %240 : vector<16x16xf32>
    %242 = arith.negf %241 : vector<16x16xf32>
    %243 = math.exp %242 : vector<16x16xf32>
    %cst_85 = arith.constant 1.000000e+00 : f32
    %244 = vector.broadcast %cst_85 : f32 to vector<16x16xf32>
    %245 = arith.addf %244, %243 : vector<16x16xf32>
    %246 = arith.divf %244, %245 : vector<16x16xf32>
    %247 = vector.extract_strided_slice %234 {offsets = [0, 16], sizes = [16, 16], strides = [1, 1]} : vector<16x48xf32> to vector<16x16xf32>
    %248 = vector.extract_strided_slice %238 {offsets = [0, 16], sizes = [16, 16], strides = [1, 1]} : vector<16x48xf32> to vector<16x16xf32>
    %249 = arith.addf %247, %248 : vector<16x16xf32>
    %250 = arith.negf %249 : vector<16x16xf32>
    %251 = math.exp %250 : vector<16x16xf32>
    %cst_86 = arith.constant 1.000000e+00 : f32
    %252 = vector.broadcast %cst_86 : f32 to vector<16x16xf32>
    %253 = arith.addf %252, %251 : vector<16x16xf32>
    %254 = arith.divf %252, %253 : vector<16x16xf32>
    %255 = vector.extract_strided_slice %234 {offsets = [0, 32], sizes = [16, 16], strides = [1, 1]} : vector<16x48xf32> to vector<16x16xf32>
    %256 = vector.extract_strided_slice %238 {offsets = [0, 32], sizes = [16, 16], strides = [1, 1]} : vector<16x48xf32> to vector<16x16xf32>
    %257 = arith.mulf %246, %256 : vector<16x16xf32>
    %258 = arith.addf %255, %257 : vector<16x16xf32>
    %259 = math.tanh %258 : vector<16x16xf32>
    %cst_87 = arith.constant 1.000000e+00 : f32
    %260 = vector.broadcast %cst_87 : f32 to vector<16x16xf32>
    %261 = arith.subf %260, %254 : vector<16x16xf32>
    %262 = arith.mulf %261, %259 : vector<16x16xf32>
    %263 = arith.mulf %254, %233 : vector<16x16xf32>
    %264 = arith.addf %262, %263 : vector<16x16xf32>
    %265 = vector.extract_strided_slice %170 {offsets = [48, 0], sizes = [16, 48], strides = [1, 1]} : vector<80x48xf32> to vector<16x48xf32>
    %cst_88 = arith.constant dense<0.000000e+00> : vector<16x48xf32>
    %266 = tpu.matmul %264, %166, %cst_88 {dimension_numbers = #tpu.dot_dimension_numbers<[1], [0], [0], [1], [0, 0, 1, 1], [], []>} : vector<16x16xf32>, vector<16x48xf32>, vector<16x48xf32> -> vector<16x48xf32>
    %c0_89 = arith.constant 0 : index
    %c0_90 = arith.constant 0 : index
    %267 = vector.load %arg17[%c0_89, %c0_90] : memref<1x48xf32, #tpu.memory_space<vmem>>, vector<1x48xf32>
    %268 = vector.broadcast %267 : vector<1x48xf32> to vector<16x48xf32>
    %269 = arith.addf %266, %268 : vector<16x48xf32>
    %270 = vector.extract_strided_slice %265 {offsets = [0, 0], sizes = [16, 16], strides = [1, 1]} : vector<16x48xf32> to vector<16x16xf32>
    %271 = vector.extract_strided_slice %269 {offsets = [0, 0], sizes = [16, 16], strides = [1, 1]} : vector<16x48xf32> to vector<16x16xf32>
    %272 = arith.addf %270, %271 : vector<16x16xf32>
    %273 = arith.negf %272 : vector<16x16xf32>
    %274 = math.exp %273 : vector<16x16xf32>
    %cst_91 = arith.constant 1.000000e+00 : f32
    %275 = vector.broadcast %cst_91 : f32 to vector<16x16xf32>
    %276 = arith.addf %275, %274 : vector<16x16xf32>
    %277 = arith.divf %275, %276 : vector<16x16xf32>
    %278 = vector.extract_strided_slice %265 {offsets = [0, 16], sizes = [16, 16], strides = [1, 1]} : vector<16x48xf32> to vector<16x16xf32>
    %279 = vector.extract_strided_slice %269 {offsets = [0, 16], sizes = [16, 16], strides = [1, 1]} : vector<16x48xf32> to vector<16x16xf32>
    %280 = arith.addf %278, %279 : vector<16x16xf32>
    %281 = arith.negf %280 : vector<16x16xf32>
    %282 = math.exp %281 : vector<16x16xf32>
    %cst_92 = arith.constant 1.000000e+00 : f32
    %283 = vector.broadcast %cst_92 : f32 to vector<16x16xf32>
    %284 = arith.addf %283, %282 : vector<16x16xf32>
    %285 = arith.divf %283, %284 : vector<16x16xf32>
    %286 = vector.extract_strided_slice %265 {offsets = [0, 32], sizes = [16, 16], strides = [1, 1]} : vector<16x48xf32> to vector<16x16xf32>
    %287 = vector.extract_strided_slice %269 {offsets = [0, 32], sizes = [16, 16], strides = [1, 1]} : vector<16x48xf32> to vector<16x16xf32>
    %288 = arith.mulf %277, %287 : vector<16x16xf32>
    %289 = arith.addf %286, %288 : vector<16x16xf32>
    %290 = math.tanh %289 : vector<16x16xf32>
    %cst_93 = arith.constant 1.000000e+00 : f32
    %291 = vector.broadcast %cst_93 : f32 to vector<16x16xf32>
    %292 = arith.subf %291, %285 : vector<16x16xf32>
    %293 = arith.mulf %292, %290 : vector<16x16xf32>
    %294 = arith.mulf %285, %264 : vector<16x16xf32>
    %295 = arith.addf %293, %294 : vector<16x16xf32>
    %296 = vector.extract_strided_slice %170 {offsets = [64, 0], sizes = [16, 48], strides = [1, 1]} : vector<80x48xf32> to vector<16x48xf32>
    %cst_94 = arith.constant dense<0.000000e+00> : vector<16x48xf32>
    %297 = tpu.matmul %295, %166, %cst_94 {dimension_numbers = #tpu.dot_dimension_numbers<[1], [0], [0], [1], [0, 0, 1, 1], [], []>} : vector<16x16xf32>, vector<16x48xf32>, vector<16x48xf32> -> vector<16x48xf32>
    %c0_95 = arith.constant 0 : index
    %c0_96 = arith.constant 0 : index
    %298 = vector.load %arg17[%c0_95, %c0_96] : memref<1x48xf32, #tpu.memory_space<vmem>>, vector<1x48xf32>
    %299 = vector.broadcast %298 : vector<1x48xf32> to vector<16x48xf32>
    %300 = arith.addf %297, %299 : vector<16x48xf32>
    %301 = vector.extract_strided_slice %296 {offsets = [0, 0], sizes = [16, 16], strides = [1, 1]} : vector<16x48xf32> to vector<16x16xf32>
    %302 = vector.extract_strided_slice %300 {offsets = [0, 0], sizes = [16, 16], strides = [1, 1]} : vector<16x48xf32> to vector<16x16xf32>
    %303 = arith.addf %301, %302 : vector<16x16xf32>
    %304 = arith.negf %303 : vector<16x16xf32>
    %305 = math.exp %304 : vector<16x16xf32>
    %cst_97 = arith.constant 1.000000e+00 : f32
    %306 = vector.broadcast %cst_97 : f32 to vector<16x16xf32>
    %307 = arith.addf %306, %305 : vector<16x16xf32>
    %308 = arith.divf %306, %307 : vector<16x16xf32>
    %309 = vector.extract_strided_slice %296 {offsets = [0, 16], sizes = [16, 16], strides = [1, 1]} : vector<16x48xf32> to vector<16x16xf32>
    %310 = vector.extract_strided_slice %300 {offsets = [0, 16], sizes = [16, 16], strides = [1, 1]} : vector<16x48xf32> to vector<16x16xf32>
    %311 = arith.addf %309, %310 : vector<16x16xf32>
    %312 = arith.negf %311 : vector<16x16xf32>
    %313 = math.exp %312 : vector<16x16xf32>
    %cst_98 = arith.constant 1.000000e+00 : f32
    %314 = vector.broadcast %cst_98 : f32 to vector<16x16xf32>
    %315 = arith.addf %314, %313 : vector<16x16xf32>
    %316 = arith.divf %314, %315 : vector<16x16xf32>
    %317 = vector.extract_strided_slice %296 {offsets = [0, 32], sizes = [16, 16], strides = [1, 1]} : vector<16x48xf32> to vector<16x16xf32>
    %318 = vector.extract_strided_slice %300 {offsets = [0, 32], sizes = [16, 16], strides = [1, 1]} : vector<16x48xf32> to vector<16x16xf32>
    %319 = arith.mulf %308, %318 : vector<16x16xf32>
    %320 = arith.addf %317, %319 : vector<16x16xf32>
    %321 = math.tanh %320 : vector<16x16xf32>
    %cst_99 = arith.constant 1.000000e+00 : f32
    %322 = vector.broadcast %cst_99 : f32 to vector<16x16xf32>
    %323 = arith.subf %322, %316 : vector<16x16xf32>
    %324 = arith.mulf %323, %321 : vector<16x16xf32>
    %325 = arith.mulf %316, %295 : vector<16x16xf32>
    %326 = arith.addf %324, %325 : vector<16x16xf32>
    %327 = tpu.concatenate %202, %233, %264, %295, %326 in 0 : vector<16x16xf32>, vector<16x16xf32>, vector<16x16xf32>, vector<16x16xf32>, vector<16x16xf32> -> vector<80x16xf32>
    %c0_100 = arith.constant 0 : index
    %c0_101 = arith.constant 0 : index
    %328 = vector.load %arg18[%c0_100, %c0_101] : memref<16x48xbf16, #tpu.memory_space<vmem>>, vector<16x48xbf16>
    %329 = arith.extf %328 : vector<16x48xbf16> to vector<16x48xf32>
    %c0_102 = arith.constant 0 : index
    %c0_103 = arith.constant 0 : index
    %330 = vector.load %arg19[%c0_102, %c0_103] : memref<16x48xbf16, #tpu.memory_space<vmem>>, vector<16x48xbf16>
    %331 = arith.extf %330 : vector<16x48xbf16> to vector<16x48xf32>
    %cst_104 = arith.constant dense<0.000000e+00> : vector<80x48xf32>
    %332 = tpu.matmul %327, %329, %cst_104 {dimension_numbers = #tpu.dot_dimension_numbers<[1], [0], [0], [1], [0, 0, 1, 1], [], []>} : vector<80x16xf32>, vector<16x48xf32>, vector<80x48xf32> -> vector<80x48xf32>
    %c0_105 = arith.constant 0 : index
    %c0_106 = arith.constant 0 : index
    %333 = vector.load %arg20[%c0_105, %c0_106] : memref<1x48xf32, #tpu.memory_space<vmem>>, vector<1x48xf32>
    %334 = vector.broadcast %333 : vector<1x48xf32> to vector<80x48xf32>
    %335 = arith.addf %332, %334 : vector<80x48xf32>
    %cst_107 = arith.constant 0.000000e+00 : f32
    %336 = vector.broadcast %cst_107 : f32 to vector<16x16xf32>
    %337 = vector.extract_strided_slice %335 {offsets = [0, 0], sizes = [16, 48], strides = [1, 1]} : vector<80x48xf32> to vector<16x48xf32>
    %cst_108 = arith.constant dense<0.000000e+00> : vector<16x48xf32>
    %338 = tpu.matmul %336, %331, %cst_108 {dimension_numbers = #tpu.dot_dimension_numbers<[1], [0], [0], [1], [0, 0, 1, 1], [], []>} : vector<16x16xf32>, vector<16x48xf32>, vector<16x48xf32> -> vector<16x48xf32>
    %c0_109 = arith.constant 0 : index
    %c0_110 = arith.constant 0 : index
    %339 = vector.load %arg21[%c0_109, %c0_110] : memref<1x48xf32, #tpu.memory_space<vmem>>, vector<1x48xf32>
    %340 = vector.broadcast %339 : vector<1x48xf32> to vector<16x48xf32>
    %341 = arith.addf %338, %340 : vector<16x48xf32>
    %342 = vector.extract_strided_slice %337 {offsets = [0, 0], sizes = [16, 16], strides = [1, 1]} : vector<16x48xf32> to vector<16x16xf32>
    %343 = vector.extract_strided_slice %341 {offsets = [0, 0], sizes = [16, 16], strides = [1, 1]} : vector<16x48xf32> to vector<16x16xf32>
    %344 = arith.addf %342, %343 : vector<16x16xf32>
    %345 = arith.negf %344 : vector<16x16xf32>
    %346 = math.exp %345 : vector<16x16xf32>
    %cst_111 = arith.constant 1.000000e+00 : f32
    %347 = vector.broadcast %cst_111 : f32 to vector<16x16xf32>
    %348 = arith.addf %347, %346 : vector<16x16xf32>
    %349 = arith.divf %347, %348 : vector<16x16xf32>
    %350 = vector.extract_strided_slice %337 {offsets = [0, 16], sizes = [16, 16], strides = [1, 1]} : vector<16x48xf32> to vector<16x16xf32>
    %351 = vector.extract_strided_slice %341 {offsets = [0, 16], sizes = [16, 16], strides = [1, 1]} : vector<16x48xf32> to vector<16x16xf32>
    %352 = arith.addf %350, %351 : vector<16x16xf32>
    %353 = arith.negf %352 : vector<16x16xf32>
    %354 = math.exp %353 : vector<16x16xf32>
    %cst_112 = arith.constant 1.000000e+00 : f32
    %355 = vector.broadcast %cst_112 : f32 to vector<16x16xf32>
    %356 = arith.addf %355, %354 : vector<16x16xf32>
    %357 = arith.divf %355, %356 : vector<16x16xf32>
    %358 = vector.extract_strided_slice %337 {offsets = [0, 32], sizes = [16, 16], strides = [1, 1]} : vector<16x48xf32> to vector<16x16xf32>
    %359 = vector.extract_strided_slice %341 {offsets = [0, 32], sizes = [16, 16], strides = [1, 1]} : vector<16x48xf32> to vector<16x16xf32>
    %360 = arith.mulf %349, %359 : vector<16x16xf32>
    %361 = arith.addf %358, %360 : vector<16x16xf32>
    %362 = math.tanh %361 : vector<16x16xf32>
    %cst_113 = arith.constant 1.000000e+00 : f32
    %363 = vector.broadcast %cst_113 : f32 to vector<16x16xf32>
    %364 = arith.subf %363, %357 : vector<16x16xf32>
    %365 = arith.mulf %364, %362 : vector<16x16xf32>
    %366 = arith.mulf %357, %336 : vector<16x16xf32>
    %367 = arith.addf %365, %366 : vector<16x16xf32>
    %368 = vector.extract_strided_slice %335 {offsets = [16, 0], sizes = [16, 48], strides = [1, 1]} : vector<80x48xf32> to vector<16x48xf32>
    %cst_114 = arith.constant dense<0.000000e+00> : vector<16x48xf32>
    %369 = tpu.matmul %367, %331, %cst_114 {dimension_numbers = #tpu.dot_dimension_numbers<[1], [0], [0], [1], [0, 0, 1, 1], [], []>} : vector<16x16xf32>, vector<16x48xf32>, vector<16x48xf32> -> vector<16x48xf32>
    %c0_115 = arith.constant 0 : index
    %c0_116 = arith.constant 0 : index
    %370 = vector.load %arg21[%c0_115, %c0_116] : memref<1x48xf32, #tpu.memory_space<vmem>>, vector<1x48xf32>
    %371 = vector.broadcast %370 : vector<1x48xf32> to vector<16x48xf32>
    %372 = arith.addf %369, %371 : vector<16x48xf32>
    %373 = vector.extract_strided_slice %368 {offsets = [0, 0], sizes = [16, 16], strides = [1, 1]} : vector<16x48xf32> to vector<16x16xf32>
    %374 = vector.extract_strided_slice %372 {offsets = [0, 0], sizes = [16, 16], strides = [1, 1]} : vector<16x48xf32> to vector<16x16xf32>
    %375 = arith.addf %373, %374 : vector<16x16xf32>
    %376 = arith.negf %375 : vector<16x16xf32>
    %377 = math.exp %376 : vector<16x16xf32>
    %cst_117 = arith.constant 1.000000e+00 : f32
    %378 = vector.broadcast %cst_117 : f32 to vector<16x16xf32>
    %379 = arith.addf %378, %377 : vector<16x16xf32>
    %380 = arith.divf %378, %379 : vector<16x16xf32>
    %381 = vector.extract_strided_slice %368 {offsets = [0, 16], sizes = [16, 16], strides = [1, 1]} : vector<16x48xf32> to vector<16x16xf32>
    %382 = vector.extract_strided_slice %372 {offsets = [0, 16], sizes = [16, 16], strides = [1, 1]} : vector<16x48xf32> to vector<16x16xf32>
    %383 = arith.addf %381, %382 : vector<16x16xf32>
    %384 = arith.negf %383 : vector<16x16xf32>
    %385 = math.exp %384 : vector<16x16xf32>
    %cst_118 = arith.constant 1.000000e+00 : f32
    %386 = vector.broadcast %cst_118 : f32 to vector<16x16xf32>
    %387 = arith.addf %386, %385 : vector<16x16xf32>
    %388 = arith.divf %386, %387 : vector<16x16xf32>
    %389 = vector.extract_strided_slice %368 {offsets = [0, 32], sizes = [16, 16], strides = [1, 1]} : vector<16x48xf32> to vector<16x16xf32>
    %390 = vector.extract_strided_slice %372 {offsets = [0, 32], sizes = [16, 16], strides = [1, 1]} : vector<16x48xf32> to vector<16x16xf32>
    %391 = arith.mulf %380, %390 : vector<16x16xf32>
    %392 = arith.addf %389, %391 : vector<16x16xf32>
    %393 = math.tanh %392 : vector<16x16xf32>
    %cst_119 = arith.constant 1.000000e+00 : f32
    %394 = vector.broadcast %cst_119 : f32 to vector<16x16xf32>
    %395 = arith.subf %394, %388 : vector<16x16xf32>
    %396 = arith.mulf %395, %393 : vector<16x16xf32>
    %397 = arith.mulf %388, %367 : vector<16x16xf32>
    %398 = arith.addf %396, %397 : vector<16x16xf32>
    %399 = vector.extract_strided_slice %335 {offsets = [32, 0], sizes = [16, 48], strides = [1, 1]} : vector<80x48xf32> to vector<16x48xf32>
    %cst_120 = arith.constant dense<0.000000e+00> : vector<16x48xf32>
    %400 = tpu.matmul %398, %331, %cst_120 {dimension_numbers = #tpu.dot_dimension_numbers<[1], [0], [0], [1], [0, 0, 1, 1], [], []>} : vector<16x16xf32>, vector<16x48xf32>, vector<16x48xf32> -> vector<16x48xf32>
    %c0_121 = arith.constant 0 : index
    %c0_122 = arith.constant 0 : index
    %401 = vector.load %arg21[%c0_121, %c0_122] : memref<1x48xf32, #tpu.memory_space<vmem>>, vector<1x48xf32>
    %402 = vector.broadcast %401 : vector<1x48xf32> to vector<16x48xf32>
    %403 = arith.addf %400, %402 : vector<16x48xf32>
    %404 = vector.extract_strided_slice %399 {offsets = [0, 0], sizes = [16, 16], strides = [1, 1]} : vector<16x48xf32> to vector<16x16xf32>
    %405 = vector.extract_strided_slice %403 {offsets = [0, 0], sizes = [16, 16], strides = [1, 1]} : vector<16x48xf32> to vector<16x16xf32>
    %406 = arith.addf %404, %405 : vector<16x16xf32>
    %407 = arith.negf %406 : vector<16x16xf32>
    %408 = math.exp %407 : vector<16x16xf32>
    %cst_123 = arith.constant 1.000000e+00 : f32
    %409 = vector.broadcast %cst_123 : f32 to vector<16x16xf32>
    %410 = arith.addf %409, %408 : vector<16x16xf32>
    %411 = arith.divf %409, %410 : vector<16x16xf32>
    %412 = vector.extract_strided_slice %399 {offsets = [0, 16], sizes = [16, 16], strides = [1, 1]} : vector<16x48xf32> to vector<16x16xf32>
    %413 = vector.extract_strided_slice %403 {offsets = [0, 16], sizes = [16, 16], strides = [1, 1]} : vector<16x48xf32> to vector<16x16xf32>
    %414 = arith.addf %412, %413 : vector<16x16xf32>
    %415 = arith.negf %414 : vector<16x16xf32>
    %416 = math.exp %415 : vector<16x16xf32>
    %cst_124 = arith.constant 1.000000e+00 : f32
    %417 = vector.broadcast %cst_124 : f32 to vector<16x16xf32>
    %418 = arith.addf %417, %416 : vector<16x16xf32>
    %419 = arith.divf %417, %418 : vector<16x16xf32>
    %420 = vector.extract_strided_slice %399 {offsets = [0, 32], sizes = [16, 16], strides = [1, 1]} : vector<16x48xf32> to vector<16x16xf32>
    %421 = vector.extract_strided_slice %403 {offsets = [0, 32], sizes = [16, 16], strides = [1, 1]} : vector<16x48xf32> to vector<16x16xf32>
    %422 = arith.mulf %411, %421 : vector<16x16xf32>
    %423 = arith.addf %420, %422 : vector<16x16xf32>
    %424 = math.tanh %423 : vector<16x16xf32>
    %cst_125 = arith.constant 1.000000e+00 : f32
    %425 = vector.broadcast %cst_125 : f32 to vector<16x16xf32>
    %426 = arith.subf %425, %419 : vector<16x16xf32>
    %427 = arith.mulf %426, %424 : vector<16x16xf32>
    %428 = arith.mulf %419, %398 : vector<16x16xf32>
    %429 = arith.addf %427, %428 : vector<16x16xf32>
    %430 = vector.extract_strided_slice %335 {offsets = [48, 0], sizes = [16, 48], strides = [1, 1]} : vector<80x48xf32> to vector<16x48xf32>
    %cst_126 = arith.constant dense<0.000000e+00> : vector<16x48xf32>
    %431 = tpu.matmul %429, %331, %cst_126 {dimension_numbers = #tpu.dot_dimension_numbers<[1], [0], [0], [1], [0, 0, 1, 1], [], []>} : vector<16x16xf32>, vector<16x48xf32>, vector<16x48xf32> -> vector<16x48xf32>
    %c0_127 = arith.constant 0 : index
    %c0_128 = arith.constant 0 : index
    %432 = vector.load %arg21[%c0_127, %c0_128] : memref<1x48xf32, #tpu.memory_space<vmem>>, vector<1x48xf32>
    %433 = vector.broadcast %432 : vector<1x48xf32> to vector<16x48xf32>
    %434 = arith.addf %431, %433 : vector<16x48xf32>
    %435 = vector.extract_strided_slice %430 {offsets = [0, 0], sizes = [16, 16], strides = [1, 1]} : vector<16x48xf32> to vector<16x16xf32>
    %436 = vector.extract_strided_slice %434 {offsets = [0, 0], sizes = [16, 16], strides = [1, 1]} : vector<16x48xf32> to vector<16x16xf32>
    %437 = arith.addf %435, %436 : vector<16x16xf32>
    %438 = arith.negf %437 : vector<16x16xf32>
    %439 = math.exp %438 : vector<16x16xf32>
    %cst_129 = arith.constant 1.000000e+00 : f32
    %440 = vector.broadcast %cst_129 : f32 to vector<16x16xf32>
    %441 = arith.addf %440, %439 : vector<16x16xf32>
    %442 = arith.divf %440, %441 : vector<16x16xf32>
    %443 = vector.extract_strided_slice %430 {offsets = [0, 16], sizes = [16, 16], strides = [1, 1]} : vector<16x48xf32> to vector<16x16xf32>
    %444 = vector.extract_strided_slice %434 {offsets = [0, 16], sizes = [16, 16], strides = [1, 1]} : vector<16x48xf32> to vector<16x16xf32>
    %445 = arith.addf %443, %444 : vector<16x16xf32>
    %446 = arith.negf %445 : vector<16x16xf32>
    %447 = math.exp %446 : vector<16x16xf32>
    %cst_130 = arith.constant 1.000000e+00 : f32
    %448 = vector.broadcast %cst_130 : f32 to vector<16x16xf32>
    %449 = arith.addf %448, %447 : vector<16x16xf32>
    %450 = arith.divf %448, %449 : vector<16x16xf32>
    %451 = vector.extract_strided_slice %430 {offsets = [0, 32], sizes = [16, 16], strides = [1, 1]} : vector<16x48xf32> to vector<16x16xf32>
    %452 = vector.extract_strided_slice %434 {offsets = [0, 32], sizes = [16, 16], strides = [1, 1]} : vector<16x48xf32> to vector<16x16xf32>
    %453 = arith.mulf %442, %452 : vector<16x16xf32>
    %454 = arith.addf %451, %453 : vector<16x16xf32>
    %455 = math.tanh %454 : vector<16x16xf32>
    %cst_131 = arith.constant 1.000000e+00 : f32
    %456 = vector.broadcast %cst_131 : f32 to vector<16x16xf32>
    %457 = arith.subf %456, %450 : vector<16x16xf32>
    %458 = arith.mulf %457, %455 : vector<16x16xf32>
    %459 = arith.mulf %450, %429 : vector<16x16xf32>
    %460 = arith.addf %458, %459 : vector<16x16xf32>
    %461 = vector.extract_strided_slice %335 {offsets = [64, 0], sizes = [16, 48], strides = [1, 1]} : vector<80x48xf32> to vector<16x48xf32>
    %cst_132 = arith.constant dense<0.000000e+00> : vector<16x48xf32>
    %462 = tpu.matmul %460, %331, %cst_132 {dimension_numbers = #tpu.dot_dimension_numbers<[1], [0], [0], [1], [0, 0, 1, 1], [], []>} : vector<16x16xf32>, vector<16x48xf32>, vector<16x48xf32> -> vector<16x48xf32>
    %c0_133 = arith.constant 0 : index
    %c0_134 = arith.constant 0 : index
    %463 = vector.load %arg21[%c0_133, %c0_134] : memref<1x48xf32, #tpu.memory_space<vmem>>, vector<1x48xf32>
    %464 = vector.broadcast %463 : vector<1x48xf32> to vector<16x48xf32>
    %465 = arith.addf %462, %464 : vector<16x48xf32>
    %466 = vector.extract_strided_slice %461 {offsets = [0, 0], sizes = [16, 16], strides = [1, 1]} : vector<16x48xf32> to vector<16x16xf32>
    %467 = vector.extract_strided_slice %465 {offsets = [0, 0], sizes = [16, 16], strides = [1, 1]} : vector<16x48xf32> to vector<16x16xf32>
    %468 = arith.addf %466, %467 : vector<16x16xf32>
    %469 = arith.negf %468 : vector<16x16xf32>
    %470 = math.exp %469 : vector<16x16xf32>
    %cst_135 = arith.constant 1.000000e+00 : f32
    %471 = vector.broadcast %cst_135 : f32 to vector<16x16xf32>
    %472 = arith.addf %471, %470 : vector<16x16xf32>
    %473 = arith.divf %471, %472 : vector<16x16xf32>
    %474 = vector.extract_strided_slice %461 {offsets = [0, 16], sizes = [16, 16], strides = [1, 1]} : vector<16x48xf32> to vector<16x16xf32>
    %475 = vector.extract_strided_slice %465 {offsets = [0, 16], sizes = [16, 16], strides = [1, 1]} : vector<16x48xf32> to vector<16x16xf32>
    %476 = arith.addf %474, %475 : vector<16x16xf32>
    %477 = arith.negf %476 : vector<16x16xf32>
    %478 = math.exp %477 : vector<16x16xf32>
    %cst_136 = arith.constant 1.000000e+00 : f32
    %479 = vector.broadcast %cst_136 : f32 to vector<16x16xf32>
    %480 = arith.addf %479, %478 : vector<16x16xf32>
    %481 = arith.divf %479, %480 : vector<16x16xf32>
    %482 = vector.extract_strided_slice %461 {offsets = [0, 32], sizes = [16, 16], strides = [1, 1]} : vector<16x48xf32> to vector<16x16xf32>
    %483 = vector.extract_strided_slice %465 {offsets = [0, 32], sizes = [16, 16], strides = [1, 1]} : vector<16x48xf32> to vector<16x16xf32>
    %484 = arith.mulf %473, %483 : vector<16x16xf32>
    %485 = arith.addf %482, %484 : vector<16x16xf32>
    %486 = math.tanh %485 : vector<16x16xf32>
    %cst_137 = arith.constant 1.000000e+00 : f32
    %487 = vector.broadcast %cst_137 : f32 to vector<16x16xf32>
    %488 = arith.subf %487, %481 : vector<16x16xf32>
    %489 = arith.mulf %488, %486 : vector<16x16xf32>
    %490 = arith.mulf %481, %460 : vector<16x16xf32>
    %491 = arith.addf %489, %490 : vector<16x16xf32>
    %492 = tpu.concatenate %367, %398, %429, %460, %491 in 0 : vector<16x16xf32>, vector<16x16xf32>, vector<16x16xf32>, vector<16x16xf32>, vector<16x16xf32> -> vector<80x16xf32>
    %c0_138 = arith.constant 0 : index
    %c0_139 = arith.constant 0 : index
    %493 = vector.load %arg22[%c0_138, %c0_139] : memref<1x16xf32, #tpu.memory_space<vmem>>, vector<1x16xf32>
    %c0_140 = arith.constant 0 : index
    %c0_141 = arith.constant 0 : index
    %494 = vector.load %arg23[%c0_140, %c0_141] : memref<1x16xf32, #tpu.memory_space<vmem>>, vector<1x16xf32>
    %cst_142 = arith.constant dense<0.000000e+00> : vector<80xf32>
    %495 = vector.multi_reduction <add>, %492, %cst_142 [1] : vector<80x16xf32> to vector<80xf32>
    %496 = vector.shape_cast %495 : vector<80xf32> to vector<80x1xf32>
    %cst_143 = arith.constant 1.600000e+01 : f32
    %497 = vector.broadcast %cst_143 : f32 to vector<80x1xf32>
    %498 = arith.divf %496, %497 : vector<80x1xf32>
    %499 = vector.broadcast %498 : vector<80x1xf32> to vector<80x16xf32>
    %500 = arith.subf %492, %499 : vector<80x16xf32>
    %501 = arith.mulf %500, %500 : vector<80x16xf32>
    %cst_144 = arith.constant dense<0.000000e+00> : vector<80xf32>
    %502 = vector.multi_reduction <add>, %501, %cst_144 [1] : vector<80x16xf32> to vector<80xf32>
    %503 = vector.shape_cast %502 : vector<80xf32> to vector<80x1xf32>
    %cst_145 = arith.constant 1.600000e+01 : f32
    %504 = vector.broadcast %cst_145 : f32 to vector<80x1xf32>
    %505 = arith.divf %503, %504 : vector<80x1xf32>
    %506 = vector.broadcast %498 : vector<80x1xf32> to vector<80x16xf32>
    %507 = arith.subf %492, %506 : vector<80x16xf32>
    %cst_146 = arith.constant 9.99999974E-6 : f32
    %508 = vector.broadcast %cst_146 : f32 to vector<80x1xf32>
    %509 = arith.addf %505, %508 : vector<80x1xf32>
    %510 = math.rsqrt %509 : vector<80x1xf32>
    %511 = vector.broadcast %510 : vector<80x1xf32> to vector<80x16xf32>
    %512 = arith.mulf %507, %511 : vector<80x16xf32>
    %513 = vector.broadcast %493 : vector<1x16xf32> to vector<80x16xf32>
    %514 = arith.mulf %512, %513 : vector<80x16xf32>
    %515 = vector.broadcast %494 : vector<1x16xf32> to vector<80x16xf32>
    %516 = arith.addf %514, %515 : vector<80x16xf32>
    %c0_147 = arith.constant 0 : index
    %c0_148 = arith.constant 0 : index
    %517 = vector.load %arg25[%c0_147, %c0_148] : memref<16x128xf32, #tpu.memory_space<vmem>>, vector<16x128xf32>
    %cst_149 = arith.constant dense<0.000000e+00> : vector<80x128xf32>
    %518 = tpu.matmul %516, %517, %cst_149 {dimension_numbers = #tpu.dot_dimension_numbers<[1], [0], [0], [1], [0, 0, 1, 1], [], []>} : vector<80x16xf32>, vector<16x128xf32>, vector<80x128xf32> -> vector<80x128xf32>
    %519 = vector.shape_cast %518 : vector<80x128xf32> to vector<5x16x128xf32>
    %c0_150 = arith.constant 0 : index
    %c0_151 = arith.constant 0 : index
    %c0_152 = arith.constant 0 : index
    %520 = vector.load %arg26[%c0_150, %c0_151, %c0_152] : memref<5x16x128xf32, #tpu.memory_space<vmem>>, vector<5x16x128xf32>
    tpu.vector_store %arg26[%c0_150, %c0_151, %c0_152], %519 {strides = array<i32>} : memref<5x16x128xf32, #tpu.memory_space<vmem>>, vector<5x16x128xf32>,
    return
  }
  func.func @transform_0(%arg0: i32) -> (i32, i32, i32) {
    %c0_i32 = arith.constant 0 : i32
    %c0_i32_0 = arith.constant 0 : i32
    %c0_i32_1 = arith.constant 0 : i32
    return %arg0, %c0_i32, %c0_i32_0 : i32, i32, i32
  }
  func.func @transform_1(%arg0: i32) -> (i32, i32) {
    %c0_i32 = arith.constant 0 : i32
    %c0_i32_0 = arith.constant 0 : i32
    %c0_i32_1 = arith.constant 0 : i32
    return %c0_i32, %c0_i32_0 : i32, i32
  }
  func.func @transform_2(%arg0: i32) -> (i32, i32) {
    %c0_i32 = arith.constant 0 : i32
    %c0_i32_0 = arith.constant 0 : i32
    %c0_i32_1 = arith.constant 0 : i32
    return %c0_i32, %c0_i32_0 : i32, i32
  }
  func.func @transform_3(%arg0: i32) -> (i32, i32) {
    %c0_i32 = arith.constant 0 : i32
    %c0_i32_0 = arith.constant 0 : i32
    %c0_i32_1 = arith.constant 0 : i32
    return %c0_i32, %c0_i32_0 : i32, i32
  }
  func.func @transform_4(%arg0: i32) -> (i32, i32) {
    %c0_i32 = arith.constant 0 : i32
    %c0_i32_0 = arith.constant 0 : i32
    %c0_i32_1 = arith.constant 0 : i32
    return %c0_i32, %c0_i32_0 : i32, i32
  }
  func.func @transform_5(%arg0: i32) -> (i32, i32) {
    %c0_i32 = arith.constant 0 : i32
    %c0_i32_0 = arith.constant 0 : i32
    %c0_i32_1 = arith.constant 0 : i32
    return %c0_i32, %c0_i32_0 : i32, i32
  }
  func.func @transform_6(%arg0: i32) -> (i32, i32) {
    %c0_i32 = arith.constant 0 : i32
    %c0_i32_0 = arith.constant 0 : i32
    %c0_i32_1 = arith.constant 0 : i32
    return %c0_i32, %c0_i32_0 : i32, i32
  }
  func.func @transform_7(%arg0: i32) -> (i32, i32) {
    %c0_i32 = arith.constant 0 : i32
    %c0_i32_0 = arith.constant 0 : i32
    %c0_i32_1 = arith.constant 0 : i32
    return %c0_i32, %c0_i32_0 : i32, i32
  }
  func.func @transform_8(%arg0: i32) -> (i32, i32) {
    %c0_i32 = arith.constant 0 : i32
    %c0_i32_0 = arith.constant 0 : i32
    %c0_i32_1 = arith.constant 0 : i32
    return %c0_i32, %c0_i32_0 : i32, i32
  }
  func.func @transform_9(%arg0: i32) -> (i32, i32) {
    %c0_i32 = arith.constant 0 : i32
    %c0_i32_0 = arith.constant 0 : i32
    %c0_i32_1 = arith.constant 0 : i32
    return %c0_i32, %c0_i32_0 : i32, i32
  }
  func.func @transform_10(%arg0: i32) -> (i32, i32) {
    %c0_i32 = arith.constant 0 : i32
    %c0_i32_0 = arith.constant 0 : i32
    %c0_i32_1 = arith.constant 0 : i32
    return %c0_i32, %c0_i32_0 : i32, i32
  }
  func.func @transform_11(%arg0: i32) -> (i32, i32) {
    %c0_i32 = arith.constant 0 : i32
    %c0_i32_0 = arith.constant 0 : i32
    %c0_i32_1 = arith.constant 0 : i32
    return %c0_i32, %c0_i32_0 : i32, i32
  }
  func.func @transform_12(%arg0: i32) -> (i32, i32) {
    %c0_i32 = arith.constant 0 : i32
    %c0_i32_0 = arith.constant 0 : i32
    %c0_i32_1 = arith.constant 0 : i32
    return %c0_i32, %c0_i32_0 : i32, i32
  }
  func.func @transform_13(%arg0: i32) -> (i32, i32) {
    %c0_i32 = arith.constant 0 : i32
    %c0_i32_0 = arith.constant 0 : i32
    %c0_i32_1 = arith.constant 0 : i32
    return %c0_i32, %c0_i32_0 : i32, i32
  }
  func.func @transform_14(%arg0: i32) -> (i32, i32) {
    %c0_i32 = arith.constant 0 : i32
    %c0_i32_0 = arith.constant 0 : i32
    %c0_i32_1 = arith.constant 0 : i32
    return %c0_i32, %c0_i32_0 : i32, i32
  }
  func.func @transform_15(%arg0: i32) -> (i32, i32) {
    %c0_i32 = arith.constant 0 : i32
    %c0_i32_0 = arith.constant 0 : i32
    %c0_i32_1 = arith.constant 0 : i32
    return %c0_i32, %c0_i32_0 : i32, i32
  }
  func.func @transform_16(%arg0: i32) -> (i32, i32) {
    %c0_i32 = arith.constant 0 : i32
    %c0_i32_0 = arith.constant 0 : i32
    %c0_i32_1 = arith.constant 0 : i32
    return %c0_i32, %c0_i32_0 : i32, i32
  }
  func.func @transform_17(%arg0: i32) -> (i32, i32) {
    %c0_i32 = arith.constant 0 : i32
    %c0_i32_0 = arith.constant 0 : i32
    %c0_i32_1 = arith.constant 0 : i32
    return %c0_i32, %c0_i32_0 : i32, i32
  }
  func.func @transform_18(%arg0: i32) -> (i32, i32) {
    %c0_i32 = arith.constant 0 : i32
    %c0_i32_0 = arith.constant 0 : i32
    %c0_i32_1 = arith.constant 0 : i32
    return %c0_i32, %c0_i32_0 : i32, i32
  }
  func.func @transform_19(%arg0: i32) -> (i32, i32) {
    %c0_i32 = arith.constant 0 : i32
    %c0_i32_0 = arith.constant 0 : i32
    %c0_i32_1 = arith.constant 0 : i32
    return %c0_i32, %c0_i32_0 : i32, i32
  }
  func.func @transform_20(%arg0: i32) -> (i32, i32) {
    %c0_i32 = arith.constant 0 : i32
    %c0_i32_0 = arith.constant 0 : i32
    %c0_i32_1 = arith.constant 0 : i32
    return %c0_i32, %c0_i32_0 : i32, i32
  }
  func.func @transform_21(%arg0: i32) -> (i32, i32) {
    %c0_i32 = arith.constant 0 : i32
    %c0_i32_0 = arith.constant 0 : i32
    %c0_i32_1 = arith.constant 0 : i32
    return %c0_i32, %c0_i32_0 : i32, i32
  }
  func.func @transform_22(%arg0: i32) -> (i32, i32) {
    %c0_i32 = arith.constant 0 : i32
    %c0_i32_0 = arith.constant 0 : i32
    %c0_i32_1 = arith.constant 0 : i32
    return %c0_i32, %c0_i32_0 : i32, i32
  }
  func.func @transform_23(%arg0: i32) -> (i32, i32) {
    %c0_i32 = arith.constant 0 : i32
    %c0_i32_0 = arith.constant 0 : i32
    %c0_i32_1 = arith.constant 0 : i32
    return %c0_i32, %c0_i32_0 : i32, i32
  }
  func.func @transform_24(%arg0: i32) -> (i32, i32) {
    %c0_i32 = arith.constant 0 : i32
    %c0_i32_0 = arith.constant 0 : i32
    %c0_i32_1 = arith.constant 0 : i32
    return %c0_i32, %c0_i32_0 : i32, i32
  }
  func.func @transform_25(%arg0: i32) -> (i32, i32, i32) {
    %c0_i32 = arith.constant 0 : i32
    %c0_i32_0 = arith.constant 0 : i32
    %c0_i32_1 = arith.constant 0 : i32
    return %c0_i32, %arg0, %c0_i32_0 : i32, i32, i32
  }
}

</mosaic_0001>

<bundles_post_ra>
// kernel: tpu_custom_call.1
= control target key start
LH: loop header
LB: loop body
LE: loop exit
PB: predicated region body
PF: predicated region fallthrough
CT: control target
= control target key end

     0   :  { %s15497_s0 = inlined_call_operand.hbm [shape: f32[16,16,128], index: 0, kind: input, shape index: {}]   ;;  %s15498_s1 = inlined_call_operand.hbm [shape: bf16[384,128], index: 1, kind: input, shape index: {}]   ;;  %s15499_s2 = inlined_call_operand.vmem [shape: f32[1,128], index: 2, kind: input, shape index: {}]   ;;  %s15500_s3 = inlined_call_operand.vmem [shape: f32[1,128], index: 3, kind: input, shape index: {}]   ;;  %s15501_s4 = inlined_call_operand.vmem [shape: f32[1,128], index: 4, kind: input, shape index: {}]   ;;  %s15502_s5 = inlined_call_operand.hbm [shape: bf16[384,256], index: 5, kind: input, shape index: {}]   ;;  %s15503_s6 = inlined_call_operand.vmem [shape: f32[1,256], index: 6, kind: input, shape index: {}]   ;;  %s15504_s7 = inlined_call_operand.vmem [shape: f32[1,256], index: 7, kind: input, shape index: {}]   ;;  %s15505_s8 = inlined_call_operand.vmem [shape: f32[1,256], index: 8, kind: input, shape index: {}]   ;;  %s15506_s9 = inlined_call_operand.hbm [shape: bf16[768,256], index: 9, kind: input, shape index: {}]   ;;  %s15507_s10 = inlined_call_operand.vmem [shape: f32[1,256], index: 10, kind: input, shape index: {}]   ;;  %s15508_s11 = inlined_call_operand.vmem [shape: f32[1,256], index: 11, kind: input, shape index: {}]   ;;  %s15509_s12 = inlined_call_operand.vmem [shape: f32[1,256], index: 12, kind: input, shape index: {}]   ;;  %s15510_s13 = inlined_call_operand.vmem [shape: bf16[256,48], index: 13, kind: input, shape index: {}]   ;;  %s15511_s14 = inlined_call_operand.vmem [shape: bf16[16,48], index: 14, kind: input, shape index: {}]   ;;  %s15512_s15 = inlined_call_operand.vmem [shape: f32[1,48], index: 15, kind: input, shape index: {}]   ;;  %s15513_s16 = inlined_call_operand.vmem [shape: f32[1,48], index: 16, kind: input, shape index: {}]   ;;  %s15514_s17 = inlined_call_operand.vmem [shape: bf16[16,48], index: 17, kind: input, shape index: {}]   ;;  %s15515_s18 = inlined_call_operand.vmem [shape: bf16[16,48], index: 18, kind: input, shape index: {}]   ;;  %s15516_s19 = inlined_call_operand.vmem [shape: f32[1,48], index: 19, kind: input, shape index: {}]   ;;  %s15517_s20 = inlined_call_operand.hbm [shape: f32[1,48], index: 20, kind: input, shape index: {}]   ;;  %s15518_s21 = inlined_call_operand.hbm [shape: f32[1,16], index: 21, kind: input, shape index: {}]   ;;  %s15519_s22 = inlined_call_operand.hbm [shape: f32[1,16], index: 22, kind: input, shape index: {}]   ;;  %s15520_s23 = inlined_call_operand.vmem [shape: f32[80,256], index: 23, kind: input, shape index: {}]   ;;  %s15521_s24 = inlined_call_operand.vmem [shape: f32[16,128], index: 24, kind: input, shape index: {}]   ;;  %s15522_s25 = inlined_call_operand.hbm [shape: f32[5,16,128], index: 25, kind: output, shape index: {}]  }
   0x1   :  { %15995 = sst [smem:[#allocation105_spill]] %s15497_s0 }
   0x2   :  { %15996 = sst [smem:[#allocation106_spill]] %s15498_s1 }
   0x3   :  { %15997 = sst [smem:[#allocation107_spill]] %s15499_s2 }
   0x4   :  { %15998 = sst [smem:[#allocation108_spill]] %s15500_s3 }
   0x5   :  { %15999 = sst [smem:[#allocation109_spill]] %s15501_s4 }
   0x6   :  { %16000 = sst [smem:[#allocation110_spill]] %s15502_s5 }
   0x7   :  { %16001 = sst [smem:[#allocation111_spill]] %s15503_s6 }
   0x8   :  { %16002 = sst [smem:[#allocation112_spill]] %s15504_s7 }
   0x9   :  { %16003 = sst [smem:[#allocation113_spill]] %s15505_s8 }
   0xa   :  { %16004 = sst [smem:[#allocation114_spill]] %s15506_s9 }
   0xb   :  { %30 = vsyncpa [#allocation3], 0 }
   0xc   :  { %31 = vsyncpa [#allocation6], 0 }
   0xd   :  { %32 = vsyncpa [#allocation9], 0 }
   0xe   :  { %33 = vsyncpa [#allocation12], 0 }
   0xf   :  { %34 = vsyncpa [#allocation4], 0  ;;  %s9920_s29 = smov [#allocation5]  }
  0x10   :  { %s52_s2 = sshll.u32 %s9920_s29, 4  ;;  %s53_s2 = int_to_ptr.vmem [resolvable:$true] %s52_s2 }
  0x11   :  { %s9758_s6 = scalar_lea.vmem %s53_s2, 3072  ;;  %p9763_p1 = scmp.lt.s32.totalorder %s53_s2, %s53_s2 }
  0x12   :  { %p9759_p0 = scmp.ne.s32.totalorder %s53_s2, %s9758_s6  ;;  %p9764_p2 = scmp.lt.s32.totalorder %s9758_s6, %s9758_s6 }
  0x14   :  { %p9765_p3 = por %p9764_p2, %p9763_p1 }
  0x16   :  { %p9766_p4 = pnand %p9765_p3, %p9759_p0 }
  0x18   :  { %9769 = shalt.err (!%p9766_p4)
}
  0x19   :  { %s9921_s30 = smov 64   ;;  %s9922_s7 = smov 4  }
  0x1a   :  { %s16005_s1 = sld [smem:[#allocation106_spill]]  ;;  %s9923_s8 = smov [#allocation8]  }
  0x1b   :  { %s88_s27 = sshll.u32 %s9923_s8, 4  ;;  %s9924_s4 = smov [#allocation11]   ;;  %s89_s27 = int_to_ptr.vmem [resolvable:$true] %s88_s27 }
  0x1c   :  { %s131_s28 = sshll.u32 %s9924_s4, 4  ;;  %s9778_s9 = scalar_lea.vmem %s89_s27, 12288  ;;  %s132_s28 = int_to_ptr.vmem [resolvable:$true] %s131_s28 }
  0x1d   :  { %p9779_p5 = scmp.ne.s32.totalorder %s89_s27, %s9778_s9  ;;  %p9783_p6 = scmp.lt.s32.totalorder %s89_s27, %s89_s27 }
  0x1e   :  { %p9784_p7 = scmp.lt.s32.totalorder %s9778_s9, %s9778_s9 }
  0x20   :  { %58 = dma.hbm_to_vmem [thread:$0]  %s16005_s1, 3072, %s53_s2, [#allocation6], %s9921_s30, %s9921_s30, %s9922_s7  }
  0x21   :  { %p9785_p8 = por %p9784_p7, %p9783_p6 }
  0x23   :  { %p9786_p9 = pnand %p9785_p8, %p9779_p5 }
  0x25   :  { %9789 = shalt.err (!%p9786_p9)
}
  0x26   :  { %s9925_s5 = smov 128   ;;  %s9926_s0 = smov 8  }
  0x27   :  { %s16006_s2 = sld [smem:[#allocation114_spill]]  ;;  %s9798_s30 = scalar_lea.vmem %s132_s28, 16 }
  0x28   :  { %p9799_p10 = scmp.ne.s32.totalorder %s132_s28, %s9798_s30  ;;  %s9802_s7 = scalar_lea.vmem %s132_s28, 32 }
  0x29   :  { %p9803_p11 = scmp.lt.s32.totalorder %s132_s28, %s132_s28  ;;  %p9804_p12 = scmp.lt.s32.totalorder %s9802_s7, %s9798_s30 }
  0x2b   :  { %p9805_p13 = por %p9804_p12, %p9803_p11 }
  0x2d   :  { %94 = dma.hbm_to_vmem [thread:$0]  %s16006_s2, 12288, %s89_s27, [#allocation9], %s9925_s5, %s9925_s5, %s9926_s0  }
  0x2e   :  { %p9806_p0 = pnand %p9805_p13, %p9799_p10 }
  0x30   :  { %9809 = shalt.err (!%p9806_p0)
}
  0x31   :  { %134 = dma.hbm_to_vmem [thread:$0]  %s15518_s21, 16, %s132_s28, [#allocation12]  }
  0x32   :  { %s9927_s1 = smov [#allocation2]   ;;  %s9928_s4 = smov [#allocation7]  }
  0x33   :  { %s40_s8 = sshll.u32 %s9927_s1, 4  ;;  %s70_s9 = sshll.u32 %s9928_s4, 4  ;;  %s41_s8 = int_to_ptr.vmem [resolvable:$true] %s40_s8  ;;  %s71_s9 = int_to_ptr.vmem [resolvable:$true] %s70_s9 }
  0x34   :  { %s9818_s29 = scalar_lea.vmem %s41_s8, 4096  ;;  %p9823_p2 = scmp.lt.s32.totalorder %s41_s8, %s41_s8 }
  0x35   :  { %p9819_p1 = scmp.ne.s32.totalorder %s41_s8, %s9818_s29  ;;  %p9824_p3 = scmp.lt.s32.totalorder %s9818_s29, %s9818_s29 }
  0x37   :  { %p9825_p4 = por %p9824_p3, %p9823_p2 }
  0x39   :  { %p9826_p5 = pnand %p9825_p4, %p9819_p1 }
  0x3b   :  { %9829 = shalt.err (!%p9826_p5)
}
  0x3c   :  { %s16007_s2 = sld [smem:[#allocation105_spill]]  ;;  %s9838_s21 = scalar_lea.vmem %s71_s9, 6144 }
  0x3d   :  { %p9839_p6 = scmp.ne.s32.totalorder %s71_s9, %s9838_s21  ;;  %p9843_p7 = scmp.lt.s32.totalorder %s71_s9, %s71_s9 }
  0x3e   :  { %p9844_p8 = scmp.lt.s32.totalorder %s9838_s21, %s9838_s21 }
  0x40   :  { %p9845_p9 = por %p9844_p8, %p9843_p7 }
  0x42   :  { %46 = dma.hbm_to_vmem [thread:$0]  %s16007_s2, 4096, %s41_s8, [#allocation3], %s9925_s5, %s9925_s5, %s9926_s0  }
  0x43   :  { %p9846_p10 = pnand %p9845_p9, %p9839_p6 }
  0x45   :  { %9849 = shalt.err (!%p9846_p10)
}
  0x46   :  { %s16008_s7 = sld [smem:[#allocation110_spill]]  ;;  %s9929_s3 = smov [#allocation10]  }
  0x47   :  { %s121_s26 = sshll.u32 %s9929_s3, 4  ;;  %s9930_s1 = smov [#allocation13]   ;;  %s122_s26 = int_to_ptr.vmem [resolvable:$true] %s121_s26 }
  0x48   :  { %s141_s8 = sshll.u32 %s9930_s1, 4  ;;  %s9858_s4 = scalar_lea.vmem %s122_s26, 16  ;;  %s142_s8 = int_to_ptr.vmem [resolvable:$true] %s141_s8 }
  0x49   :  { %p9859_p11 = scmp.ne.s32.totalorder %s122_s26, %s9858_s4  ;;  %s9862_s29 = scalar_lea.vmem %s122_s26, 32 }
  0x4a   :  { %p9863_p12 = scmp.lt.s32.totalorder %s122_s26, %s122_s26  ;;  %p9864_p13 = scmp.lt.s32.totalorder %s9862_s29, %s9858_s4 }
  0x4c   :  { %76 = dma.hbm_to_vmem [thread:$0]  %s16008_s7, 6144, %s71_s9, [#allocation6], %s9925_s5, %s9925_s5, %s9926_s0  }
  0x4d   :  { %p9865_p0 = por %p9864_p13, %p9863_p12 }
  0x4f   :  { %p9866_p1 = pnand %p9865_p0, %p9859_p11 }
  0x51   :  { %9869 = shalt.err (!%p9866_p1)
}
  0x52   :  { %124 = dma.hbm_to_vmem [thread:$0]  %s15517_s20, 16, %s122_s26, [#allocation9]  }
  0x53   :  { %s9878_s2 = scalar_lea.vmem %s142_s8, 16  ;;  %s9882_s9 = scalar_lea.vmem %s142_s8, 32 }
  0x54   :  { %p9879_p2 = scmp.ne.s32.totalorder %s142_s8, %s9878_s2  ;;  %p9883_p3 = scmp.lt.s32.totalorder %s142_s8, %s142_s8 }
  0x55   :  { %p9884_p4 = scmp.lt.s32.totalorder %s9882_s9, %s9878_s2 }
  0x57   :  { %p9885_p5 = por %p9884_p4, %p9883_p3 }
  0x59   :  { %p9886_p6 = pnand %p9885_p5, %p9879_p2 }
  0x5b   :  { %9889 = shalt.err (!%p9886_p6)
}
  0x5c   :  { %144 = dma.hbm_to_vmem [thread:$0]  %s15519_s22, 16, %s142_s8, [#allocation12]  }
  0x5d   :  { %9910 = dma.done.wait [#allocation3], 4096  }
  0x5e   :  { %9911 = vsyncadd [#allocation3], 4294963200 }
  0x5f   :  { %9912 = dma.done.wait [#allocation6], 9216  }
  0x60   :  { %9913 = vsyncadd [#allocation6], 4294958080 }
  0x61   :  { %9914 = dma.done.wait [#allocation9], 12304  }
  0x62   :  { %9915 = vsyncadd [#allocation9], 4294954992 }
  0x63   :  { %9916 = dma.done.wait [#allocation12], 32  }
  0x64   :  { %9917 = vsyncadd [#allocation12], 4294967264  ;;  %v15558_v0 = vmov 0.0   ;;  %v8943_v1 = vld [vmem:[#allocation5 + $0x38] sm:$0xff]   ;;  %v8942_v2 = vld [vmem:[#allocation5 + $0x30] sm:$0xff]   ;;  %v170_v36 = vlaneseq  ;;  %vm15537_vm0 = vcmask 1046528  }
  0x65   :  { %1204 = vmatprep.subr.mxu0 %v15558_v0  ;;  %v8795_v3 = vunpack.c.l.bf16 %v8943_v1  ;;  %v8796_v4 = vunpack.c.h.bf16 %v8943_v1  ;;  %v8959_v5 = vld [vmem:[#allocation5 + $0xb8] sm:$0xff]   ;;  %v8792_v6 = vunpack.c.h.bf16 %v8942_v2  ;;  %v8941_v7 = vld [vmem:[#allocation5 + $0x28] sm:$0xff]   ;;  %v8958_v8 = vld [vmem:[#allocation5 + $0xb0] sm:$0xff]   ;;  %v8791_v9 = vunpack.c.l.bf16 %v8942_v2  ;;  %s16106_s30 = sld [smem:[#allocation107_spill]] }
  0x66   :  { %v8859_v10 = vunpack.c.l.bf16 %v8959_v5  ;;  %v8860_v11 = vunpack.c.h.bf16 %v8959_v5  ;;  %v8788_v12 = vunpack.c.h.bf16 %v8941_v7  ;;  %v8856_v13 = vunpack.c.h.bf16 %v8958_v8  ;;  %v8940_v14 = vld [vmem:[#allocation5 + $0x20] sm:$0xff]   ;;  %v8957_v15 = vld [vmem:[#allocation5 + $0xa8] sm:$0xff]   ;;  %v8939_v20 = vld [vmem:[#allocation5 + $0x18] sm:$0xff]   ;;  %s16139_s26 = sld [smem:[#allocation108_spill]] }
  0x67   :  { %1205 = vmatpush1.msra.mxu0 %v8796_v4  ;;  %v8787_v16 = vunpack.c.l.bf16 %v8941_v7  ;;  %v8855_v17 = vunpack.c.l.bf16 %v8958_v8  ;;  %v8784_v18 = vunpack.c.h.bf16 %v8940_v14  ;;  %v8852_v19 = vunpack.c.h.bf16 %v8957_v15  ;;  %v8956_v21 = vld [vmem:[#allocation5 + $0xa0] sm:$0xff]   ;;  %v8938_v26 = vld [vmem:[#allocation5 + $0x10] sm:$0xff]   ;;  %v8955_v27 = vld [vmem:[#allocation5 + $0x98] sm:$0xff]   ;;  %s16140_s4 = sld [smem:[#allocation109_spill]] }
  0x68   :  { %1206 = vmatprep.subr.mxu0 %v15558_v0  ;;  %9181 = vmatprep.subr.mxu1 %v8860_v11  ;;  %v8783_v22 = vunpack.c.l.bf16 %v8940_v14  ;;  %v8851_v23 = vunpack.c.l.bf16 %v8957_v15  ;;  %v8780_v24 = vunpack.c.h.bf16 %v8939_v20  ;;  %v8848_v25 = vunpack.c.h.bf16 %v8956_v21  ;;  %v8937_v32 = vld [vmem:[#allocation5 + $0x8] sm:$0xff]   ;;  %v8954_v33 = vld [vmem:[#allocation5 + $0x90] sm:$0xff]   ;;  %v8766_v39 = vld [vmem:[#allocation5] sm:$0xff]   ;;  %s16202_s6 = sld [smem:[#allocation111_spill]] }
  0x69   :  { %1207 = vmatpush1.msra.mxu0 %v8795_v3  ;;  %9182 = vmatpush3.msra.mxu1 %v8860_v11  ;;  %v8779_v28 = vunpack.c.l.bf16 %v8939_v20  ;;  %v8847_v29 = vunpack.c.l.bf16 %v8956_v21  ;;  %v8776_v30 = vunpack.c.h.bf16 %v8938_v26  ;;  %v8844_v31 = vunpack.c.h.bf16 %v8955_v27  ;;  %v8953_v40 = vld [vmem:[#allocation5 + $0x88] sm:$0xff]   ;;  %v8951_v46 = vld [vmem:[#allocation5 + $0x78] sm:$0xff]   ;;  %v8952_v47 = vld [vmem:[#allocation5 + $0x80] sm:$0xff]   ;;  %s16357_s21 = sld [smem:[#allocation112_spill]] }
  0x6a   :  { %1208 = vmatprep.subr.mxu0 %v15558_v0  ;;  %9183 = vmatprep.subr.mxu1 %v8859_v10  ;;  %v8775_v34 = vunpack.c.l.bf16 %v8938_v26  ;;  %v8843_v35 = vunpack.c.l.bf16 %v8955_v27  ;;  %v8772_v37 = vunpack.c.h.bf16 %v8937_v32  ;;  %v8840_v38 = vunpack.c.h.bf16 %v8954_v33  ;;  %v10113_v50 = vld [vmem:[#allocation2] sm:$0xff]  ;;  %v10115_v51 = vld [vmem:[#allocation2 + $0x8] sm:$0xff]  ;;  %v10119_v53 = vld [vmem:[#allocation2 + $0x10] sm:$0xff]  ;;  %s16358_s22 = sld [smem:[#allocation113_spill]] }
  0x6b   :  { %1209 = vmatpush1.msra.mxu0 %v8792_v6  ;;  %9184 = vmatpush3.msra.mxu1 %v8859_v10  ;;  %v8771_v41 = vunpack.c.l.bf16 %v8937_v32  ;;  %v8839_v42 = vunpack.c.l.bf16 %v8954_v33  ;;  %v10109_v43 = vshrl.u32 %v170_v36, 7  ;;  %v8768_v44 = vunpack.c.h.bf16 %v8766_v39  ;;  %v8950_v56 = vld [vmem:[#allocation5 + $0x70] sm:$0xff]   ;;  %v10124_v59 = vld [vmem:[#allocation2 + $0x18] sm:$0xff]  ;;  %v10129_v2 = vld [vmem:[#allocation2 + $0x20] sm:$0xff] }
  0x6c   :  { %1210 = vmatprep.subr.mxu0 %v15558_v0  ;;  %9185 = vmatprep.subr.mxu1 %v8856_v13  ;;  %v8836_v45 = vunpack.c.h.bf16 %v8953_v40  ;;  %v8767_v48 = vunpack.c.l.bf16 %v8766_v39  ;;  %v8835_v49 = vunpack.c.l.bf16 %v8953_v40  ;;  %v8828_v54 = vunpack.c.h.bf16 %v8951_v46  ;;  %v10132_v5 = vld [vmem:[#allocation2 + $0x28] sm:$0xff]  ;;  %v10145_v15 = vld [vmem:[#allocation2 + $0x30] sm:$0xff]  ;;  %v8947_v32 = vld [vmem:[#allocation5 + $0x58] sm:$0xff]  }
  0x6d   :  { %1211 = vmatpush1.msra.mxu0 %v8791_v9  ;;  %9186 = vmatpush3.msra.mxu1 %v8856_v13  ;;  %16009 = vst [vmem:[#allocation20_spill] sm:$0xff] %v10109_v43  ;;  %v172_v52 = vadd.s32 8, %v10109_v43  ;;  %v8832_v55 = vunpack.c.h.bf16 %v8952_v47  ;;  %v909_v57 = vrot.slane %v10113_v50, 1  ;;  %v910_v58 = vrot.slane %v10115_v51, 1  ;;  %v8949_v6 = vld [vmem:[#allocation5 + $0x68] sm:$0xff]   ;;  %v10181_v40 = vld [vmem:[#allocation2 + $0x50] sm:$0xff] }
  0x6e   :  { %1212 = vmatprep.subr.mxu0 %v15558_v0  ;;  %9187 = vmatprep.subr.mxu1 %v8855_v17  ;;  %v174_v60 = vadd.s32 24, %v10109_v43  ;;  %v8827_v61 = vunpack.c.l.bf16 %v8951_v46  ;;  %v8831_v62 = vunpack.c.l.bf16 %v8952_v47  ;;  %v912_v1 = vrot.slane %v10119_v53, 1 }
  0x6f   :  { %1213 = vmatpush1.msra.mxu0 %v8788_v12  ;;  %9188 = vmatpush3.msra.mxu1 %v8855_v17  ;;  %v214_v63 = vand.u32 15, %v172_v52  ;;  %v8824_v3 = vunpack.c.h.bf16 %v8950_v56  ;;  %v914_v4 = vrot.slane %v10124_v59, 1  ;;  %v911_v7 = vsel %vm15537_vm0, %v909_v57, %v910_v58 }
  0x70   :  { %1214 = vmatprep.subr.mxu0 %v15558_v0  ;;  %9189 = vmatprep.subr.mxu1 %v8852_v19  ;;  %v228_v8 = vand.u32 15, %v174_v60  ;;  %v176_v9 = vadd.s32 40, %v10109_v43  ;;  %v8823_v10 = vunpack.c.l.bf16 %v8950_v56  ;;  %v913_v11 = vsel %vm15537_vm0, %v910_v58, %v912_v1  ;;  %v10200_v58 = vld [vmem:[#allocation2 + $0x68] sm:$0xff] }
  0x71   :  { %1215 = vmatpush1.msra.mxu0 %v8787_v16  ;;  %9190 = vmatpush3.msra.mxu1 %v8852_v19  ;;  %vm10138_vm1 = vcmp.ne.s32.totalorder %v214_v63, 15  ;;  %v16010_v12 = vmov 0  ;;  %v916_v13 = vrot.slane %v10129_v2, 1  ;;  %v918_v14 = vrot.slane %v10132_v5, 1  ;;  %v8948_v19 = vld [vmem:[#allocation5 + $0x60] sm:$0xff]  }
  0x72   :  { %1216 = vmatprep.subr.mxu0 %v15558_v0  ;;  %9191 = vmatprep.subr.mxu1 %v8851_v23  ;;  %v16011_v12 = vsel %vm10138_vm1, 4294967295, %v16010_v12  ;;  %v8820_v16 = vunpack.c.h.bf16 %v8949_v6  ;;  %v915_v17 = vsel %vm15537_vm0, %v912_v1, %v914_v4  ;;  %v242_v20 = vand.u32 15, %v176_v9 }
  0x73   :  { %1217 = vmatpush1.msra.mxu0 %v8784_v18  ;;  %9192 = vmatpush3.msra.mxu1 %v8851_v23  ;;  %16012 = vst [vmem:[#allocation21_spill] sm:$0xff] %v16011_v12  ;;  %v10148_v18 = vld [vmem:[#allocation2 + $0x38] sm:$0xff]  ;;  %v178_v21 = vadd.s32 56, %v10109_v43  ;;  %v917_v23 = vsel %vm15537_vm0, %v914_v4, %v916_v13  ;;  %vm10156_vm2 = vcmp.ne.s32.totalorder %v228_v8, 15  ;;  %v919_v26 = vsel %vm15537_vm0, %v916_v13, %v918_v14  ;;  %v10215_v8 = vld [vmem:[#allocation2 + $0x70] sm:$0xff]  ;;  %v8944_v13 = vld [vmem:[#allocation5 + $0x40] sm:$0xff]  }
  0x74   :  { %1218 = vmatprep.subr.mxu0 %v15558_v0  ;;  %9193 = vmatprep.subr.mxu1 %v8848_v25  ;;  %v922_v27 = vrot.slane %v10148_v18, 1  ;;  %vm10172_vm3 = vcmp.ne.s32.totalorder %v242_v20, 15  ;;  %v16019_v46 = vmov 0  ;;  %v182_v52 = vadd.s32 88, %v10109_v43 }
  0x75   :  { %1219 = vmatpush1.msra.mxu0 %v8783_v22  ;;  %9194 = vmatpush3.msra.mxu1 %v8848_v25  ;;  %v8819_v22 = vunpack.c.l.bf16 %v8949_v6  ;;  %v920_v25 = vrot.slane %v10145_v15, 1  ;;  %v256_v33 = vand.u32 15, %v178_v21  ;;  %v16022_v1 = vmov 0  ;;  %v10229_v21 = vld [vmem:[#allocation2 + $0x80] sm:$0xff] }
  0x76   :  { %1220 = vmatprep.subr.mxu0 %v15558_v0  ;;  %9195 = vmatprep.subr.mxu1 %v8847_v29  ;;  %v184_v4 = vadd.s32 104, %v10109_v43  ;;  %v186_v20 = vadd.s32 120, %v10109_v43  ;;  %vm715_vm7 = vcmask 1040384  }
  0x77   :  { %1221 = vmatpush1.msra.mxu0 %v8780_v24  ;;  %9196 = vmatpush3.msra.mxu1 %v8847_v29  ;;  %v16013_v24 = vmov 0  ;;  %v8816_v29 = vunpack.c.h.bf16 %v8948_v19  ;;  %vm10188_vm4 = vcmp.ne.s32.totalorder %v256_v33, 15 }
  0x78   :  { %1222 = vmatprep.subr.mxu0 %v15558_v0  ;;  %9197 = vmatprep.subr.mxu1 %v8844_v31  ;;  %v16014_v24 = vsel %vm10156_vm2, 4294967295, %v16013_v24  ;;  %v16020_v46 = vsel %vm10188_vm4, 4294967295, %v16019_v46 }
  0x79   :  { %1223 = vmatpush1.msra.mxu0 %v8779_v28  ;;  %9198 = vmatpush3.msra.mxu1 %v8844_v31  ;;  %16015 = vst [vmem:[#allocation22_spill] sm:$0xff] %v16014_v24  ;;  %v10164_v28 = vld [vmem:[#allocation2 + $0x40] sm:$0xff]  ;;  %v8815_v31 = vunpack.c.l.bf16 %v8948_v19  ;;  %16021 = vst [vmem:[#allocation24_spill] sm:$0xff] %v16020_v46  ;;  %v936_v19 = vrot.slane %v10215_v8, 1 }
  0x7a   :  { %1224 = vmatprep.subr.mxu0 %v15558_v0  ;;  %9199 = vmatprep.subr.mxu1 %v8843_v35  ;;  %v924_v36 = vrot.slane %v10164_v28, 1 }
  0x7b   :  { %1225 = vmatpush1.msra.mxu0 %v8776_v30  ;;  %9200 = vmatpush3.msra.mxu1 %v8843_v35  ;;  %v10166_v30 = vld [vmem:[#allocation2 + $0x48] sm:$0xff]  ;;  %v16016_v35 = vmov 0 }
  0x7c   :  { %1226 = vmatprep.subr.mxu0 %v15558_v0  ;;  %9201 = vmatprep.subr.mxu1 %v8840_v38  ;;  %v16017_v35 = vsel %vm10172_vm3, 4294967295, %v16016_v35  ;;  %v926_v39 = vrot.slane %v10166_v30, 1  ;;  %v925_v47 = vsel %vm15537_vm0, %v922_v27, %v924_v36 }
  0x7d   :  { %1227 = vmatpush1.msra.mxu0 %v8775_v34  ;;  %9202 = vmatpush3.msra.mxu1 %v8840_v38  ;;  %v921_v34 = vsel %vm15537_vm0, %v918_v14, %v920_v25  ;;  %16018 = vst [vmem:[#allocation23_spill] sm:$0xff] %v16017_v35  ;;  %v923_v38 = vsel %vm15537_vm0, %v920_v25, %v922_v27  ;;  %v8800_v25 = vunpack.c.h.bf16 %v8944_v13  ;;  %v716_v27 = vrot.slane %v10113_v50, 7 }
  0x7e   :  { %1228 = vmatprep.subr.mxu0 %v15558_v0  ;;  %9203 = vmatprep.subr.mxu1 %v8839_v42 }
  0x7f   :  { %1229 = vmatpush1.msra.mxu0 %v8772_v37  ;;  %9204 = vmatpush3.msra.mxu1 %v8839_v42  ;;  %v180_v37 = vadd.s32 72, %v10109_v43  ;;  %v10183_v42 = vld [vmem:[#allocation2 + $0x58] sm:$0xff] }
  0x80   :  { %1230 = vmatprep.subr.mxu0 %v15558_v0  ;;  %9205 = vmatprep.subr.mxu1 %v8836_v45  ;;  %v930_v56 = vrot.slane %v10183_v42, 1 }
  0x81   :  { %1231 = vmatpush1.msra.mxu0 %v8771_v41  ;;  %9206 = vmatpush3.msra.mxu1 %v8836_v45  ;;  %v8812_v41 = vunpack.c.h.bf16 %v8947_v32  ;;  %v8946_v45 = vld [vmem:[#allocation5 + $0x50] sm:$0xff]  }
  0x82   :  { %1232 = vmatprep.subr.mxu0 %v15558_v0  ;;  %9207 = vmatprep.subr.mxu1 %v8835_v49  ;;  %v8808_v57 = vunpack.c.h.bf16 %v8946_v45  ;;  %v8807_v60 = vunpack.c.l.bf16 %v8946_v45  ;;  %v717_v45 = vrot.slane %v10115_v51, 7 }
  0x83   :  { %1233 = vmatpush1.msra.mxu0 %v8768_v44  ;;  %9208 = vmatpush3.msra.mxu1 %v8835_v49  ;;  %v8811_v44 = vunpack.c.l.bf16 %v8947_v32  ;;  %v928_v49 = vrot.slane %v10181_v40, 1  ;;  %v940_v32 = vrot.slane %v10229_v21, 1 }
  0x84   :  { %1234 = vmatprep.subr.mxu0 %v15558_v0  ;;  %9209 = vmatprep.subr.mxu1 %v8832_v55 }
  0x85   :  { %1235 = vmatpush1.msra.mxu0 %v8767_v48  ;;  %9210 = vmatpush3.msra.mxu1 %v8832_v55  ;;  %v270_v48 = vand.u32 15, %v180_v37  ;;  %v927_v55 = vsel %vm15537_vm0, %v924_v36, %v926_v39  ;;  %v929_v63 = vsel %vm15537_vm0, %v926_v39, %v928_v49  ;;  %v931_v6 = vsel %vm15537_vm0, %v928_v49, %v930_v56  ;;  %v10251_v39 = vld [vmem:[#allocation2 + $0x90] sm:$0xff] }
  0x86   :  { %1236 = vmatprep.subr.mxu0 %v15558_v0  ;;  %9211 = vmatprep.subr.mxu1 %v8831_v62  ;;  %v188_v36 = vadd.s32 136, %v10109_v43 }
  0x87   :  { %1237 = vmatpush2.msra.mxu0 %v8828_v54  ;;  %9212 = vmatpush3.msra.mxu1 %v8831_v62  ;;  %v10195_v54 = vld [vmem:[#allocation2 + $0x60] sm:$0xff]  ;;  %vm10207_vm5 = vcmp.ne.s32.totalorder %v270_v48, 15  ;;  %v10260_v48 = vld [vmem:[#allocation2 + $0x98] sm:$0xff] }
  0x88   :  { %1238 = vmatprep.subr.mxu0 %v15558_v0  ;;  %9213 = vmatprep.mubr.f32.mxu1 %v911_v7  ;;  %v932_v62 = vrot.slane %v10195_v54, 1  ;;  %v16023_v1 = vsel %vm10207_vm5, 4294967295, %v16022_v1  ;;  %v934_v7 = vrot.slane %v10200_v58, 1 }
  0x89   :  { %1239 = vmatpush2.msra.mxu0 %v8827_v61  ;;  %9214 = vmatmul.mubr.msk.f32.vlgmr.msra.gmra.mxu1 %vm10138_vm1, %v913_v11  ;;  %v8945_v61 = vld [vmem:[#allocation5 + $0x48] sm:$0xff]   ;;  %16024 = vst [vmem:[#allocation25_spill] sm:$0xff] %v16023_v1 }
  0x8a   :  { %1240 = vmatprep.subr.mxu0 %v15558_v0  ;;  %1268 = vmatprep.mubr.f32.mxu0 %v10113_v50  ;;  %v8804_v9 = vunpack.c.h.bf16 %v8945_v61  ;;  %v8803_v11 = vunpack.c.l.bf16 %v8945_v61  ;;  %v933_v14 = vsel %vm15537_vm0, %v930_v56, %v932_v62  ;;  %v937_v33 = vsel %vm15537_vm0, %v934_v7, %v936_v19 }
  0x8b   :  { %1241 = vmatpush2.msra.mxu0 %v8824_v3  ;;  %9216 = vmatprep.mubr.f32.mxu1 %v915_v17  ;;  %v284_v3 = vand.u32 15, %v182_v52  ;;  %v298_v17 = vand.u32 15, %v184_v4  ;;  %v312_v50 = vand.u32 15, %v186_v20  ;;  %v16034_v52 = vmov 0 }
  0x8c   :  { %1242 = vmatprep.subr.mxu0 %v15558_v0  ;;  %v944_v56 = vrot.slane %v10251_v39, 1  ;;  %v719_v4 = vrot.slane %v10119_v53, 7 }
  0x8d   :  { %1243 = vmatpush2.msra.mxu0 %v8823_v10  ;;  %9217 = vmatmul.mubr.msk.f32.gmra.mxu1 %vm10156_vm2, %v917_v23  ;;  %v10217_v10 = vld [vmem:[#allocation2 + $0x78] sm:$0xff]  ;;  %vm10223_vm6 = vcmp.ne.s32.totalorder %v284_v3, 15  ;;  %vm10243_vm8 = vcmp.ne.s32.totalorder %v298_v17, 15  ;;  %vm10266_vm10 = vcmp.ne.s32.totalorder %v312_v50, 15  ;;  %v10315_v50 = vld [vmem:[#allocation2 + $0xc0] sm:$0xff] }
  0x8e   :  { %1244 = vmatprep.subr.mxu0 %v15558_v0  ;;  %9219 = vmatprep.mubr.f32.mxu1 %v919_v26  ;;  %v938_v23 = vrot.slane %v10217_v10, 1  ;;  %v207_v26 = vand.u32 15, %v10109_v43  ;;  %v16035_v52 = vsel %vm10266_vm10, 4294967295, %v16034_v52  ;;  %v720_v20 = vsel %vm715_vm7, %v717_v45, %v719_v4 }
  0x8f   :  { %1245 = vmatpush2.msra.mxu0 %v8820_v16  ;;  %v16025_v16 = vmov 0  ;;  %16036 = vst [vmem:[#allocation29_spill] sm:$0xff] %v16035_v52 }
  0x90   :  { %1246 = vmatprep.subr.mxu0 %v15558_v0  ;;  %v16026_v16 = vsel %vm10223_vm6, 4294967295, %v16025_v16  ;;  %v939_v37 = vsel %vm15537_vm0, %v936_v19, %v938_v23  ;;  %vm10254_vm9 = vcmp.ne.s32.totalorder %v207_v26, 0  ;;  %v941_v49 = vsel %vm15537_vm0, %v938_v23, %v940_v32  ;;  %v10294_v19 = vld [vmem:[#allocation2 + $0xb0] sm:$0xff]  ;;  %v10304_v26 = vld [vmem:[#allocation2 + $0xb8] sm:$0xff] }
  0x91   :  { %1247 = vmatpush2.msra.mxu0 %v8819_v22  ;;  %9220 = vmatmul.mubr.msk.f32.gmra.mxu1 %vm10172_vm3, %v921_v34  ;;  %16027 = vst [vmem:[#allocation26_spill] sm:$0xff] %v16026_v16  ;;  %v935_v22 = vsel %vm15537_vm0, %v932_v62, %v934_v7  ;;  %v16028_v34 = vmov 0  ;;  %v946_v62 = vrot.slane %v10260_v48, 1  ;;  %v721_v23 = vrot.slane %v10124_v59, 7 }
  0x92   :  { %1248 = vmatprep.subr.mxu0 %v15558_v0  ;;  %9222 = vmatprep.mubr.f32.mxu1 %v923_v38  ;;  %v16029_v34 = vsel %vm10243_vm8, 4294967295, %v16028_v34 }
  0x93   :  { %1249 = vmatpush2.msra.mxu0 %v8816_v29  ;;  %v10236_v29 = vld [vmem:[#allocation2 + $0x88] sm:$0xff]  ;;  %16030 = vst [vmem:[#allocation27_spill] sm:$0xff] %v16029_v34 }
  0x94   :  { %1250 = vmatprep.subr.mxu0 %v15558_v0  ;;  %v942_v38 = vrot.slane %v10236_v29, 1 }
  0x95   :  { %1251 = vmatpush2.msra.mxu0 %v8815_v31  ;;  %9223 = vmatmul.mubr.msk.f32.gmra.mxu1 %vm10188_vm4, %v925_v47  ;;  %v8799_v31 = vunpack.c.l.bf16 %v8944_v13  ;;  %v173_v47 = vadd.s32 16, %v10109_v43  ;;  %v192_v13 = vadd.s32 168, %v10109_v43 }
  0x96   :  { %1252 = vmatprep.subr.mxu0 %v15558_v0  ;;  %9225 = vmatprep.mubr.f32.mxu1 %v927_v55  ;;  %v326_v55 = vand.u32 15, %v188_v36  ;;  %v943_v61 = vsel %vm15537_vm0, %v940_v32, %v942_v38  ;;  %v952_v32 = vrot.slane %v10294_v19, 1 }
  0x97   :  { %1253 = vmatpush2.msra.mxu0 %v8812_v41  ;;  %v811_v41 = vsel %vm715_vm7, 0.0, %v716_v27  ;;  %v221_v3 = vand.u32 15, %v173_v47  ;;  %v10324_v47 = vld [vmem:[#allocation2 + $0xc8] sm:$0xff] }
  0x98   :  { %1254 = vmatprep.subr.mxu0 %v15558_v0  ;;  %vm10287_vm11 = vcmp.ne.s32.totalorder %v326_v55, 15 }
  0x99   :  { %1255 = vmatpush2.msra.mxu0 %v8811_v44  ;;  %9226 = vmatmul.mubr.msk.f32.gmra.mxu1 %vm10207_vm5, %v929_v63  ;;  %v16031_v44 = vmov 0  ;;  %v718_v63 = vsel %vm715_vm7, %v716_v27, %v717_v45  ;;  %vm10298_vm12 = vcmp.ne.s32.totalorder %v221_v3, 0  ;;  %v723_v45 = vrot.slane %v10129_v2, 7 }
  0x9a   :  { %1256 = vmatprep.subr.mxu0 %v15558_v0  ;;  %9228 = vmatprep.mubr.f32.mxu1 %v931_v6  ;;  %v16032_v44 = vsel %vm10254_vm9, 4294967295, %v16031_v44  ;;  %v10281_v6 = vld [vmem:[#allocation2 + $0xa8] sm:$0xff] }
  0x9b   :  { %1257 = vmatpush2.msra.mxu0 %v8808_v57  ;;  %16033 = vst [vmem:[#allocation28_spill] sm:$0xff] %v16032_v44  ;;  %v190_v57 = vadd.s32 152, %v10109_v43  ;;  %v950_v17 = vrot.slane %v10281_v6, 1  ;;  %v724_v3 = vsel %vm715_vm7, %v721_v23, %v723_v45 }
  0x9c   :  { %1258 = vmatprep.subr.mxu0 %v15558_v0 }
  0x9d   :  { %1259 = vmatpush2.msra.mxu0 %v8807_v60  ;;  %9229 = vmatmul.mubr.msk.f32.gmra.mxu1 %vm10223_vm6, %v933_v14  ;;  %v10272_v60 = vld [vmem:[#allocation2 + $0xa0] sm:$0xff]  ;;  %v947_v14 = vsel %vm15537_vm0, %v944_v56, %v946_v62  ;;  %v953_v55 = vsel %vm15537_vm0, %v950_v17, %v952_v32 }
  0x9e   :  { %1260 = vmatprep.subr.mxu0 %v15558_v0  ;;  %9231 = vmatprep.mubr.f32.mxu1 %v935_v22  ;;  %v948_v7 = vrot.slane %v10272_v60, 1  ;;  %v16040_v22 = vmov 0 }
  0x9f   :  { %1261 = vmatpush2.msra.mxu0 %v8804_v9  ;;  %v945_v9 = vsel %vm15537_vm0, %v942_v38, %v944_v56  ;;  %v16041_v22 = vsel %vm10298_vm12, 4294967295, %v16040_v22  ;;  %v722_v38 = vsel %vm715_vm7, %v719_v4, %v721_v23  ;;  %v16046_v56 = vmov 0  ;;  %v10358_v23 = vld [vmem:[#allocation2 + $0xe0] sm:$0xff] }
  0xa0   :  { %1262 = vmatprep.subr.mxu0 %v15558_v0  ;;  %16042 = vst [vmem:[#allocation31_spill] sm:$0xff] %v16041_v22  ;;  %v949_v27 = vsel %vm15537_vm0, %v946_v62, %v948_v7  ;;  %v951_v36 = vsel %vm15537_vm0, %v948_v7, %v950_v17  ;;  %v958_v62 = vrot.slane %v10324_v47, 1  ;;  %v16049_v4 = vmov 0 }
  0xa1   :  { %1263 = vmatpush2.msra.mxu0 %v8803_v11  ;;  %9232 = vmatmul.mubr.msk.f32.gmra.mxu1 %vm10243_vm8, %v937_v33  ;;  %v16037_v11 = vmov 0  ;;  %v194_v33 = vadd.s32 184, %v10109_v43  ;;  %v725_v7 = vrot.slane %v10132_v5, 7 }
  0xa2   :  { %1264 = vmatprep.subr.mxu0 %v15558_v0  ;;  %9234 = vmatprep.mubr.f32.mxu1 %v939_v37  ;;  %v16038_v11 = vsel %vm10287_vm11, 4294967295, %v16037_v11  ;;  %v954_v37 = vrot.slane %v10304_v26, 1 }
  0xa3   :  { %1265 = vmatpush2.msra.mxu0 %v8800_v25  ;;  %16039 = vst [vmem:[#allocation30_spill] sm:$0xff] %v16038_v11  ;;  %v175_v25 = vadd.s32 32, %v10109_v43 }
  0xa4   :  { %1266 = vmatprep.subr.mxu0 %v15558_v0 }
  0xa5   :  { %1267 = vmatpush2.msra.mxu0 %v8799_v31  ;;  %9235 = vmatmul.mubr.msk.f32.gmra.mxu1 %vm10266_vm10, %v941_v49  ;;  %v354_v31 = vand.u32 15, %v192_v13  ;;  %v956_v49 = vrot.slane %v10315_v50, 1 }
  0xa6   :  { %8446 = vmatmul.mubr.msk.f32.vlgmr.msra.gmra.mxu0 %vm10254_vm9, %v811_v41  ;;  %9237 = vmatprep.mubr.f32.mxu1 %v943_v61  ;;  %v235_v41 = vand.u32 15, %v175_v25  ;;  %v955_v61 = vsel %vm15537_vm0, %v952_v32, %v954_v37 }
  0xa7   :  { %1273 = vmatprep.mubr.f32.mxu0 %v10115_v51  ;;  %v340_v51 = vand.u32 15, %v190_v57  ;;  %vm10330_vm14 = vcmp.ne.s32.totalorder %v354_v31, 15  ;;  %v196_v57 = vadd.s32 200, %v10109_v43  ;;  %v957_v13 = vsel %vm15537_vm0, %v954_v37, %v956_v49 }
  0xa8   :  { %v16047_v56 = vsel %vm10330_vm14, 4294967295, %v16046_v56  ;;  %vm10341_vm15 = vcmp.ne.s32.totalorder %v235_v41, 0  ;;  %v959_v25 = vsel %vm15537_vm0, %v956_v49, %v958_v62  ;;  %v726_v31 = vsel %vm715_vm7, %v723_v45, %v725_v7 }
  0xa9   :  { %9238 = vmatmul.mubr.msk.f32.gmra.mxu1 %vm10287_vm11, %v945_v9  ;;  %vm10309_vm13 = vcmp.ne.s32.totalorder %v340_v51, 15  ;;  %16048 = vst [vmem:[#allocation33_spill] sm:$0xff] %v16047_v56  ;;  %v16050_v4 = vsel %vm10341_vm15, 4294967295, %v16049_v4  ;;  %v177_v9 = vadd.s32 48, %v10109_v43  ;;  %v10347_v51 = vld [vmem:[#allocation2 + $0xd8] sm:$0xff]  ;;  %v964_v37 = vrot.slane %v10358_v23, 1 }
  0xaa   :  { %1274 = vmatmul.mubr.f32.gmra.mxu0 %v718_v63  ;;  %9240 = vmatprep.mubr.f32.mxu1 %v947_v14  ;;  %v10337_v63 = vld [vmem:[#allocation2 + $0xd0] sm:$0xff]  ;;  %16051 = vst [vmem:[#allocation34_spill] sm:$0xff] %v16050_v4  ;;  %v382_v14 = vand.u32 15, %v196_v57  ;;  %v16055_v41 = vmov 0  ;;  %v200_v45 = vadd.s32 232, %v10109_v43 }
  0xab   :  { %1278 = vmatprep.mubr.f32.mxu0 %v10119_v53  ;;  %v16043_v53 = vmov 0  ;;  %v960_v17 = vrot.slane %v10337_v63, 1  ;;  %v249_v32 = vand.u32 15, %v177_v9  ;;  %v10390_v9 = vld [vmem:[#allocation2 + $0xf8] sm:$0xff] }
  0xac   :  { %v16044_v53 = vsel %vm10309_vm13, 4294967295, %v16043_v53 }
  0xad   :  { %16045 = vst [vmem:[#allocation32_spill] sm:$0xff] %v16044_v53  ;;  %9241 = vmatmul.mubr.msk.f32.gmra.mxu1 %vm10309_vm13, %v949_v27  ;;  %v962_v27 = vrot.slane %v10347_v51, 1 }
  0xae   :  { %8448 = vmatmul.mubr.msk.f32.gmra.mxu0 %vm10298_vm12, %v720_v20  ;;  %9243 = vmatprep.mubr.f32.mxu1 %v951_v36  ;;  %v198_v20 = vadd.s32 216, %v10109_v43  ;;  %v10367_v36 = vld [vmem:[#allocation2 + $0xe8] sm:$0xff] }
  0xaf   :  { %1283 = vmatprep.mubr.f32.mxu0 %v10124_v59  ;;  %v368_v59 = vand.u32 15, %v194_v33  ;;  %v727_v33 = vrot.slane %v10145_v15, 7  ;;  %v963_v49 = vsel %vm15537_vm0, %v960_v17, %v962_v27 }
  0xb1   :  { %9244 = vmatmul.mubr.msk.f32.gmra.mxu1 %vm10330_vm14, %v953_v55  ;;  %vm10352_vm13 = vcmp.ne.s32.totalorder %v368_v59, 15  ;;  %vm10373_vm14 = vcmp.ne.s32.totalorder %v382_v14, 15  ;;  %v966_v55 = vrot.slane %v10367_v36, 1  ;;  %v10380_v59 = vld [vmem:[#allocation2 + $0xf0] sm:$0xff]  ;;  %v728_v57 = vsel %vm715_vm7, %v725_v7, %v727_v33 }
  0xb2   :  { %1284 = vmatmul.mubr.f32.gmra.mxu0 %v722_v38  ;;  %9246 = vmatprep.mubr.f32.mxu1 %v955_v61  ;;  %v961_v38 = vsel %vm15537_vm0, %v958_v62, %v960_v17  ;;  %v16056_v41 = vsel %vm10373_vm14, 4294967295, %v16055_v41  ;;  %v16058_v61 = vmov 0  ;;  %v729_v62 = vrot.slane %v10148_v18, 7 }
  0xb3   :  { %1288 = vmatprep.mubr.f32.mxu0 %v10129_v2  ;;  %v16052_v2 = vmov 0  ;;  %16057 = vst [vmem:[#allocation36_spill] sm:$0xff] %v16056_v41  ;;  %v410_v7 = vand.u32 15, %v200_v45  ;;  %v968_v14 = vrot.slane %v10380_v59, 1  ;;  %v202_v17 = vadd.s32 248, %v10109_v43 }
  0xb4   :  { %v16053_v2 = vsel %vm10352_vm13, 4294967295, %v16052_v2 }
  0xb5   :  { %16054 = vst [vmem:[#allocation35_spill] sm:$0xff] %v16053_v2  ;;  %9247 = vmatmul.mubr.msk.f32.gmra.mxu1 %vm10352_vm13, %v957_v13  ;;  %vm10384_vm13 = vcmp.ne.s32.totalorder %v249_v32, 0  ;;  %v965_v13 = vsel %vm15537_vm0, %v962_v27, %v964_v37  ;;  %v730_v27 = vsel %vm715_vm7, %v727_v33, %v729_v62  ;;  %v731_v32 = vrot.slane %v10164_v28, 7 }
  0xb6   :  { %8450 = vmatmul.mubr.msk.f32.gmra.mxu0 %vm10341_vm15, %v724_v3  ;;  %9249 = vmatprep.mubr.f32.mxu1 %v959_v25  ;;  %v16059_v61 = vsel %vm10384_vm13, 4294967295, %v16058_v61  ;;  %v179_v3 = vadd.s32 64, %v10109_v43  ;;  %v970_v25 = vrot.slane %v10390_v9, 1  ;;  %v16067_v33 = vmov 0 }
  0xb7   :  { %1293 = vmatprep.mubr.f32.mxu0 %v10132_v5  ;;  %v396_v5 = vand.u32 15, %v198_v20  ;;  %16060 = vst [vmem:[#allocation37_spill] sm:$0xff] %v16059_v61  ;;  %v967_v20 = vsel %vm15537_vm0, %v964_v37, %v966_v55  ;;  %v424_v37 = vand.u32 15, %v202_v17  ;;  %v737_v17 = vrot.slane %v10183_v42, 7 }
  0xb8   :  { %v971_v45 = vsel %vm15537_vm0, %v968_v14, %v970_v25 }
  0xb9   :  { %9250 = vmatmul.mubr.msk.f32.gmra.mxu1 %vm10373_vm14, %v961_v38  ;;  %vm10395_vm11 = vcmp.ne.s32.totalorder %v396_v5, 15  ;;  %v969_v38 = vsel %vm15537_vm0, %v966_v55, %v968_v14  ;;  %vm10411_vm14 = vcmp.ne.s32.totalorder %v410_v7, 15  ;;  %v16064_v5 = vmov 0 }
  0xba   :  { %1294 = vmatmul.mubr.f32.gmra.mxu0 %v726_v31  ;;  %9252 = vmatprep.mubr.f32.mxu1 %v963_v49  ;;  %v263_v31 = vand.u32 15, %v179_v3  ;;  %v16065_v5 = vsel %vm10411_vm14, 4294967295, %v16064_v5  ;;  %v733_v49 = vrot.slane %v10166_v30, 7  ;;  %v181_v55 = vadd.s32 80, %v10109_v43 }
  0xbb   :  { %1298 = vmatprep.mubr.f32.mxu0 %v10145_v15  ;;  %v16061_v15 = vmov 0  ;;  %16066 = vst [vmem:[#allocation39_spill] sm:$0xff] %v16065_v5  ;;  %v16070_v3 = vmov 0  ;;  %v16073_v14 = vmov 0 }
  0xbc   :  { %v16062_v15 = vsel %vm10395_vm11, 4294967295, %v16061_v15  ;;  %vm10418_vm10 = vcmp.ne.s32.totalorder %v263_v31, 0  ;;  %v16076_v31 = vmov 0 }
  0xbd   :  { %16063 = vst [vmem:[#allocation38_spill] sm:$0xff] %v16062_v15  ;;  %9253 = vmatmul.mubr.msk.f32.gmra.mxu1 %vm10395_vm11, %v965_v13  ;;  %v16068_v33 = vsel %vm10418_vm10, 4294967295, %v16067_v33  ;;  %vm10427_vm11 = vcmp.ne.s32.totalorder %v424_v37, 15  ;;  %v735_v13 = vrot.slane %v10181_v40, 7 }
  0xbe   :  { %8452 = vmatmul.mubr.msk.f32.gmra.mxu0 %vm10384_vm13, %v728_v57  ;;  %9255 = vmatprep.mubr.f32.mxu1 %v967_v20  ;;  %16069 = vst [vmem:[#allocation40_spill] sm:$0xff] %v16068_v33  ;;  %v1004_v57 = vsel %vm15537_vm0, %v970_v25, 0.0  ;;  %v16071_v3 = vsel %vm10427_vm11, 4294967295, %v16070_v3 }
  0xbf   :  { %1303 = vmatprep.mubr.f32.mxu0 %v10148_v18  ;;  %v732_v18 = vsel %vm715_vm7, %v729_v62, %v731_v32  ;;  %16072 = vst [vmem:[#allocation41_spill] sm:$0xff] %v16071_v3  ;;  %v277_v62 = vand.u32 15, %v181_v55  ;;  %v736_v7 = vsel %vm715_vm7, %v733_v49, %v735_v13  ;;  %v738_v20 = vsel %vm715_vm7, %v735_v13, %v737_v17 }
  0xc0   :  { %v187_v55 = vadd.s32 128, %v10109_v43  ;;  %v749_v13 = vrot.slane %v10236_v29, 7 }
  0xc1   :  { %9256 = vmatmul.mubr.msk.f32.gmra.mxu1 %vm10411_vm14, %v969_v38  ;;  %vm10440_vm0 = vcmp.ne.s32.totalorder %v277_v62, 0  ;;  %v185_v38 = vadd.s32 112, %v10109_v43  ;;  %v16082_v62 = vmov 0 }
  0xc2   :  { %1304 = vmatmul.mubr.f32.gmra.mxu0 %v730_v27  ;;  %9258 = vmatprep.mubr.f32.mxu1 %v971_v45  ;;  %v16074_v14 = vsel %vm10440_vm0, 4294967295, %v16073_v14 }
  0xc3   :  { %1308 = vmatprep.mubr.f32.mxu0 %v10164_v28  ;;  %v734_v28 = vsel %vm715_vm7, %v731_v32, %v733_v49  ;;  %16075 = vst [vmem:[#allocation42_spill] sm:$0xff] %v16074_v14  ;;  %v741_v32 = vrot.slane %v10200_v58, 7  ;;  %v305_v37 = vand.u32 15, %v185_v38  ;;  %v745_v49 = vrot.slane %v10217_v10, 7 }
  0xc4   :  { %v16088_v38 = vmov 0 }
  0xc5   :  { %9259 = vmatmul.mubr.msk.f32.gmra.mxu1 %vm10427_vm11, %v1004_v57  ;;  %vm10466_vm14 = vcmp.ne.s32.totalorder %v305_v37, 0  ;;  %v319_v57 = vand.u32 15, %v187_v55  ;;  %v193_v37 = vadd.s32 176, %v10109_v43  ;;  %v761_v55 = vrot.slane %v10304_v26, 7 }
  0xc6   :  { %8454 = vmatmul.mubr.msk.f32.gmra.mxu0 %vm10418_vm10, %v732_v18  ;;  %v16079_v18 = vmov 0 }
  0xc7   :  { %1313 = vmatprep.mubr.f32.mxu0 %v10166_v30  ;;  %v183_v30 = vadd.s32 96, %v10109_v43  ;;  %v16080_v18 = vsel %vm10466_vm14, 4294967295, %v16079_v18  ;;  %vm10479_vm8 = vcmp.ne.s32.totalorder %v319_v57, 0 }
  0xc8   :  { %16081 = vst [vmem:[#allocation44_spill] sm:$0xff] %v16080_v18  ;;  %v16083_v62 = vsel %vm10479_vm8, 4294967295, %v16082_v62 }
  0xc9   :  { %v291_v25 = vand.u32 15, %v183_v30  ;;  %16084 = vst [vmem:[#allocation45_spill] sm:$0xff] %v16083_v62 }
  0xca   :  { %1314 = vmatmul.mubr.f32.gmra.mxu0 %v734_v28 }
  0xcb   :  { %1318 = vmatprep.mubr.f32.mxu0 %v10181_v40  ;;  %v739_v40 = vrot.slane %v10195_v54, 7  ;;  %vm10453_vm11 = vcmp.ne.s32.totalorder %v291_v25, 0  ;;  %v753_v25 = vrot.slane %v10260_v48, 7 }
  0xcc   :  { %v16077_v31 = vsel %vm10453_vm11, 4294967295, %v16076_v31 }
  0xcd   :  { %v740_v27 = vsel %vm715_vm7, %v737_v17, %v739_v40  ;;  %16078 = vst [vmem:[#allocation43_spill] sm:$0xff] %v16077_v31  ;;  %v2435_v31 = vld [vmem:[#allocation7 + $0xf0] sm:$0xff] }
  0xce   :  { %8456 = vmatmul.mubr.msk.f32.gmra.mxu0 %vm10440_vm0, %v736_v7  ;;  %v189_v7 = vadd.s32 144, %v10109_v43 }
  0xcf   :  { %1323 = vmatprep.mubr.f32.mxu0 %v10183_v42  ;;  %v742_v42 = vsel %vm715_vm7, %v739_v40, %v741_v32  ;;  %v191_v40 = vadd.s32 160, %v10109_v43 }
  0xd0   :  { %v333_v17 = vand.u32 15, %v189_v7  ;;  %v197_v7 = vadd.s32 208, %v10109_v43 }
  0xd2   :  { %1324 = vmatmul.mubr.f32.gmra.mxu0 %v738_v20  ;;  %v16085_v20 = vmov 0 }
  0xd3   :  { %1328 = vmatprep.mubr.f32.mxu0 %v10195_v54  ;;  %v743_v54 = vrot.slane %v10215_v8, 7 }
  0xd5   :  { %v744_v45 = vsel %vm715_vm7, %v741_v32, %v743_v54 }
  0xd6   :  { %8458 = vmatmul.mubr.msk.f32.gmra.mxu0 %vm10453_vm11, %v740_v27  ;;  %v347_v27 = vand.u32 15, %v191_v40 }
  0xd7   :  { %1333 = vmatprep.mubr.f32.mxu0 %v10200_v58  ;;  %v746_v58 = vsel %vm715_vm7, %v743_v54, %v745_v49  ;;  %v361_v54 = vand.u32 15, %v193_v37 }
  0xda   :  { %1334 = vmatmul.mubr.f32.gmra.mxu0 %v742_v42  ;;  %v757_v42 = vrot.slane %v10281_v6, 7 }
  0xdb   :  { %1338 = vmatprep.mubr.f32.mxu0 %v10215_v8  ;;  %v747_v8 = vrot.slane %v10229_v21, 7 }
  0xdd   :  { %v748_v28 = vsel %vm715_vm7, %v745_v49, %v747_v8  ;;  %v16091_v49 = vmov 0 }
  0xde   :  { %8460 = vmatmul.mubr.msk.f32.gmra.mxu0 %vm10466_vm14, %v744_v45  ;;  %vm10492_vm14 = vcmp.ne.s32.totalorder %v333_v17, 0 }
  0xdf   :  { %1343 = vmatprep.mubr.f32.mxu0 %v10217_v10  ;;  %v750_v10 = vsel %vm715_vm7, %v747_v8, %v749_v13  ;;  %v16086_v20 = vsel %vm10492_vm14, 4294967295, %v16085_v20 }
  0xe0   :  { %16087 = vst [vmem:[#allocation46_spill] sm:$0xff] %v16086_v20 }
  0xe2   :  { %1344 = vmatmul.mubr.f32.gmra.mxu0 %v746_v58  ;;  %v195_v58 = vadd.s32 192, %v10109_v43 }
  0xe3   :  { %1348 = vmatprep.mubr.f32.mxu0 %v10229_v21  ;;  %v751_v21 = vrot.slane %v10251_v39, 7 }
  0xe4   :  { %v375_v57 = vand.u32 15, %v195_v58 }
  0xe5   :  { %v752_v30 = vsel %vm715_vm7, %v749_v13, %v751_v21  ;;  %v765_v13 = vrot.slane %v10324_v47, 7 }
  0xe6   :  { %8462 = vmatmul.mubr.msk.f32.gmra.mxu0 %vm10479_vm8, %v748_v28  ;;  %vm10505_vm8 = vcmp.ne.s32.totalorder %v347_v27, 0  ;;  %v16094_v28 = vmov 0  ;;  %v16100_v27 = vmov 0 }
  0xe7   :  { %1353 = vmatprep.mubr.f32.mxu0 %v10236_v29  ;;  %v754_v29 = vsel %vm715_vm7, %v751_v21, %v753_v25  ;;  %v16089_v38 = vsel %vm10505_vm8, 4294967295, %v16088_v38  ;;  %v16097_v21 = vmov 0 }
  0xe8   :  { %16090 = vst [vmem:[#allocation47_spill] sm:$0xff] %v16089_v38 }
  0xea   :  { %1354 = vmatmul.mubr.f32.gmra.mxu0 %v750_v10  ;;  %v389_v10 = vand.u32 15, %v197_v7 }
  0xeb   :  { %1358 = vmatprep.mubr.f32.mxu0 %v10251_v39  ;;  %v755_v39 = vrot.slane %v10272_v60, 7 }
  0xed   :  { %v756_v32 = vsel %vm715_vm7, %v753_v25, %v755_v39  ;;  %v199_v25 = vadd.s32 224, %v10109_v43 }
  0xee   :  { %8464 = vmatmul.mubr.msk.f32.gmra.mxu0 %vm10492_vm14, %v752_v30  ;;  %vm10518_vm14 = vcmp.ne.s32.totalorder %v361_v54, 0  ;;  %v769_v30 = vrot.slane %v10347_v51, 7  ;;  %v777_v54 = vrot.slane %v10390_v9, 7 }
  0xef   :  { %1363 = vmatprep.mubr.f32.mxu0 %v10260_v48  ;;  %v758_v48 = vsel %vm715_vm7, %v755_v39, %v757_v42  ;;  %v16092_v49 = vsel %vm10518_vm14, 4294967295, %v16091_v49  ;;  %v403_v40 = vand.u32 15, %v199_v25  ;;  %v773_v39 = vrot.slane %v10367_v36, 7 }
  0xf0   :  { %16093 = vst [vmem:[#allocation48_spill] sm:$0xff] %v16092_v49 }
  0xf2   :  { %1364 = vmatmul.mubr.f32.gmra.mxu0 %v754_v29 }
  0xf3   :  { %1368 = vmatprep.mubr.f32.mxu0 %v10272_v60  ;;  %v759_v60 = vrot.slane %v10294_v19, 7 }
  0xf5   :  { %v760_v45 = vsel %vm715_vm7, %v757_v42, %v759_v60 }
  0xf6   :  { %8466 = vmatmul.mubr.msk.f32.gmra.mxu0 %vm10505_vm8, %v756_v32  ;;  %vm10531_vm8 = vcmp.ne.s32.totalorder %v375_v57, 0  ;;  %v201_v32 = vadd.s32 240, %v10109_v43 }
  0xf7   :  { %1373 = vmatprep.mubr.f32.mxu0 %v10281_v6  ;;  %v762_v6 = vsel %vm715_vm7, %v759_v60, %v761_v55  ;;  %v16095_v28 = vsel %vm10531_vm8, 4294967295, %v16094_v28 }
  0xf8   :  { %16096 = vst [vmem:[#allocation49_spill] sm:$0xff] %v16095_v28  ;;  %v417_v42 = vand.u32 15, %v201_v32 }
  0xfa   :  { %1374 = vmatmul.mubr.f32.gmra.mxu0 %v758_v48  ;;  %v16103_v48 = vmov 0 }
  0xfb   :  { %1378 = vmatprep.mubr.f32.mxu0 %v10294_v19  ;;  %v763_v19 = vrot.slane %v10315_v50, 7 }
  0xfd   :  { %v764_v8 = vsel %vm715_vm7, %v761_v55, %v763_v19 }
  0xfe   :  { %8468 = vmatmul.mubr.msk.f32.gmra.mxu0 %vm10518_vm14, %v760_v45  ;;  %vm10544_vm14 = vcmp.ne.s32.totalorder %v389_v10, 0 }
  0xff   :  { %1383 = vmatprep.mubr.f32.mxu0 %v10304_v26  ;;  %v766_v26 = vsel %vm715_vm7, %v763_v19, %v765_v13  ;;  %v16098_v21 = vsel %vm10544_vm14, 4294967295, %v16097_v21 }
 0x100   :  { %16099 = vst [vmem:[#allocation50_spill] sm:$0xff] %v16098_v21 }
 0x102   :  { %1384 = vmatmul.mubr.f32.gmra.mxu0 %v762_v6 }
 0x103   :  { %1388 = vmatprep.mubr.f32.mxu0 %v10315_v50  ;;  %v767_v50 = vrot.slane %v10337_v63, 7 }
 0x105   :  { %v768_v17 = vsel %vm715_vm7, %v765_v13, %v767_v50 }
 0x106   :  { %8470 = vmatmul.mubr.msk.f32.gmra.mxu0 %vm10531_vm8, %v764_v8  ;;  %vm10557_vm8 = vcmp.ne.s32.totalorder %v403_v40, 0 }
 0x107   :  { %1393 = vmatprep.mubr.f32.mxu0 %v10324_v47  ;;  %v770_v47 = vsel %vm715_vm7, %v767_v50, %v769_v30  ;;  %v16101_v27 = vsel %vm10557_vm8, 4294967295, %v16100_v27 }
 0x108   :  { %16102 = vst [vmem:[#allocation51_spill] sm:$0xff] %v16101_v27 }
 0x10a   :  { %1394 = vmatmul.mubr.f32.gmra.mxu0 %v766_v26 }
 0x10b   :  { %1398 = vmatprep.mubr.f32.mxu0 %v10337_v63  ;;  %v771_v63 = vrot.slane %v10358_v23, 7 }
 0x10d   :  { %v772_v29 = vsel %vm715_vm7, %v769_v30, %v771_v63 }
 0x10e   :  { %8472 = vmatmul.mubr.msk.f32.gmra.mxu0 %vm10544_vm14, %v768_v17  ;;  %vm10570_vm14 = vcmp.ne.s32.totalorder %v417_v42, 0 }
 0x10f   :  { %1403 = vmatprep.mubr.f32.mxu0 %v10347_v51  ;;  %v774_v51 = vsel %vm715_vm7, %v771_v63, %v773_v39  ;;  %v16104_v48 = vsel %vm10570_vm14, 4294967295, %v16103_v48 }
 0x110   :  { %16105 = vst [vmem:[#allocation52_spill] sm:$0xff] %v16104_v48 }
 0x112   :  { %1404 = vmatmul.mubr.f32.gmra.mxu0 %v770_v47 }
 0x113   :  { %1408 = vmatprep.mubr.f32.mxu0 %v10358_v23  ;;  %v775_v23 = vrot.slane %v10380_v59, 7 }
 0x115   :  { %v776_v37 = vsel %vm715_vm7, %v773_v39, %v775_v23 }
 0x116   :  { %8474 = vmatmul.mubr.msk.f32.gmra.mxu0 %vm10557_vm8, %v772_v29 }
 0x117   :  { %1413 = vmatprep.mubr.f32.mxu0 %v10367_v36  ;;  %v778_v36 = vsel %vm715_vm7, %v775_v23, %v777_v54 }
 0x11a   :  { %1414 = vmatmul.mubr.f32.gmra.mxu0 %v774_v51 }
 0x11b   :  { %1418 = vmatprep.mubr.f32.mxu0 %v10380_v59  ;;  %v10583_v59 = vld [vmem:[%s16106_s30] ss:$0 sm:$0xff] }
 0x11e   :  { %8476 = vmatmul.mubr.msk.f32.gmra.mxu0 %vm10570_vm14, %v776_v37 }
 0x11f   :  { %1423 = vmatprep.mubr.f32.mxu0 %v10390_v9 }
 0x122   :  { %1424 = vmatmul.mubr.f32.gmra.mxu0 %v778_v36 }
 0x123   :  { %2882 = vmatprep.mubr.f32.mxu0 %v15558_v0 }
 0x149   :  { %v9215_v60 = vpop.f32.mrf.mxu1 }
 0x14b   :  { %v1495_v58 = vpop.f32.mrf.mxu1 }
 0x14d   :  { %v9218_v7 = vpop.f32.mrf.mxu1 }
 0x14f   :  { %v1505_v30 = vpop.f32.mrf.mxu1 }
 0x151   :  { %v9221_v32 = vpop.f32.mrf.mxu1 }
 0x153   :  { %v1515_v54 = vpop.f32.mrf.mxu1 }
 0x166   :  { %v1270_v45 = vpop.f32.mrf.mxu0 }
 0x167   :  { %v1271_v55 = vadd.f32 %v10583_v59, %v1270_v45 }
 0x168   :  { %v1272_v6 = vpop.f32.mrf.mxu0 }
 0x169   :  { %v10586_v57 = vadd.f32 %v1495_v58, %v1271_v55 }
 0x16a   :  { %v1275_v19 = vpop.f32.mrf.mxu0 }
 0x16b   :  { %v1276_v9 = vadd.f32 %v10583_v59, %v1275_v19  ;;  %v15574_v8 = vmax.f32 %v10586_v57, 0.0  ;;  %v9224_v19 = vpop.f32.mrf.mxu1 }
 0x16c   :  { %v1277_v13 = vpop.f32.mrf.mxu0 }
 0x16d   :  { %1688 = vadd.xlane.f32.xlu0 %v15574_v8  ;;  %v10592_v26 = vadd.f32 %v9215_v60, %v1276_v9 }
 0x16e   :  { %v1280_v10 = vpop.f32.mrf.mxu0 }
 0x16f   :  { %v1281_v50 = vadd.f32 %v10583_v59, %v1280_v10  ;;  %v15572_v17 = vmax.f32 %v10592_v26, 0.0 }
 0x170   :  { %v1282_v25 = vpop.f32.mrf.mxu0 }
 0x171   :  { %v10596_v47 = vadd.f32 %v1505_v30, %v1281_v50  ;;  %1690 = vadd.xlane.f32.xlu0 %v15572_v17  ;;  %v1525_v50 = vpop.f32.mrf.mxu1 }
 0x172   :  { %v1285_v40 = vpop.f32.mrf.mxu0 }
 0x173   :  { %v1286_v63 = vadd.f32 %v10583_v59, %v1285_v40  ;;  %v15570_v29 = vmax.f32 %v10596_v47, 0.0 }
 0x174   :  { %v1287_v39 = vpop.f32.mrf.mxu0 }
 0x175   :  { %1692 = vadd.xlane.f32.xlu1 %v15570_v29  ;;  %v10604_v51 = vadd.f32 %v9218_v7, %v1286_v63 }
 0x176   :  { %v1290_v42 = vpop.f32.mrf.mxu0 }
 0x177   :  { %v1291_v23 = vadd.f32 %v10583_v59, %v1290_v42  ;;  %v15568_v37 = vmax.f32 %v10604_v51, 0.0 }
 0x178   :  { %v1292_v36 = vpop.f32.mrf.mxu0 }
 0x179   :  { %v10608_v60 = vadd.f32 %v1515_v54, %v1291_v23  ;;  %1694 = vadd.xlane.f32.xlu1 %v15568_v37 }
 0x17a   :  { %v1295_v45 = vpop.f32.mrf.mxu0 }
 0x17b   :  { %v1296_v55 = vadd.f32 %v10583_v59, %v1295_v45  ;;  %v15566_v58 = vmax.f32 %v10608_v60, 0.0 }
 0x17c   :  { %v1297_v6 = vpop.f32.mrf.mxu0 }
 0x17d   :  { %1696 = vadd.xlane.f32.xlu0 %v15566_v58  ;;  %v10616_v9 = vadd.f32 %v9221_v32, %v1296_v55  ;;  %v9227_v32 = vpop.f32.mrf.mxu1 }
 0x17e   :  { %v1300_v13 = vpop.f32.mrf.mxu0 }
 0x17f   :  { %v1301_v7 = vadd.f32 %v10583_v59, %v1300_v13  ;;  %v15564_v10 = vmax.f32 %v10616_v9, 0.0  ;;  %v1535_v55 = vpop.f32.mrf.mxu1 }
 0x180   :  { %v1302_v30 = vpop.f32.mrf.mxu0 }
 0x181   :  { %v10620_v25 = vadd.f32 %v1525_v50, %v1301_v7  ;;  %1698 = vadd.xlane.f32.xlu1 %v15564_v10 }
 0x182   :  { %v1305_v40 = vpop.f32.mrf.mxu0 }
 0x183   :  { %v1306_v63 = vadd.f32 %v10583_v59, %v1305_v40  ;;  %v15562_v39 = vmax.f32 %v10620_v25, 0.0 }
 0x184   :  { %v1307_v42 = vpop.f32.mrf.mxu0 }
 0x185   :  { %1700 = vadd.xlane.f32.xlu0 %v15562_v39  ;;  %v10628_v23 = vadd.f32 %v9224_v19, %v1306_v63  ;;  %v9230_v19 = vpop.f32.mrf.mxu1 }
 0x186   :  { %v1310_v54 = vpop.f32.mrf.mxu0 }
 0x187   :  { %v1311_v36 = vadd.f32 %v10583_v59, %v1310_v54  ;;  %v15560_v45 = vmax.f32 %v10628_v23, 0.0 }
 0x188   :  { %v1312_v6 = vpop.f32.mrf.mxu0 }
 0x189   :  { %v10632_v13 = vadd.f32 %v1535_v55, %v1311_v36  ;;  %1702 = vadd.xlane.f32.xlu1 %v15560_v45  ;;  %v1545_v55 = vpop.f32.mrf.mxu1 }
 0x18a   :  { %v1315_v7 = vpop.f32.mrf.mxu0 }
 0x18b   :  { %v1316_v50 = vadd.f32 %v10583_v59, %v1315_v7  ;;  %v15561_v30 = vmax.f32 %v10632_v13, 0.0 }
 0x18c   :  { %v1317_v40 = vpop.f32.mrf.mxu0 }
 0x18d   :  { %1704 = vadd.xlane.f32.xlu0 %v15561_v30  ;;  %v10640_v63 = vadd.f32 %v9227_v32, %v1316_v50  ;;  %v9233_v32 = vpop.f32.mrf.mxu1 }
 0x18e   :  { %v1320_v42 = vpop.f32.mrf.mxu0 }
 0x18f   :  { %v1321_v54 = vadd.f32 %v10583_v59, %v1320_v42  ;;  %v15563_v36 = vmax.f32 %v10640_v63, 0.0 }
 0x190   :  { %v1322_v6 = vpop.f32.mrf.mxu0 }
 0x191   :  { %v10644_v0 = vadd.f32 %v1545_v55, %v1321_v54  ;;  %1706 = vadd.xlane.f32.xlu1 %v15563_v36  ;;  %v1555_v55 = vpop.f32.mrf.mxu1 }
 0x192   :  { %v1325_v7 = vpop.f32.mrf.mxu0 }
 0x193   :  { %v1326_v40 = vadd.f32 %v10583_v59, %v1325_v7  ;;  %v15565_v45 = vmax.f32 %v10644_v0, 0.0 }
 0x194   :  { %v1327_v30 = vpop.f32.mrf.mxu0 }
 0x195   :  { %1708 = vadd.xlane.f32.xlu0 %v15565_v45  ;;  %v10652_v50 = vadd.f32 %v9230_v19, %v1326_v40  ;;  %v9236_v19 = vpop.f32.mrf.mxu1 }
 0x196   :  { %v1330_v42 = vpop.f32.mrf.mxu0 }
 0x197   :  { %v1331_v6 = vadd.f32 %v10583_v59, %v1330_v42  ;;  %v15567_v54 = vmax.f32 %v10652_v50, 0.0 }
 0x198   :  { %v1332_v39 = vpop.f32.mrf.mxu0 }
 0x199   :  { %v10656_v36 = vadd.f32 %v1555_v55, %v1331_v6  ;;  %1710 = vadd.xlane.f32.xlu1 %v15567_v54  ;;  %v1565_v55 = vpop.f32.mrf.mxu1 }
 0x19a   :  { %v1335_v7 = vpop.f32.mrf.mxu0 }
 0x19b   :  { %v1336_v30 = vadd.f32 %v10583_v59, %v1335_v7  ;;  %v15569_v10 = vmax.f32 %v10656_v36, 0.0 }
 0x19c   :  { %v1337_v45 = vpop.f32.mrf.mxu0 }
 0x19d   :  { %1712 = vadd.xlane.f32.xlu0 %v15569_v10  ;;  %v10664_v40 = vadd.f32 %v9233_v32, %v1336_v30  ;;  %v9239_v32 = vpop.f32.mrf.mxu1 }
 0x19e   :  { %v1340_v42 = vpop.f32.mrf.mxu0 }
 0x19f   :  { %v1341_v39 = vadd.f32 %v10583_v59, %v1340_v42  ;;  %v15571_v6 = vmax.f32 %v10664_v40, 0.0 }
 0x1a0   :  { %v1342_v58 = vpop.f32.mrf.mxu0 }
 0x1a1   :  { %v10668_v54 = vadd.f32 %v1565_v55, %v1341_v39  ;;  %1714 = vadd.xlane.f32.xlu1 %v15571_v6  ;;  %v1575_v55 = vpop.f32.mrf.mxu1 }
 0x1a2   :  { %v1345_v7 = vpop.f32.mrf.mxu0 }
 0x1a3   :  { %v1346_v45 = vadd.f32 %v10583_v59, %v1345_v7  ;;  %v15573_v37 = vmax.f32 %v10668_v54, 0.0 }
 0x1a4   :  { %v1347_v10 = vpop.f32.mrf.mxu0 }
 0x1a5   :  { %1716 = vadd.xlane.f32.xlu0 %v15573_v37  ;;  %v10676_v30 = vadd.f32 %v9236_v19, %v1346_v45  ;;  %v9242_v19 = vpop.f32.mrf.mxu1 }
 0x1a6   :  { %v1350_v42 = vpop.f32.mrf.mxu0 }
 0x1a7   :  { %v1351_v58 = vadd.f32 %v10583_v59, %v1350_v42  ;;  %v15575_v39 = vmax.f32 %v10676_v30, 0.0 }
 0x1a8   :  { %v1352_v29 = vpop.f32.mrf.mxu0 }
 0x1a9   :  { %v10680_v6 = vadd.f32 %v1575_v55, %v1351_v58  ;;  %1718 = vadd.xlane.f32.xlu1 %v15575_v39  ;;  %v1585_v55 = vpop.f32.mrf.mxu1 }
 0x1aa   :  { %v1355_v7 = vpop.f32.mrf.mxu0 }
 0x1ab   :  { %v1356_v10 = vadd.f32 %v10583_v59, %v1355_v7  ;;  %v15578_v17 = vmax.f32 %v10680_v6, 0.0 }
 0x1ac   :  { %v1357_v37 = vpop.f32.mrf.mxu0 }
 0x1ad   :  { %1720 = vadd.xlane.f32.xlu0 %v15578_v17  ;;  %v10688_v45 = vadd.f32 %v9239_v32, %v1356_v10  ;;  %v9245_v32 = vpop.f32.mrf.mxu1 }
 0x1ae   :  { %v1360_v42 = vpop.f32.mrf.mxu0 }
 0x1af   :  { %v1361_v29 = vadd.f32 %v10583_v59, %v1360_v42  ;;  %v15581_v58 = vmax.f32 %v10688_v45, 0.0 }
 0x1b0   :  { %v1362_v8 = vpop.f32.mrf.mxu0 }
 0x1b1   :  { %v10692_v39 = vadd.f32 %v1585_v55, %v1361_v29  ;;  %1722 = vadd.xlane.f32.xlu1 %v15581_v58  ;;  %v1595_v55 = vpop.f32.mrf.mxu1 }
 0x1b2   :  { %v1365_v7 = vpop.f32.mrf.mxu0 }
 0x1b3   :  { %v1366_v37 = vadd.f32 %v10583_v59, %v1365_v7  ;;  %v15584_v43 = vmax.f32 %v10692_v39, 0.0 }
 0x1b4   :  { %v1367_v17 = vpop.f32.mrf.mxu0 }
 0x1b5   :  { %1724 = vadd.xlane.f32.xlu0 %v15584_v43  ;;  %v10700_v10 = vadd.f32 %v9242_v19, %v1366_v37  ;;  %v9248_v19 = vpop.f32.mrf.mxu1 }
 0x1b6   :  { %v1370_v42 = vpop.f32.mrf.mxu0 }
 0x1b7   :  { %v1371_v8 = vadd.f32 %v10583_v59, %v1370_v42  ;;  %v15587_v29 = vmax.f32 %v10700_v10, 0.0 }
 0x1b8   :  { %v1372_v3 = vpop.f32.mrf.mxu0 }
 0x1b9   :  { %v10704_v58 = vadd.f32 %v1595_v55, %v1371_v8  ;;  %1726 = vadd.xlane.f32.xlu1 %v15587_v29  ;;  %v1605_v55 = vpop.f32.mrf.mxu1 }
 0x1ba   :  { %v1375_v7 = vpop.f32.mrf.mxu0 }
 0x1bb   :  { %v1376_v17 = vadd.f32 %v10583_v59, %v1375_v7  ;;  %v15590_v5 = vmax.f32 %v10704_v58, 0.0 }
 0x1bc   :  { %v1377_v43 = vpop.f32.mrf.mxu0 }
 0x1bd   :  { %1728 = vadd.xlane.f32.xlu1 %v15590_v5  ;;  %v10712_v37 = vadd.f32 %v9245_v32, %v1376_v17  ;;  %v9251_v32 = vpop.f32.mrf.mxu1 }
 0x1be   :  { %v1380_v42 = vpop.f32.mrf.mxu0 }
 0x1bf   :  { %v1381_v3 = vadd.f32 %v10583_v59, %v1380_v42  ;;  %v15593_v8 = vmax.f32 %v10712_v37, 0.0  ;;  %v2452_v42 = vld [vmem:[#allocation7 + $0x178] sm:$0xff]  ;;  %v1615_v41 = vpop.f32.mrf.mxu1 }
 0x1c0   :  { %v1382_v48 = vpop.f32.mrf.mxu0 }
 0x1c1   :  { %v10716_v29 = vadd.f32 %v1605_v55, %v1381_v3  ;;  %1730 = vadd.xlane.f32.xlu1 %v15593_v8  ;;  %v2547_v48 = vunpack.c.l.bf16 %v2452_v42  ;;  %v2548_v3 = vunpack.c.h.bf16 %v2452_v42  ;;  %v9254_v42 = vpop.f32.mrf.mxu1 }
 0x1c2   :  { %v1385_v7 = vpop.f32.mrf.mxu0 }
 0x1c3   :  { %v1386_v43 = vadd.f32 %v10583_v59, %v1385_v7  ;;  %v15598_v15 = vmax.f32 %v10716_v29, 0.0  ;;  %2818 = vmatprep.subr.mxu0 %v2548_v3 }
 0x1c4   :  { %v1387_v5 = vpop.f32.mrf.mxu0  ;;  %2819 = vmatpush1.msra.mxu0 %v2547_v48 }
 0x1c5   :  { %1732 = vadd.xlane.f32.xlu1 %v15598_v15  ;;  %v10724_v17 = vadd.f32 %v9248_v19, %v1386_v43 }
 0x1c6   :  { %v1390_v27 = vpop.f32.mrf.mxu0 }
 0x1c7   :  { %v1391_v55 = vadd.f32 %v10583_v59, %v1390_v27  ;;  %v15601_v8 = vmax.f32 %v10724_v17, 0.0 }
 0x1c8   :  { %v1392_v21 = vpop.f32.mrf.mxu0 }
 0x1c9   :  { %v10728_v7 = vadd.f32 %v1615_v41, %v1391_v55  ;;  %1734 = vadd.xlane.f32.xlu1 %v15601_v8  ;;  %v2451_v21 = vld [vmem:[#allocation7 + $0x170] sm:$0xff]  ;;  %v1625_v8 = vpop.f32.mrf.mxu1 }
 0x1ca   :  { %v1395_v5 = vpop.f32.mrf.mxu0  ;;  %v2545_v41 = vunpack.c.l.bf16 %v2451_v21  ;;  %v2546_v55 = vunpack.c.h.bf16 %v2451_v21 }
 0x1cb   :  { %v1396_v19 = vadd.f32 %v10583_v59, %v1395_v5  ;;  %v15604_v43 = vmax.f32 %v10728_v7, 0.0  ;;  %v9257_v21 = vpop.f32.mrf.mxu1 }
 0x1cc   :  { %v1397_v15 = vpop.f32.mrf.mxu0  ;;  %2820 = vmatprep.subr.mxu0 %v2546_v55 }
 0x1cd   :  { %1736 = vadd.xlane.f32.xlu1 %v15604_v43  ;;  %v10736_v27 = vadd.f32 %v9251_v32, %v1396_v19  ;;  %2821 = vmatpush1.msra.mxu0 %v2545_v41 }
 0x1ce   :  { %v1400_v3 = vpop.f32.mrf.mxu0 }
 0x1cf   :  { %v1401_v2 = vadd.f32 %v10583_v59, %v1400_v3  ;;  %v15607_v48 = vmax.f32 %v10736_v27, 0.0 }
 0x1d0   :  { %v1402_v28 = vpop.f32.mrf.mxu0 }
 0x1d1   :  { %v10740_v5 = vadd.f32 %v1625_v8, %v1401_v2  ;;  %1738 = vadd.xlane.f32.xlu1 %v15607_v48  ;;  %v2450_v28 = vld [vmem:[#allocation7 + $0x168] sm:$0xff]  ;;  %v1635_v48 = vpop.f32.mrf.mxu1 }
 0x1d2   :  { %v1405_v15 = vpop.f32.mrf.mxu0  ;;  %v2543_v2 = vunpack.c.l.bf16 %v2450_v28  ;;  %v2544_v8 = vunpack.c.h.bf16 %v2450_v28 }
 0x1d3   :  { %v1406_v32 = vadd.f32 %v10583_v59, %v1405_v15  ;;  %v15610_v19 = vmax.f32 %v10740_v5, 0.0  ;;  %v9260_v28 = vpop.f32.mrf.mxu1 }
 0x1d4   :  { %v1407_v43 = vpop.f32.mrf.mxu0  ;;  %2822 = vmatprep.subr.mxu0 %v2544_v8 }
 0x1d5   :  { %1740 = vadd.xlane.f32.xlu1 %v15610_v19  ;;  %v10748_v3 = vadd.f32 %v9254_v42, %v1406_v32  ;;  %2823 = vmatpush1.msra.mxu0 %v2543_v2  ;;  %v1645_v38 = vpop.f32.mrf.mxu1 }
 0x1d6   :  { %v1410_v55 = vpop.f32.mrf.mxu0 }
 0x1d7   :  { %v1411_v56 = vadd.f32 %v10583_v59, %v1410_v55  ;;  %v15613_v41 = vmax.f32 %v10748_v3, 0.0 }
 0x1d8   :  { %v1412_v49 = vpop.f32.mrf.mxu0 }
 0x1d9   :  { %v10752_v15 = vadd.f32 %v1635_v48, %v1411_v56  ;;  %1742 = vadd.xlane.f32.xlu1 %v15613_v41  ;;  %v2449_v49 = vld [vmem:[#allocation7 + $0x160] sm:$0xff]  ;;  %v2420_v41 = vld [vmem:[#allocation7 + $0x78] sm:$0xff] }
 0x1da   :  { %v1415_v43 = vpop.f32.mrf.mxu0  ;;  %v2541_v56 = vunpack.c.l.bf16 %v2449_v49  ;;  %v2542_v48 = vunpack.c.h.bf16 %v2449_v49  ;;  %v2484_v11 = vunpack.c.h.bf16 %v2420_v41 }
 0x1db   :  { %v1416_v42 = vadd.f32 %v10583_v59, %v1415_v43  ;;  %v15618_v32 = vmax.f32 %v10752_v15, 0.0 }
 0x1dc   :  { %v1417_v19 = vpop.f32.mrf.mxu0  ;;  %2824 = vmatprep.subr.mxu0 %v2542_v48  ;;  %2561 = vmatprep.subr.mxu1 %v2484_v11  ;;  %v2417_v11 = vld [vmem:[#allocation7 + $0x60] sm:$0xff] }
 0x1dd   :  { %1744 = vadd.xlane.f32.xlu1 %v15618_v32  ;;  %v10760_v55 = vadd.f32 %v9257_v21, %v1416_v42  ;;  %2825 = vmatpush1.msra.mxu0 %v2541_v56  ;;  %v2483_v21 = vunpack.c.l.bf16 %v2420_v41  ;;  %v2419_v42 = vld [vmem:[#allocation7 + $0x70] sm:$0xff]  ;;  %v2448_v56 = vld [vmem:[#allocation7 + $0x158] sm:$0xff] }
 0x1de   :  { %v1420_v8 = vpop.f32.mrf.mxu0  ;;  %v2482_v49 = vunpack.c.h.bf16 %v2419_v42  ;;  %v2481_v52 = vunpack.c.l.bf16 %v2419_v42  ;;  %v2477_v42 = vunpack.c.l.bf16 %v2417_v11 }
 0x1df   :  { %v1421_v53 = vadd.f32 %v10583_v59, %v1420_v8  ;;  %v15623_v2 = vmax.f32 %v10760_v55, 0.0  ;;  %2562 = vmatpush1.msra.mxu1 %v2483_v21 }
 0x1e0   :  { %v1422_v43 = vpop.f32.mrf.mxu0  ;;  %2563 = vmatprep.subr.mxu1 %v2482_v49 }
 0x1e1   :  { %v10764_v19 = vadd.f32 %v1645_v38, %v1421_v53  ;;  %1746 = vadd.xlane.f32.xlu1 %v15623_v2  ;;  %v2418_v43 = vld [vmem:[#allocation7 + $0x68] sm:$0xff]  ;;  %2564 = vmatpush1.msra.mxu1 %v2481_v52  ;;  %v2539_v2 = vunpack.c.l.bf16 %v2448_v56 }
 0x1e2   :  { %v1425_v32 = vpop.f32.mrf.mxu0  ;;  %v2480_v53 = vunpack.c.h.bf16 %v2418_v43  ;;  %v2479_v41 = vunpack.c.l.bf16 %v2418_v43 }
 0x1e3   :  { %v1426_v8 = vadd.f32 %v10583_v59, %v1425_v32  ;;  %v15624_v20 = vmax.f32 %v10764_v19, 0.0  ;;  %v2540_v59 = vunpack.c.h.bf16 %v2448_v56  ;;  %v2478_v32 = vunpack.c.h.bf16 %v2417_v11  ;;  %v2447_v11 = vld [vmem:[#allocation7 + $0x150] sm:$0xff] }
 0x1e4   :  { %v1427_v48 = vpop.f32.mrf.mxu0  ;;  %2565 = vmatprep.subr.mxu1 %v2480_v53  ;;  %v2414_v53 = vld [vmem:[#allocation7 + $0x48] sm:$0xff] }
 0x1e5   :  { %1748 = vadd.xlane.f32.xlu1 %v15624_v20  ;;  %v10772_v38 = vadd.f32 %v9260_v28, %v1426_v8  ;;  %2566 = vmatpush1.msra.mxu1 %v2479_v41  ;;  %v2416_v48 = vld [vmem:[#allocation7 + $0x58] sm:$0xff]  ;;  %v2415_v28 = vld [vmem:[#allocation7 + $0x50] sm:$0xff]  ;;  %v2472_v56 = vunpack.c.h.bf16 %v2414_v53  ;;  %v2471_v41 = vunpack.c.l.bf16 %v2414_v53  ;;  %v2413_v20 = vld [vmem:[#allocation7 + $0x40] sm:$0xff] }
 0x1e6   :  { %2826 = vmatprep.subr.mxu0 %v2540_v59  ;;  %2567 = vmatprep.subr.mxu1 %v2478_v32  ;;  %v2476_v49 = vunpack.c.h.bf16 %v2416_v48  ;;  %v2475_v52 = vunpack.c.l.bf16 %v2416_v48  ;;  %v2474_v8 = vunpack.c.h.bf16 %v2415_v28  ;;  %v2473_v43 = vunpack.c.l.bf16 %v2415_v28 }
 0x1e7   :  { %v15627_v21 = vmax.f32 %v10772_v38, 0.0  ;;  %2827 = vmatpush1.msra.mxu0 %v2539_v2  ;;  %2568 = vmatpush1.msra.mxu1 %v2477_v42  ;;  %v2537_v59 = vunpack.c.l.bf16 %v2447_v11  ;;  %v2538_v32 = vunpack.c.h.bf16 %v2447_v11  ;;  %v2470_v62 = vunpack.c.h.bf16 %v2413_v20  ;;  %v2412_v2 = vld [vmem:[#allocation7 + $0x38] sm:$0xff]  ;;  %v2446_v11 = vld [vmem:[#allocation7 + $0x148] sm:$0xff] }
 0x1e8   :  { %2569 = vmatprep.subr.mxu1 %v2476_v49  ;;  %v2468_v42 = vunpack.c.h.bf16 %v2412_v2  ;;  %v2467_v48 = vunpack.c.l.bf16 %v2412_v2  ;;  %v2411_v49 = vld [vmem:[#allocation7 + $0x30] sm:$0xff]  ;;  %v2408_v2 = vld [vmem:[#allocation7 + $0x18] sm:$0xff] }
 0x1e9   :  { %1750 = vadd.xlane.f32.xlu1 %v15627_v21  ;;  %2570 = vmatpush1.msra.mxu1 %v2475_v52  ;;  %v2469_v21 = vunpack.c.l.bf16 %v2413_v20  ;;  %v2466_v52 = vunpack.c.h.bf16 %v2411_v49  ;;  %v2465_v28 = vunpack.c.l.bf16 %v2411_v49  ;;  %v2459_v49 = vunpack.c.l.bf16 %v2408_v2 }
 0x1ea   :  { %2571 = vmatprep.subr.mxu1 %v2474_v8  ;;  %2828 = vmatprep.subr.mxu0 %v2538_v32  ;;  %v2410_v8 = vld [vmem:[#allocation7 + $0x28] sm:$0xff]  ;;  %v2535_v32 = vunpack.c.l.bf16 %v2446_v11 }
 0x1eb   :  { %2572 = vmatpush1.msra.mxu1 %v2473_v43  ;;  %2829 = vmatpush1.msra.mxu0 %v2537_v59  ;;  %v2464_v43 = vunpack.c.h.bf16 %v2410_v8  ;;  %v2463_v53 = vunpack.c.l.bf16 %v2410_v8  ;;  %v2406_v8 = vld [vmem:[#allocation7 + $0x8] sm:$0xff] }
 0x1ec   :  { %2573 = vmatprep.subr.mxu1 %v2472_v56  ;;  %v2409_v56 = vld [vmem:[#allocation7 + $0x20] sm:$0xff] }
 0x1ed   :  { %2574 = vmatpush1.msra.mxu1 %v2471_v41  ;;  %v2536_v41 = vunpack.c.h.bf16 %v2446_v11  ;;  %v2461_v34 = vunpack.c.l.bf16 %v2409_v56  ;;  %v2462_v59 = vunpack.c.h.bf16 %v2409_v56 }
 0x1ee   :  { %2575 = vmatprep.subr.mxu1 %v2470_v62 }
 0x1ef   :  { %2576 = vmatpush1.msra.mxu1 %v2469_v21  ;;  %2830 = vmatprep.subr.mxu0 %v2536_v41  ;;  %v2460_v21 = vunpack.c.h.bf16 %v2408_v2  ;;  %v16108_v2 = vmax.f32 %v10592_v26, 0.0 }
 0x1f0   :  { %2577 = vmatprep.subr.mxu1 %v2468_v42  ;;  %v16107_v42 = vmax.f32 %v10586_v57, 0.0  ;;  %2831 = vmatpush1.msra.mxu0 %v2535_v32  ;;  %v2455_v32 = vunpack.c.l.bf16 %v2406_v8 }
 0x1f1   :  { %2578 = vmatpush1.msra.mxu1 %v2467_v48 }
 0x1f2   :  { %2579 = vmatprep.subr.mxu1 %v2466_v52  ;;  %v2407_v52 = vld [vmem:[#allocation7 + $0x10] sm:$0xff] }
 0x1f3   :  { %2580 = vmatpush1.msra.mxu1 %v2465_v28  ;;  %v2445_v28 = vld [vmem:[#allocation7 + $0x140] sm:$0xff]  ;;  %v2457_v11 = vunpack.c.l.bf16 %v2407_v52  ;;  %v2458_v56 = vunpack.c.h.bf16 %v2407_v52 }
 0x1f4   :  { %2581 = vmatprep.subr.mxu1 %v2464_v43  ;;  %v2405_v43 = vld [vmem:[#allocation7] sm:$0xff]  ;;  %v2533_v57 = vunpack.c.l.bf16 %v2445_v28  ;;  %v2534_v41 = vunpack.c.h.bf16 %v2445_v28  ;;  %v16109_v28 = vmax.f32 %v10596_v47, 0.0 }
 0x1f5   :  { %2582 = vmatpush1.msra.mxu1 %v2463_v53 }
 0x1f6   :  { %v1689_v20 = vpop.xlane.xlu0 %1688  ;;  %2583 = vmatprep.subr.mxu1 %v2462_v59  ;;  %v2436_v59 = vld [vmem:[#allocation7 + $0xf8] sm:$0xff]  ;;  %2832 = vmatprep.subr.mxu0 %v2534_v41 }
 0x1f7   :  { %v1753_v62 = vmul.f32 0.0078125, %v1689_v20  ;;  %2584 = vmatpush1.msra.mxu1 %v2461_v34  ;;  %v2456_v20 = vunpack.c.h.bf16 %v2406_v8  ;;  %v2454_v34 = vunpack.c.h.bf16 %v2405_v43  ;;  %2833 = vmatpush1.msra.mxu0 %v2533_v57  ;;  %v2516_v8 = vunpack.c.h.bf16 %v2436_v59 }
 0x1f8   :  { %2585 = vmatprep.subr.mxu1 %v2460_v21  ;;  %v2515_v26 = vunpack.c.l.bf16 %v2436_v59 }
 0x1f9   :  { %v10779_v48 = vsub.f32 %v16107_v42, %v1753_v62  ;;  %v2444_v62 = vld [vmem:[#allocation7 + $0x138] sm:$0xff]  ;;  %2586 = vmatpush1.msra.mxu1 %v2459_v49 }
 0x1fa   :  { %v1691_v18 = vpop.xlane.xlu0 %1690  ;;  %2587 = vmatprep.subr.mxu1 %v2458_v56  ;;  %v2531_v1 = vunpack.c.l.bf16 %v2444_v62  ;;  %v2532_v21 = vunpack.c.h.bf16 %v2444_v62  ;;  %v2514_v56 = vunpack.c.h.bf16 %v2435_v31 }
 0x1fb   :  { %v1754_v16 = vmul.f32 0.0078125, %v1691_v18  ;;  %v1817_v53 = vmul.f32 %v10779_v48, %v10779_v48  ;;  %2588 = vmatpush1.msra.mxu1 %v2457_v11  ;;  %v2453_v18 = vunpack.c.l.bf16 %v2405_v43 }
 0x1fc   :  { %2589 = vmatprep.subr.mxu1 %v2456_v20  ;;  %2834 = vmatprep.subr.mxu0 %v2532_v21  ;;  %v16111_v21 = vmax.f32 %v10608_v60, 0.0  ;;  %v16112_v60 = vmax.f32 %v10616_v9, 0.0 }
 0x1fd   :  { %1849 = vadd.xlane.f32.xlu0 %v1817_v53  ;;  %v10785_v42 = vsub.f32 %v16108_v2, %v1754_v16  ;;  %2590 = vmatpush1.msra.mxu1 %v2455_v32  ;;  %v2434_v16 = vld [vmem:[#allocation7 + $0xe8] sm:$0xff]  ;;  %v2513_v53 = vunpack.c.l.bf16 %v2435_v31  ;;  %v16110_v32 = vmax.f32 %v10604_v51, 0.0 }
 0x1fe   :  { %v1693_v52 = vpop.xlane.xlu1 %1692  ;;  %2591 = vmatprep.subr.mxu1 %v2454_v34  ;;  %2835 = vmatpush1.msra.mxu0 %v2531_v1  ;;  %v2512_v57 = vunpack.c.h.bf16 %v2434_v16  ;;  %v2511_v62 = vunpack.c.l.bf16 %v2434_v16 }
 0x1ff   :  { %v1755_v14 = vmul.f32 0.0078125, %v1693_v52  ;;  %v1818_v49 = vmul.f32 %v10785_v42, %v10785_v42  ;;  %2592 = vmatpush1.msra.mxu1 %v2453_v18  ;;  %v2432_v52 = vld [vmem:[#allocation7 + $0xd8] sm:$0xff] }
 0x200   :  { %2593 = vmatprep.subr.mxu1 %v2516_v8  ;;  %v2508_v18 = vunpack.c.h.bf16 %v2432_v52  ;;  %v2431_v8 = vld [vmem:[#allocation7 + $0xd0] sm:$0xff] }
 0x201   :  { %1851 = vadd.xlane.f32.xlu0 %v1818_v49  ;;  %v10791_v11 = vsub.f32 %v16109_v28, %v1755_v14  ;;  %2594 = vmatpush2.msra.mxu1 %v2515_v26  ;;  %v2433_v14 = vld [vmem:[#allocation7 + $0xe0] sm:$0xff]  ;;  %v2507_v49 = vunpack.c.l.bf16 %v2432_v52  ;;  %v2506_v16 = vunpack.c.h.bf16 %v2431_v8 }
 0x202   :  { %v1695_v43 = vpop.xlane.xlu1 %1694  ;;  %2595 = vmatprep.subr.mxu1 %v2514_v56  ;;  %v2510_v2 = vunpack.c.h.bf16 %v2433_v14  ;;  %v2509_v34 = vunpack.c.l.bf16 %v2433_v14 }
 0x203   :  { %v1756_v41 = vmul.f32 0.0078125, %v1695_v43  ;;  %v1819_v20 = vmul.f32 %v10791_v11, %v10791_v11  ;;  %2596 = vmatpush2.msra.mxu1 %v2513_v53  ;;  %v2505_v43 = vunpack.c.l.bf16 %v2431_v8  ;;  %v2430_v53 = vld [vmem:[#allocation7 + $0xc8] sm:$0xff] }
 0x204   :  { %2597 = vmatprep.subr.mxu1 %v2512_v57  ;;  %v2503_v57 = vunpack.c.l.bf16 %v2430_v53 }
 0x205   :  { %1853 = vadd.xlane.f32.xlu0 %v1819_v20  ;;  %v10797_v47 = vsub.f32 %v16110_v32, %v1756_v41  ;;  %2598 = vmatpush2.msra.mxu1 %v2511_v62  ;;  %v2504_v41 = vunpack.c.h.bf16 %v2430_v53  ;;  %v2429_v62 = vld [vmem:[#allocation7 + $0xc0] sm:$0xff] }
 0x206   :  { %v1697_v59 = vpop.xlane.xlu0 %1696  ;;  %2599 = vmatprep.subr.mxu1 %v2510_v2  ;;  %v2502_v14 = vunpack.c.h.bf16 %v2429_v62 }
 0x207   :  { %v1757_v31 = vmul.f32 0.0078125, %v1697_v59  ;;  %v1820_v1 = vmul.f32 %v10797_v47, %v10797_v47  ;;  %2600 = vmatpush2.msra.mxu1 %v2509_v34  ;;  %v2428_v34 = vld [vmem:[#allocation7 + $0xb8] sm:$0xff] }
 0x208   :  { %2601 = vmatprep.subr.mxu1 %v2508_v18  ;;  %v2500_v9 = vunpack.c.h.bf16 %v2428_v34  ;;  %v2499_v8 = vunpack.c.l.bf16 %v2428_v34 }
 0x209   :  { %1855 = vadd.xlane.f32.xlu0 %v1820_v1  ;;  %v10803_v51 = vsub.f32 %v16111_v21, %v1757_v31  ;;  %2602 = vmatpush2.msra.mxu1 %v2507_v49  ;;  %v2443_v31 = vld [vmem:[#allocation7 + $0x130] sm:$0xff]  ;;  %v2501_v1 = vunpack.c.l.bf16 %v2429_v62  ;;  %v16113_v21 = vmax.f32 %v10620_v25, 0.0  ;;  %v16114_v25 = vmax.f32 %v10628_v23, 0.0 }
 0x20a   :  { %v1699_v26 = vpop.xlane.xlu1 %1698  ;;  %2603 = vmatprep.subr.mxu1 %v2506_v16  ;;  %v2529_v52 = vunpack.c.l.bf16 %v2443_v31  ;;  %v2530_v18 = vunpack.c.h.bf16 %v2443_v31 }
 0x20b   :  { %v1758_v28 = vmul.f32 0.0078125, %v1699_v26  ;;  %v1821_v56 = vmul.f32 %v10803_v51, %v10803_v51  ;;  %2604 = vmatpush2.msra.mxu1 %v2505_v43  ;;  %v2427_v26 = vld [vmem:[#allocation7 + $0xb0] sm:$0xff] }
 0x20c   :  { %2605 = vmatprep.subr.mxu1 %v2504_v41  ;;  %2836 = vmatprep.subr.mxu0 %v2530_v18  ;;  %v2497_v53 = vunpack.c.l.bf16 %v2427_v26  ;;  %v2426_v41 = vld [vmem:[#allocation7 + $0xa8] sm:$0xff] }
 0x20d   :  { %1857 = vadd.xlane.f32.xlu0 %v1821_v56  ;;  %v10809_v20 = vsub.f32 %v16112_v60, %v1758_v28  ;;  %2606 = vmatpush2.msra.mxu1 %v2503_v57  ;;  %v2498_v28 = vunpack.c.h.bf16 %v2427_v26  ;;  %v2496_v60 = vunpack.c.h.bf16 %v2426_v41  ;;  %v2495_v62 = vunpack.c.l.bf16 %v2426_v41 }
 0x20e   :  { %v1701_v32 = vpop.xlane.xlu0 %1700  ;;  %2607 = vmatprep.subr.mxu1 %v2502_v14  ;;  %2837 = vmatpush1.msra.mxu0 %v2529_v52  ;;  %v2424_v52 = vld [vmem:[#allocation7 + $0x98] sm:$0xff] }
 0x20f   :  { %v1759_v59 = vmul.f32 0.0078125, %v1701_v32  ;;  %v1822_v2 = vmul.f32 %v10809_v20, %v10809_v20  ;;  %2608 = vmatpush2.msra.mxu1 %v2501_v1  ;;  %v2425_v32 = vld [vmem:[#allocation7 + $0xa0] sm:$0xff]  ;;  %v2442_v1 = vld [vmem:[#allocation7 + $0x128] sm:$0xff]  ;;  %v2492_v23 = vunpack.c.h.bf16 %v2424_v52  ;;  %v2491_v26 = vunpack.c.l.bf16 %v2424_v52 }
 0x210   :  { %2609 = vmatprep.subr.mxu1 %v2500_v9  ;;  %v2493_v34 = vunpack.c.l.bf16 %v2425_v32  ;;  %v2527_v18 = vunpack.c.l.bf16 %v2442_v1  ;;  %v2528_v9 = vunpack.c.h.bf16 %v2442_v1  ;;  %v2421_v52 = vld [vmem:[#allocation7 + $0x80] sm:$0xff] }
 0x211   :  { %1859 = vadd.xlane.f32.xlu0 %v1822_v2  ;;  %v10815_v49 = vsub.f32 %v16113_v21, %v1759_v59  ;;  %2610 = vmatpush2.msra.mxu1 %v2499_v8  ;;  %v2494_v59 = vunpack.c.h.bf16 %v2425_v32  ;;  %v16115_v21 = vmax.f32 %v10632_v13, 0.0  ;;  %v2422_v13 = vld [vmem:[#allocation7 + $0x88] sm:$0xff]  ;;  %v2440_v32 = vld [vmem:[#allocation7 + $0x118] sm:$0xff] }
 0x212   :  { %v1703_v16 = vpop.xlane.xlu1 %1702  ;;  %2611 = vmatprep.subr.mxu1 %v2498_v28  ;;  %v2441_v28 = vld [vmem:[#allocation7 + $0x120] sm:$0xff]  ;;  %2838 = vmatprep.subr.mxu0 %v2528_v9  ;;  %v2487_v1 = vunpack.c.l.bf16 %v2422_v13  ;;  %v2439_v9 = vld [vmem:[#allocation7 + $0x110] sm:$0xff] }
 0x213   :  { %v1760_v56 = vmul.f32 0.0078125, %v1703_v16  ;;  %v1823_v43 = vmul.f32 %v10815_v49, %v10815_v49  ;;  %2612 = vmatpush2.msra.mxu1 %v2497_v53  ;;  %v2423_v16 = vld [vmem:[#allocation7 + $0x90] sm:$0xff]  ;;  %v2526_v53 = vunpack.c.h.bf16 %v2441_v28  ;;  %2839 = vmatpush1.msra.mxu0 %v2527_v18 }
 0x214   :  { %2613 = vmatprep.subr.mxu1 %v2496_v60 }
 0x215   :  { %1861 = vadd.xlane.f32.xlu0 %v1823_v43  ;;  %v10821_v57 = vsub.f32 %v16114_v25, %v1760_v56  ;;  %2614 = vmatpush2.msra.mxu1 %v2495_v62  ;;  %v2490_v43 = vunpack.c.h.bf16 %v2423_v16  ;;  %v2489_v25 = vunpack.c.l.bf16 %v2423_v16  ;;  %v2525_v62 = vunpack.c.l.bf16 %v2441_v28 }
 0x216   :  { %v1705_v14 = vpop.xlane.xlu0 %1704  ;;  %2615 = vmatprep.subr.mxu1 %v2494_v59  ;;  %2840 = vmatprep.subr.mxu0 %v2526_v53  ;;  %v2524_v59 = vunpack.c.h.bf16 %v2440_v32  ;;  %v2485_v28 = vunpack.c.l.bf16 %v2421_v52  ;;  %v16117_v53 = vmax.f32 %v10644_v0, 0.0 }
 0x217   :  { %v1761_v2 = vmul.f32 0.0078125, %v1705_v14  ;;  %v1824_v31 = vmul.f32 %v10821_v57, %v10821_v57  ;;  %2616 = vmatpush2.msra.mxu1 %v2493_v34  ;;  %v2488_v14 = vunpack.c.h.bf16 %v2422_v13  ;;  %v2523_v34 = vunpack.c.l.bf16 %v2440_v32  ;;  %2841 = vmatpush1.msra.mxu0 %v2525_v62  ;;  %v2437_v62 = vld [vmem:[#allocation7 + $0x100] sm:$0xff] }
 0x218   :  { %2617 = vmatprep.subr.mxu1 %v2492_v23  ;;  %v2486_v23 = vunpack.c.h.bf16 %v2421_v52  ;;  %2842 = vmatprep.subr.mxu0 %v2524_v59  ;;  %v2517_v59 = vunpack.c.l.bf16 %v2437_v62 }
 0x219   :  { %1863 = vadd.xlane.f32.xlu0 %v1824_v31  ;;  %v10827_v8 = vsub.f32 %v16115_v21, %v1761_v2  ;;  %2618 = vmatpush2.msra.mxu1 %v2491_v26  ;;  %v16116_v2 = vmax.f32 %v10640_v63, 0.0  ;;  %v2522_v21 = vunpack.c.h.bf16 %v2439_v9  ;;  %v2521_v63 = vunpack.c.l.bf16 %v2439_v9 }
 0x21a   :  { %v1707_v56 = vpop.xlane.xlu1 %1706  ;;  %2619 = vmatprep.subr.mxu1 %v2490_v43  ;;  %2843 = vmatpush1.msra.mxu0 %v2523_v34  ;;  %v16119_v9 = vmax.f32 %v10656_v36, 0.0  ;;  %v16121_v36 = vmax.f32 %v10668_v54, 0.0  ;;  %v16123_v54 = vmax.f32 %v10680_v6, 0.0  ;;  %v16125_v6 = vmax.f32 %v10692_v39, 0.0 }
 0x21b   :  { %v1762_v41 = vmul.f32 0.0078125, %v1707_v56  ;;  %v1825_v60 = vmul.f32 %v10827_v8, %v10827_v8  ;;  %2620 = vmatpush2.msra.mxu1 %v2489_v25  ;;  %v2438_v56 = vld [vmem:[#allocation7 + $0x108] sm:$0xff]  ;;  %2844 = vmatprep.subr.mxu0 %v2522_v21  ;;  %v16127_v39 = vmax.f32 %v10704_v58, 0.0  ;;  %v16129_v58 = vmax.f32 %v10716_v29, 0.0 }
 0x21c   :  { %2621 = vmatprep.subr.mxu1 %v2488_v14  ;;  %v2520_v43 = vunpack.c.h.bf16 %v2438_v56  ;;  %2845 = vmatpush1.msra.mxu0 %v2521_v63  ;;  %v2518_v14 = vunpack.c.h.bf16 %v2437_v62  ;;  %v16131_v29 = vmax.f32 %v10728_v7, 0.0  ;;  %v16133_v7 = vmax.f32 %v10740_v5, 0.0 }
 0x21d   :  { %1865 = vadd.xlane.f32.xlu0 %v1825_v60  ;;  %v10833_v31 = vsub.f32 %v16116_v2, %v1762_v41  ;;  %2622 = vmatpush2.msra.mxu1 %v2487_v1  ;;  %v2519_v60 = vunpack.c.l.bf16 %v2438_v56  ;;  %v16118_v2 = vmax.f32 %v10652_v50, 0.0  ;;  %v16135_v5 = vmax.f32 %v10752_v15, 0.0 }
 0x21e   :  { %v1709_v18 = vpop.xlane.xlu0 %1708  ;;  %2623 = vmatprep.subr.mxu1 %v2486_v23  ;;  %2846 = vmatprep.subr.mxu0 %v2520_v43  ;;  %v16137_v15 = vmax.f32 %v10764_v19, 0.0 }
 0x21f   :  { %v1763_v16 = vmul.f32 0.0078125, %v1709_v18  ;;  %v1826_v26 = vmul.f32 %v10833_v31, %v10833_v31  ;;  %2624 = vmatpush2.msra.mxu1 %v2485_v28  ;;  %2847 = vmatpush1.msra.mxu0 %v2519_v60 }
 0x220   :  { %2848 = vmatprep.subr.mxu0 %v2518_v14 }
 0x221   :  { %1867 = vadd.xlane.f32.xlu0 %v1826_v26  ;;  %v10839_v41 = vsub.f32 %v16117_v53, %v1763_v16  ;;  %2849 = vmatpush1.msra.mxu0 %v2517_v59  ;;  %v16120_v16 = vmax.f32 %v10664_v40, 0.0  ;;  %v16122_v40 = vmax.f32 %v10676_v30, 0.0  ;;  %v16124_v30 = vmax.f32 %v10688_v45, 0.0 }
 0x222   :  { %v1711_v25 = vpop.xlane.xlu1 %1710  ;;  %v16126_v45 = vmax.f32 %v10700_v10, 0.0  ;;  %v16128_v10 = vmax.f32 %v10712_v37, 0.0  ;;  %v16130_v37 = vmax.f32 %v10724_v17, 0.0  ;;  %v16132_v17 = vmax.f32 %v10736_v27, 0.0 }
 0x223   :  { %v1764_v13 = vmul.f32 0.0078125, %v1711_v25  ;;  %v1827_v32 = vmul.f32 %v10839_v41, %v10839_v41  ;;  %v16134_v27 = vmax.f32 %v10748_v3, 0.0  ;;  %v16136_v3 = vmax.f32 %v10760_v55, 0.0 }
 0x224   :  { %v16138_v55 = vmax.f32 %v10772_v38, 0.0 }
 0x225   :  { %1869 = vadd.xlane.f32.xlu0 %v1827_v32  ;;  %v10845_v0 = vsub.f32 %v16118_v2, %v1764_v13 }
 0x226   :  { %v1713_v1 = vpop.xlane.xlu0 %1712 }
 0x227   :  { %v1765_v34 = vmul.f32 0.0078125, %v1713_v1  ;;  %v1828_v52 = vmul.f32 %v10845_v0, %v10845_v0 }
 0x229   :  { %1871 = vadd.xlane.f32.xlu0 %v1828_v52  ;;  %v10851_v18 = vsub.f32 %v16119_v9, %v1765_v34 }
 0x22a   :  { %v1715_v23 = vpop.xlane.xlu1 %1714 }
 0x22b   :  { %v1766_v21 = vmul.f32 0.0078125, %v1715_v23  ;;  %v1829_v50 = vmul.f32 %v10851_v18, %v10851_v18 }
 0x22d   :  { %1873 = vadd.xlane.f32.xlu0 %v1829_v50  ;;  %v10857_v26 = vsub.f32 %v16120_v16, %v1766_v21 }
 0x22e   :  { %v1717_v28 = vpop.xlane.xlu0 %1716 }
 0x22f   :  { %v1767_v63 = vmul.f32 0.0078125, %v1717_v28  ;;  %v1830_v56 = vmul.f32 %v10857_v26, %v10857_v26 }
 0x231   :  { %1875 = vadd.xlane.f32.xlu1 %v1830_v56  ;;  %v10863_v43 = vsub.f32 %v16121_v36, %v1767_v63 }
 0x232   :  { %v1719_v53 = vpop.xlane.xlu1 %1718 }
 0x233   :  { %v1768_v60 = vmul.f32 0.0078125, %v1719_v53  ;;  %v1831_v25 = vmul.f32 %v10863_v43, %v10863_v43 }
 0x235   :  { %1877 = vadd.xlane.f32.xlu0 %v1831_v25  ;;  %v10869_v62 = vsub.f32 %v16122_v40, %v1768_v60 }
 0x236   :  { %v1721_v13 = vpop.xlane.xlu0 %1720 }
 0x237   :  { %v1769_v32 = vmul.f32 0.0078125, %v1721_v13  ;;  %v1832_v14 = vmul.f32 %v10869_v62, %v10869_v62 }
 0x239   :  { %1879 = vadd.xlane.f32.xlu1 %v1832_v14  ;;  %v10875_v59 = vsub.f32 %v16123_v54, %v1769_v32 }
 0x23a   :  { %v1723_v2 = vpop.xlane.xlu1 %1722 }
 0x23b   :  { %v1770_v1 = vmul.f32 0.0078125, %v1723_v2  ;;  %v1833_v34 = vmul.f32 %v10875_v59, %v10875_v59 }
 0x23d   :  { %1881 = vadd.xlane.f32.xlu0 %v1833_v34  ;;  %v10881_v52 = vsub.f32 %v16124_v30, %v1770_v1 }
 0x23e   :  { %v1725_v9 = vpop.xlane.xlu0 %1724 }
 0x23f   :  { %v1771_v23 = vmul.f32 0.0078125, %v1725_v9  ;;  %v1834_v21 = vmul.f32 %v10881_v52, %v10881_v52 }
 0x241   :  { %1883 = vadd.xlane.f32.xlu1 %v1834_v21  ;;  %v10887_v50 = vsub.f32 %v16125_v6, %v1771_v23 }
 0x242   :  { %v1727_v16 = vpop.xlane.xlu1 %1726 }
 0x243   :  { %v1772_v28 = vmul.f32 0.0078125, %v1727_v16  ;;  %v1835_v63 = vmul.f32 %v10887_v50, %v10887_v50 }
 0x245   :  { %1885 = vadd.xlane.f32.xlu0 %v1835_v63  ;;  %v10893_v56 = vsub.f32 %v16126_v45, %v1772_v28 }
 0x246   :  { %v1729_v36 = vpop.xlane.xlu1 %1728 }
 0x247   :  { %v1773_v53 = vmul.f32 0.0078125, %v1729_v36  ;;  %v1836_v60 = vmul.f32 %v10893_v56, %v10893_v56 }
 0x249   :  { %1887 = vadd.xlane.f32.xlu1 %v1836_v60  ;;  %v10899_v25 = vsub.f32 %v16127_v39, %v1773_v53 }
 0x24a   :  { %v1731_v40 = vpop.xlane.xlu1 %1730 }
 0x24b   :  { %v1774_v13 = vmul.f32 0.0078125, %v1731_v40  ;;  %v1837_v32 = vmul.f32 %v10899_v25, %v10899_v25 }
 0x24d   :  { %1889 = vadd.xlane.f32.xlu0 %v1837_v32  ;;  %v10905_v14 = vsub.f32 %v16128_v10, %v1774_v13 }
 0x24e   :  { %v1733_v54 = vpop.xlane.xlu1 %1732 }
 0x24f   :  { %v1775_v2 = vmul.f32 0.0078125, %v1733_v54  ;;  %v1838_v1 = vmul.f32 %v10905_v14, %v10905_v14 }
 0x251   :  { %1891 = vadd.xlane.f32.xlu1 %v1838_v1  ;;  %v10911_v34 = vsub.f32 %v16129_v58, %v1775_v2 }
 0x252   :  { %v1735_v30 = vpop.xlane.xlu1 %1734 }
 0x253   :  { %v1776_v9 = vmul.f32 0.0078125, %v1735_v30  ;;  %v1839_v23 = vmul.f32 %v10911_v34, %v10911_v34 }
 0x255   :  { %1893 = vadd.xlane.f32.xlu0 %v1839_v23  ;;  %v10917_v21 = vsub.f32 %v16130_v37, %v1776_v9 }
 0x256   :  { %v1737_v6 = vpop.xlane.xlu1 %1736 }
 0x257   :  { %v1777_v16 = vmul.f32 0.0078125, %v1737_v6  ;;  %v1840_v28 = vmul.f32 %v10917_v21, %v10917_v21 }
 0x259   :  { %1895 = vadd.xlane.f32.xlu1 %v1840_v28  ;;  %v10923_v63 = vsub.f32 %v16131_v29, %v1777_v16 }
 0x25a   :  { %v1739_v45 = vpop.xlane.xlu1 %1738 }
 0x25b   :  { %v1778_v36 = vmul.f32 0.0078125, %v1739_v45  ;;  %v1841_v53 = vmul.f32 %v10923_v63, %v10923_v63 }
 0x25d   :  { %1897 = vadd.xlane.f32.xlu0 %v1841_v53  ;;  %v10929_v60 = vsub.f32 %v16132_v17, %v1778_v36 }
 0x25e   :  { %v1741_v39 = vpop.xlane.xlu1 %1740 }
 0x25f   :  { %v1779_v40 = vmul.f32 0.0078125, %v1741_v39  ;;  %v1842_v13 = vmul.f32 %v10929_v60, %v10929_v60 }
 0x261   :  { %1899 = vadd.xlane.f32.xlu1 %v1842_v13  ;;  %v10935_v32 = vsub.f32 %v16133_v7, %v1779_v40 }
 0x262   :  { %v1743_v10 = vpop.xlane.xlu1 %1742 }
 0x263   :  { %v1780_v54 = vmul.f32 0.0078125, %v1743_v10  ;;  %v1843_v2 = vmul.f32 %v10935_v32, %v10935_v32 }
 0x265   :  { %1901 = vadd.xlane.f32.xlu0 %v1843_v2  ;;  %v10941_v1 = vsub.f32 %v16134_v27, %v1780_v54 }
 0x266   :  { %v1745_v58 = vpop.xlane.xlu1 %1744 }
 0x267   :  { %v1781_v30 = vmul.f32 0.0078125, %v1745_v58  ;;  %v1844_v9 = vmul.f32 %v10941_v1, %v10941_v1 }
 0x269   :  { %1903 = vadd.xlane.f32.xlu1 %v1844_v9  ;;  %v10947_v23 = vsub.f32 %v16135_v5, %v1781_v30 }
 0x26a   :  { %v1747_v37 = vpop.xlane.xlu1 %1746 }
 0x26b   :  { %v1782_v6 = vmul.f32 0.0078125, %v1747_v37  ;;  %v1845_v16 = vmul.f32 %v10947_v23, %v10947_v23 }
 0x26d   :  { %1905 = vadd.xlane.f32.xlu0 %v1845_v16  ;;  %v10953_v28 = vsub.f32 %v16136_v3, %v1782_v6 }
 0x26e   :  { %v1749_v29 = vpop.xlane.xlu1 %1748 }
 0x26f   :  { %v1783_v45 = vmul.f32 0.0078125, %v1749_v29  ;;  %v1846_v36 = vmul.f32 %v10953_v28, %v10953_v28 }
 0x271   :  { %1907 = vadd.xlane.f32.xlu1 %v1846_v36  ;;  %v10959_v53 = vsub.f32 %v16137_v15, %v1783_v45  ;;  %v10972_v45 = vld [vmem:[%s16139_s26] ss:$0 sm:$0xff]  ;;  %s9932_s26 = smov 96  }
 0x272   :  { %v1751_v17 = vpop.xlane.xlu1 %1750 }
 0x273   :  { %v1784_v39 = vmul.f32 0.0078125, %v1751_v17  ;;  %v1847_v40 = vmul.f32 %v10959_v53, %v10959_v53 }
 0x275   :  { %1909 = vadd.xlane.f32.xlu0 %v1847_v40  ;;  %v10965_v13 = vsub.f32 %v16138_v55, %v1784_v39  ;;  %v10978_v39 = vld [vmem:[%s16140_s4] ss:$0 sm:$0xff] }
 0x277   :  { %v1848_v7 = vmul.f32 %v10965_v13, %v10965_v13 }
 0x279   :  { %1911 = vadd.xlane.f32.xlu1 %v1848_v7 }
 0x286   :  { %v1850_v10 = vpop.xlane.xlu0 %1849 }
 0x287   :  { %v1913_v54 = vmul.f32 0.0078125, %v1850_v10 }
 0x289   :  { %v1945_v2 = vadd.f32 1e-05, %v1913_v54 }
 0x28a   :  { %v1852_v19 = vpop.xlane.xlu0 %1851 }
 0x28b   :  { %9418 = vrsqrt.f32 %v1945_v2  ;;  %v1914_v27 = vmul.f32 0.0078125, %v1852_v19 }
 0x28d   :  { %v1946_v58 = vadd.f32 1e-05, %v1914_v27 }
 0x28e   :  { %v1854_v30 = vpop.xlane.xlu0 %1853 }
 0x28f   :  { %9420 = vrsqrt.f32 %v1946_v58  ;;  %v1915_v9 = vmul.f32 0.0078125, %v1854_v30 }
 0x291   :  { %v1947_v5 = vadd.f32 1e-05, %v1915_v9 }
 0x292   :  { %v1856_v37 = vpop.xlane.xlu0 %1855 }
 0x293   :  { %9422 = vrsqrt.f32 %v1947_v5  ;;  %v1916_v38 = vmul.f32 0.0078125, %v1856_v37 }
 0x295   :  { %v1948_v6 = vadd.f32 1e-05, %v1916_v38 }
 0x296   :  { %v1858_v16 = vpop.xlane.xlu0 %1857 }
 0x297   :  { %9424 = vrsqrt.f32 %v1948_v6  ;;  %v1917_v3 = vmul.f32 0.0078125, %v1858_v16 }
 0x298   :  { %v9419_v29 = vpop.eup %9418 }
 0x299   :  { %v1949_v36 = vadd.f32 1e-05, %v1917_v3  ;;  %v2009_v15 = vmul.f32 %v9419_v29, %v10779_v48 }
 0x29a   :  { %v1860_v17 = vpop.xlane.xlu0 %1859 }
 0x29b   :  { %9426 = vrsqrt.f32 %v1949_v36  ;;  %v1918_v40 = vmul.f32 0.0078125, %v1860_v17  ;;  %v2047_v55 = vmul.f32 %v10972_v45, %v2009_v15 }
 0x29c   :  { %v9421_v7 = vpop.eup %9420 }
 0x29d   :  { %v1950_v10 = vadd.f32 1e-05, %v1918_v40  ;;  %v2085_v54 = vadd.f32 %v10978_v39, %v2047_v55  ;;  %v2010_v2 = vmul.f32 %v9421_v7, %v10785_v42 }
 0x29e   :  { %v1862_v19 = vpop.xlane.xlu0 %1861 }
 0x29f   :  { %9428 = vrsqrt.f32 %v1950_v10  ;;  %v1919_v27 = vmul.f32 0.0078125, %v1862_v19  ;;  %v2149_v48 = vrot.slane %v2085_v54, 7  ;;  %2625 = vmatprep.mubr.f32.mxu1 %v2085_v54  ;;  %v2048_v30 = vmul.f32 %v10972_v45, %v2010_v2 }
 0x2a0   :  { %v9423_v58 = vpop.eup %9422  ;;  %v2277_v29 = vrot.slane %v2085_v54, 1 }
 0x2a1   :  { %v1951_v9 = vadd.f32 1e-05, %v1919_v27  ;;  %v2244_v5 = vsel %vm715_vm7, 0.0, %v2149_v48  ;;  %v2011_v37 = vmul.f32 %v9423_v58, %v10791_v11  ;;  %v2086_v6 = vadd.f32 %v10978_v39, %v2048_v30 }
 0x2a2   :  { %8512 = vmatmul.mubr.msk.f32.vlgmr.msra.gmra.mxu1 %vm10254_vm9, %v2244_v5  ;;  %v1864_v38 = vpop.xlane.xlu0 %1863  ;;  %vm16141_vm9 = vcmask 1046528   ;;  %v16142_v58 = vmov 0.0  }
 0x2a3   :  { %9430 = vrsqrt.f32 %v1951_v9  ;;  %v1920_v42 = vmul.f32 0.0078125, %v1864_v38  ;;  %v2049_v16 = vmul.f32 %v10972_v45, %v2011_v37  ;;  %v2278_v36 = vrot.slane %v2086_v6, 1  ;;  %2631 = vmatprep.mubr.f32.mxu1 %v2086_v6  ;;  %vm16143_vm14 = vmmov %vm16141_vm9 }
 0x2a4   :  { %v9425_v3 = vpop.eup %9424  ;;  %v2150_v15 = vrot.slane %v2086_v6, 7 }
 0x2a5   :  { %v1952_v17 = vadd.f32 1e-05, %v1920_v42  ;;  %v2087_v40 = vadd.f32 %v10978_v39, %v2049_v16  ;;  %v2012_v11 = vmul.f32 %v9425_v3, %v10797_v47  ;;  %v2279_v7 = vsel %vm16141_vm9, %v2277_v29, %v2278_v36 }
 0x2a6   :  { %v2151_v55 = vsel %vm715_vm7, %v2149_v48, %v2150_v15  ;;  %v1866_v10 = vpop.xlane.xlu0 %1865  ;;  %2883 = vmatmul.mubr.f32.vlgmr.msra.gmra.mxu0 %v2279_v7 }
 0x2a7   :  { %9432 = vrsqrt.f32 %v1952_v17  ;;  %2632 = vmatmul.mubr.f32.gmra.mxu1 %v2151_v55  ;;  %v1921_v2 = vmul.f32 0.0078125, %v1866_v10  ;;  %v2152_v19 = vrot.slane %v2087_v40, 7  ;;  %v2280_v27 = vrot.slane %v2087_v40, 1  ;;  %2888 = vmatprep.mubr.f32.mxu0 %v16142_v58 }
 0x2a8   :  { %v9427_v54 = vpop.eup %9426  ;;  %2637 = vmatprep.mubr.f32.mxu1 %v2087_v40  ;;  %v2050_v30 = vmul.f32 %v10972_v45, %v2012_v11 }
 0x2a9   :  { %v1953_v9 = vadd.f32 1e-05, %v1921_v2  ;;  %v2153_v47 = vsel %vm715_vm7, %v2150_v15, %v2152_v19  ;;  %v2281_v48 = vsel %vm16143_vm14, %v2278_v36, %v2280_v27  ;;  %v2013_v5 = vmul.f32 %v9427_v54, %v10803_v51  ;;  %vm16144_vm14 = vmmov %vm16141_vm9 }
 0x2aa   :  { %v1868_v37 = vpop.xlane.xlu0 %1867  ;;  %v2088_v38 = vadd.f32 %v10978_v39, %v2050_v30  ;;  %8544 = vmatmul.mubr.msk.f32.gmra.mxu0 %vm10138_vm1, %v2281_v48 }
 0x2ab   :  { %9434 = vrsqrt.f32 %v1953_v9  ;;  %8514 = vmatmul.mubr.msk.f32.gmra.mxu1 %vm10298_vm12, %v2153_v47  ;;  %v1922_v6 = vmul.f32 0.0078125, %v1868_v37  ;;  %v2051_v42 = vmul.f32 %v10972_v45, %v2013_v5  ;;  %2894 = vmatprep.mubr.f32.mxu0 %v16142_v58 }
 0x2ac   :  { %v9429_v16 = vpop.eup %9428  ;;  %2643 = vmatprep.mubr.f32.mxu1 %v2088_v38  ;;  %v2154_v3 = vrot.slane %v2088_v38, 7  ;;  %v2282_v29 = vrot.slane %v2088_v38, 1 }
 0x2ad   :  { %v1954_v51 = vadd.f32 1e-05, %v1922_v6  ;;  %v2089_v36 = vadd.f32 %v10978_v39, %v2051_v42  ;;  %v2014_v15 = vmul.f32 %v9429_v16, %v10809_v20 }
 0x2ae   :  { %v2155_v17 = vsel %vm715_vm7, %v2152_v19, %v2154_v3  ;;  %v2283_v40 = vsel %vm16141_vm9, %v2280_v27, %v2282_v29  ;;  %v1870_v11 = vpop.xlane.xlu0 %1869 }
 0x2af   :  { %9436 = vrsqrt.f32 %v1954_v51  ;;  %2644 = vmatmul.mubr.f32.gmra.mxu1 %v2155_v17  ;;  %2895 = vmatmul.mubr.f32.gmra.mxu0 %v2283_v40  ;;  %v1923_v55 = vmul.f32 0.0078125, %v1870_v11  ;;  %v2156_v7 = vrot.slane %v2089_v36, 7  ;;  %v2284_v10 = vrot.slane %v2089_v36, 1 }
 0x2b0   :  { %v9431_v2 = vpop.eup %9430  ;;  %2649 = vmatprep.mubr.f32.mxu1 %v2089_v36  ;;  %2900 = vmatprep.mubr.f32.mxu0 %v16142_v58  ;;  %v2052_v54 = vmul.f32 %v10972_v45, %v2014_v15 }
 0x2b1   :  { %v1955_v30 = vadd.f32 1e-05, %v1923_v55  ;;  %v2157_v20 = vsel %vm715_vm7, %v2154_v3, %v2156_v7  ;;  %v2285_v19 = vsel %vm16144_vm14, %v2282_v29, %v2284_v10  ;;  %v2015_v27 = vmul.f32 %v9431_v2, %v10815_v49  ;;  %vm16145_vm14 = vmmov %vm16141_vm9 }
 0x2b2   :  { %v1872_v9 = vpop.xlane.xlu0 %1871  ;;  %v2090_v47 = vadd.f32 %v10978_v39, %v2052_v54 }
 0x2b3   :  { %9438 = vrsqrt.f32 %v1955_v30  ;;  %8516 = vmatmul.mubr.msk.f32.gmra.mxu1 %vm10341_vm15, %v2157_v20  ;;  %8546 = vmatmul.mubr.msk.f32.gmra.mxu0 %vm10156_vm2, %v2285_v19  ;;  %v1924_v48 = vmul.f32 0.0078125, %v1872_v9  ;;  %v2053_v5 = vmul.f32 %v10972_v45, %v2015_v27 }
 0x2b4   :  { %v9433_v37 = vpop.eup %9432  ;;  %2655 = vmatprep.mubr.f32.mxu1 %v2090_v47  ;;  %2906 = vmatprep.mubr.f32.mxu0 %v16142_v58  ;;  %v2158_v38 = vrot.slane %v2090_v47, 7  ;;  %v2286_v6 = vrot.slane %v2090_v47, 1 }
 0x2b5   :  { %v1956_v49 = vadd.f32 1e-05, %v1924_v48  ;;  %v2091_v42 = vadd.f32 %v10978_v39, %v2053_v5  ;;  %v2016_v16 = vmul.f32 %v9433_v37, %v10821_v57 }
 0x2b6   :  { %v2159_v3 = vsel %vm715_vm7, %v2156_v7, %v2158_v38  ;;  %v2287_v29 = vsel %vm16141_vm9, %v2284_v10, %v2286_v6  ;;  %v1874_v51 = vpop.xlane.xlu0 %1873 }
 0x2b7   :  { %9440 = vrsqrt.f32 %v1956_v49  ;;  %2656 = vmatmul.mubr.f32.gmra.mxu1 %v2159_v3  ;;  %2907 = vmatmul.mubr.f32.gmra.mxu0 %v2287_v29  ;;  %v1925_v36 = vmul.f32 0.0078125, %v1874_v51  ;;  %v2160_v15 = vrot.slane %v2091_v42, 7  ;;  %v2288_v17 = vrot.slane %v2091_v42, 1 }
 0x2b8   :  { %v9435_v40 = vpop.eup %9434  ;;  %2661 = vmatprep.mubr.f32.mxu1 %v2091_v42  ;;  %2912 = vmatprep.mubr.f32.mxu0 %v16142_v58  ;;  %v2054_v11 = vmul.f32 %v10972_v45, %v2016_v16 }
 0x2b9   :  { %v1957_v55 = vadd.f32 1e-05, %v1925_v36  ;;  %v2161_v57 = vsel %vm715_vm7, %v2158_v38, %v2160_v15  ;;  %v2289_v7 = vsel %vm16145_vm14, %v2286_v6, %v2288_v17  ;;  %v2017_v10 = vmul.f32 %v9435_v40, %v10827_v8  ;;  %vm16146_vm14 = vmmov %vm16141_vm9 }
 0x2ba   :  { %v1876_v2 = vpop.xlane.xlu1 %1875  ;;  %v2092_v54 = vadd.f32 %v10978_v39, %v2054_v11 }
 0x2bb   :  { %9442 = vrsqrt.f32 %v1957_v55  ;;  %v1926_v30 = vmul.f32 0.0078125, %v1876_v2  ;;  %8518 = vmatmul.mubr.msk.f32.gmra.mxu1 %vm10384_vm13, %v2161_v57  ;;  %8548 = vmatmul.mubr.msk.f32.gmra.mxu0 %vm10172_vm3, %v2289_v7  ;;  %v2055_v20 = vmul.f32 %v10972_v45, %v2017_v10 }
 0x2bc   :  { %v9437_v19 = vpop.eup %9436  ;;  %2667 = vmatprep.mubr.f32.mxu1 %v2092_v54  ;;  %2918 = vmatprep.mubr.f32.mxu0 %v16142_v58  ;;  %v2162_v27 = vrot.slane %v2092_v54, 7  ;;  %v2290_v9 = vrot.slane %v2092_v54, 1 }
 0x2bd   :  { %v1958_v8 = vadd.f32 1e-05, %v1926_v30  ;;  %v2093_v47 = vadd.f32 %v10978_v39, %v2055_v20  ;;  %v2018_v48 = vmul.f32 %v9437_v19, %v10833_v31 }
 0x2be   :  { %v2163_v5 = vsel %vm715_vm7, %v2160_v15, %v2162_v27  ;;  %v2291_v37 = vsel %vm16141_vm9, %v2288_v17, %v2290_v9  ;;  %v1878_v38 = vpop.xlane.xlu0 %1877 }
 0x2bf   :  { %9444 = vrsqrt.f32 %v1958_v8  ;;  %2668 = vmatmul.mubr.f32.gmra.mxu1 %v2163_v5  ;;  %2919 = vmatmul.mubr.f32.gmra.mxu0 %v2291_v37  ;;  %v1927_v6 = vmul.f32 0.0078125, %v1878_v38  ;;  %v2164_v49 = vrot.slane %v2093_v47, 7  ;;  %v2292_v42 = vrot.slane %v2093_v47, 1 }
 0x2c0   :  { %v9439_v16 = vpop.eup %9438  ;;  %2673 = vmatprep.mubr.f32.mxu1 %v2093_v47  ;;  %2924 = vmatprep.mubr.f32.mxu0 %v16142_v58  ;;  %v2056_v3 = vmul.f32 %v10972_v45, %v2018_v48 }
 0x2c1   :  { %v1959_v29 = vadd.f32 1e-05, %v1927_v6  ;;  %v2165_v31 = vsel %vm715_vm7, %v2162_v27, %v2164_v49  ;;  %v2293_v51 = vsel %vm16146_vm14, %v2290_v9, %v2292_v42  ;;  %v2019_v36 = vmul.f32 %v9439_v16, %v10839_v41  ;;  %vm16147_vm14 = vmmov %vm16141_vm9 }
 0x2c2   :  { %v1880_v15 = vpop.xlane.xlu1 %1879  ;;  %v2094_v17 = vadd.f32 %v10978_v39, %v2056_v3 }
 0x2c3   :  { %9446 = vrsqrt.f32 %v1959_v29  ;;  %v1928_v40 = vmul.f32 0.0078125, %v1880_v15  ;;  %8520 = vmatmul.mubr.msk.f32.gmra.mxu1 %vm10418_vm10, %v2165_v31  ;;  %8550 = vmatmul.mubr.msk.f32.gmra.mxu0 %vm10188_vm4, %v2293_v51  ;;  %v2057_v11 = vmul.f32 %v10972_v45, %v2019_v36 }
 0x2c4   :  { %v9441_v55 = vpop.eup %9440  ;;  %2679 = vmatprep.mubr.f32.mxu1 %v2094_v17  ;;  %2930 = vmatprep.mubr.f32.mxu0 %v16142_v58  ;;  %v2166_v57 = vrot.slane %v2094_v17, 7  ;;  %v2294_v7 = vrot.slane %v2094_v17, 1 }
 0x2c5   :  { %v1960_v41 = vadd.f32 1e-05, %v1928_v40  ;;  %v2095_v10 = vadd.f32 %v10978_v39, %v2057_v11  ;;  %v2020_v2 = vmul.f32 %v9441_v55, %v10845_v0 }
 0x2c6   :  { %v2167_v54 = vsel %vm715_vm7, %v2164_v49, %v2166_v57  ;;  %v2295_v30 = vsel %vm16141_vm9, %v2292_v42, %v2294_v7  ;;  %v1882_v20 = vpop.xlane.xlu0 %1881 }
 0x2c7   :  { %9448 = vrsqrt.f32 %v1960_v41  ;;  %2680 = vmatmul.mubr.f32.gmra.mxu1 %v2167_v54  ;;  %2931 = vmatmul.mubr.f32.gmra.mxu0 %v2295_v30  ;;  %v1929_v19 = vmul.f32 0.0078125, %v1882_v20  ;;  %v2168_v27 = vrot.slane %v2095_v10, 7  ;;  %v2296_v9 = vrot.slane %v2095_v10, 1 }
 0x2c8   :  { %v9443_v8 = vpop.eup %9442  ;;  %2685 = vmatprep.mubr.f32.mxu1 %v2095_v10  ;;  %2936 = vmatprep.mubr.f32.mxu0 %v16142_v58  ;;  %v2058_v47 = vmul.f32 %v10972_v45, %v2020_v2 }
 0x2c9   :  { %v1961_v48 = vadd.f32 1e-05, %v1929_v19  ;;  %v2169_v0 = vsel %vm715_vm7, %v2166_v57, %v2168_v27  ;;  %v2297_v5 = vsel %vm16147_vm14, %v2294_v7, %v2296_v9  ;;  %v2021_v37 = vmul.f32 %v9443_v8, %v10851_v18  ;;  %vm16150_vm14 = vmmov %vm16141_vm9 }
 0x2ca   :  { %v1884_v38 = vpop.xlane.xlu1 %1883  ;;  %v2096_v6 = vadd.f32 %v10978_v39, %v2058_v47 }
 0x2cb   :  { %9450 = vrsqrt.f32 %v1961_v48  ;;  %v1930_v49 = vmul.f32 0.0078125, %v1884_v38  ;;  %8522 = vmatmul.mubr.msk.f32.gmra.mxu1 %vm10440_vm0, %v2169_v0  ;;  %8552 = vmatmul.mubr.msk.f32.gmra.mxu0 %vm10207_vm5, %v2297_v5  ;;  %v2059_v3 = vmul.f32 %v10972_v45, %v2021_v37 }
 0x2cc   :  { %v9445_v29 = vpop.eup %9444  ;;  %2691 = vmatprep.mubr.f32.mxu1 %v2096_v6  ;;  %2942 = vmatprep.mubr.f32.mxu0 %v16142_v58  ;;  %v2170_v31 = vrot.slane %v2096_v6, 7  ;;  %v2298_v51 = vrot.slane %v2096_v6, 1 }
 0x2cd   :  { %v1962_v18 = vadd.f32 1e-05, %v1930_v49  ;;  %v2097_v36 = vadd.f32 %v10978_v39, %v2059_v3  ;;  %v2022_v15 = vmul.f32 %v9445_v29, %v10857_v26 }
 0x2ce   :  { %v2171_v17 = vsel %vm715_vm7, %v2168_v27, %v2170_v31  ;;  %v2299_v40 = vsel %vm16141_vm9, %v2296_v9, %v2298_v51  ;;  %v1886_v11 = vpop.xlane.xlu0 %1885 }
 0x2cf   :  { %9452 = vrsqrt.f32 %v1962_v18  ;;  %2692 = vmatmul.mubr.f32.gmra.mxu1 %v2171_v17  ;;  %2943 = vmatmul.mubr.f32.gmra.mxu0 %v2299_v40  ;;  %v1931_v55 = vmul.f32 0.0078125, %v1886_v11  ;;  %v2172_v57 = vrot.slane %v2097_v36, 7  ;;  %v2300_v7 = vrot.slane %v2097_v36, 1 }
 0x2d0   :  { %v9447_v41 = vpop.eup %9446  ;;  %2697 = vmatprep.mubr.f32.mxu1 %v2097_v36  ;;  %2948 = vmatprep.mubr.f32.mxu0 %v16142_v58  ;;  %v2060_v10 = vmul.f32 %v10972_v45, %v2022_v15 }
 0x2d1   :  { %v1963_v2 = vadd.f32 1e-05, %v1931_v55  ;;  %v2173_v26 = vsel %vm715_vm7, %v2170_v31, %v2172_v57  ;;  %v2301_v54 = vsel %vm16150_vm14, %v2298_v51, %v2300_v7  ;;  %v2023_v30 = vmul.f32 %v9447_v41, %v10863_v43  ;;  %vm16153_vm14 = vmmov %vm16141_vm9  ;;  %v16156_v41 = vld [vmem:[#allocation27_spill] sm:$0xff] }
 0x2d2   :  { %v1888_v20 = vpop.xlane.xlu1 %1887  ;;  %v2098_v19 = vadd.f32 %v10978_v39, %v2060_v10 }
 0x2d3   :  { %9454 = vrsqrt.f32 %v1963_v2  ;;  %v1932_v27 = vmul.f32 0.0078125, %v1888_v20  ;;  %8524 = vmatmul.mubr.msk.f32.gmra.mxu1 %vm10453_vm11, %v2173_v26  ;;  %8554 = vmatmul.mubr.msk.f32.gmra.mxu0 %vm10223_vm6, %v2301_v54  ;;  %v2061_v47 = vmul.f32 %v10972_v45, %v2023_v30  ;;  %vm16157_vm6 = vnez %v16156_v41 }
 0x2d4   :  { %v9449_v48 = vpop.eup %9448  ;;  %2703 = vmatprep.mubr.f32.mxu1 %v2098_v19  ;;  %2954 = vmatprep.mubr.f32.mxu0 %v16142_v58  ;;  %v2174_v0 = vrot.slane %v2098_v19, 7  ;;  %v2302_v5 = vrot.slane %v2098_v19, 1 }
 0x2d5   :  { %v1964_v43 = vadd.f32 1e-05, %v1932_v27  ;;  %v2099_v37 = vadd.f32 %v10978_v39, %v2061_v47  ;;  %v2024_v38 = vmul.f32 %v9449_v48, %v10869_v62 }
 0x2d6   :  { %v2175_v6 = vsel %vm715_vm7, %v2172_v57, %v2174_v0  ;;  %v2303_v49 = vsel %vm16141_vm9, %v2300_v7, %v2302_v5  ;;  %v1890_v3 = vpop.xlane.xlu0 %1889  ;;  %v16154_v7 = vld [vmem:[#allocation44_spill] sm:$0xff] }
 0x2d7   :  { %9456 = vrsqrt.f32 %v1964_v43  ;;  %2704 = vmatmul.mubr.f32.gmra.mxu1 %v2175_v6  ;;  %2955 = vmatmul.mubr.f32.gmra.mxu0 %v2303_v49  ;;  %v1933_v29 = vmul.f32 0.0078125, %v1890_v3  ;;  %v2176_v31 = vrot.slane %v2099_v37, 7  ;;  %v2304_v51 = vrot.slane %v2099_v37, 1 }
 0x2d8   :  { %v9451_v18 = vpop.eup %9450  ;;  %2709 = vmatprep.mubr.f32.mxu1 %v2099_v37  ;;  %2960 = vmatprep.mubr.f32.mxu0 %v16142_v58  ;;  %v2062_v36 = vmul.f32 %v10972_v45, %v2024_v38  ;;  %vm16155_vm9 = vnez %v16154_v7 }
 0x2d9   :  { %v1965_v15 = vadd.f32 1e-05, %v1933_v29  ;;  %v2177_v62 = vsel %vm715_vm7, %v2174_v0, %v2176_v31  ;;  %v2305_v17 = vsel %vm16153_vm14, %v2302_v5, %v2304_v51  ;;  %v2025_v40 = vmul.f32 %v9451_v18, %v10875_v59  ;;  %v16161_v18 = vld [vmem:[#allocation29_spill] sm:$0xff] }
 0x2da   :  { %v1892_v11 = vpop.xlane.xlu1 %1891  ;;  %v2100_v55 = vadd.f32 %v10978_v39, %v2062_v36  ;;  %vm16162_vm5 = vnez %v16161_v18 }
 0x2db   :  { %9458 = vrsqrt.f32 %v1965_v15  ;;  %v1934_v57 = vmul.f32 0.0078125, %v1892_v11  ;;  %8526 = vmatmul.mubr.msk.f32.gmra.mxu1 %vm16155_vm9, %v2177_v62  ;;  %8556 = vmatmul.mubr.msk.f32.gmra.mxu0 %vm16157_vm6, %v2305_v17  ;;  %v2063_v10 = vmul.f32 %v10972_v45, %v2025_v40  ;;  %vm16158_vm6 = vmmov %vm16153_vm14 }
 0x2dc   :  { %v9453_v2 = vpop.eup %9452  ;;  %2715 = vmatprep.mubr.f32.mxu1 %v2100_v55  ;;  %2966 = vmatprep.mubr.f32.mxu0 %v16142_v58  ;;  %v2178_v26 = vrot.slane %v2100_v55, 7  ;;  %v2306_v54 = vrot.slane %v2100_v55, 1 }
 0x2dd   :  { %v1966_v59 = vadd.f32 1e-05, %v1934_v57  ;;  %v2101_v30 = vadd.f32 %v10978_v39, %v2063_v10  ;;  %v2026_v20 = vmul.f32 %v9453_v2, %v10881_v52 }
 0x2de   :  { %v2179_v19 = vsel %vm715_vm7, %v2176_v31, %v2178_v26  ;;  %v2307_v27 = vsel %vm16153_vm14, %v2304_v51, %v2306_v54  ;;  %v1894_v47 = vpop.xlane.xlu0 %1893  ;;  %v16159_v51 = vld [vmem:[#allocation45_spill] sm:$0xff] }
 0x2df   :  { %9460 = vrsqrt.f32 %v1966_v59  ;;  %2716 = vmatmul.mubr.f32.gmra.mxu1 %v2179_v19  ;;  %2967 = vmatmul.mubr.f32.gmra.mxu0 %v2307_v27  ;;  %v1935_v48 = vmul.f32 0.0078125, %v1894_v47  ;;  %v2180_v0 = vrot.slane %v2101_v30, 7  ;;  %v2308_v5 = vrot.slane %v2101_v30, 1 }
 0x2e0   :  { %v9455_v43 = vpop.eup %9454  ;;  %2721 = vmatprep.mubr.f32.mxu1 %v2101_v30  ;;  %2972 = vmatprep.mubr.f32.mxu0 %v16142_v58  ;;  %v2064_v37 = vmul.f32 %v10972_v45, %v2026_v20  ;;  %vm16160_vm14 = vnez %v16159_v51 }
 0x2e1   :  { %v1967_v38 = vadd.f32 1e-05, %v1935_v48  ;;  %v2181_v52 = vsel %vm715_vm7, %v2178_v26, %v2180_v0  ;;  %v2309_v6 = vsel %vm16158_vm6, %v2306_v54, %v2308_v5  ;;  %v2027_v49 = vmul.f32 %v9455_v43, %v10887_v50  ;;  %v16166_v43 = vld [vmem:[#allocation30_spill] sm:$0xff] }
 0x2e2   :  { %v1896_v3 = vpop.xlane.xlu1 %1895  ;;  %v2102_v29 = vadd.f32 %v10978_v39, %v2064_v37  ;;  %vm16167_vm4 = vnez %v16166_v43 }
 0x2e3   :  { %9462 = vrsqrt.f32 %v1967_v38  ;;  %v1936_v31 = vmul.f32 0.0078125, %v1896_v3  ;;  %8528 = vmatmul.mubr.msk.f32.gmra.mxu1 %vm16160_vm14, %v2181_v52  ;;  %8558 = vmatmul.mubr.msk.f32.gmra.mxu0 %vm16162_vm5, %v2309_v6  ;;  %v2065_v36 = vmul.f32 %v10972_v45, %v2027_v49  ;;  %vm16163_vm5 = vmmov %vm16158_vm6 }
 0x2e4   :  { %v9457_v15 = vpop.eup %9456  ;;  %2727 = vmatprep.mubr.f32.mxu1 %v2102_v29  ;;  %2978 = vmatprep.mubr.f32.mxu0 %v16142_v58  ;;  %v2182_v62 = vrot.slane %v2102_v29, 7  ;;  %v2310_v17 = vrot.slane %v2102_v29, 1 }
 0x2e5   :  { %v1968_v50 = vadd.f32 1e-05, %v1936_v31  ;;  %v2103_v40 = vadd.f32 %v10978_v39, %v2065_v36  ;;  %v2028_v11 = vmul.f32 %v9457_v15, %v10893_v56 }
 0x2e6   :  { %v2183_v55 = vsel %vm715_vm7, %v2180_v0, %v2182_v62  ;;  %v2311_v57 = vsel %vm16158_vm6, %v2308_v5, %v2310_v17  ;;  %v1898_v10 = vpop.xlane.xlu0 %1897  ;;  %v16164_v5 = vld [vmem:[#allocation46_spill] sm:$0xff] }
 0x2e7   :  { %9464 = vrsqrt.f32 %v1968_v50  ;;  %2728 = vmatmul.mubr.f32.gmra.mxu1 %v2183_v55  ;;  %2979 = vmatmul.mubr.f32.gmra.mxu0 %v2311_v57  ;;  %v1937_v2 = vmul.f32 0.0078125, %v1898_v10  ;;  %v2184_v26 = vrot.slane %v2103_v40, 7  ;;  %v2312_v54 = vrot.slane %v2103_v40, 1 }
 0x2e8   :  { %v9459_v59 = vpop.eup %9458  ;;  %2733 = vmatprep.mubr.f32.mxu1 %v2103_v40  ;;  %2984 = vmatprep.mubr.f32.mxu0 %v16142_v58  ;;  %v2066_v30 = vmul.f32 %v10972_v45, %v2028_v11  ;;  %vm16165_vm6 = vnez %v16164_v5 }
 0x2e9   :  { %v1969_v20 = vadd.f32 1e-05, %v1937_v2  ;;  %v2185_v56 = vsel %vm715_vm7, %v2182_v62, %v2184_v26  ;;  %v2313_v19 = vsel %vm16163_vm5, %v2310_v17, %v2312_v54  ;;  %v2029_v27 = vmul.f32 %v9459_v59, %v10899_v25  ;;  %v16171_v59 = vld [vmem:[#allocation32_spill] sm:$0xff] }
 0x2ea   :  { %v1900_v47 = vpop.xlane.xlu1 %1899  ;;  %v2104_v48 = vadd.f32 %v10978_v39, %v2066_v30  ;;  %vm16172_vm3 = vnez %v16171_v59 }
 0x2eb   :  { %9466 = vrsqrt.f32 %v1969_v20  ;;  %v1938_v0 = vmul.f32 0.0078125, %v1900_v47  ;;  %8530 = vmatmul.mubr.msk.f32.gmra.mxu1 %vm16165_vm6, %v2185_v56  ;;  %8560 = vmatmul.mubr.msk.f32.gmra.mxu0 %vm16167_vm4, %v2313_v19  ;;  %v2067_v37 = vmul.f32 %v10972_v45, %v2029_v27  ;;  %vm16168_vm4 = vmmov %vm16163_vm5 }
 0x2ec   :  { %v9461_v38 = vpop.eup %9460  ;;  %2739 = vmatprep.mubr.f32.mxu1 %v2104_v48  ;;  %2990 = vmatprep.mubr.f32.mxu0 %v16142_v58  ;;  %v2186_v52 = vrot.slane %v2104_v48, 7  ;;  %v2314_v6 = vrot.slane %v2104_v48, 1 }
 0x2ed   :  { %v1970_v25 = vadd.f32 1e-05, %v1938_v0  ;;  %v2105_v49 = vadd.f32 %v10978_v39, %v2067_v37  ;;  %v2030_v3 = vmul.f32 %v9461_v38, %v10905_v14 }
 0x2ee   :  { %v2187_v29 = vsel %vm715_vm7, %v2184_v26, %v2186_v52  ;;  %v2315_v31 = vsel %vm16163_vm5, %v2312_v54, %v2314_v6  ;;  %v1902_v36 = vpop.xlane.xlu0 %1901  ;;  %v16169_v54 = vld [vmem:[#allocation47_spill] sm:$0xff] }
 0x2ef   :  { %9468 = vrsqrt.f32 %v1970_v25  ;;  %2740 = vmatmul.mubr.f32.gmra.mxu1 %v2187_v29  ;;  %2991 = vmatmul.mubr.f32.gmra.mxu0 %v2315_v31  ;;  %v1939_v15 = vmul.f32 0.0078125, %v1902_v36  ;;  %v2188_v62 = vrot.slane %v2105_v49, 7  ;;  %v2316_v17 = vrot.slane %v2105_v49, 1 }
 0x2f0   :  { %v9463_v50 = vpop.eup %9462  ;;  %2745 = vmatprep.mubr.f32.mxu1 %v2105_v49  ;;  %2996 = vmatprep.mubr.f32.mxu0 %v16142_v58  ;;  %v2068_v40 = vmul.f32 %v10972_v45, %v2030_v3  ;;  %vm16170_vm5 = vnez %v16169_v54 }
 0x2f1   :  { %v1971_v11 = vadd.f32 1e-05, %v1939_v15  ;;  %v2189_v14 = vsel %vm715_vm7, %v2186_v52, %v2188_v62  ;;  %v2317_v55 = vsel %vm16168_vm4, %v2314_v6, %v2316_v17  ;;  %v2031_v57 = vmul.f32 %v9463_v50, %v10911_v34  ;;  %v16176_v50 = vld [vmem:[#allocation33_spill] sm:$0xff] }
 0x2f2   :  { %v1904_v10 = vpop.xlane.xlu1 %1903  ;;  %v2106_v2 = vadd.f32 %v10978_v39, %v2068_v40  ;;  %vm16177_vm2 = vnez %v16176_v50 }
 0x2f3   :  { %9470 = vrsqrt.f32 %v1971_v11  ;;  %v1940_v26 = vmul.f32 0.0078125, %v1904_v10  ;;  %8532 = vmatmul.mubr.msk.f32.gmra.mxu1 %vm16170_vm5, %v2189_v14  ;;  %8562 = vmatmul.mubr.msk.f32.gmra.mxu0 %vm16172_vm3, %v2317_v55  ;;  %v2069_v30 = vmul.f32 %v10972_v45, %v2031_v57  ;;  %vm16173_vm3 = vmmov %vm16168_vm4 }
 0x2f4   :  { %v9465_v20 = vpop.eup %9464  ;;  %2751 = vmatprep.mubr.f32.mxu1 %v2106_v2  ;;  %3002 = vmatprep.mubr.f32.mxu0 %v16142_v58  ;;  %v2190_v56 = vrot.slane %v2106_v2, 7  ;;  %v2318_v19 = vrot.slane %v2106_v2, 1 }
 0x2f5   :  { %v1972_v34 = vadd.f32 1e-05, %v1940_v26  ;;  %v2107_v27 = vadd.f32 %v10978_v39, %v2069_v30  ;;  %v2032_v47 = vmul.f32 %v9465_v20, %v10917_v21 }
 0x2f6   :  { %v2191_v48 = vsel %vm715_vm7, %v2188_v62, %v2190_v56  ;;  %v2319_v0 = vsel %vm16168_vm4, %v2316_v17, %v2318_v19  ;;  %v1906_v37 = vpop.xlane.xlu0 %1905  ;;  %v16174_v17 = vld [vmem:[#allocation48_spill] sm:$0xff] }
 0x2f7   :  { %9472 = vrsqrt.f32 %v1972_v34  ;;  %2752 = vmatmul.mubr.f32.gmra.mxu1 %v2191_v48  ;;  %3003 = vmatmul.mubr.f32.gmra.mxu0 %v2319_v0  ;;  %v1941_v38 = vmul.f32 0.0078125, %v1906_v37  ;;  %v2192_v52 = vrot.slane %v2107_v27, 7  ;;  %v2320_v6 = vrot.slane %v2107_v27, 1 }
 0x2f8   :  { %v9467_v25 = vpop.eup %9466  ;;  %2757 = vmatprep.mubr.f32.mxu1 %v2107_v27  ;;  %3008 = vmatprep.mubr.f32.mxu0 %v16142_v58  ;;  %v2070_v49 = vmul.f32 %v10972_v45, %v2032_v47  ;;  %vm16175_vm4 = vnez %v16174_v17 }
 0x2f9   :  { %v1973_v3 = vadd.f32 1e-05, %v1941_v38  ;;  %v2193_v21 = vsel %vm715_vm7, %v2190_v56, %v2192_v52  ;;  %v2321_v29 = vsel %vm16173_vm3, %v2318_v19, %v2320_v6  ;;  %v2033_v31 = vmul.f32 %v9467_v25, %v10923_v63  ;;  %v16181_v25 = vld [vmem:[#allocation35_spill] sm:$0xff] }
 0x2fa   :  { %v1908_v36 = vpop.xlane.xlu1 %1907  ;;  %v2108_v15 = vadd.f32 %v10978_v39, %v2070_v49  ;;  %vm16182_vm1 = vnez %v16181_v25 }
 0x2fb   :  { %9474 = vrsqrt.f32 %v1973_v3  ;;  %v1942_v62 = vmul.f32 0.0078125, %v1908_v36  ;;  %8534 = vmatmul.mubr.msk.f32.gmra.mxu1 %vm16175_vm4, %v2193_v21  ;;  %8564 = vmatmul.mubr.msk.f32.gmra.mxu0 %vm16177_vm2, %v2321_v29  ;;  %v2071_v40 = vmul.f32 %v10972_v45, %v2033_v31  ;;  %vm16178_vm2 = vmmov %vm16173_vm3 }
 0x2fc   :  { %v9469_v11 = vpop.eup %9468  ;;  %2763 = vmatprep.mubr.f32.mxu1 %v2108_v15  ;;  %3014 = vmatprep.mubr.f32.mxu0 %v16142_v58  ;;  %v2194_v14 = vrot.slane %v2108_v15, 7  ;;  %v2322_v55 = vrot.slane %v2108_v15, 1 }
 0x2fd   :  { %v1974_v63 = vadd.f32 1e-05, %v1942_v62  ;;  %v2109_v57 = vadd.f32 %v10978_v39, %v2071_v40  ;;  %v2034_v10 = vmul.f32 %v9469_v11, %v10929_v60 }
 0x2fe   :  { %v2195_v2 = vsel %vm715_vm7, %v2192_v52, %v2194_v14  ;;  %v2323_v26 = vsel %vm16173_vm3, %v2320_v6, %v2322_v55  ;;  %v1910_v30 = vpop.xlane.xlu0 %1909  ;;  %v16179_v6 = vld [vmem:[#allocation49_spill] sm:$0xff] }
 0x2ff   :  { %9476 = vrsqrt.f32 %v1974_v63  ;;  %2764 = vmatmul.mubr.f32.gmra.mxu1 %v2195_v2  ;;  %3015 = vmatmul.mubr.f32.gmra.mxu0 %v2323_v26  ;;  %v1943_v20 = vmul.f32 0.0078125, %v1910_v30  ;;  %v2196_v56 = vrot.slane %v2109_v57, 7  ;;  %v2324_v19 = vrot.slane %v2109_v57, 1  ;;  %v16184_v2 = vld [vmem:[#allocation50_spill] sm:$0xff]  ;;  %v16186_v26 = vld [vmem:[#allocation36_spill] sm:$0xff] }
 0x300   :  { %v9471_v34 = vpop.eup %9470  ;;  %2769 = vmatprep.mubr.f32.mxu1 %v2109_v57  ;;  %3020 = vmatprep.mubr.f32.mxu0 %v16142_v58  ;;  %v2072_v27 = vmul.f32 %v10972_v45, %v2034_v10  ;;  %vm16180_vm3 = vnez %v16179_v6 }
 0x301   :  { %v1975_v47 = vadd.f32 1e-05, %v1943_v20  ;;  %v2197_v60 = vsel %vm715_vm7, %v2194_v14, %v2196_v56  ;;  %v2325_v48 = vsel %vm16178_vm2, %v2322_v55, %v2324_v19  ;;  %v2035_v0 = vmul.f32 %v9471_v34, %v10935_v32 }
 0x302   :  { %v1912_v37 = vpop.xlane.xlu1 %1911  ;;  %v2110_v38 = vadd.f32 %v10978_v39, %v2072_v27 }
 0x303   :  { %9478 = vrsqrt.f32 %v1975_v47  ;;  %v1944_v52 = vmul.f32 0.0078125, %v1912_v37  ;;  %8536 = vmatmul.mubr.msk.f32.gmra.mxu1 %vm16180_vm3, %v2197_v60  ;;  %8566 = vmatmul.mubr.msk.f32.gmra.mxu0 %vm16182_vm1, %v2325_v48  ;;  %v2073_v49 = vmul.f32 %v10972_v45, %v2035_v0  ;;  %vm16183_vm1 = vmmov %vm16178_vm2  ;;  %vm16187_vm3 = vnez %v16186_v26 }
 0x304   :  { %v9473_v3 = vpop.eup %9472  ;;  %2775 = vmatprep.mubr.f32.mxu1 %v2110_v38  ;;  %3026 = vmatprep.mubr.f32.mxu0 %v16142_v58  ;;  %v2198_v21 = vrot.slane %v2110_v38, 7  ;;  %v2326_v29 = vrot.slane %v2110_v38, 1 }
 0x305   :  { %v1976_v32 = vadd.f32 1e-05, %v1944_v52  ;;  %v2111_v31 = vadd.f32 %v10978_v39, %v2073_v49  ;;  %v2036_v36 = vmul.f32 %v9473_v3, %v10941_v1 }
 0x306   :  { %v2199_v15 = vsel %vm715_vm7, %v2196_v56, %v2198_v21  ;;  %v2327_v62 = vsel %vm16178_vm2, %v2324_v19, %v2326_v29  ;;  %vm16185_vm2 = vnez %v16184_v2 }
 0x307   :  { %9480 = vrsqrt.f32 %v1976_v32  ;;  %2776 = vmatmul.mubr.f32.gmra.mxu1 %v2199_v15  ;;  %3027 = vmatmul.mubr.f32.gmra.mxu0 %v2327_v62  ;;  %v2328_v40 = vrot.slane %v2111_v31, 1  ;;  %v2200_v11 = vrot.slane %v2111_v31, 7  ;;  %v2074_v14 = vmul.f32 %v10972_v45, %v2036_v36 }
 0x308   :  { %v9475_v55 = vpop.eup %9474  ;;  %2781 = vmatprep.mubr.f32.mxu1 %v2111_v31  ;;  %3032 = vmatprep.mubr.f32.mxu0 %v16142_v58 }
 0x309   :  { %v2201_v63 = vsel %vm715_vm7, %v2198_v21, %v2200_v11  ;;  %v2329_v57 = vsel %vm16183_vm1, %v2326_v29, %v2328_v40  ;;  %v2112_v1 = vadd.f32 %v10978_v39, %v2074_v14  ;;  %v2037_v10 = vmul.f32 %v9475_v55, %v10947_v23 }
 0x30b   :  { %8538 = vmatmul.mubr.msk.f32.gmra.mxu1 %vm16185_vm2, %v2201_v63  ;;  %8568 = vmatmul.mubr.msk.f32.gmra.mxu0 %vm16187_vm3, %v2329_v57  ;;  %v2202_v30 = vrot.slane %v2112_v1, 7  ;;  %v2330_v20 = vrot.slane %v2112_v1, 1  ;;  %v2075_v56 = vmul.f32 %v10972_v45, %v2037_v10  ;;  %vm16188_vm3 = vmmov %vm16183_vm1  ;;  %v16193_v10 = vld [vmem:[#allocation52_spill] sm:$0xff] }
 0x30c   :  { %v9477_v19 = vpop.eup %9476  ;;  %2787 = vmatprep.mubr.f32.mxu1 %v2112_v1  ;;  %3038 = vmatprep.mubr.f32.mxu0 %v16142_v58 }
 0x30d   :  { %v2203_v34 = vsel %vm715_vm7, %v2200_v11, %v2202_v30  ;;  %v2331_v27 = vsel %vm16183_vm1, %v2328_v40, %v2330_v20  ;;  %v2113_v23 = vadd.f32 %v10978_v39, %v2075_v56  ;;  %v2038_v47 = vmul.f32 %v9477_v19, %v10953_v28  ;;  %v16190_v28 = vld [vmem:[#allocation38_spill] sm:$0xff]  ;;  %v16198_v19 = vld [vmem:[#allocation41_spill] sm:$0xff] }
 0x30e   :  { %vm16191_vm1 = vnez %v16190_v28 }
 0x30f   :  { %2788 = vmatmul.mubr.f32.gmra.mxu1 %v2203_v34  ;;  %3039 = vmatmul.mubr.f32.gmra.mxu0 %v2331_v27  ;;  %v2332_v60 = vrot.slane %v2113_v23, 1  ;;  %v2204_v48 = vrot.slane %v2113_v23, 7  ;;  %v2076_v0 = vmul.f32 %v10972_v45, %v2038_v47  ;;  %v16200_v34 = vld [vmem:[#allocation20_spill] sm:$0xff] }
 0x310   :  { %v9479_v37 = vpop.eup %9478  ;;  %2793 = vmatprep.mubr.f32.mxu1 %v2113_v23  ;;  %3044 = vmatprep.mubr.f32.mxu0 %v16142_v58  ;;  %v11235_v27 = vsub.s32 0, %v16200_v34  ;;  %v2549_v23 = vld [vmem:[%s16202_s6] sm:$0x3]  ;;  %v11241_v47 = vsub.s32 1, %v16200_v34 }
 0x311   :  { %v2205_v38 = vsel %vm715_vm7, %v2202_v30, %v2204_v48  ;;  %v2333_v52 = vsel %vm16188_vm3, %v2330_v20, %v2332_v60  ;;  %v2114_v49 = vadd.f32 %v10978_v39, %v2076_v0  ;;  %v2039_v3 = vmul.f32 %v9479_v37, %v10959_v53  ;;  %v16195_v30 = vld [vmem:[#allocation39_spill] sm:$0xff] }
 0x312   :  { %16201 = vst [vmem:[#allocation20_spill] sm:$0xff] %v11235_v27  ;;  %16203 = vst [vmem:[#allocation53_spill] sm:$0xff] %v11241_v47  ;;  %v11247_v0 = vrot.slane %v2549_v23, %v11241_v47 }
 0x313   :  { %8540 = vmatmul.mubr.msk.f32.gmra.mxu1 %vm10557_vm8, %v2205_v38  ;;  %8570 = vmatmul.mubr.msk.f32.gmra.mxu0 %vm16191_vm1, %v2333_v52  ;;  %v2206_v29 = vrot.slane %v2114_v49, 7  ;;  %v2334_v32 = vrot.slane %v2114_v49, 1  ;;  %v2077_v31 = vmul.f32 %v10972_v45, %v2039_v3  ;;  %vm16192_vm1 = vmmov %vm16188_vm3  ;;  %vm16196_vm8 = vnez %v16195_v30 }
 0x314   :  { %v9481_v36 = vpop.eup %9480  ;;  %2799 = vmatprep.mubr.f32.mxu1 %v2114_v49  ;;  %3050 = vmatprep.mubr.f32.mxu0 %v16142_v58  ;;  %vm16197_vm2 = vmmov %vm16192_vm1 }
 0x315   :  { %v2207_v15 = vsel %vm715_vm7, %v2204_v48, %v2206_v29  ;;  %v2335_v62 = vsel %vm16188_vm3, %v2332_v60, %v2334_v32  ;;  %v2115_v53 = vadd.f32 %v10978_v39, %v2077_v31  ;;  %v2040_v40 = vmul.f32 %v9481_v36, %v10965_v13 }
 0x316   :  { %vm16194_vm3 = vnez %v16193_v10  ;;  %v11244_v60 = vrot.slane %v2549_v23, %v11235_v27 }
 0x317   :  { %2800 = vmatmul.mubr.f32.gmra.mxu1 %v2207_v15  ;;  %3051 = vmatmul.mubr.f32.gmra.mxu0 %v2335_v62  ;;  %v2336_v11 = vrot.slane %v2115_v53, 1  ;;  %v2208_v14 = vrot.slane %v2115_v53, 7  ;;  %v2078_v55 = vmul.f32 %v10972_v45, %v2040_v40 }
 0x318   :  { %2805 = vmatprep.mubr.f32.mxu1 %v2115_v53  ;;  %3056 = vmatprep.mubr.f32.mxu0 %v16142_v58 }
 0x319   :  { %v2209_v63 = vsel %vm715_vm7, %v2206_v29, %v2208_v14  ;;  %v2337_v57 = vsel %vm16192_vm1, %v2334_v32, %v2336_v11  ;;  %v2116_v1 = vadd.f32 %v10978_v39, %v2078_v55 }
 0x31b   :  { %8542 = vmatmul.mubr.msk.f32.gmra.mxu1 %vm16194_vm3, %v2209_v63  ;;  %8572 = vmatmul.mubr.msk.f32.gmra.mxu0 %vm16196_vm8, %v2337_v57  ;;  %v2210_v13 = vrot.slane %v2116_v1, 7  ;;  %v2338_v20 = vrot.slane %v2116_v1, 1  ;;  %vm16199_vm3 = vnez %v16198_v19 }
 0x31c   :  { %2811 = vmatprep.mubr.f32.mxu1 %v2116_v1  ;;  %3062 = vmatprep.mubr.f32.mxu0 %v16142_v58 }
 0x31d   :  { %v2211_v45 = vsel %vm715_vm7, %v2208_v14, %v2210_v13  ;;  %v2339_v56 = vsel %vm16197_vm2, %v2336_v11, %v2338_v20  ;;  %v2372_v39 = vsel %vm16192_vm1, %v2338_v20, 0.0 }
 0x31f   :  { %2812 = vmatmul.mubr.f32.gmra.mxu1 %v2211_v45  ;;  %3063 = vmatmul.mubr.f32.gmra.mxu0 %v2339_v56 }
 0x320   :  { %3068 = vmatprep.mubr.f32.mxu0 %v16142_v58 }
 0x323   :  { %8574 = vmatmul.mubr.msk.f32.gmra.mxu0 %vm16199_vm3, %v2372_v39 }
 0x362   :  { %v2627_v48 = vpop.f32.mrf.mxu1 }
 0x363   :  { %v2628_v38 = vadd.f32 %v2627_v48, %v11244_v60 }
 0x364   :  { %v2629_v37 = vpop.f32.mrf.mxu1 }
 0x365   :  { %v2630_v3 = vadd.f32 %v2629_v37, %v11247_v0 }
 0x366   :  { %v2884_v49 = vpop.f32.mrf.mxu0 }
 0x367   :  { %v2633_v52 = vpop.f32.mrf.mxu1  ;;  %v11251_v29 = vadd.f32 %v2884_v49, %v2628_v38 }
 0x368   :  { %v2886_v31 = vpop.f32.mrf.mxu0  ;;  %v2634_v36 = vadd.f32 %v2633_v52, %v11244_v60 }
 0x369   :  { %v2635_v32 = vpop.f32.mrf.mxu1  ;;  %v11254_v15 = vadd.f32 %v2886_v31, %v2630_v3  ;;  %v15665_v40 = vmax.f32 %v11251_v29, 0.0 }
 0x36a   :  { %v2890_v53 = vpop.f32.mrf.mxu0  ;;  %v2636_v11 = vadd.f32 %v2635_v32, %v11247_v0 }
 0x36b   :  { %v2639_v62 = vpop.f32.mrf.mxu1  ;;  %v15664_v14 = vmax.f32 %v11254_v15, 0.0  ;;  %v11259_v55 = vadd.f32 %v2890_v53, %v2634_v36 }
 0x36c   :  { %v2892_v57 = vpop.f32.mrf.mxu0  ;;  %v2640_v1 = vadd.f32 %v2639_v62, %v11244_v60 }
 0x36d   :  { %v2641_v63 = vpop.f32.mrf.mxu1  ;;  %v11262_v13 = vadd.f32 %v2892_v57, %v2636_v11  ;;  %v3141_v20 = vadd.f32 %v15664_v14, %v15665_v40  ;;  %v15661_v39 = vmax.f32 %v11259_v55, 0.0 }
 0x36e   :  { %v2642_v34 = vadd.f32 %v2641_v63, %v11247_v0 }
 0x36f   :  { %v2645_v45 = vpop.f32.mrf.mxu1  ;;  %v2896_v56 = vpop.f32.mrf.mxu0  ;;  %v15660_v23 = vmax.f32 %v11262_v13, 0.0  ;;  %3142 = vadd.xlane.f32.xlu0 %v3141_v20 }
 0x370   :  { %v11271_v48 = vadd.f32 %v2896_v56, %v2640_v1  ;;  %v2646_v52 = vadd.f32 %v2645_v45, %v11244_v60 }
 0x371   :  { %v2647_v37 = vpop.f32.mrf.mxu1  ;;  %v2898_v38 = vpop.f32.mrf.mxu0  ;;  %v3144_v3 = vadd.f32 %v15660_v23, %v15661_v39 }
 0x372   :  { %v11274_v49 = vadd.f32 %v2898_v38, %v2642_v34  ;;  %v15659_v36 = vmax.f32 %v11271_v48, 0.0  ;;  %v2648_v62 = vadd.f32 %v2647_v37, %v11247_v0 }
 0x373   :  { %v2651_v32 = vpop.f32.mrf.mxu1  ;;  %v2902_v31 = vpop.f32.mrf.mxu0  ;;  %3145 = vadd.xlane.f32.xlu1 %v3144_v3 }
 0x374   :  { %v15658_v53 = vmax.f32 %v11274_v49, 0.0  ;;  %v11283_v11 = vadd.f32 %v2902_v31, %v2646_v52  ;;  %v2652_v1 = vadd.f32 %v2651_v32, %v11244_v60 }
 0x375   :  { %v2653_v63 = vpop.f32.mrf.mxu1  ;;  %v2904_v57 = vpop.f32.mrf.mxu0 }
 0x376   :  { %v11286_v20 = vadd.f32 %v2904_v57, %v2648_v62  ;;  %v3147_v45 = vadd.f32 %v15658_v53, %v15659_v36  ;;  %v15663_v37 = vmax.f32 %v11283_v11, 0.0  ;;  %v2654_v38 = vadd.f32 %v2653_v63, %v11247_v0 }
 0x377   :  { %v2657_v56 = vpop.f32.mrf.mxu1  ;;  %v2908_v34 = vpop.f32.mrf.mxu0 }
 0x378   :  { %v15662_v52 = vmax.f32 %v11286_v20, 0.0  ;;  %v11295_v3 = vadd.f32 %v2908_v34, %v2652_v1  ;;  %3148 = vadd.xlane.f32.xlu0 %v3147_v45  ;;  %v2658_v62 = vadd.f32 %v2657_v56, %v11244_v60 }
 0x379   :  { %v2659_v31 = vpop.f32.mrf.mxu1  ;;  %v2910_v32 = vpop.f32.mrf.mxu0 }
 0x37a   :  { %v11298_v57 = vadd.f32 %v2910_v32, %v2654_v38  ;;  %v3150_v53 = vadd.f32 %v15662_v52, %v15663_v37  ;;  %v15667_v63 = vmax.f32 %v11295_v3, 0.0  ;;  %v2660_v39 = vadd.f32 %v2659_v31, %v11247_v0 }
 0x37b   :  { %v2663_v36 = vpop.f32.mrf.mxu1  ;;  %v2914_v23 = vpop.f32.mrf.mxu0 }
 0x37c   :  { %v15666_v1 = vmax.f32 %v11298_v57, 0.0  ;;  %v11307_v45 = vadd.f32 %v2914_v23, %v2658_v62  ;;  %3151 = vadd.xlane.f32.xlu1 %v3150_v53  ;;  %v2664_v38 = vadd.f32 %v2663_v36, %v11244_v60 }
 0x37d   :  { %v2665_v34 = vpop.f32.mrf.mxu1  ;;  %v2916_v56 = vpop.f32.mrf.mxu0 }
 0x37e   :  { %v11310_v32 = vadd.f32 %v2916_v56, %v2660_v39  ;;  %v3153_v52 = vadd.f32 %v15666_v1, %v15667_v63  ;;  %v15670_v31 = vmax.f32 %v11307_v45, 0.0  ;;  %v2666_v40 = vadd.f32 %v2665_v34, %v11247_v0 }
 0x37f   :  { %v2669_v37 = vpop.f32.mrf.mxu1  ;;  %v2920_v14 = vpop.f32.mrf.mxu0 }
 0x380   :  { %v15669_v23 = vmax.f32 %v11310_v32, 0.0  ;;  %v11319_v53 = vadd.f32 %v2920_v14, %v2664_v38  ;;  %3154 = vadd.xlane.f32.xlu0 %v3153_v52  ;;  %v2670_v39 = vadd.f32 %v2669_v37, %v11244_v60 }
 0x381   :  { %v2671_v62 = vpop.f32.mrf.mxu1  ;;  %v2922_v36 = vpop.f32.mrf.mxu0 }
 0x382   :  { %v11322_v56 = vadd.f32 %v2922_v36, %v2666_v40  ;;  %v3156_v1 = vadd.f32 %v15669_v23, %v15670_v31  ;;  %v15672_v34 = vmax.f32 %v11319_v53, 0.0  ;;  %v2672_v19 = vadd.f32 %v2671_v62, %v11247_v0 }
 0x383   :  { %v2675_v63 = vpop.f32.mrf.mxu1  ;;  %v2926_v58 = vpop.f32.mrf.mxu0 }
 0x384   :  { %v15671_v14 = vmax.f32 %v11322_v56, 0.0  ;;  %v11331_v52 = vadd.f32 %v2926_v58, %v2670_v39  ;;  %3157 = vadd.xlane.f32.xlu1 %v3156_v1  ;;  %v2676_v40 = vadd.f32 %v2675_v63, %v11244_v60 }
 0x385   :  { %v2677_v38 = vpop.f32.mrf.mxu1  ;;  %v2928_v37 = vpop.f32.mrf.mxu0 }
 0x386   :  { %v11334_v36 = vadd.f32 %v2928_v37, %v2672_v19  ;;  %v3159_v23 = vadd.f32 %v15671_v14, %v15672_v34  ;;  %v15674_v62 = vmax.f32 %v11331_v52, 0.0  ;;  %v2678_v28 = vadd.f32 %v2677_v38, %v11247_v0 }
 0x387   :  { %v2681_v31 = vpop.f32.mrf.mxu1  ;;  %v2932_v30 = vpop.f32.mrf.mxu0 }
 0x388   :  { %v15673_v58 = vmax.f32 %v11334_v36, 0.0  ;;  %v11343_v1 = vadd.f32 %v2932_v30, %v2676_v40  ;;  %3160 = vadd.xlane.f32.xlu0 %v3159_v23  ;;  %v2682_v19 = vadd.f32 %v2681_v31, %v11244_v60 }
 0x389   :  { %v2683_v39 = vpop.f32.mrf.mxu1  ;;  %v2934_v63 = vpop.f32.mrf.mxu0 }
 0x38a   :  { %v11346_v37 = vadd.f32 %v2934_v63, %v2678_v28  ;;  %v3162_v14 = vadd.f32 %v15673_v58, %v15674_v62  ;;  %v15676_v38 = vmax.f32 %v11343_v1, 0.0  ;;  %v2684_v25 = vadd.f32 %v2683_v39, %v11247_v0 }
 0x38b   :  { %v2687_v34 = vpop.f32.mrf.mxu1  ;;  %v2938_v26 = vpop.f32.mrf.mxu0 }
 0x38c   :  { %v15675_v30 = vmax.f32 %v11346_v37, 0.0  ;;  %v11355_v23 = vadd.f32 %v2938_v26, %v2682_v19  ;;  %3163 = vadd.xlane.f32.xlu1 %v3162_v14  ;;  %v2688_v28 = vadd.f32 %v2687_v34, %v11244_v60 }
 0x38d   :  { %v2689_v40 = vpop.f32.mrf.mxu1  ;;  %v2940_v31 = vpop.f32.mrf.mxu0 }
 0x38e   :  { %v11358_v63 = vadd.f32 %v2940_v31, %v2684_v25  ;;  %v3165_v58 = vadd.f32 %v15675_v30, %v15676_v38  ;;  %v15678_v39 = vmax.f32 %v11355_v23, 0.0  ;;  %v2690_v59 = vadd.f32 %v2689_v40, %v11247_v0 }
 0x38f   :  { %v2693_v62 = vpop.f32.mrf.mxu1  ;;  %v2944_v50 = vpop.f32.mrf.mxu0 }
 0x390   :  { %v15677_v26 = vmax.f32 %v11358_v63, 0.0  ;;  %v11367_v14 = vadd.f32 %v2944_v50, %v2688_v28  ;;  %3166 = vadd.xlane.f32.xlu0 %v3165_v58  ;;  %v2694_v25 = vadd.f32 %v2693_v62, %v11244_v60 }
 0x391   :  { %v2695_v19 = vpop.f32.mrf.mxu1  ;;  %v2946_v34 = vpop.f32.mrf.mxu0 }
 0x392   :  { %v11370_v31 = vadd.f32 %v2946_v34, %v2690_v59  ;;  %v3168_v30 = vadd.f32 %v15677_v26, %v15678_v39  ;;  %v15680_v40 = vmax.f32 %v11367_v14, 0.0  ;;  %v2696_v18 = vadd.f32 %v2695_v19, %v11247_v0 }
 0x393   :  { %v2699_v38 = vpop.f32.mrf.mxu1  ;;  %v2950_v43 = vpop.f32.mrf.mxu0 }
 0x394   :  { %v15679_v50 = vmax.f32 %v11370_v31, 0.0  ;;  %v11379_v58 = vadd.f32 %v2950_v43, %v2694_v25  ;;  %3169 = vadd.xlane.f32.xlu1 %v3168_v30  ;;  %v2700_v59 = vadd.f32 %v2699_v38, %v11244_v60 }
 0x395   :  { %v2701_v28 = vpop.f32.mrf.mxu1  ;;  %v2952_v62 = vpop.f32.mrf.mxu0 }
 0x396   :  { %v11382_v34 = vadd.f32 %v2952_v62, %v2696_v18  ;;  %v3171_v26 = vadd.f32 %v15679_v50, %v15680_v40  ;;  %v15684_v19 = vmax.f32 %v11379_v58, 0.0  ;;  %v2702_v8 = vadd.f32 %v2701_v28, %v11247_v0 }
 0x397   :  { %v2705_v39 = vpop.f32.mrf.mxu1  ;;  %v2956_v41 = vpop.f32.mrf.mxu0 }
 0x398   :  { %v15683_v43 = vmax.f32 %v11382_v34, 0.0  ;;  %v11391_v30 = vadd.f32 %v2956_v41, %v2700_v59  ;;  %3172 = vadd.xlane.f32.xlu0 %v3171_v26  ;;  %v2706_v18 = vadd.f32 %v2705_v39, %v11244_v60 }
 0x399   :  { %v2707_v25 = vpop.f32.mrf.mxu1  ;;  %v2958_v38 = vpop.f32.mrf.mxu0 }
 0x39a   :  { %v11394_v62 = vadd.f32 %v2958_v38, %v2702_v8  ;;  %v3174_v50 = vadd.f32 %v15683_v43, %v15684_v19  ;;  %v15690_v28 = vmax.f32 %v11391_v30, 0.0  ;;  %v2708_v46 = vadd.f32 %v2707_v25, %v11247_v0 }
 0x39b   :  { %v2711_v40 = vpop.f32.mrf.mxu1  ;;  %v2962_v16 = vpop.f32.mrf.mxu0 }
 0x39c   :  { %v15689_v41 = vmax.f32 %v11394_v62, 0.0  ;;  %v11403_v26 = vadd.f32 %v2962_v16, %v2706_v18  ;;  %3175 = vadd.xlane.f32.xlu1 %v3174_v50  ;;  %v2712_v8 = vadd.f32 %v2711_v40, %v11244_v60 }
 0x39d   :  { %v2713_v59 = vpop.f32.mrf.mxu1  ;;  %v2964_v39 = vpop.f32.mrf.mxu0 }
 0x39e   :  { %v11406_v38 = vadd.f32 %v2964_v39, %v2708_v46  ;;  %v3177_v43 = vadd.f32 %v15689_v41, %v15690_v28  ;;  %v15694_v25 = vmax.f32 %v11403_v26, 0.0  ;;  %v2714_v24 = vadd.f32 %v2713_v59, %v11247_v0 }
 0x39f   :  { %v2717_v19 = vpop.f32.mrf.mxu1  ;;  %v2968_v35 = vpop.f32.mrf.mxu0 }
 0x3a0   :  { %v15693_v16 = vmax.f32 %v11406_v38, 0.0  ;;  %v11415_v50 = vadd.f32 %v2968_v35, %v2712_v8  ;;  %3178 = vadd.xlane.f32.xlu0 %v3177_v43  ;;  %v2718_v46 = vadd.f32 %v2717_v19, %v11244_v60 }
 0x3a1   :  { %v2719_v18 = vpop.f32.mrf.mxu1  ;;  %v2970_v40 = vpop.f32.mrf.mxu0 }
 0x3a2   :  { %v11418_v39 = vadd.f32 %v2970_v40, %v2714_v24  ;;  %v3180_v41 = vadd.f32 %v15693_v16, %v15694_v25  ;;  %v15696_v59 = vmax.f32 %v11415_v50, 0.0  ;;  %v2720_v10 = vadd.f32 %v2719_v18, %v11247_v0 }
 0x3a3   :  { %v2723_v28 = vpop.f32.mrf.mxu1  ;;  %v2974_v12 = vpop.f32.mrf.mxu0 }
 0x3a4   :  { %v15695_v35 = vmax.f32 %v11418_v39, 0.0  ;;  %v11427_v43 = vadd.f32 %v2974_v12, %v2718_v46  ;;  %3181 = vadd.xlane.f32.xlu1 %v3180_v41  ;;  %v2724_v24 = vadd.f32 %v2723_v28, %v11244_v60 }
 0x3a5   :  { %v2725_v8 = vpop.f32.mrf.mxu1  ;;  %v2976_v19 = vpop.f32.mrf.mxu0 }
 0x3a6   :  { %v11430_v40 = vadd.f32 %v2976_v19, %v2720_v10  ;;  %v3183_v16 = vadd.f32 %v15695_v35, %v15696_v59  ;;  %v15698_v18 = vmax.f32 %v11427_v43, 0.0  ;;  %v2726_v2 = vadd.f32 %v2725_v8, %v11247_v0 }
 0x3a7   :  { %v2729_v25 = vpop.f32.mrf.mxu1  ;;  %v2980_v21 = vpop.f32.mrf.mxu0 }
 0x3a8   :  { %v15697_v12 = vmax.f32 %v11430_v40, 0.0  ;;  %v11439_v41 = vadd.f32 %v2980_v21, %v2724_v24  ;;  %3184 = vadd.xlane.f32.xlu0 %v3183_v16  ;;  %v2730_v10 = vadd.f32 %v2729_v25, %v11244_v60 }
 0x3a9   :  { %v2731_v46 = vpop.f32.mrf.mxu1  ;;  %v2982_v28 = vpop.f32.mrf.mxu0 }
 0x3aa   :  { %v11442_v19 = vadd.f32 %v2982_v28, %v2726_v2  ;;  %v3186_v35 = vadd.f32 %v15697_v12, %v15698_v18  ;;  %v15700_v8 = vmax.f32 %v11439_v41, 0.0  ;;  %v2732_v17 = vadd.f32 %v2731_v46, %v11247_v0 }
 0x3ab   :  { %v2735_v59 = vpop.f32.mrf.mxu1  ;;  %v2986_v6 = vpop.f32.mrf.mxu0 }
 0x3ac   :  { %v15699_v21 = vmax.f32 %v11442_v19, 0.0  ;;  %v11451_v16 = vadd.f32 %v2986_v6, %v2730_v10  ;;  %3187 = vadd.xlane.f32.xlu1 %v3186_v35  ;;  %v2736_v2 = vadd.f32 %v2735_v59, %v11244_v60 }
 0x3ad   :  { %v2737_v24 = vpop.f32.mrf.mxu1  ;;  %v2988_v25 = vpop.f32.mrf.mxu0 }
 0x3ae   :  { %v11454_v28 = vadd.f32 %v2988_v25, %v2732_v17  ;;  %v3189_v12 = vadd.f32 %v15699_v21, %v15700_v8  ;;  %v15702_v46 = vmax.f32 %v11451_v16, 0.0  ;;  %v2738_v5 = vadd.f32 %v2737_v24, %v11247_v0 }
 0x3af   :  { %v2741_v18 = vpop.f32.mrf.mxu1  ;;  %v2992_v54 = vpop.f32.mrf.mxu0 }
 0x3b0   :  { %v15701_v6 = vmax.f32 %v11454_v28, 0.0  ;;  %v11463_v35 = vadd.f32 %v2992_v54, %v2736_v2  ;;  %3190 = vadd.xlane.f32.xlu0 %v3189_v12  ;;  %v2742_v17 = vadd.f32 %v2741_v18, %v11244_v60 }
 0x3b1   :  { %v2743_v10 = vpop.f32.mrf.mxu1  ;;  %v2994_v59 = vpop.f32.mrf.mxu0 }
 0x3b2   :  { %v11466_v25 = vadd.f32 %v2994_v59, %v2738_v5  ;;  %v3192_v21 = vadd.f32 %v15701_v6, %v15702_v46  ;;  %v15704_v24 = vmax.f32 %v11463_v35, 0.0  ;;  %v2744_v7 = vadd.f32 %v2743_v10, %v11247_v0 }
 0x3b3   :  { %v2747_v8 = vpop.f32.mrf.mxu1  ;;  %v2998_v51 = vpop.f32.mrf.mxu0 }
 0x3b4   :  { %v15703_v54 = vmax.f32 %v11466_v25, 0.0  ;;  %v11475_v12 = vadd.f32 %v2998_v51, %v2742_v17  ;;  %3193 = vadd.xlane.f32.xlu1 %v3192_v21  ;;  %v2748_v5 = vadd.f32 %v2747_v8, %v11244_v60 }
 0x3b5   :  { %v2749_v2 = vpop.f32.mrf.mxu1  ;;  %v3000_v18 = vpop.f32.mrf.mxu0 }
 0x3b6   :  { %v11478_v59 = vadd.f32 %v3000_v18, %v2744_v7  ;;  %v3195_v6 = vadd.f32 %v15703_v54, %v15704_v24  ;;  %v15710_v10 = vmax.f32 %v11475_v12, 0.0  ;;  %v2750_v42 = vadd.f32 %v2749_v2, %v11247_v0 }
 0x3b7   :  { %v2753_v46 = vpop.f32.mrf.mxu1  ;;  %v3004_v9 = vpop.f32.mrf.mxu0 }
 0x3b8   :  { %v15709_v51 = vmax.f32 %v11478_v59, 0.0  ;;  %v11487_v21 = vadd.f32 %v3004_v9, %v2748_v5  ;;  %3196 = vadd.xlane.f32.xlu0 %v3195_v6  ;;  %v2754_v7 = vadd.f32 %v2753_v46, %v11244_v60 }
 0x3b9   :  { %v2755_v17 = vpop.f32.mrf.mxu1  ;;  %v3006_v8 = vpop.f32.mrf.mxu0 }
 0x3ba   :  { %v11490_v18 = vadd.f32 %v3006_v8, %v2750_v42  ;;  %v3198_v54 = vadd.f32 %v15709_v51, %v15710_v10  ;;  %v15716_v2 = vmax.f32 %v11487_v21, 0.0  ;;  %v2756_v61 = vadd.f32 %v2755_v17, %v11247_v0 }
 0x3bb   :  { %v2759_v24 = vpop.f32.mrf.mxu1  ;;  %v3010_v33 = vpop.f32.mrf.mxu0 }
 0x3bc   :  { %16204 = vst [vmem:[#allocation54_spill] sm:$0xff] %v11490_v18  ;;  %v15715_v9 = vmax.f32 %v11490_v18, 0.0  ;;  %v11499_v6 = vadd.f32 %v3010_v33, %v2754_v7  ;;  %3199 = vadd.xlane.f32.xlu1 %v3198_v54  ;;  %v2760_v42 = vadd.f32 %v2759_v24, %v11244_v60 }
 0x3bd   :  { %v2761_v5 = vpop.f32.mrf.mxu1  ;;  %v3012_v46 = vpop.f32.mrf.mxu0 }
 0x3be   :  { %16205 = vst [vmem:[#allocation55_spill] sm:$0xff] %v11499_v6  ;;  %v11502_v8 = vadd.f32 %v3012_v46, %v2756_v61  ;;  %v3201_v51 = vadd.f32 %v15715_v9, %v15716_v2  ;;  %v15722_v17 = vmax.f32 %v11499_v6, 0.0  ;;  %v2762_v22 = vadd.f32 %v2761_v5, %v11247_v0 }
 0x3bf   :  { %v2765_v10 = vpop.f32.mrf.mxu1  ;;  %v3016_v4 = vpop.f32.mrf.mxu0 }
 0x3c0   :  { %16206 = vst [vmem:[#allocation56_spill] sm:$0xff] %v11502_v8  ;;  %v15721_v33 = vmax.f32 %v11502_v8, 0.0  ;;  %v11511_v54 = vadd.f32 %v3016_v4, %v2760_v42  ;;  %3202 = vadd.xlane.f32.xlu1 %v3201_v51  ;;  %v2766_v61 = vadd.f32 %v2765_v10, %v11244_v60 }
 0x3c1   :  { %v2767_v7 = vpop.f32.mrf.mxu1  ;;  %v3018_v24 = vpop.f32.mrf.mxu0 }
 0x3c2   :  { %16207 = vst [vmem:[#allocation57_spill] sm:$0xff] %v11511_v54  ;;  %v11514_v46 = vadd.f32 %v3018_v24, %v2762_v22  ;;  %v3204_v9 = vadd.f32 %v15721_v33, %v15722_v17  ;;  %v15727_v5 = vmax.f32 %v11511_v54, 0.0  ;;  %v2768_v47 = vadd.f32 %v2767_v7, %v11247_v0 }
 0x3c3   :  { %v2771_v2 = vpop.f32.mrf.mxu1  ;;  %v3022_v44 = vpop.f32.mrf.mxu0 }
 0x3c4   :  { %16208 = vst [vmem:[#allocation58_spill] sm:$0xff] %v11514_v46  ;;  %v15726_v4 = vmax.f32 %v11514_v46, 0.0  ;;  %v11523_v51 = vadd.f32 %v3022_v44, %v2766_v61  ;;  %3205 = vadd.xlane.f32.xlu1 %v3204_v9  ;;  %v2772_v22 = vadd.f32 %v2771_v2, %v11244_v60 }
 0x3c5   :  { %v2773_v42 = vpop.f32.mrf.mxu1  ;;  %v3024_v10 = vpop.f32.mrf.mxu0 }
 0x3c6   :  { %16209 = vst [vmem:[#allocation59_spill] sm:$0xff] %v11523_v51  ;;  %v11526_v24 = vadd.f32 %v3024_v10, %v2768_v47  ;;  %v3207_v33 = vadd.f32 %v15726_v4, %v15727_v5  ;;  %v15733_v7 = vmax.f32 %v11523_v51, 0.0  ;;  %v2774_v8 = vadd.f32 %v2773_v42, %v11247_v0  ;;  %v4395_v5 = vld [vmem:[#allocation8 + $0x78] sm:$0xff] }
 0x3c7   :  { %v2777_v17 = vpop.f32.mrf.mxu1  ;;  %v3028_v27 = vpop.f32.mrf.mxu0  ;;  %v4506_v42 = vunpack.c.l.bf16 %v4395_v5  ;;  %v4507_v6 = vunpack.c.h.bf16 %v4395_v5 }
 0x3c8   :  { %16210 = vst [vmem:[#allocation60_spill] sm:$0xff] %v11526_v24  ;;  %v15732_v44 = vmax.f32 %v11526_v24, 0.0  ;;  %v11535_v9 = vadd.f32 %v3028_v27, %v2772_v22  ;;  %3208 = vadd.xlane.f32.xlu1 %v3207_v33  ;;  %v2778_v47 = vadd.f32 %v2777_v17, %v11244_v60 }
 0x3c9   :  { %v2779_v61 = vpop.f32.mrf.mxu1  ;;  %v3030_v2 = vpop.f32.mrf.mxu0  ;;  %4680 = vmatprep.subr.mxu1 %v4507_v6 }
 0x3ca   :  { %16211 = vst [vmem:[#allocation61_spill] sm:$0xff] %v11535_v9  ;;  %v11538_v10 = vadd.f32 %v3030_v2, %v2774_v8  ;;  %v3210_v4 = vadd.f32 %v15732_v44, %v15733_v7  ;;  %v15737_v27 = vmax.f32 %v11535_v9, 0.0  ;;  %v2780_v33 = vadd.f32 %v2779_v61, %v11247_v0  ;;  %4681 = vmatpush1.msra.mxu1 %v4506_v42  ;;  %v4394_v7 = vld [vmem:[#allocation8 + $0x70] sm:$0xff] }
 0x3cb   :  { %v2783_v46 = vpop.f32.mrf.mxu1  ;;  %v3034_v54 = vpop.f32.mrf.mxu0  ;;  %v4504_v51 = vunpack.c.l.bf16 %v4394_v7 }
 0x3cc   :  { %16212 = vst [vmem:[#allocation62_spill] sm:$0xff] %v11538_v10  ;;  %v15736_v22 = vmax.f32 %v11538_v10, 0.0  ;;  %v11547_v18 = vadd.f32 %v3034_v54, %v2778_v47  ;;  %3211 = vadd.xlane.f32.xlu1 %v3210_v4  ;;  %v2784_v2 = vadd.f32 %v2783_v46, %v11244_v60  ;;  %v4505_v54 = vunpack.c.h.bf16 %v4394_v7 }
 0x3cd   :  { %v2785_v8 = vpop.f32.mrf.mxu1  ;;  %v3036_v17 = vpop.f32.mrf.mxu0 }
 0x3ce   :  { %16213 = vst [vmem:[#allocation63_spill] sm:$0xff] %v11547_v18  ;;  %v11550_v44 = vadd.f32 %v3036_v17, %v2780_v33  ;;  %v3213_v5 = vadd.f32 %v15736_v22, %v15737_v27  ;;  %v15741_v4 = vmax.f32 %v11547_v18, 0.0  ;;  %v2786_v47 = vadd.f32 %v2785_v8, %v11247_v0  ;;  %4682 = vmatprep.subr.mxu1 %v4505_v54  ;;  %v4393_v27 = vld [vmem:[#allocation8 + $0x68] sm:$0xff] }
 0x3cf   :  { %v2789_v61 = vpop.f32.mrf.mxu1  ;;  %v3040_v24 = vpop.f32.mrf.mxu0  ;;  %4683 = vmatpush1.msra.mxu1 %v4504_v51  ;;  %v4502_v9 = vunpack.c.l.bf16 %v4393_v27 }
 0x3d0   :  { %16214 = vst [vmem:[#allocation64_spill] sm:$0xff] %v11550_v44  ;;  %v15740_v6 = vmax.f32 %v11550_v44, 0.0  ;;  %v11559_v46 = vadd.f32 %v3040_v24, %v2784_v2  ;;  %3214 = vadd.xlane.f32.xlu1 %v3213_v5  ;;  %v2790_v22 = vadd.f32 %v2789_v61, %v11244_v60  ;;  %v4503_v24 = vunpack.c.h.bf16 %v4393_v27 }
 0x3d1   :  { %v2791_v33 = vpop.f32.mrf.mxu1  ;;  %v3042_v17 = vpop.f32.mrf.mxu0 }
 0x3d2   :  { %16215 = vst [vmem:[#allocation65_spill] sm:$0xff] %v11559_v46  ;;  %v11562_v42 = vadd.f32 %v3042_v17, %v2786_v47  ;;  %v3216_v7 = vadd.f32 %v15740_v6, %v15741_v4  ;;  %v15745_v2 = vmax.f32 %v11559_v46, 0.0  ;;  %v2792_v5 = vadd.f32 %v2791_v33, %v11247_v0  ;;  %4684 = vmatprep.subr.mxu1 %v4503_v24  ;;  %v4392_v4 = vld [vmem:[#allocation8 + $0x60] sm:$0xff] }
 0x3d3   :  { %v2795_v8 = vpop.f32.mrf.mxu1  ;;  %v3046_v10 = vpop.f32.mrf.mxu0  ;;  %4685 = vmatpush1.msra.mxu1 %v4502_v9  ;;  %v4500_v18 = vunpack.c.l.bf16 %v4392_v4 }
 0x3d4   :  { %16216 = vst [vmem:[#allocation66_spill] sm:$0xff] %v11562_v42  ;;  %v15744_v54 = vmax.f32 %v11562_v42, 0.0  ;;  %v11571_v61 = vadd.f32 %v3046_v10, %v2790_v22  ;;  %3217 = vadd.xlane.f32.xlu1 %v3216_v7  ;;  %v2796_v6 = vadd.f32 %v2795_v8, %v11244_v60  ;;  %v4501_v10 = vunpack.c.h.bf16 %v4392_v4 }
 0x3d5   :  { %v2797_v47 = vpop.f32.mrf.mxu1  ;;  %v3048_v17 = vpop.f32.mrf.mxu0 }
 0x3d6   :  { %16217 = vst [vmem:[#allocation67_spill] sm:$0xff] %v11571_v61  ;;  %v11574_v51 = vadd.f32 %v3048_v17, %v2792_v5  ;;  %v3219_v27 = vadd.f32 %v15744_v54, %v15745_v2  ;;  %v15749_v22 = vmax.f32 %v11571_v61, 0.0  ;;  %v2798_v7 = vadd.f32 %v2797_v47, %v11247_v0  ;;  %4686 = vmatprep.subr.mxu1 %v4501_v10  ;;  %v4391_v2 = vld [vmem:[#allocation8 + $0x58] sm:$0xff] }
 0x3d7   :  { %v2801_v33 = vpop.f32.mrf.mxu1  ;;  %v3052_v44 = vpop.f32.mrf.mxu0  ;;  %4687 = vmatpush1.msra.mxu1 %v4500_v18  ;;  %v4498_v46 = vunpack.c.l.bf16 %v4391_v2 }
 0x3d8   :  { %16218 = vst [vmem:[#allocation68_spill] sm:$0xff] %v11574_v51  ;;  %v15748_v24 = vmax.f32 %v11574_v51, 0.0  ;;  %v11583_v8 = vadd.f32 %v3052_v44, %v2796_v6  ;;  %3220 = vadd.xlane.f32.xlu1 %v3219_v27  ;;  %v2802_v54 = vadd.f32 %v2801_v33, %v11244_v60  ;;  %v4499_v44 = vunpack.c.h.bf16 %v4391_v2 }
 0x3d9   :  { %v2803_v5 = vpop.f32.mrf.mxu1  ;;  %v3054_v17 = vpop.f32.mrf.mxu0 }
 0x3da   :  { %16219 = vst [vmem:[#allocation69_spill] sm:$0xff] %v11583_v8  ;;  %v11586_v9 = vadd.f32 %v3054_v17, %v2798_v7  ;;  %v3222_v4 = vadd.f32 %v15748_v24, %v15749_v22  ;;  %v15753_v6 = vmax.f32 %v11583_v8, 0.0  ;;  %v2804_v27 = vadd.f32 %v2803_v5, %v11247_v0  ;;  %4688 = vmatprep.subr.mxu1 %v4499_v44  ;;  %v4390_v22 = vld [vmem:[#allocation8 + $0x50] sm:$0xff] }
 0x3db   :  { %v2807_v47 = vpop.f32.mrf.mxu1  ;;  %v3058_v42 = vpop.f32.mrf.mxu0  ;;  %4689 = vmatpush1.msra.mxu1 %v4498_v46  ;;  %v4496_v61 = vunpack.c.l.bf16 %v4390_v22 }
 0x3dc   :  { %16220 = vst [vmem:[#allocation70_spill] sm:$0xff] %v11586_v9  ;;  %v15752_v10 = vmax.f32 %v11586_v9, 0.0  ;;  %v11595_v33 = vadd.f32 %v3058_v42, %v2802_v54  ;;  %3223 = vadd.xlane.f32.xlu1 %v3222_v4  ;;  %v2808_v24 = vadd.f32 %v2807_v47, %v11244_v60  ;;  %v4497_v42 = vunpack.c.h.bf16 %v4390_v22 }
 0x3dd   :  { %v2809_v7 = vpop.f32.mrf.mxu1  ;;  %v3060_v17 = vpop.f32.mrf.mxu0 }
 0x3de   :  { %16221 = vst [vmem:[#allocation71_spill] sm:$0xff] %v11595_v33  ;;  %v11598_v18 = vadd.f32 %v3060_v17, %v2804_v27  ;;  %v3225_v2 = vadd.f32 %v15752_v10, %v15753_v6  ;;  %v15762_v54 = vmax.f32 %v11595_v33, 0.0  ;;  %v2810_v4 = vadd.f32 %v2809_v7, %v11247_v0  ;;  %4690 = vmatprep.subr.mxu1 %v4497_v42  ;;  %v4389_v6 = vld [vmem:[#allocation8 + $0x48] sm:$0xff]  ;;  %v4427_v7 = vld [vmem:[#allocation8 + $0x178] sm:$0xff] }
 0x3df   :  { %v2813_v5 = vpop.f32.mrf.mxu1  ;;  %v3064_v51 = vpop.f32.mrf.mxu0  ;;  %4691 = vmatpush1.msra.mxu1 %v4496_v61  ;;  %v4571_v8 = vunpack.c.h.bf16 %v4427_v7 }
 0x3e0   :  { %16222 = vst [vmem:[#allocation72_spill] sm:$0xff] %v11598_v18  ;;  %v15757_v44 = vmax.f32 %v11598_v18, 0.0  ;;  %v11607_v47 = vadd.f32 %v3064_v51, %v2808_v24  ;;  %3226 = vadd.xlane.f32.xlu1 %v3225_v2  ;;  %v2814_v10 = vadd.f32 %v2813_v5, %v11244_v60  ;;  %v4494_v24 = vunpack.c.l.bf16 %v4389_v6 }
 0x3e1   :  { %v2815_v27 = vpop.f32.mrf.mxu1  ;;  %v3066_v17 = vpop.f32.mrf.mxu0  ;;  %v4495_v2 = vunpack.c.h.bf16 %v4389_v6  ;;  %4937 = vmatprep.subr.mxu0 %v4571_v8 }
 0x3e2   :  { %16223 = vst [vmem:[#allocation73_spill] sm:$0xff] %v11607_v47  ;;  %v11610_v46 = vadd.f32 %v3066_v17, %v2810_v4  ;;  %v3228_v22 = vadd.f32 %v15757_v44, %v15762_v54  ;;  %v15759_v9 = vmax.f32 %v11607_v47, 0.0  ;;  %v2816_v42 = vadd.f32 %v2815_v27, %v11247_v0  ;;  %v4426_v17 = vld [vmem:[#allocation8 + $0x170] sm:$0xff]  ;;  %v4388_v0 = vld [vmem:[#allocation8 + $0x40] sm:$0xff] }
 0x3e3   :  { %v3070_v51 = vpop.f32.mrf.mxu0  ;;  %v4570_v4 = vunpack.c.l.bf16 %v4427_v7  ;;  %4692 = vmatprep.subr.mxu1 %v4495_v2  ;;  %v4569_v61 = vunpack.c.h.bf16 %v4426_v17  ;;  %v4568_v27 = vunpack.c.l.bf16 %v4426_v17 }
 0x3e4   :  { %16224 = vst [vmem:[#allocation74_spill] sm:$0xff] %v11610_v46  ;;  %v15758_v60 = vmax.f32 %v11610_v46, 0.0  ;;  %v11619_v5 = vadd.f32 %v3070_v51, %v2814_v10  ;;  %3229 = vadd.xlane.f32.xlu1 %v3228_v22  ;;  %4693 = vmatpush1.msra.mxu1 %v4494_v24  ;;  %v4425_v10 = vld [vmem:[#allocation8 + $0x168] sm:$0xff]  ;;  %v4492_v51 = vunpack.c.l.bf16 %v4388_v0  ;;  %v4493_v22 = vunpack.c.h.bf16 %v4388_v0 }
 0x3e5   :  { %v3072_v18 = vpop.f32.mrf.mxu0  ;;  %4938 = vmatpush1.msra.mxu0 %v4570_v4  ;;  %v4567_v7 = vunpack.c.h.bf16 %v4425_v10  ;;  %v4387_v4 = vld [vmem:[#allocation8 + $0x38] sm:$0xff] }
 0x3e6   :  { %16225 = vst [vmem:[#allocation75_spill] sm:$0xff] %v11619_v5  ;;  %v11621_v44 = vadd.f32 %v3072_v18, %v2816_v42  ;;  %v3231_v6 = vadd.f32 %v15758_v60, %v15759_v9  ;;  %4939 = vmatprep.subr.mxu0 %v4569_v61  ;;  %v15761_v2 = vmax.f32 %v11619_v5, 0.0  ;;  %v4566_v18 = vunpack.c.l.bf16 %v4425_v10  ;;  %v4424_v42 = vld [vmem:[#allocation8 + $0x160] sm:$0xff]  ;;  %4694 = vmatprep.subr.mxu1 %v4493_v22  ;;  %v4423_v61 = vld [vmem:[#allocation8 + $0x158] sm:$0xff]  ;;  %v4422_v10 = vld [vmem:[#allocation8 + $0x150] sm:$0xff] }
 0x3e7   :  { %4940 = vmatpush1.msra.mxu0 %v4568_v27  ;;  %v4565_v60 = vunpack.c.h.bf16 %v4424_v42  ;;  %4695 = vmatpush1.msra.mxu1 %v4492_v51  ;;  %v4564_v17 = vunpack.c.l.bf16 %v4424_v42  ;;  %v4490_v0 = vunpack.c.l.bf16 %v4387_v4  ;;  %v4491_v9 = vunpack.c.h.bf16 %v4387_v4  ;;  %v4421_v51 = vld [vmem:[#allocation8 + $0x148] sm:$0xff] }
 0x3e8   :  { %16226 = vst [vmem:[#allocation76_spill] sm:$0xff] %v11621_v44  ;;  %v15760_v8 = vmax.f32 %v11621_v44, 0.0  ;;  %3232 = vadd.xlane.f32.xlu1 %v3231_v6  ;;  %4941 = vmatprep.subr.mxu0 %v4567_v7  ;;  %v4563_v6 = vunpack.c.h.bf16 %v4423_v61  ;;  %v4562_v27 = vunpack.c.l.bf16 %v4423_v61  ;;  %v4561_v22 = vunpack.c.h.bf16 %v4422_v10  ;;  %v4386_v7 = vld [vmem:[#allocation8 + $0x30] sm:$0xff]  ;;  %v4419_v61 = vld [vmem:[#allocation8 + $0x138] sm:$0xff] }
 0x3e9   :  { %4942 = vmatpush1.msra.mxu0 %v4566_v18  ;;  %4696 = vmatprep.subr.mxu1 %v4491_v9  ;;  %v4489_v18 = vunpack.c.h.bf16 %v4386_v7  ;;  %v4559_v42 = vunpack.c.h.bf16 %v4421_v51  ;;  %v4558_v4 = vunpack.c.l.bf16 %v4421_v51 }
 0x3ea   :  { %v3234_v24 = vadd.f32 %v15760_v8, %v15761_v2  ;;  %4943 = vmatprep.subr.mxu0 %v4565_v60  ;;  %4697 = vmatpush1.msra.mxu1 %v4490_v0  ;;  %v4560_v8 = vunpack.c.l.bf16 %v4422_v10  ;;  %v4488_v2 = vunpack.c.l.bf16 %v4386_v7  ;;  %v4420_v60 = vld [vmem:[#allocation8 + $0x140] sm:$0xff]  ;;  %v4554_v10 = vunpack.c.l.bf16 %v4419_v61  ;;  %v4418_v7 = vld [vmem:[#allocation8 + $0x130] sm:$0xff] }
 0x3eb   :  { %4944 = vmatpush1.msra.mxu0 %v4564_v17  ;;  %4698 = vmatprep.subr.mxu1 %v4489_v18  ;;  %v4385_v17 = vld [vmem:[#allocation8 + $0x28] sm:$0xff]  ;;  %v4556_v9 = vunpack.c.l.bf16 %v4420_v60  ;;  %v4552_v51 = vunpack.c.l.bf16 %v4418_v7 }
 0x3ec   :  { %3235 = vadd.xlane.f32.xlu1 %v3234_v24  ;;  %4945 = vmatprep.subr.mxu0 %v4563_v6  ;;  %v4557_v24 = vunpack.c.h.bf16 %v4420_v60  ;;  %v4486_v0 = vunpack.c.l.bf16 %v4385_v17  ;;  %v4487_v6 = vunpack.c.h.bf16 %v4385_v17  ;;  %v4417_v18 = vld [vmem:[#allocation8 + $0x128] sm:$0xff]  ;;  %v4416_v17 = vld [vmem:[#allocation8 + $0x120] sm:$0xff] }
 0x3ed   :  { %4946 = vmatpush1.msra.mxu0 %v4562_v27  ;;  %4699 = vmatpush1.msra.mxu1 %v4488_v2  ;;  %v4555_v27 = vunpack.c.h.bf16 %v4419_v61  ;;  %v4550_v60 = vunpack.c.l.bf16 %v4417_v18 }
 0x3ee   :  { %4947 = vmatprep.subr.mxu0 %v4561_v22  ;;  %4700 = vmatprep.subr.mxu1 %v4487_v6  ;;  %v4384_v22 = vld [vmem:[#allocation8 + $0x20] sm:$0xff]  ;;  %v4383_v6 = vld [vmem:[#allocation8 + $0x18] sm:$0xff] }
 0x3ef   :  { %4948 = vmatpush1.msra.mxu0 %v4560_v8  ;;  %v4553_v8 = vunpack.c.h.bf16 %v4418_v7  ;;  %4701 = vmatpush1.msra.mxu1 %v4486_v0  ;;  %v4484_v2 = vunpack.c.l.bf16 %v4384_v22  ;;  %v4548_v0 = vunpack.c.l.bf16 %v4416_v17  ;;  %v4482_v7 = vunpack.c.l.bf16 %v4383_v6 }
 0x3f0   :  { %4949 = vmatprep.subr.mxu0 %v4559_v42  ;;  %v4485_v42 = vunpack.c.h.bf16 %v4384_v22  ;;  %v4483_v54 = vunpack.c.h.bf16 %v4383_v6 }
 0x3f1   :  { %4950 = vmatpush1.msra.mxu0 %v4558_v4  ;;  %v4551_v4 = vunpack.c.h.bf16 %v4417_v18 }
 0x3f2   :  { %4951 = vmatprep.subr.mxu0 %v4557_v24  ;;  %4702 = vmatprep.subr.mxu1 %v4485_v42  ;;  %v16229_v42 = vmax.f32 %v11254_v15, 0.0  ;;  %v4381_v15 = vld [vmem:[#allocation8 + $0x8] sm:$0xff] }
 0x3f3   :  { %4952 = vmatpush1.msra.mxu0 %v4556_v9  ;;  %v4549_v9 = vunpack.c.h.bf16 %v4416_v17  ;;  %4703 = vmatpush1.msra.mxu1 %v4484_v2 }
 0x3f4   :  { %4953 = vmatprep.subr.mxu0 %v4555_v27  ;;  %v4382_v27 = vld [vmem:[#allocation8 + $0x10] sm:$0xff]  ;;  %4704 = vmatprep.subr.mxu1 %v4483_v54  ;;  %v4380_v54 = vld [vmem:[#allocation8] sm:$0xff] }
 0x3f5   :  { %4954 = vmatpush1.msra.mxu0 %v4554_v10  ;;  %v4415_v10 = vld [vmem:[#allocation8 + $0x118] sm:$0xff]  ;;  %v4480_v22 = vunpack.c.l.bf16 %v4382_v27  ;;  %4705 = vmatpush1.msra.mxu1 %v4482_v7  ;;  %v4477_v47 = vunpack.c.h.bf16 %v4380_v54 }
 0x3f6   :  { %4955 = vmatprep.subr.mxu0 %v4553_v8  ;;  %v4481_v8 = vunpack.c.h.bf16 %v4382_v27  ;;  %v4546_v2 = vunpack.c.l.bf16 %v4415_v10  ;;  %v4412_v27 = vld [vmem:[#allocation8 + $0x100] sm:$0xff] }
 0x3f7   :  { %4956 = vmatpush1.msra.mxu0 %v4552_v51  ;;  %v16227_v51 = vmax.f32 %v11251_v29, 0.0 }
 0x3f8   :  { %v3143_v24 = vpop.xlane.xlu0 %3142  ;;  %4957 = vmatprep.subr.mxu0 %v4551_v4  ;;  %4706 = vmatprep.subr.mxu1 %v4481_v8 }
 0x3f9   :  { %v3238_v61 = vmul.f32 0.00390625, %v3143_v24  ;;  %4958 = vmatpush1.msra.mxu0 %v4550_v60  ;;  %v4547_v24 = vunpack.c.h.bf16 %v4415_v10  ;;  %v4414_v60 = vld [vmem:[#allocation8 + $0x110] sm:$0xff]  ;;  %v4479_v10 = vunpack.c.h.bf16 %v4381_v15  ;;  %4707 = vmatpush1.msra.mxu1 %v4480_v22 }
 0x3fa   :  { %4959 = vmatprep.subr.mxu0 %v4549_v9  ;;  %v4545_v44 = vunpack.c.h.bf16 %v4414_v60  ;;  %v4544_v6 = vunpack.c.l.bf16 %v4414_v60  ;;  %v4443_v60 = vld [vmem:[#allocation8 + $0x1f8] sm:$0xff]  ;;  %v4410_v22 = vld [vmem:[#allocation8 + $0xf0] sm:$0xff] }
 0x3fb   :  { %v11635_v18 = vsub.f32 %v16227_v51, %v3238_v61  ;;  %v11639_v4 = vsub.f32 %v16229_v42, %v3238_v61  ;;  %4960 = vmatpush1.msra.mxu0 %v4548_v0  ;;  %v4413_v61 = vld [vmem:[#allocation8 + $0x108] sm:$0xff]  ;;  %v4478_v0 = vunpack.c.l.bf16 %v4381_v15  ;;  %v16231_v42 = vmax.f32 %v11259_v55, 0.0  ;;  %4708 = vmatprep.subr.mxu1 %v4479_v10 }
 0x3fc   :  { %v3146_v17 = vpop.xlane.xlu1 %3145  ;;  %4961 = vmatprep.subr.mxu0 %v4547_v24  ;;  %v4543_v51 = vunpack.c.h.bf16 %v4413_v61  ;;  %v4542_v24 = vunpack.c.l.bf16 %v4413_v61  ;;  %v4476_v15 = vunpack.c.l.bf16 %v4380_v54  ;;  %v16234_v10 = vmax.f32 %v11274_v49, 0.0 }
 0x3fd   :  { %16228 = vst [vmem:[#allocation77_spill] sm:$0xff] %v11635_v18  ;;  %16230 = vst [vmem:[#allocation78_spill] sm:$0xff] %v11639_v4  ;;  %v3239_v5 = vmul.f32 0.00390625, %v3146_v17  ;;  %v3334_v9 = vmul.f32 %v11635_v18, %v11635_v18  ;;  %v3335_v29 = vmul.f32 %v11639_v4, %v11639_v4  ;;  %4962 = vmatpush1.msra.mxu0 %v4546_v2  ;;  %v16232_v18 = vmax.f32 %v11262_v13, 0.0  ;;  %v4411_v4 = vld [vmem:[#allocation8 + $0xf8] sm:$0xff] }
 0x3fe   :  { %4963 = vmatprep.subr.mxu0 %v4545_v44  ;;  %v4541_v2 = vunpack.c.h.bf16 %v4412_v27  ;;  %4709 = vmatpush1.msra.mxu1 %v4478_v0  ;;  %v4442_v44 = vld [vmem:[#allocation8 + $0x1f0] sm:$0xff]  ;;  %v4602_v0 = vunpack.c.l.bf16 %v4443_v60 }
 0x3ff   :  { %v11647_v17 = vsub.f32 %v16231_v42, %v3239_v5  ;;  %v11651_v46 = vsub.f32 %v16232_v18, %v3239_v5  ;;  %v3398_v7 = vadd.f32 %v3335_v29, %v3334_v9  ;;  %4964 = vmatpush1.msra.mxu0 %v4544_v6  ;;  %v4540_v5 = vunpack.c.l.bf16 %v4412_v27  ;;  %4710 = vmatprep.subr.mxu1 %v4477_v47  ;;  %v4441_v27 = vld [vmem:[#allocation8 + $0x1e8] sm:$0xff] }
 0x400   :  { %4965 = vmatprep.subr.mxu0 %v4543_v51  ;;  %v4603_v18 = vunpack.c.h.bf16 %v4443_v60  ;;  %v4538_v9 = vunpack.c.l.bf16 %v4411_v4  ;;  %v4539_v29 = vunpack.c.h.bf16 %v4411_v4  ;;  %v16233_v6 = vmax.f32 %v11271_v48, 0.0  ;;  %4711 = vmatpush1.msra.mxu1 %v4476_v15 }
 0x401   :  { %v3149_v8 = vpop.xlane.xlu0 %3148  ;;  %3399 = vadd.xlane.f32.xlu0 %v3398_v7  ;;  %v3336_v55 = vmul.f32 %v11647_v17, %v11647_v17  ;;  %v3337_v13 = vmul.f32 %v11651_v46, %v11651_v46  ;;  %4966 = vmatpush1.msra.mxu0 %v4542_v24  ;;  %v4601_v51 = vunpack.c.h.bf16 %v4442_v44  ;;  %v4536_v47 = vunpack.c.l.bf16 %v4410_v22  ;;  %v4440_v24 = vld [vmem:[#allocation8 + $0x1e0] sm:$0xff] }
 0x402   :  { %v3240_v33 = vmul.f32 0.00390625, %v3149_v8  ;;  %4967 = vmatprep.subr.mxu0 %v4541_v2  ;;  %4712 = vmatprep.subr.mxu1 %v4539_v29  ;;  %v4537_v8 = vunpack.c.h.bf16 %v4410_v22  ;;  %v4599_v60 = vunpack.c.h.bf16 %v4441_v27  ;;  %v16235_v2 = vmax.f32 %v11283_v11, 0.0 }
 0x403   :  { %v3401_v42 = vadd.f32 %v3337_v13, %v3336_v55  ;;  %4968 = vmatpush1.msra.mxu0 %v4540_v5  ;;  %4713 = vmatpush2.msra.mxu1 %v4538_v9  ;;  %v16236_v55 = vmax.f32 %v11286_v20, 0.0  ;;  %v4598_v29 = vunpack.c.l.bf16 %v4441_v27  ;;  %v4596_v5 = vunpack.c.l.bf16 %v4440_v24 }
 0x404   :  { %v11659_v61 = vsub.f32 %v16233_v6, %v3240_v33  ;;  %v11663_v54 = vsub.f32 %v16234_v10, %v3240_v33  ;;  %v4600_v33 = vunpack.c.l.bf16 %v4442_v44  ;;  %4969 = vmatprep.subr.mxu0 %v4603_v18  ;;  %4714 = vmatprep.subr.mxu1 %v4537_v8  ;;  %v4597_v44 = vunpack.c.h.bf16 %v4440_v24  ;;  %v4409_v18 = vld [vmem:[#allocation8 + $0xe8] sm:$0xff]  ;;  %v4438_v24 = vld [vmem:[#allocation8 + $0x1d0] sm:$0xff] }
 0x405   :  { %v3152_v7 = vpop.xlane.xlu1 %3151  ;;  %3402 = vadd.xlane.f32.xlu0 %v3401_v42  ;;  %4970 = vmatpush2.msra.mxu0 %v4602_v0  ;;  %v4535_v10 = vunpack.c.h.bf16 %v4409_v18  ;;  %v4439_v42 = vld [vmem:[#allocation8 + $0x1d8] sm:$0xff]  ;;  %v4534_v0 = vunpack.c.l.bf16 %v4409_v18  ;;  %v16238_v8 = vmax.f32 %v11298_v57, 0.0  ;;  %v4437_v18 = vld [vmem:[#allocation8 + $0x1c8] sm:$0xff] }
 0x406   :  { %v3241_v4 = vmul.f32 0.00390625, %v3152_v7  ;;  %v3338_v48 = vmul.f32 %v11659_v61, %v11659_v61  ;;  %v3339_v49 = vmul.f32 %v11663_v54, %v11663_v54  ;;  %4971 = vmatprep.subr.mxu0 %v4601_v51  ;;  %4715 = vmatpush2.msra.mxu1 %v4536_v47  ;;  %v4595_v27 = vunpack.c.h.bf16 %v4439_v42  ;;  %v4408_v7 = vld [vmem:[#allocation8 + $0xe0] sm:$0xff] }
 0x407   :  { %4972 = vmatpush2.msra.mxu0 %v4600_v33  ;;  %v16237_v51 = vmax.f32 %v11295_v3, 0.0  ;;  %4716 = vmatprep.subr.mxu1 %v4535_v10  ;;  %v16239_v10 = vmax.f32 %v11307_v45, 0.0 }
 0x408   :  { %v11671_v15 = vsub.f32 %v16235_v2, %v3241_v4  ;;  %v11675_v13 = vsub.f32 %v16236_v55, %v3241_v4  ;;  %v3404_v22 = vadd.f32 %v3339_v49, %v3338_v48  ;;  %4973 = vmatprep.subr.mxu0 %v4599_v60  ;;  %v4594_v49 = vunpack.c.l.bf16 %v4439_v42  ;;  %4717 = vmatpush2.msra.mxu1 %v4534_v0 }
 0x409   :  { %v3155_v6 = vpop.xlane.xlu0 %3154  ;;  %4974 = vmatpush2.msra.mxu0 %v4598_v29  ;;  %v4532_v60 = vunpack.c.l.bf16 %v4408_v7  ;;  %v4533_v2 = vunpack.c.h.bf16 %v4408_v7  ;;  %v4593_v55 = vunpack.c.h.bf16 %v4438_v24  ;;  %v4592_v29 = vunpack.c.l.bf16 %v4438_v24 }
 0x40a   :  { %v3242_v9 = vmul.f32 0.00390625, %v3155_v6  ;;  %3405 = vadd.xlane.f32.xlu0 %v3404_v22  ;;  %v3340_v11 = vmul.f32 %v11671_v15, %v11671_v15  ;;  %v3341_v20 = vmul.f32 %v11675_v13, %v11675_v13  ;;  %4975 = vmatprep.subr.mxu0 %v4597_v44  ;;  %v4407_v22 = vld [vmem:[#allocation8 + $0xd8] sm:$0xff]  ;;  %v16240_v0 = vmax.f32 %v11310_v32, 0.0 }
 0x40b   :  { %4976 = vmatpush2.msra.mxu0 %v4596_v5  ;;  %4718 = vmatprep.subr.mxu1 %v4533_v2  ;;  %v4531_v44 = vunpack.c.h.bf16 %v4407_v22  ;;  %v4590_v5 = vunpack.c.l.bf16 %v4437_v18  ;;  %v4405_v2 = vld [vmem:[#allocation8 + $0xc8] sm:$0xff] }
 0x40c   :  { %v11683_v47 = vsub.f32 %v16237_v51, %v3242_v9  ;;  %v11687_v4 = vsub.f32 %v16238_v8, %v3242_v9  ;;  %v3407_v48 = vadd.f32 %v3341_v20, %v3340_v11  ;;  %4977 = vmatprep.subr.mxu0 %v4595_v27  ;;  %v4530_v9 = vunpack.c.l.bf16 %v4407_v22  ;;  %v4406_v20 = vld [vmem:[#allocation8 + $0xd0] sm:$0xff]  ;;  %4719 = vmatpush2.msra.mxu1 %v4532_v60  ;;  %v4436_v8 = vld [vmem:[#allocation8 + $0x1c0] sm:$0xff] }
 0x40d   :  { %v3158_v33 = vpop.xlane.xlu1 %3157  ;;  %v4591_v11 = vunpack.c.h.bf16 %v4437_v18  ;;  %4978 = vmatpush2.msra.mxu0 %v4594_v49  ;;  %4720 = vmatprep.subr.mxu1 %v4531_v44  ;;  %v4528_v27 = vunpack.c.l.bf16 %v4406_v20  ;;  %v4529_v24 = vunpack.c.h.bf16 %v4406_v20  ;;  %v4435_v49 = vld [vmem:[#allocation8 + $0x1b8] sm:$0xff]  ;;  %v4588_v60 = vunpack.c.l.bf16 %v4436_v8 }
 0x40e   :  { %v3243_v6 = vmul.f32 0.00390625, %v3158_v33  ;;  %3408 = vadd.xlane.f32.xlu0 %v3407_v48  ;;  %v3342_v3 = vmul.f32 %v11683_v47, %v11683_v47  ;;  %v3343_v57 = vmul.f32 %v11687_v4, %v11687_v4  ;;  %4979 = vmatprep.subr.mxu0 %v4593_v55  ;;  %v4589_v33 = vunpack.c.h.bf16 %v4436_v8 }
 0x40f   :  { %4980 = vmatpush2.msra.mxu0 %v4592_v29  ;;  %4721 = vmatpush2.msra.mxu1 %v4530_v9  ;;  %v4527_v55 = vunpack.c.h.bf16 %v4405_v2  ;;  %v16242_v44 = vmax.f32 %v11322_v56, 0.0  ;;  %v4434_v29 = vld [vmem:[#allocation8 + $0x1b0] sm:$0xff]  ;;  %v4586_v9 = vunpack.c.l.bf16 %v4435_v49 }
 0x410   :  { %v11695_v42 = vsub.f32 %v16239_v10, %v3243_v6  ;;  %v11699_v7 = vsub.f32 %v16240_v0, %v3243_v6  ;;  %v3410_v51 = vadd.f32 %v3343_v57, %v3342_v3  ;;  %4981 = vmatprep.subr.mxu0 %v4591_v11  ;;  %v4526_v6 = vunpack.c.l.bf16 %v4405_v2  ;;  %v4404_v3 = vld [vmem:[#allocation8 + $0xc0] sm:$0xff]  ;;  %4722 = vmatprep.subr.mxu1 %v4529_v24 }
 0x411   :  { %v3161_v48 = vpop.xlane.xlu0 %3160  ;;  %v16241_v57 = vmax.f32 %v11319_v53, 0.0  ;;  %4982 = vmatpush2.msra.mxu0 %v4590_v5  ;;  %v4587_v0 = vunpack.c.h.bf16 %v4435_v49  ;;  %4723 = vmatpush2.msra.mxu1 %v4528_v27  ;;  %v4524_v11 = vunpack.c.l.bf16 %v4404_v3  ;;  %v4525_v8 = vunpack.c.h.bf16 %v4404_v3  ;;  %v4433_v5 = vld [vmem:[#allocation8 + $0x1a8] sm:$0xff] }
 0x412   :  { %v3244_v22 = vmul.f32 0.00390625, %v3161_v48  ;;  %3411 = vadd.xlane.f32.xlu0 %v3410_v51  ;;  %v3344_v45 = vmul.f32 %v11695_v42, %v11695_v42  ;;  %v3345_v32 = vmul.f32 %v11699_v7, %v11699_v7  ;;  %4983 = vmatprep.subr.mxu0 %v4589_v33  ;;  %v4403_v48 = vld [vmem:[#allocation8 + $0xb8] sm:$0xff]  ;;  %v4585_v24 = vunpack.c.h.bf16 %v4434_v29 }
 0x413   :  { %4724 = vmatprep.subr.mxu1 %v4527_v55  ;;  %4984 = vmatpush2.msra.mxu0 %v4588_v60  ;;  %v4522_v27 = vunpack.c.l.bf16 %v4403_v48  ;;  %v4523_v33 = vunpack.c.h.bf16 %v4403_v48  ;;  %v16245_v3 = vmax.f32 %v11334_v36, 0.0  ;;  %v4583_v55 = vunpack.c.h.bf16 %v4433_v5 }
 0x414   :  { %v11707_v18 = vsub.f32 %v16241_v57, %v3244_v22  ;;  %v11711_v20 = vsub.f32 %v16242_v44, %v3244_v22  ;;  %v3413_v10 = vadd.f32 %v3345_v32, %v3344_v45  ;;  %4725 = vmatpush2.msra.mxu1 %v4526_v6  ;;  %v4584_v22 = vunpack.c.l.bf16 %v4434_v29  ;;  %v4402_v45 = vld [vmem:[#allocation8 + $0xb0] sm:$0xff]  ;;  %4985 = vmatprep.subr.mxu0 %v4587_v0  ;;  %v4401_v29 = vld [vmem:[#allocation8 + $0xa8] sm:$0xff]  ;;  %v4431_v0 = vld [vmem:[#allocation8 + $0x198] sm:$0xff] }
 0x415   :  { %v3164_v51 = vpop.xlane.xlu1 %3163  ;;  %v16243_v32 = vmax.f32 %v11331_v52, 0.0  ;;  %4726 = vmatprep.subr.mxu1 %v4525_v8  ;;  %4986 = vmatpush2.msra.mxu0 %v4586_v9  ;;  %v4582_v60 = vunpack.c.l.bf16 %v4433_v5  ;;  %v4521_v6 = vunpack.c.h.bf16 %v4402_v45  ;;  %v4519_v9 = vunpack.c.h.bf16 %v4401_v29 }
 0x416   :  { %v3245_v2 = vmul.f32 0.00390625, %v3164_v51  ;;  %3414 = vadd.xlane.f32.xlu0 %v3413_v10  ;;  %v3346_v53 = vmul.f32 %v11707_v18, %v11707_v18  ;;  %v3347_v56 = vmul.f32 %v11711_v20, %v11711_v20  ;;  %v4432_v10 = vld [vmem:[#allocation8 + $0x1a0] sm:$0xff]  ;;  %4727 = vmatpush2.msra.mxu1 %v4524_v11 }
 0x417   :  { %4987 = vmatprep.subr.mxu0 %v4585_v24  ;;  %4728 = vmatprep.subr.mxu1 %v4523_v33  ;;  %v4580_v8 = vunpack.c.l.bf16 %v4432_v10  ;;  %v4400_v11 = vld [vmem:[#allocation8 + $0xa0] sm:$0xff]  ;;  %v4518_v24 = vunpack.c.l.bf16 %v4401_v29 }
 0x418   :  { %v11719_v49 = vsub.f32 %v16243_v32, %v3245_v2  ;;  %v11723_v57 = vsub.f32 %v16245_v3, %v3245_v2  ;;  %v3416_v44 = vadd.f32 %v3347_v56, %v3346_v53  ;;  %v4520_v2 = vunpack.c.l.bf16 %v4402_v45  ;;  %4988 = vmatpush2.msra.mxu0 %v4584_v22  ;;  %4729 = vmatpush2.msra.mxu1 %v4522_v27  ;;  %v4430_v45 = vld [vmem:[#allocation8 + $0x190] sm:$0xff]  ;;  %v4429_v27 = vld [vmem:[#allocation8 + $0x188] sm:$0xff] }
 0x419   :  { %v3167_v51 = vpop.xlane.xlu0 %3166  ;;  %v4581_v53 = vunpack.c.h.bf16 %v4432_v10  ;;  %v16246_v56 = vmax.f32 %v11343_v1, 0.0  ;;  %v16248_v32 = vmax.f32 %v11346_v37, 0.0  ;;  %4989 = vmatprep.subr.mxu0 %v4583_v55  ;;  %4730 = vmatprep.subr.mxu1 %v4521_v6  ;;  %v4579_v22 = vunpack.c.h.bf16 %v4431_v0  ;;  %v4399_v10 = vld [vmem:[#allocation8 + $0x98] sm:$0xff] }
 0x41a   :  { %16244 = vst [vmem:[#allocation79_spill] sm:$0xff] %v11719_v49  ;;  %v3348_v52 = vmul.f32 %v11719_v49, %v11719_v49  ;;  %v3349_v48 = vmul.f32 %v11723_v57, %v11723_v57  ;;  %v3246_v36 = vmul.f32 0.00390625, %v3167_v51  ;;  %3417 = vadd.xlane.f32.xlu0 %v3416_v44  ;;  %4990 = vmatpush2.msra.mxu0 %v4582_v60  ;;  %v4517_v33 = vunpack.c.h.bf16 %v4400_v11  ;;  %v4398_v60 = vld [vmem:[#allocation8 + $0x90] sm:$0xff] }
 0x41b   :  { %4731 = vmatpush2.msra.mxu1 %v4520_v2  ;;  %4991 = vmatprep.subr.mxu0 %v4581_v53  ;;  %v4516_v55 = vunpack.c.l.bf16 %v4400_v11  ;;  %v4576_v29 = vunpack.c.l.bf16 %v4430_v45  ;;  %v4577_v6 = vunpack.c.h.bf16 %v4430_v45  ;;  %v4428_v2 = vld [vmem:[#allocation8 + $0x180] sm:$0xff]  ;;  %v4514_v53 = vunpack.c.l.bf16 %v4399_v10  ;;  %v4397_v11 = vld [vmem:[#allocation8 + $0x88] sm:$0xff] }
 0x41c   :  { %v11731_v5 = vsub.f32 %v16246_v56, %v3246_v36  ;;  %v11735_v3 = vsub.f32 %v16248_v32, %v3246_v36  ;;  %v3419_v49 = vadd.f32 %v3349_v48, %v3348_v52  ;;  %v4578_v52 = vunpack.c.l.bf16 %v4431_v0  ;;  %4732 = vmatprep.subr.mxu1 %v4519_v9  ;;  %4992 = vmatpush2.msra.mxu0 %v4580_v8 }
 0x41d   :  { %v3170_v44 = vpop.xlane.xlu1 %3169  ;;  %v16249_v48 = vmax.f32 %v11355_v23, 0.0  ;;  %v16250_v56 = vmax.f32 %v11358_v63, 0.0  ;;  %4733 = vmatpush2.msra.mxu1 %v4518_v24  ;;  %4993 = vmatprep.subr.mxu0 %v4579_v22  ;;  %v4575_v9 = vunpack.c.h.bf16 %v4429_v27  ;;  %v4574_v8 = vunpack.c.l.bf16 %v4429_v27  ;;  %v4396_v22 = vld [vmem:[#allocation8 + $0x80] sm:$0xff] }
 0x41e   :  { %16247 = vst [vmem:[#allocation80_spill] sm:$0xff] %v11731_v5  ;;  %v3350_v1 = vmul.f32 %v11731_v5, %v11731_v5  ;;  %v3351_v51 = vmul.f32 %v11735_v3, %v11735_v3  ;;  %v3247_v37 = vmul.f32 0.00390625, %v3170_v44  ;;  %3420 = vadd.xlane.f32.xlu0 %v3419_v49  ;;  %v4515_v49 = vunpack.c.h.bf16 %v4399_v10  ;;  %4734 = vmatprep.subr.mxu1 %v4517_v33 }
 0x41f   :  { %4994 = vmatpush2.msra.mxu0 %v4578_v52  ;;  %v4513_v44 = vunpack.c.h.bf16 %v4398_v60  ;;  %4735 = vmatpush2.msra.mxu1 %v4516_v55  ;;  %v4512_v24 = vunpack.c.l.bf16 %v4398_v60  ;;  %v16251_v33 = vmax.f32 %v11367_v14, 0.0  ;;  %v4572_v55 = vunpack.c.l.bf16 %v4428_v2 }
 0x420   :  { %v11743_v36 = vsub.f32 %v16249_v48, %v3247_v37  ;;  %v11747_v32 = vsub.f32 %v16250_v56, %v3247_v37  ;;  %v3422_v5 = vadd.f32 %v3351_v51, %v3350_v1  ;;  %4995 = vmatprep.subr.mxu0 %v4577_v6  ;;  %v4573_v1 = vunpack.c.h.bf16 %v4428_v2  ;;  %4736 = vmatprep.subr.mxu1 %v4515_v49 }
 0x421   :  { %v3173_v0 = vpop.xlane.xlu0 %3172  ;;  %v16252_v51 = vmax.f32 %v11370_v31, 0.0  ;;  %4996 = vmatpush2.msra.mxu0 %v4576_v29  ;;  %4737 = vmatpush2.msra.mxu1 %v4514_v53  ;;  %v4510_v27 = vunpack.c.l.bf16 %v4397_v11  ;;  %v4509_v31 = vunpack.c.h.bf16 %v4396_v22  ;;  %v4508_v56 = vunpack.c.l.bf16 %v4396_v22 }
 0x422   :  { %v3352_v23 = vmul.f32 %v11743_v36, %v11743_v36  ;;  %v3353_v45 = vmul.f32 %v11747_v32, %v11747_v32  ;;  %v3248_v63 = vmul.f32 0.00390625, %v3173_v0  ;;  %3423 = vadd.xlane.f32.xlu0 %v3422_v5  ;;  %v4511_v5 = vunpack.c.h.bf16 %v4397_v11  ;;  %4997 = vmatprep.subr.mxu0 %v4575_v9 }
 0x423   :  { %4738 = vmatprep.subr.mxu1 %v4513_v44  ;;  %4998 = vmatpush2.msra.mxu0 %v4574_v8  ;;  %v16253_v29 = vmax.f32 %v11379_v58, 0.0  ;;  %v16254_v2 = vmax.f32 %v11382_v34, 0.0  ;;  %v16255_v58 = vmax.f32 %v11391_v30, 0.0  ;;  %v16260_v30 = vmax.f32 %v11406_v38, 0.0 }
 0x424   :  { %v11755_v10 = vsub.f32 %v16251_v33, %v3248_v63  ;;  %v11759_v37 = vsub.f32 %v16252_v51, %v3248_v63  ;;  %v3425_v48 = vadd.f32 %v3353_v45, %v3352_v23  ;;  %4739 = vmatpush2.msra.mxu1 %v4512_v24  ;;  %4999 = vmatprep.subr.mxu0 %v4573_v1  ;;  %v16257_v63 = vmax.f32 %v11394_v62, 0.0 }
 0x425   :  { %v3176_v52 = vpop.xlane.xlu1 %3175  ;;  %4740 = vmatprep.subr.mxu1 %v4511_v5  ;;  %5000 = vmatpush2.msra.mxu0 %v4572_v55  ;;  %v16258_v51 = vmax.f32 %v11403_v26, 0.0  ;;  %v16264_v26 = vmax.f32 %v11418_v39, 0.0 }
 0x426   :  { %v3354_v6 = vmul.f32 %v11755_v10, %v11755_v10  ;;  %v3355_v14 = vmul.f32 %v11759_v37, %v11759_v37  ;;  %v3249_v60 = vmul.f32 0.00390625, %v3176_v52  ;;  %3426 = vadd.xlane.f32.xlu0 %v3425_v48  ;;  %4741 = vmatpush2.msra.mxu1 %v4510_v27 }
 0x427   :  { %4742 = vmatprep.subr.mxu1 %v4509_v31 }
 0x428   :  { %v11767_v49 = vsub.f32 %v16253_v29, %v3249_v60  ;;  %v11771_v0 = vsub.f32 %v16254_v2, %v3249_v60  ;;  %v3428_v53 = vadd.f32 %v3355_v14, %v3354_v6  ;;  %4743 = vmatpush2.msra.mxu1 %v4508_v56  ;;  %v16262_v14 = vmax.f32 %v11415_v50, 0.0 }
 0x429   :  { %v3179_v9 = vpop.xlane.xlu0 %3178  ;;  %v16268_v50 = vmax.f32 %v11430_v40, 0.0 }
 0x42a   :  { %v3356_v11 = vmul.f32 %v11767_v49, %v11767_v49  ;;  %v3357_v23 = vmul.f32 %v11771_v0, %v11771_v0  ;;  %v3250_v45 = vmul.f32 0.00390625, %v3179_v9  ;;  %3429 = vadd.xlane.f32.xlu0 %v3428_v53  ;;  %v16266_v9 = vmax.f32 %v11427_v43, 0.0 }
 0x42b   :  { %v16272_v43 = vmax.f32 %v11442_v19, 0.0 }
 0x42c   :  { %v11779_v34 = vsub.f32 %v16255_v58, %v3250_v45  ;;  %v11783_v44 = vsub.f32 %v16257_v63, %v3250_v45  ;;  %v3431_v8 = vadd.f32 %v3357_v23, %v3356_v11 }
 0x42d   :  { %v3182_v24 = vpop.xlane.xlu1 %3181 }
 0x42e   :  { %16256 = vst [vmem:[#allocation81_spill] sm:$0xff] %v11779_v34  ;;  %v3358_v1 = vmul.f32 %v11779_v34, %v11779_v34  ;;  %v3359_v22 = vmul.f32 %v11783_v44, %v11783_v44  ;;  %v3251_v33 = vmul.f32 0.00390625, %v3182_v24  ;;  %3432 = vadd.xlane.f32.xlu0 %v3431_v8  ;;  %v16270_v24 = vmax.f32 %v11439_v41, 0.0 }
 0x42f   :  { %v16276_v41 = vmax.f32 %v11454_v28, 0.0 }
 0x430   :  { %v11791_v48 = vsub.f32 %v16258_v51, %v3251_v33  ;;  %v11795_v5 = vsub.f32 %v16260_v30, %v3251_v33  ;;  %v3434_v62 = vadd.f32 %v3359_v22, %v3358_v1 }
 0x431   :  { %v3185_v52 = vpop.xlane.xlu0 %3184 }
 0x432   :  { %16259 = vst [vmem:[#allocation82_spill] sm:$0xff] %v11791_v48  ;;  %16261 = vst [vmem:[#allocation83_spill] sm:$0xff] %v11795_v5  ;;  %v3360_v55 = vmul.f32 %v11791_v48, %v11791_v48  ;;  %v3361_v27 = vmul.f32 %v11795_v5, %v11795_v5  ;;  %v3252_v6 = vmul.f32 0.00390625, %v3185_v52  ;;  %3435 = vadd.xlane.f32.xlu0 %v3434_v62  ;;  %v16274_v52 = vmax.f32 %v11451_v16, 0.0 }
 0x433   :  { %v16280_v16 = vmax.f32 %v11466_v25, 0.0 }
 0x434   :  { %v11803_v60 = vsub.f32 %v16262_v14, %v3252_v6  ;;  %v11807_v31 = vsub.f32 %v16264_v26, %v3252_v6  ;;  %v3437_v38 = vadd.f32 %v3361_v27, %v3360_v55 }
 0x435   :  { %v3188_v56 = vpop.xlane.xlu1 %3187 }
 0x436   :  { %16263 = vst [vmem:[#allocation84_spill] sm:$0xff] %v11803_v60  ;;  %16265 = vst [vmem:[#allocation85_spill] sm:$0xff] %v11807_v31  ;;  %v3362_v29 = vmul.f32 %v11803_v60, %v11803_v60  ;;  %v3363_v2 = vmul.f32 %v11807_v31, %v11807_v31  ;;  %v3253_v53 = vmul.f32 0.00390625, %v3188_v56  ;;  %3438 = vadd.xlane.f32.xlu1 %v3437_v38  ;;  %v16278_v56 = vmax.f32 %v11463_v35, 0.0  ;;  %v12132_v31 = vld [vmem:[#allocation8 + $0x2a8] sm:$0xff]  ;;  %v16367_v60 = vld [vmem:[#allocation77_spill] sm:$0xff] }
 0x437   :  { %v16284_v35 = vmax.f32 %v11478_v59, 0.0  ;;  %16366 = vst [vmem:[#allocation102_spill] sm:$0xff] %v12132_v31 }
 0x438   :  { %v11815_v11 = vsub.f32 %v16266_v9, %v3253_v53  ;;  %v11819_v23 = vsub.f32 %v16268_v50, %v3253_v53  ;;  %v3440_v39 = vadd.f32 %v3363_v2, %v3362_v29 }
 0x439   :  { %v3191_v45 = vpop.xlane.xlu0 %3190 }
 0x43a   :  { %16267 = vst [vmem:[#allocation86_spill] sm:$0xff] %v11815_v11  ;;  %16269 = vst [vmem:[#allocation87_spill] sm:$0xff] %v11819_v23  ;;  %v3364_v58 = vmul.f32 %v11815_v11, %v11815_v11  ;;  %v3365_v63 = vmul.f32 %v11819_v23, %v11819_v23  ;;  %v3254_v8 = vmul.f32 0.00390625, %v3191_v45  ;;  %3441 = vadd.xlane.f32.xlu0 %v3440_v39  ;;  %v16282_v45 = vmax.f32 %v11475_v12, 0.0  ;;  %v16288_v12 = vld [vmem:[#allocation54_spill] sm:$0xff]  ;;  %v12122_v23 = vld [vmem:[#allocation8 + $0x2b8] sm:$0xff] }
 0x43b   :  { %v12120_v11 = vld [vmem:[#allocation8 + $0x2c0] sm:$0xff]  ;;  %16365 = vst [vmem:[#allocation101_spill] sm:$0xff] %v12122_v23 }
 0x43c   :  { %v11827_v1 = vsub.f32 %v16270_v24, %v3254_v8  ;;  %v11831_v22 = vsub.f32 %v16272_v43, %v3254_v8  ;;  %v3443_v40 = vadd.f32 %v3365_v63, %v3364_v58  ;;  %16364 = vst [vmem:[#allocation100_spill] sm:$0xff] %v12120_v11 }
 0x43d   :  { %v3194_v33 = vpop.xlane.xlu1 %3193 }
 0x43e   :  { %16271 = vst [vmem:[#allocation88_spill] sm:$0xff] %v11827_v1  ;;  %16273 = vst [vmem:[#allocation89_spill] sm:$0xff] %v11831_v22  ;;  %v3366_v51 = vmul.f32 %v11827_v1, %v11827_v1  ;;  %v3367_v30 = vmul.f32 %v11831_v22, %v11831_v22  ;;  %v3255_v62 = vmul.f32 0.00390625, %v3194_v33  ;;  %3444 = vadd.xlane.f32.xlu1 %v3443_v40  ;;  %v16286_v33 = vmax.f32 %v11487_v21, 0.0  ;;  %v16291_v21 = vld [vmem:[#allocation55_spill] sm:$0xff] }
 0x43f   :  { %v12109_v1 = vld [vmem:[#allocation8 + $0x2d0] sm:$0xff]  ;;  %v12115_v22 = vld [vmem:[#allocation8 + $0x2c8] sm:$0xff] }
 0x440   :  { %v11839_v55 = vsub.f32 %v16274_v52, %v3255_v62  ;;  %v11843_v27 = vsub.f32 %v16276_v41, %v3255_v62  ;;  %v3446_v19 = vadd.f32 %v3367_v30, %v3366_v51  ;;  %v16289_v30 = vmax.f32 %v16288_v12, 0.0  ;;  %v11881_v52 = vld [vmem:[#allocation8 + $0x278] sm:$0xff]  ;;  %16363 = vst [vmem:[#allocation99_spill] sm:$0xff] %v12109_v1  ;;  %v12141_v1 = vld [vmem:[#allocation8 + $0x2a0] sm:$0xff] }
 0x441   :  { %v3197_v6 = vpop.xlane.xlu0 %3196  ;;  %16369 = vst [vmem:[#allocation77_spill] sm:$0xff] %v12141_v1  ;;  %v16373_v1 = vld [vmem:[#allocation28_spill] sm:$0xff] }
 0x442   :  { %16275 = vst [vmem:[#allocation90_spill] sm:$0xff] %v11839_v55  ;;  %16277 = vst [vmem:[#allocation91_spill] sm:$0xff] %v11843_v27  ;;  %v3368_v14 = vmul.f32 %v11839_v55, %v11839_v55  ;;  %v3369_v26 = vmul.f32 %v11843_v27, %v11843_v27  ;;  %v3256_v38 = vmul.f32 0.00390625, %v3197_v6  ;;  %3447 = vadd.xlane.f32.xlu0 %v3446_v19  ;;  %v4635_v19 = vunpack.c.h.bf16 %v11881_v52  ;;  %v12107_v27 = vld [vmem:[#allocation8 + $0x2d8] sm:$0xff]  ;;  %v12130_v55 = vld [vmem:[#allocation8 + $0x2b0] sm:$0xff] }
 0x443   :  { %16362 = vst [vmem:[#allocation98_spill] sm:$0xff] %v12107_v27  ;;  %v16368_v27 = vld [vmem:[#allocation78_spill] sm:$0xff]  ;;  %vm16374_vm2 = vnez %v16373_v1 }
 0x444   :  { %v11851_v29 = vsub.f32 %v16278_v56, %v3256_v38  ;;  %v11855_v2 = vsub.f32 %v16280_v16, %v3256_v38  ;;  %v3449_v28 = vadd.f32 %v3369_v26, %v3368_v14  ;;  %5194 = vmatprep.subr.mxu1 %v4635_v19  ;;  %v16292_v38 = vmax.f32 %v16291_v21, 0.0  ;;  %v16294_v16 = vld [vmem:[#allocation56_spill] sm:$0xff] }
 0x445   :  { %v3200_v53 = vpop.xlane.xlu1 %3199  ;;  %v16306_v21 = vld [vmem:[#allocation60_spill] sm:$0xff] }
 0x446   :  { %16279 = vst [vmem:[#allocation92_spill] sm:$0xff] %v11851_v29  ;;  %16281 = vst [vmem:[#allocation93_spill] sm:$0xff] %v11855_v2  ;;  %v3370_v9 = vmul.f32 %v11851_v29, %v11851_v29  ;;  %v3371_v50 = vmul.f32 %v11855_v2, %v11855_v2  ;;  %v3257_v39 = vmul.f32 0.00390625, %v3200_v53  ;;  %3450 = vadd.xlane.f32.xlu1 %v3449_v28  ;;  %v16295_v28 = vmax.f32 %v16294_v16, 0.0  ;;  %v12095_v29 = vld [vmem:[#allocation8 + $0x2f0] sm:$0xff] }
 0x448   :  { %v11863_v58 = vsub.f32 %v16282_v45, %v3257_v39  ;;  %v11867_v63 = vsub.f32 %v16284_v35, %v3257_v39  ;;  %v3452_v25 = vadd.f32 %v3371_v50, %v3370_v9 }
 0x449   :  { %v3203_v8 = vpop.xlane.xlu1 %3202 }
 0x44a   :  { %16283 = vst [vmem:[#allocation94_spill] sm:$0xff] %v11863_v58  ;;  %16285 = vst [vmem:[#allocation95_spill] sm:$0xff] %v11867_v63  ;;  %v3372_v24 = vmul.f32 %v11863_v58, %v11863_v58  ;;  %v3373_v43 = vmul.f32 %v11867_v63, %v11867_v63  ;;  %v3258_v40 = vmul.f32 0.00390625, %v3203_v8  ;;  %3453 = vadd.xlane.f32.xlu0 %v3452_v25  ;;  %v16297_v25 = vld [vmem:[#allocation57_spill] sm:$0xff] }
 0x44b   :  { %v16298_v8 = vmax.f32 %v16297_v25, 0.0  ;;  %v12088_v58 = vld [vmem:[#allocation8 + $0x200] sm:$0xff]  ;;  %v12093_v63 = vld [vmem:[#allocation8 + $0x2f8] sm:$0xff] }
 0x44c   :  { %v11875_v51 = vsub.f32 %v16286_v33, %v3258_v40  ;;  %v11879_v62 = vsub.f32 %v16289_v30, %v3258_v40  ;;  %v3455_v59 = vadd.f32 %v3373_v43, %v3372_v24  ;;  %v16300_v43 = vld [vmem:[#allocation58_spill] sm:$0xff] }
 0x44d   :  { %v3206_v41 = vpop.xlane.xlu1 %3205  ;;  %v16301_v40 = vmax.f32 %v16300_v43, 0.0  ;;  %v16312_v43 = vld [vmem:[#allocation62_spill] sm:$0xff] }
 0x44e   :  { %16287 = vst [vmem:[#allocation96_spill] sm:$0xff] %v11875_v51  ;;  %16290 = vst [vmem:[#allocation54_spill] sm:$0xff] %v11879_v62  ;;  %v3374_v6 = vmul.f32 %v11875_v51, %v11875_v51  ;;  %v3375_v14 = vmul.f32 %v11879_v62, %v11879_v62  ;;  %v3259_v26 = vmul.f32 0.00390625, %v3206_v41  ;;  %3456 = vadd.xlane.f32.xlu1 %v3455_v59  ;;  %v12080_v51 = vld [vmem:[#allocation8 + $0x210] sm:$0xff]  ;;  %v12082_v62 = vld [vmem:[#allocation8 + $0x208] sm:$0xff] }
 0x450   :  { %v11890_v56 = vsub.f32 %v16292_v38, %v3259_v26  ;;  %v11894_v53 = vsub.f32 %v16295_v28, %v3259_v26  ;;  %v3458_v9 = vadd.f32 %v3375_v14, %v3374_v6  ;;  %v16303_v6 = vld [vmem:[#allocation59_spill] sm:$0xff]  ;;  %v16307_v38 = vmax.f32 %v16306_v21, 0.0 }
 0x451   :  { %v3209_v50 = vpop.xlane.xlu1 %3208  ;;  %v16304_v14 = vmax.f32 %v16303_v6, 0.0 }
 0x452   :  { %16293 = vst [vmem:[#allocation55_spill] sm:$0xff] %v11890_v56  ;;  %16296 = vst [vmem:[#allocation56_spill] sm:$0xff] %v11894_v53  ;;  %v3376_v39 = vmul.f32 %v11890_v56, %v11890_v56  ;;  %v3377_v45 = vmul.f32 %v11894_v53, %v11894_v53  ;;  %v3260_v35 = vmul.f32 0.00390625, %v3209_v50  ;;  %3459 = vadd.xlane.f32.xlu0 %v3458_v9  ;;  %v12070_v56 = vld [vmem:[#allocation8 + $0x220] sm:$0xff] }
 0x454   :  { %v11902_v24 = vsub.f32 %v16298_v8, %v3260_v35  ;;  %v11906_v33 = vsub.f32 %v16301_v40, %v3260_v35  ;;  %v3461_v12 = vadd.f32 %v3377_v45, %v3376_v39  ;;  %v16309_v35 = vld [vmem:[#allocation61_spill] sm:$0xff]  ;;  %v16313_v40 = vmax.f32 %v16312_v43, 0.0 }
 0x455   :  { %v3212_v30 = vpop.xlane.xlu1 %3211  ;;  %v16310_v25 = vmax.f32 %v16309_v35, 0.0 }
 0x456   :  { %16299 = vst [vmem:[#allocation57_spill] sm:$0xff] %v11902_v24  ;;  %16302 = vst [vmem:[#allocation58_spill] sm:$0xff] %v11906_v33  ;;  %v3378_v59 = vmul.f32 %v11902_v24, %v11902_v24  ;;  %v3379_v41 = vmul.f32 %v11906_v33, %v11906_v33  ;;  %v3261_v19 = vmul.f32 0.00390625, %v3212_v30  ;;  %3462 = vadd.xlane.f32.xlu1 %v3461_v12  ;;  %v12063_v24 = vld [vmem:[#allocation8 + $0x230] sm:$0xff]  ;;  %v12068_v33 = vld [vmem:[#allocation8 + $0x228] sm:$0xff] }
 0x458   :  { %v11914_v26 = vsub.f32 %v16304_v14, %v3261_v19  ;;  %v11918_v16 = vsub.f32 %v16307_v38, %v3261_v19  ;;  %v3464_v28 = vadd.f32 %v3379_v41, %v3378_v59  ;;  %v16315_v14 = vld [vmem:[#allocation63_spill] sm:$0xff] }
 0x459   :  { %v3215_v9 = vpop.xlane.xlu1 %3214  ;;  %v16316_v21 = vmax.f32 %v16315_v14, 0.0  ;;  %v16324_v14 = vld [vmem:[#allocation66_spill] sm:$0xff] }
 0x45a   :  { %16305 = vst [vmem:[#allocation59_spill] sm:$0xff] %v11914_v26  ;;  %16308 = vst [vmem:[#allocation60_spill] sm:$0xff] %v11918_v16  ;;  %v3380_v50 = vmul.f32 %v11914_v26, %v11914_v26  ;;  %v3381_v39 = vmul.f32 %v11918_v16, %v11918_v16  ;;  %v3262_v45 = vmul.f32 0.00390625, %v3215_v9  ;;  %3465 = vadd.xlane.f32.xlu0 %v3464_v28  ;;  %v16318_v28 = vld [vmem:[#allocation64_spill] sm:$0xff]  ;;  %v12055_v16 = vld [vmem:[#allocation8 + $0x240] sm:$0xff] }
 0x45b   :  { %v16319_v9 = vmax.f32 %v16318_v28, 0.0 }
 0x45c   :  { %v11926_v8 = vsub.f32 %v16310_v25, %v3262_v45  ;;  %v11930_v12 = vsub.f32 %v16313_v40, %v3262_v45  ;;  %v3467_v30 = vadd.f32 %v3381_v39, %v3380_v50  ;;  %v16321_v40 = vld [vmem:[#allocation65_spill] sm:$0xff] }
 0x45d   :  { %v3218_v19 = vpop.xlane.xlu1 %3217 }
 0x45e   :  { %16311 = vst [vmem:[#allocation61_spill] sm:$0xff] %v11926_v8  ;;  %16314 = vst [vmem:[#allocation62_spill] sm:$0xff] %v11930_v12  ;;  %v3382_v59 = vmul.f32 %v11926_v8, %v11926_v8  ;;  %v3383_v41 = vmul.f32 %v11930_v12, %v11930_v12  ;;  %v3263_v6 = vmul.f32 0.00390625, %v3218_v19  ;;  %3468 = vadd.xlane.f32.xlu1 %v3467_v30  ;;  %v16322_v30 = vmax.f32 %v16321_v40, 0.0  ;;  %v16330_v40 = vld [vmem:[#allocation68_spill] sm:$0xff] }
 0x460   :  { %v11938_v38 = vsub.f32 %v16316_v21, %v3263_v6  ;;  %v11942_v35 = vsub.f32 %v16319_v9, %v3263_v6  ;;  %v3470_v45 = vadd.f32 %v3383_v41, %v3382_v59  ;;  %v16325_v21 = vmax.f32 %v16324_v14, 0.0 }
 0x461   :  { %v3221_v25 = vpop.xlane.xlu1 %3220 }
 0x462   :  { %16317 = vst [vmem:[#allocation63_spill] sm:$0xff] %v11938_v38  ;;  %16320 = vst [vmem:[#allocation64_spill] sm:$0xff] %v11942_v35  ;;  %v3384_v50 = vmul.f32 %v11938_v38, %v11938_v38  ;;  %v3385_v39 = vmul.f32 %v11942_v35, %v11942_v35  ;;  %v3264_v43 = vmul.f32 0.00390625, %v3221_v25  ;;  %3471 = vadd.xlane.f32.xlu0 %v3470_v45  ;;  %v16327_v25 = vld [vmem:[#allocation67_spill] sm:$0xff] }
 0x463   :  { %v16328_v45 = vmax.f32 %v16327_v25, 0.0  ;;  %v16336_v25 = vld [vmem:[#allocation70_spill] sm:$0xff] }
 0x464   :  { %v11950_v19 = vsub.f32 %v16322_v30, %v3264_v43  ;;  %v11954_v8 = vsub.f32 %v16325_v21, %v3264_v43  ;;  %v3473_v6 = vadd.f32 %v3385_v39, %v3384_v50  ;;  %v16331_v30 = vmax.f32 %v16330_v40, 0.0 }
 0x465   :  { %v3224_v28 = vpop.xlane.xlu1 %3223 }
 0x466   :  { %16323 = vst [vmem:[#allocation65_spill] sm:$0xff] %v11950_v19  ;;  %16326 = vst [vmem:[#allocation66_spill] sm:$0xff] %v11954_v8  ;;  %v3386_v59 = vmul.f32 %v11950_v19, %v11950_v19  ;;  %v3387_v41 = vmul.f32 %v11954_v8, %v11954_v8  ;;  %v3265_v9 = vmul.f32 0.00390625, %v3224_v28  ;;  %3474 = vadd.xlane.f32.xlu1 %v3473_v6  ;;  %v16333_v28 = vld [vmem:[#allocation69_spill] sm:$0xff] }
 0x467   :  { %v16334_v6 = vmax.f32 %v16333_v28, 0.0  ;;  %v16342_v28 = vld [vmem:[#allocation72_spill] sm:$0xff] }
 0x468   :  { %v11962_v38 = vsub.f32 %v16328_v45, %v3265_v9  ;;  %v11966_v35 = vsub.f32 %v16331_v30, %v3265_v9  ;;  %v3476_v43 = vadd.f32 %v3387_v41, %v3386_v59  ;;  %v16337_v45 = vmax.f32 %v16336_v25, 0.0 }
 0x469   :  { %v3227_v14 = vpop.xlane.xlu1 %3226 }
 0x46a   :  { %16329 = vst [vmem:[#allocation67_spill] sm:$0xff] %v11962_v38  ;;  %16332 = vst [vmem:[#allocation68_spill] sm:$0xff] %v11966_v35  ;;  %v3388_v50 = vmul.f32 %v11962_v38, %v11962_v38  ;;  %v3389_v39 = vmul.f32 %v11966_v35, %v11966_v35  ;;  %v3266_v21 = vmul.f32 0.00390625, %v3227_v14  ;;  %3477 = vadd.xlane.f32.xlu0 %v3476_v43  ;;  %v16339_v14 = vld [vmem:[#allocation71_spill] sm:$0xff] }
 0x46b   :  { %v16340_v43 = vmax.f32 %v16339_v14, 0.0  ;;  %v16348_v14 = vld [vmem:[#allocation74_spill] sm:$0xff] }
 0x46c   :  { %v11974_v19 = vsub.f32 %v16334_v6, %v3266_v21  ;;  %v11978_v8 = vsub.f32 %v16337_v45, %v3266_v21  ;;  %v3479_v9 = vadd.f32 %v3389_v39, %v3388_v50  ;;  %v16343_v6 = vmax.f32 %v16342_v28, 0.0 }
 0x46d   :  { %v3230_v40 = vpop.xlane.xlu1 %3229 }
 0x46e   :  { %16335 = vst [vmem:[#allocation69_spill] sm:$0xff] %v11974_v19  ;;  %16338 = vst [vmem:[#allocation70_spill] sm:$0xff] %v11978_v8  ;;  %v3390_v59 = vmul.f32 %v11974_v19, %v11974_v19  ;;  %v3391_v41 = vmul.f32 %v11978_v8, %v11978_v8  ;;  %v3267_v30 = vmul.f32 0.00390625, %v3230_v40  ;;  %3480 = vadd.xlane.f32.xlu1 %v3479_v9  ;;  %v16345_v40 = vld [vmem:[#allocation73_spill] sm:$0xff] }
 0x46f   :  { %v16346_v9 = vmax.f32 %v16345_v40, 0.0  ;;  %v16354_v40 = vld [vmem:[#allocation76_spill] sm:$0xff] }
 0x470   :  { %v11986_v38 = vsub.f32 %v16340_v43, %v3267_v30  ;;  %v11990_v35 = vsub.f32 %v16343_v6, %v3267_v30  ;;  %v3482_v21 = vadd.f32 %v3391_v41, %v3390_v59  ;;  %v16349_v43 = vmax.f32 %v16348_v14, 0.0 }
 0x471   :  { %v3233_v25 = vpop.xlane.xlu1 %3232 }
 0x472   :  { %16341 = vst [vmem:[#allocation71_spill] sm:$0xff] %v11986_v38  ;;  %16344 = vst [vmem:[#allocation72_spill] sm:$0xff] %v11990_v35  ;;  %v3392_v50 = vmul.f32 %v11986_v38, %v11986_v38  ;;  %v3393_v39 = vmul.f32 %v11990_v35, %v11990_v35  ;;  %v3268_v45 = vmul.f32 0.00390625, %v3233_v25  ;;  %3483 = vadd.xlane.f32.xlu0 %v3482_v21  ;;  %v16351_v25 = vld [vmem:[#allocation75_spill] sm:$0xff] }
 0x473   :  { %v16352_v21 = vmax.f32 %v16351_v25, 0.0  ;;  %v16359_v25 = vld [vmem:[#allocation20_spill] sm:$0xff] }
 0x474   :  { %v11998_v19 = vsub.f32 %v16346_v9, %v3268_v45  ;;  %v12002_v8 = vsub.f32 %v16349_v43, %v3268_v45  ;;  %v3485_v30 = vadd.f32 %v3393_v39, %v3392_v50  ;;  %v16355_v9 = vmax.f32 %v16354_v40, 0.0  ;;  %v3139_v43 = vld [vmem:[%s16357_s21] sm:$0x3] }
 0x475   :  { %v3236_v28 = vpop.xlane.xlu1 %3235 }
 0x476   :  { %16347 = vst [vmem:[#allocation73_spill] sm:$0xff] %v11998_v19  ;;  %16350 = vst [vmem:[#allocation74_spill] sm:$0xff] %v12002_v8  ;;  %v3394_v59 = vmul.f32 %v11998_v19, %v11998_v19  ;;  %v3395_v41 = vmul.f32 %v12002_v8, %v12002_v8  ;;  %v3269_v6 = vmul.f32 0.00390625, %v3236_v28  ;;  %3486 = vadd.xlane.f32.xlu1 %v3485_v30  ;;  %v3140_v28 = vld [vmem:[%s16358_s22] sm:$0x3]  ;;  %v12049_v8 = vld [vmem:[#allocation8 + $0x250] sm:$0xff] }
 0x478   :  { %v12010_v38 = vsub.f32 %v16352_v21, %v3269_v6  ;;  %v12014_v35 = vsub.f32 %v16355_v9, %v3269_v6  ;;  %v3488_v45 = vadd.f32 %v3395_v41, %v3394_v59  ;;  %v12026_v59 = vld [vmem:[#allocation8 + $0x270] sm:$0xff]  ;;  %v12028_v41 = vld [vmem:[#allocation8 + $0x268] sm:$0xff]  ;;  %v12031_v21 = vrot.slane %v3139_v43, %v16359_v25  ;;  %v16360_v9 = vld [vmem:[#allocation53_spill] sm:$0xff] }
 0x47a   :  { %16353 = vst [vmem:[#allocation75_spill] sm:$0xff] %v12010_v38  ;;  %16356 = vst [vmem:[#allocation76_spill] sm:$0xff] %v12014_v35  ;;  %v3396_v50 = vmul.f32 %v12010_v38, %v12010_v38  ;;  %v3397_v39 = vmul.f32 %v12014_v35, %v12014_v35  ;;  %3489 = vadd.xlane.f32.xlu0 %v3488_v45  ;;  %v12034_v45 = vrot.slane %v3139_v43, %v16360_v9  ;;  %v12051_v43 = vld [vmem:[#allocation8 + $0x248] sm:$0xff] }
 0x47c   :  { %v3491_v14 = vadd.f32 %v3397_v39, %v3396_v50  ;;  %v12037_v50 = vrot.slane %v3140_v28, %v16359_v25  ;;  %v12039_v39 = vld [vmem:[#allocation8 + $0x260] sm:$0xff] }
 0x47e   :  { %3492 = vadd.xlane.f32.xlu1 %v3491_v14  ;;  %v12041_v14 = vld [vmem:[#allocation8 + $0x258] sm:$0xff] }
 0x48a   :  { %v3400_v30 = vpop.xlane.xlu0 %3399 }
 0x48b   :  { %v3494_v6 = vmul.f32 0.00390625, %v3400_v30  ;;  %v12044_v30 = vrot.slane %v3140_v28, %v16360_v9  ;;  %v12057_v28 = vld [vmem:[#allocation8 + $0x238] sm:$0xff] }
 0x48d   :  { %v3526_v40 = vadd.f32 1e-05, %v3494_v6 }
 0x48e   :  { %v3403_v38 = vpop.xlane.xlu0 %3402 }
 0x48f   :  { %9482 = vrsqrt.f32 %v3526_v40  ;;  %v3495_v25 = vmul.f32 0.00390625, %v3403_v38 }
 0x491   :  { %v3527_v40 = vadd.f32 1e-05, %v3495_v25  ;;  %v12076_v25 = vld [vmem:[#allocation8 + $0x218] sm:$0xff] }
 0x493   :  { %v3406_v35 = vpop.xlane.xlu0 %3405  ;;  %9484 = vrsqrt.f32 %v3527_v40 }
 0x494   :  { %v3496_v38 = vmul.f32 0.00390625, %v3406_v35  ;;  %v12103_v35 = vld [vmem:[#allocation8 + $0x2e0] sm:$0xff] }
 0x495   :  { %16361 = vst [vmem:[#allocation97_spill] sm:$0xff] %v12103_v35  ;;  %v12143_v35 = vld [vmem:[#allocation8 + $0x298] sm:$0xff] }
 0x496   :  { %v3528_v40 = vadd.f32 1e-05, %v3496_v38  ;;  %v12101_v38 = vld [vmem:[#allocation8 + $0x2e8] sm:$0xff]  ;;  %16370 = vst [vmem:[#allocation78_spill] sm:$0xff] %v12143_v35 }
 0x497   :  { %v3409_v19 = vpop.xlane.xlu0 %3408 }
 0x498   :  { %9486 = vrsqrt.f32 %v3528_v40  ;;  %v3497_v12 = vmul.f32 0.00390625, %v3409_v19 }
 0x49a   :  { %v3529_v40 = vadd.f32 1e-05, %v3497_v12 }
 0x49b   :  { %v3412_v6 = vpop.xlane.xlu0 %3411 }
 0x49c   :  { %9488 = vrsqrt.f32 %v3529_v40  ;;  %v3498_v12 = vmul.f32 0.00390625, %v3412_v6  ;;  %v9483_v48 = vpop.eup %9482 }
 0x49d   :  { %v3590_v40 = vmul.f32 %v9483_v48, %v16367_v60  ;;  %v3591_v19 = vmul.f32 %v9483_v48, %v16368_v27  ;;  %v12151_v27 = vld [vmem:[#allocation8 + $0x290] sm:$0xff] }
 0x49e   :  { %v3530_v6 = vadd.f32 1e-05, %v3498_v12  ;;  %16371 = vst [vmem:[#allocation103_spill] sm:$0xff] %v12151_v27  ;;  %v12181_v27 = vld [vmem:[#allocation8 + $0x280] sm:$0xff] }
 0x49f   :  { %v3415_v34 = vpop.xlane.xlu0 %3414  ;;  %v3665_v60 = vmul.f32 %v12031_v21, %v3590_v40  ;;  %v3666_v48 = vmul.f32 %v12034_v45, %v3591_v19  ;;  %v12164_v19 = vld [vmem:[#allocation8 + $0x288] sm:$0xff] }
 0x4a0   :  { %9490 = vrsqrt.f32 %v3530_v6  ;;  %v3499_v12 = vmul.f32 0.00390625, %v3415_v34  ;;  %v9485_v26 = vpop.eup %9484  ;;  %16372 = vst [vmem:[#allocation104_spill] sm:$0xff] %v12164_v19 }
 0x4a1   :  { %v12158_v9 = vadd.f32 %v12044_v30, %v3666_v48  ;;  %v12161_v40 = vadd.f32 %v12037_v50, %v3665_v60  ;;  %v3593_v34 = vmul.f32 %v9485_v26, %v11651_v46  ;;  %v3592_v23 = vmul.f32 %v9485_v26, %v11647_v17 }
 0x4a2   :  { %v3531_v2 = vadd.f32 1e-05, %v3499_v12 }
 0x4a3   :  { %v3418_v6 = vpop.xlane.xlu0 %3417  ;;  %5001 = vmatprep.mubr.f32.mxu0 %v12158_v9  ;;  %v3869_v60 = vrot.slane %v12158_v9, 7  ;;  %v3868_v48 = vrot.slane %v12161_v40, 7  ;;  %v3668_v35 = vmul.f32 %v12034_v45, %v3593_v34  ;;  %v3667_v17 = vmul.f32 %v12031_v21, %v3592_v23 }
 0x4a4   :  { %9492 = vrsqrt.f32 %v3531_v2  ;;  %v3500_v12 = vmul.f32 0.00390625, %v3418_v6  ;;  %5002 = vmatmul.mubr.f32.vlgmr.msra.gmra.mxu0 %v12161_v40  ;;  %v4127_v11 = vrot.slane %v12158_v9, 1 }
 0x4a5   :  { %v9487_v46 = vpop.eup %9486  ;;  %v4059_v2 = vsel %vm715_vm7, 0.0, %v3869_v60  ;;  %v4058_v6 = vsel %vm715_vm7, 0.0, %v3868_v48  ;;  %v12186_v34 = vadd.f32 %v12044_v30, %v3668_v35  ;;  %v12189_v23 = vadd.f32 %v12037_v50, %v3667_v17 }
 0x4a6   :  { %v3532_v53 = vadd.f32 1e-05, %v3500_v12  ;;  %v3595_v5 = vmul.f32 %v9487_v46, %v11663_v54  ;;  %8576 = vmatprep.mubr.msk.f32.mxu1 %vm16374_vm2, %v4059_v2  ;;  %v3594_v9 = vmul.f32 %v9487_v46, %v11659_v61  ;;  %v16376_v12 = vunpack.c.h.bf16 %v12026_v59 }
 0x4a7   :  { %v3421_v31 = vpop.xlane.xlu0 %3420  ;;  %8578 = vmatmul.mubr.msk.f32.vlgmr.msra.gmra.mxu1 %vm16374_vm2, %v4058_v6  ;;  %5007 = vmatprep.mubr.f32.mxu0 %v12186_v34  ;;  %v3872_v17 = vrot.slane %v12186_v34, 7  ;;  %v3870_v61 = vrot.slane %v12189_v23, 7  ;;  %vm16385_vm2 = vmmov %vm16192_vm1 }
 0x4a8   :  { %9494 = vrsqrt.f32 %v3532_v53  ;;  %v3501_v26 = vmul.f32 0.00390625, %v3421_v31  ;;  %v3670_v54 = vmul.f32 %v12034_v45, %v3595_v5  ;;  %v3669_v46 = vmul.f32 %v12031_v21, %v3594_v9  ;;  %5008 = vmatmul.mubr.f32.gmra.mxu0 %v12189_v23 }
 0x4a9   :  { %v9489_v19 = vpop.eup %9488  ;;  %v16375_v31 = vunpack.c.l.bf16 %v11881_v52  ;;  %v3873_v2 = vsel %vm715_vm7, %v3869_v60, %v3872_v17  ;;  %v3871_v9 = vsel %vm715_vm7, %v3868_v48, %v3870_v61 }
 0x4aa   :  { %v3533_v1 = vadd.f32 1e-05, %v3501_v26  ;;  %v12206_v5 = vadd.f32 %v12044_v30, %v3670_v54  ;;  %v3597_v53 = vmul.f32 %v9489_v19, %v11675_v13  ;;  %v3596_v6 = vmul.f32 %v9489_v19, %v11671_v15  ;;  %4750 = vmatprep.mubr.f32.mxu1 %v3873_v2 }
 0x4ab   :  { %5195 = vmatpush1.msra.mxu1 %v16375_v31  ;;  %v3424_v35 = vpop.xlane.xlu0 %3423  ;;  %v12215_v52 = vadd.f32 %v12037_v50, %v3669_v46  ;;  %v16377_v26 = vunpack.c.l.bf16 %v12026_v59  ;;  %v4128_v54 = vrot.slane %v12186_v34, 1  ;;  %v16378_v59 = vunpack.c.h.bf16 %v12028_v41 }
 0x4ac   :  { %5196 = vmatprep.subr.mxu1 %v16376_v12  ;;  %9496 = vrsqrt.f32 %v3533_v1  ;;  %v3502_v13 = vmul.f32 0.00390625, %v3424_v35  ;;  %5013 = vmatprep.mubr.f32.mxu0 %v12206_v5  ;;  %v3876_v15 = vrot.slane %v12206_v5, 7  ;;  %v3672_v19 = vmul.f32 %v12034_v45, %v3597_v53 }
 0x4ad   :  { %5197 = vmatpush1.msra.mxu1 %v16377_v26  ;;  %v9491_v60 = vpop.eup %9490  ;;  %v3874_v48 = vrot.slane %v12215_v52, 7  ;;  %v3671_v12 = vmul.f32 %v12031_v21, %v3596_v6  ;;  %v12228_v34 = vsel %vm16192_vm1, %v4127_v11, %v4128_v54  ;;  %v4124_v2 = vrot.slane %v12161_v40, 1  ;;  %5014 = vmatmul.mubr.f32.gmra.mxu0 %v12215_v52 }
 0x4ae   :  { %4751 = vmatmul.mubr.f32.gmra.mxu1 %v3871_v9  ;;  %5198 = vmatprep.subr.mxu1 %v16378_v59  ;;  %v3534_v35 = vadd.f32 1e-05, %v3502_v13  ;;  %v3877_v46 = vsel %vm715_vm7, %v3872_v17, %v3876_v15  ;;  %v12234_v31 = vadd.f32 %v12044_v30, %v3672_v19  ;;  %v3599_v1 = vmul.f32 %v9491_v60, %v11687_v4 }
 0x4af   :  { %v16379_v53 = vunpack.c.l.bf16 %v12028_v41  ;;  %8580 = vmatprep.mubr.msk.f32.mxu1 %vm10298_vm12, %v3877_v46  ;;  %v3427_v11 = vpop.xlane.xlu0 %3426  ;;  %v3875_v9 = vsel %vm715_vm7, %v3870_v61, %v3874_v48  ;;  %v12243_v40 = vadd.f32 %v12037_v50, %v3671_v12  ;;  %v3598_v26 = vmul.f32 %v9491_v60, %v11683_v47 }
 0x4b0   :  { %v16381_v17 = vunpack.c.h.bf16 %v12039_v39  ;;  %v4132_v13 = vrot.slane %v12206_v5, 1  ;;  %9498 = vrsqrt.f32 %v3534_v35  ;;  %v3503_v4 = vmul.f32 0.00390625, %v3427_v11  ;;  %5019 = vmatprep.mubr.f32.mxu0 %v12234_v31 }
 0x4b1   :  { %5199 = vmatpush1.msra.mxu1 %v16379_v53  ;;  %v3880_v41 = vrot.slane %v12234_v31, 7  ;;  %v3674_v19 = vmul.f32 %v12034_v45, %v3599_v1  ;;  %v16382_v61 = vunpack.c.l.bf16 %v12039_v39  ;;  %v9493_v12 = vpop.eup %9492  ;;  %v3878_v47 = vrot.slane %v12243_v40, 7  ;;  %5020 = vmatmul.mubr.f32.gmra.mxu0 %v12243_v40 }
 0x4b2   :  { %5200 = vmatprep.subr.mxu1 %v16381_v17  ;;  %8582 = vmatmul.mubr.msk.f32.gmra.mxu1 %vm10298_vm12, %v3875_v9  ;;  %v3673_v60 = vmul.f32 %v12031_v21, %v3598_v26  ;;  %v16383_v59 = vunpack.c.h.bf16 %v12041_v14  ;;  %v16384_v35 = vrot.slane %v12189_v23, 1  ;;  %v12268_v39 = vsel %vm16192_vm1, %v4128_v54, %v4132_v13  ;;  %vm16391_vm12 = vmmov %vm16192_vm1 }
 0x4b3   :  { %5201 = vmatpush1.msra.mxu1 %v16382_v61  ;;  %v3535_v1 = vadd.f32 1e-05, %v3503_v4  ;;  %v3881_v53 = vsel %vm715_vm7, %v3876_v15, %v3880_v41  ;;  %v12273_v6 = vadd.f32 %v12044_v30, %v3674_v19  ;;  %v3601_v11 = vmul.f32 %v9493_v12, %v11699_v7 }
 0x4b4   :  { %5202 = vmatprep.subr.mxu1 %v16383_v59  ;;  %v12263_v46 = vsel %vm16385_vm2, %v4124_v2, %v16384_v35  ;;  %v16386_v9 = vunpack.c.l.bf16 %v12041_v14  ;;  %4762 = vmatprep.mubr.f32.mxu1 %v3881_v53  ;;  %v3430_v2 = vpop.xlane.xlu0 %3429  ;;  %v3879_v26 = vsel %vm715_vm7, %v3874_v48, %v3878_v47  ;;  %v12280_v54 = vadd.f32 %v12037_v50, %v3673_v60  ;;  %vm16397_vm2 = vmmov %vm16192_vm1 }
 0x4b5   :  { %v3600_v17 = vmul.f32 %v9493_v12, %v11695_v42  ;;  %v16387_v4 = vunpack.c.h.bf16 %v12049_v8  ;;  %v4130_v15 = vrot.slane %v12215_v52, 1  ;;  %9500 = vrsqrt.f32 %v3535_v1  ;;  %5025 = vmatprep.mubr.f32.mxu0 %v12273_v6  ;;  %v9495_v61 = vpop.eup %9494 }
 0x4b6   :  { %5203 = vmatpush1.msra.mxu1 %v16386_v9  ;;  %v3504_v19 = vmul.f32 0.00390625, %v3430_v2  ;;  %v3884_v7 = vrot.slane %v12273_v6, 7  ;;  %v3676_v14 = vmul.f32 %v12034_v45, %v3601_v11  ;;  %v16388_v48 = vunpack.c.l.bf16 %v12049_v8  ;;  %5026 = vmatmul.mubr.f32.gmra.mxu0 %v12280_v54 }
 0x4b7   :  { %5204 = vmatprep.subr.mxu1 %v16387_v4  ;;  %4763 = vmatmul.mubr.f32.gmra.mxu1 %v3879_v26  ;;  %v3882_v42 = vrot.slane %v12280_v54, 7  ;;  %v3675_v12 = vmul.f32 %v12031_v21, %v3600_v17  ;;  %v16389_v60 = vunpack.c.h.bf16 %v12051_v43  ;;  %v16390_v52 = vmov %v16384_v35 }
 0x4b8   :  { %5205 = vmatpush1.msra.mxu1 %v16388_v48  ;;  %v12298_v59 = vsel %vm16391_vm12, %v16390_v52, %v4130_v15  ;;  %v4136_v35 = vrot.slane %v12234_v31, 1  ;;  %v3536_v1 = vadd.f32 1e-05, %v3504_v19  ;;  %v3885_v8 = vsel %vm715_vm7, %v3880_v41, %v3884_v7  ;;  %v3433_v23 = vpop.xlane.xlu0 %3432  ;;  %vm16410_vm12 = vmmov %vm16192_vm1 }
 0x4b9   :  { %5206 = vmatprep.subr.mxu1 %v16389_v60  ;;  %v12304_v53 = vadd.f32 %v12044_v30, %v3676_v14  ;;  %v3603_v11 = vmul.f32 %v9495_v61, %v11711_v20  ;;  %v16392_v9 = vunpack.c.l.bf16 %v12051_v43  ;;  %8584 = vmatprep.mubr.msk.f32.mxu1 %vm10341_vm15, %v3885_v8  ;;  %v3883_v26 = vsel %vm715_vm7, %v3878_v47, %v3882_v42  ;;  %v9497_v14 = vpop.eup %9496 }
 0x4ba   :  { %v12313_v31 = vadd.f32 %v12037_v50, %v3675_v12  ;;  %v3602_v17 = vmul.f32 %v9495_v61, %v11707_v18  ;;  %v16394_v41 = vunpack.c.h.bf16 %v12055_v16  ;;  %v4134_v4 = vrot.slane %v12243_v40, 1 }
 0x4bb   :  { %5207 = vmatpush1.msra.mxu1 %v16392_v9  ;;  %9502 = vrsqrt.f32 %v3536_v1  ;;  %v3505_v20 = vmul.f32 0.00390625, %v3433_v23  ;;  %5031 = vmatprep.mubr.f32.mxu0 %v12304_v53  ;;  %v3888_v43 = vrot.slane %v12304_v53, 7  ;;  %v3678_v19 = vmul.f32 %v12034_v45, %v3603_v11  ;;  %v16399_v9 = vld [vmem:[#allocation79_spill] sm:$0xff] }
 0x4bc   :  { %5208 = vmatprep.subr.mxu1 %v16394_v41  ;;  %v16395_v47 = vunpack.c.l.bf16 %v12055_v16  ;;  %8586 = vmatmul.mubr.msk.f32.gmra.mxu1 %vm10341_vm15, %v3883_v26  ;;  %v3886_v18 = vrot.slane %v12313_v31, 7  ;;  %v3677_v48 = vmul.f32 %v12031_v21, %v3602_v17  ;;  %v16396_v61 = vunpack.c.h.bf16 %v12057_v28  ;;  %vm16403_vm15 = vmmov %vm16192_vm1 }
 0x4bd   :  { %v12333_v12 = vsel %vm16397_vm2, %v4132_v13, %v4136_v35  ;;  %v12338_v16 = vsel %vm16192_vm1, %v4130_v15, %v4134_v4  ;;  %v3537_v60 = vadd.f32 1e-05, %v3505_v20  ;;  %5032 = vmatmul.mubr.f32.gmra.mxu0 %v12313_v31  ;;  %v3889_v52 = vsel %vm715_vm7, %v3884_v7, %v3888_v43  ;;  %v3436_v13 = vpop.xlane.xlu0 %3435  ;;  %v9499_v17 = vpop.eup %9498  ;;  %vm16411_vm2 = vmmov %vm16192_vm1 }
 0x4be   :  { %5209 = vmatpush1.msra.mxu1 %v16395_v47  ;;  %v12343_v1 = vadd.f32 %v12044_v30, %v3678_v19  ;;  %v3605_v8 = vmul.f32 %v9497_v14, %v11723_v57  ;;  %v16398_v5 = vunpack.c.l.bf16 %v12057_v28  ;;  %4774 = vmatprep.mubr.f32.mxu1 %v3889_v52  ;;  %v3887_v11 = vsel %vm715_vm7, %v3882_v42, %v3886_v18 }
 0x4bf   :  { %5210 = vmatprep.subr.mxu1 %v16396_v61  ;;  %v12350_v15 = vadd.f32 %v12037_v50, %v3677_v48  ;;  %v3604_v2 = vmul.f32 %v9497_v14, %v16399_v9  ;;  %v16400_v23 = vunpack.c.h.bf16 %v12063_v24  ;;  %v4140_v7 = vrot.slane %v12273_v6, 1  ;;  %v3439_v52 = vpop.xlane.xlu1 %3438 }
 0x4c0   :  { %5211 = vmatpush1.msra.mxu1 %v16398_v5  ;;  %9504 = vrsqrt.f32 %v3537_v60  ;;  %v3506_v26 = vmul.f32 0.00390625, %v3436_v13  ;;  %5037 = vmatprep.mubr.f32.mxu0 %v12343_v1  ;;  %v3892_v57 = vrot.slane %v12343_v1, 7  ;;  %v3680_v28 = vmul.f32 %v12034_v45, %v3605_v8  ;;  %v16406_v5 = vld [vmem:[#allocation80_spill] sm:$0xff] }
 0x4c1   :  { %5212 = vmatprep.subr.mxu1 %v16400_v23  ;;  %v16401_v42 = vunpack.c.l.bf16 %v12063_v24  ;;  %4775 = vmatmul.mubr.f32.gmra.mxu1 %v3887_v11  ;;  %v3890_v41 = vrot.slane %v12350_v15, 7  ;;  %v3679_v20 = vmul.f32 %v12031_v21, %v3604_v2  ;;  %v16402_v19 = vunpack.c.h.bf16 %v12068_v33 }
 0x4c2   :  { %v12366_v6 = vsel %vm16403_vm15, %v4136_v35, %v4140_v7  ;;  %v4138_v47 = vrot.slane %v12280_v54, 1  ;;  %v3538_v14 = vadd.f32 1e-05, %v3506_v26  ;;  %5038 = vmatmul.mubr.f32.gmra.mxu0 %v12350_v15  ;;  %v3893_v24 = vsel %vm715_vm7, %v3888_v43, %v3892_v57  ;;  %v9501_v2 = vpop.eup %9500  ;;  %vm16422_vm15 = vmmov %vm16192_vm1 }
 0x4c3   :  { %5213 = vmatpush1.msra.mxu1 %v16401_v42  ;;  %v12372_v48 = vadd.f32 %v12044_v30, %v3680_v28  ;;  %v3607_v61 = vmul.f32 %v9499_v17, %v11735_v3  ;;  %v16404_v60 = vunpack.c.l.bf16 %v12068_v33  ;;  %8588 = vmatprep.mubr.msk.f32.mxu1 %vm10384_vm13, %v3893_v24  ;;  %v3891_v35 = vsel %vm715_vm7, %v3886_v18, %v3890_v41 }
 0x4c4   :  { %5214 = vmatprep.subr.mxu1 %v16402_v19  ;;  %v12381_v54 = vadd.f32 %v12037_v50, %v3679_v20  ;;  %v3606_v13 = vmul.f32 %v9499_v17, %v16406_v5  ;;  %v16407_v43 = vunpack.c.h.bf16 %v12070_v56  ;;  %v4144_v11 = vrot.slane %v12304_v53, 1 }
 0x4c5   :  { %5215 = vmatpush1.msra.mxu1 %v16404_v60  ;;  %9506 = vrsqrt.f32 %v3538_v14  ;;  %v3507_v3 = vmul.f32 0.00390625, %v3439_v52  ;;  %5043 = vmatprep.mubr.f32.mxu0 %v12372_v48  ;;  %v3896_v33 = vrot.slane %v12372_v48, 7  ;;  %v3682_v9 = vmul.f32 %v12034_v45, %v3607_v61 }
 0x4c6   :  { %5216 = vmatprep.subr.mxu1 %v16407_v43  ;;  %v16408_v18 = vunpack.c.l.bf16 %v12070_v56  ;;  %8590 = vmatmul.mubr.msk.f32.gmra.mxu1 %vm10384_vm13, %v3891_v35  ;;  %v3894_v23 = vrot.slane %v12381_v54, 7  ;;  %v3681_v26 = vmul.f32 %v12031_v21, %v3606_v13  ;;  %v16409_v28 = vunpack.c.h.bf16 %v12076_v25  ;;  %vm16416_vm13 = vmmov %vm16192_vm1 }
 0x4c7   :  { %v12401_v42 = vsel %vm16410_vm12, %v4134_v4, %v4138_v47  ;;  %v12406_v56 = vsel %vm16411_vm2, %v4140_v7, %v4144_v11  ;;  %v3539_v17 = vadd.f32 1e-05, %v3507_v3  ;;  %5044 = vmatmul.mubr.f32.gmra.mxu0 %v12381_v54  ;;  %v3897_v20 = vsel %vm715_vm7, %v3892_v57, %v3896_v33  ;;  %v3442_v4 = vpop.xlane.xlu0 %3441  ;;  %vm16436_vm12 = vmmov %vm16192_vm1 }
 0x4c8   :  { %5217 = vmatpush1.msra.mxu1 %v16408_v18  ;;  %v12411_v19 = vadd.f32 %v12044_v30, %v3682_v9  ;;  %v3609_v14 = vmul.f32 %v9501_v2, %v11747_v32  ;;  %v16412_v40 = vunpack.c.l.bf16 %v12076_v25  ;;  %4786 = vmatprep.mubr.f32.mxu1 %v3897_v20  ;;  %v3895_v24 = vsel %vm715_vm7, %v3890_v41, %v3894_v23  ;;  %v9503_v8 = vpop.eup %9502  ;;  %vm16437_vm2 = vmmov %vm16192_vm1 }
 0x4c9   :  { %5218 = vmatprep.subr.mxu1 %v16409_v28  ;;  %v12418_v7 = vadd.f32 %v12037_v50, %v3681_v26  ;;  %v3608_v61 = vmul.f32 %v9501_v2, %v11743_v36  ;;  %v16413_v60 = vunpack.c.h.bf16 %v12080_v51  ;;  %v4142_v57 = vrot.slane %v12313_v31, 1  ;;  %v3445_v2 = vpop.xlane.xlu1 %3444 }
 0x4ca   :  { %5219 = vmatpush1.msra.mxu1 %v16412_v40  ;;  %9508 = vrsqrt.f32 %v3539_v17  ;;  %v3508_v52 = vmul.f32 0.00390625, %v3442_v4  ;;  %5049 = vmatprep.mubr.f32.mxu0 %v12411_v19  ;;  %v3900_v32 = vrot.slane %v12411_v19, 7  ;;  %v3684_v25 = vmul.f32 %v12034_v45, %v3609_v14 }
 0x4cb   :  { %5220 = vmatprep.subr.mxu1 %v16413_v60  ;;  %v16414_v41 = vunpack.c.l.bf16 %v12080_v51  ;;  %4787 = vmatmul.mubr.f32.gmra.mxu1 %v3895_v24  ;;  %v3898_v36 = vrot.slane %v12418_v7, 7  ;;  %v3683_v35 = vmul.f32 %v12031_v21, %v3608_v61  ;;  %v16415_v5 = vunpack.c.h.bf16 %v12082_v62 }
 0x4cc   :  { %v12434_v31 = vsel %vm16416_vm13, %v4138_v47, %v4142_v57  ;;  %v4148_v13 = vrot.slane %v12343_v1, 1  ;;  %v3540_v43 = vadd.f32 1e-05, %v3508_v52  ;;  %5050 = vmatmul.mubr.f32.gmra.mxu0 %v12418_v7  ;;  %v3901_v51 = vsel %vm715_vm7, %v3896_v33, %v3900_v32 }
 0x4cd   :  { %5221 = vmatpush1.msra.mxu1 %v16414_v41  ;;  %v12440_v3 = vadd.f32 %v12044_v30, %v3684_v25  ;;  %v3611_v9 = vmul.f32 %v9503_v8, %v11759_v37  ;;  %v16417_v18 = vunpack.c.l.bf16 %v12082_v62  ;;  %8592 = vmatprep.mubr.msk.f32.mxu1 %vm10418_vm10, %v3901_v51  ;;  %v3899_v47 = vsel %vm715_vm7, %v3894_v23, %v3898_v36  ;;  %v9505_v14 = vpop.eup %9504 }
 0x4ce   :  { %5222 = vmatprep.subr.mxu1 %v16415_v5  ;;  %v12449_v1 = vadd.f32 %v12037_v50, %v3683_v35  ;;  %v3610_v28 = vmul.f32 %v9503_v8, %v11755_v10  ;;  %v16419_v33 = vunpack.c.h.bf16 %v12088_v58  ;;  %v4146_v17 = vrot.slane %v12350_v15, 1 }
 0x4cf   :  { %5223 = vmatpush1.msra.mxu1 %v16417_v18  ;;  %9510 = vrsqrt.f32 %v3540_v43  ;;  %v3509_v37 = vmul.f32 0.00390625, %v3445_v2  ;;  %5055 = vmatprep.mubr.f32.mxu0 %v12440_v3  ;;  %v3904_v62 = vrot.slane %v12440_v3, 7  ;;  %v3686_v20 = vmul.f32 %v12034_v45, %v3611_v9 }
 0x4d0   :  { %5224 = vmatprep.subr.mxu1 %v16419_v33  ;;  %v16420_v23 = vunpack.c.l.bf16 %v12088_v58  ;;  %8594 = vmatmul.mubr.msk.f32.gmra.mxu1 %vm10418_vm10, %v3899_v47  ;;  %v3902_v10 = vrot.slane %v12449_v1, 7  ;;  %v3685_v40 = vmul.f32 %v12031_v21, %v3610_v28  ;;  %v16421_v4 = vunpack.c.h.bf16 %v12093_v63  ;;  %vm16427_vm10 = vmmov %vm16192_vm1  ;;  %v3451_v33 = vpop.xlane.xlu1 %3450 }
 0x4d1   :  { %v12469_v24 = vsel %vm16192_vm1, %v4144_v11, %v4148_v13  ;;  %v12474_v58 = vsel %vm16422_vm15, %v4142_v57, %v4146_v17  ;;  %v3541_v61 = vadd.f32 1e-05, %v3509_v37  ;;  %5056 = vmatmul.mubr.f32.gmra.mxu0 %v12449_v1  ;;  %v3905_v60 = vsel %vm715_vm7, %v3900_v32, %v3904_v62  ;;  %v3448_v11 = vpop.xlane.xlu0 %3447 }
 0x4d2   :  { %5225 = vmatpush1.msra.mxu1 %v16420_v23  ;;  %v12479_v52 = vadd.f32 %v12044_v30, %v3686_v20  ;;  %v3613_v25 = vmul.f32 %v9505_v14, %v11771_v0  ;;  %v16423_v53 = vunpack.c.l.bf16 %v12093_v63  ;;  %4798 = vmatprep.mubr.f32.mxu1 %v3905_v60  ;;  %v3903_v41 = vsel %vm715_vm7, %v3898_v36, %v3902_v10  ;;  %v9507_v43 = vpop.eup %9506  ;;  %v16430_v20 = vld [vmem:[#allocation81_spill] sm:$0xff] }
 0x4d3   :  { %5226 = vmatprep.subr.mxu1 %v16421_v4  ;;  %v12486_v57 = vadd.f32 %v12037_v50, %v3685_v40  ;;  %v3612_v8 = vmul.f32 %v9505_v14, %v11767_v49  ;;  %v16424_v35 = vunpack.c.h.bf16 %v12095_v29  ;;  %v4152_v32 = vrot.slane %v12372_v48, 1 }
 0x4d4   :  { %5227 = vmatpush2.msra.mxu1 %v16423_v53  ;;  %9512 = vrsqrt.f32 %v3541_v61  ;;  %v3510_v5 = vmul.f32 0.00390625, %v3448_v11  ;;  %5061 = vmatprep.mubr.f32.mxu0 %v12479_v52  ;;  %v3908_v0 = vrot.slane %v12479_v52, 7  ;;  %v3688_v63 = vmul.f32 %v12034_v45, %v3613_v25  ;;  %v16434_v53 = vld [vmem:[#allocation98_spill] sm:$0xff] }
 0x4d5   :  { %5228 = vmatprep.subr.mxu1 %v16424_v35  ;;  %v16425_v36 = vunpack.c.l.bf16 %v12095_v29  ;;  %4799 = vmatmul.mubr.f32.gmra.mxu1 %v3903_v41  ;;  %v3906_v49 = vrot.slane %v12486_v57, 7  ;;  %v3687_v51 = vmul.f32 %v12031_v21, %v3612_v8  ;;  %v16426_v9 = vunpack.c.h.bf16 %v12101_v38 }
 0x4d6   :  { %v12502_v48 = vsel %vm16427_vm10, %v4148_v13, %v4152_v32  ;;  %v4150_v18 = vrot.slane %v12381_v54, 1  ;;  %v3542_v2 = vadd.f32 1e-05, %v3510_v5  ;;  %5062 = vmatmul.mubr.f32.gmra.mxu0 %v12486_v57  ;;  %v3909_v29 = vsel %vm715_vm7, %v3904_v62, %v3908_v0  ;;  %v16431_v62 = vld [vmem:[#allocation97_spill] sm:$0xff] }
 0x4d7   :  { %5229 = vmatpush2.msra.mxu1 %v16425_v36  ;;  %v12508_v26 = vadd.f32 %v12044_v30, %v3688_v63  ;;  %v3615_v47 = vmul.f32 %v9507_v43, %v11783_v44  ;;  %v16428_v28 = vunpack.c.l.bf16 %v12101_v38  ;;  %8596 = vmatprep.mubr.msk.f32.mxu1 %vm10440_vm0, %v3909_v29  ;;  %v3907_v13 = vsel %vm715_vm7, %v3902_v10, %v3906_v49  ;;  %v9509_v61 = vpop.eup %9508  ;;  %v16438_v36 = vld [vmem:[#allocation83_spill] sm:$0xff] }
 0x4d8   :  { %5230 = vmatprep.subr.mxu1 %v16426_v9  ;;  %v12517_v54 = vadd.f32 %v12037_v50, %v3687_v51  ;;  %v3614_v23 = vmul.f32 %v9507_v43, %v16430_v20  ;;  %v16432_v14 = vunpack.c.h.bf16 %v16431_v62  ;;  %v4156_v40 = vrot.slane %v12411_v19, 1  ;;  %v16440_v9 = vld [vmem:[#allocation82_spill] sm:$0xff]  ;;  %v16441_v29 = vld [vmem:[#allocation99_spill] sm:$0xff] }
 0x4d9   :  { %5231 = vmatpush2.msra.mxu1 %v16428_v28  ;;  %9514 = vrsqrt.f32 %v3542_v2  ;;  %v3511_v44 = vmul.f32 0.00390625, %v3451_v33  ;;  %5067 = vmatprep.mubr.f32.mxu0 %v12508_v26  ;;  %v3912_v38 = vrot.slane %v12508_v26, 7  ;;  %v3690_v4 = vmul.f32 %v12034_v45, %v3615_v47 }
 0x4da   :  { %5232 = vmatprep.subr.mxu1 %v16432_v14  ;;  %v16433_v10 = vunpack.c.l.bf16 %v16431_v62  ;;  %8598 = vmatmul.mubr.msk.f32.gmra.mxu1 %vm10440_vm0, %v3907_v13  ;;  %v3910_v60 = vrot.slane %v12517_v54, 7  ;;  %v3689_v25 = vmul.f32 %v12031_v21, %v3614_v23  ;;  %v16435_v11 = vunpack.c.h.bf16 %v16434_v53  ;;  %vm16445_vm0 = vmmov %vm16192_vm1 }
 0x4db   :  { %v12537_v41 = vsel %vm16436_vm12, %v4146_v17, %v4150_v18  ;;  %v12542_v8 = vsel %vm16437_vm2, %v4152_v32, %v4156_v40  ;;  %v3543_v35 = vadd.f32 1e-05, %v3511_v44  ;;  %5068 = vmatmul.mubr.f32.gmra.mxu0 %v12517_v54  ;;  %v3913_v5 = vsel %vm715_vm7, %v3908_v0, %v3912_v38  ;;  %v3454_v17 = vpop.xlane.xlu0 %3453  ;;  %vm16455_vm13 = vmmov %vm16445_vm0 }
 0x4dc   :  { %5233 = vmatpush2.msra.mxu1 %v16433_v10  ;;  %v12547_v63 = vadd.f32 %v12044_v30, %v3690_v4  ;;  %v3617_v43 = vmul.f32 %v9509_v61, %v16438_v36  ;;  %v16439_v15 = vunpack.c.l.bf16 %v16434_v53  ;;  %4810 = vmatprep.mubr.f32.mxu1 %v3913_v5  ;;  %v3911_v51 = vsel %vm715_vm7, %v3906_v49, %v3910_v60  ;;  %v9511_v13 = vpop.eup %9510  ;;  %v16449_v5 = vld [vmem:[#allocation84_spill] sm:$0xff]  ;;  %vm16456_vm1 = vmmov %vm16445_vm0 }
 0x4dd   :  { %5234 = vmatprep.subr.mxu1 %v16435_v11  ;;  %v12554_v32 = vadd.f32 %v12037_v50, %v3689_v25  ;;  %v3616_v2 = vmul.f32 %v9509_v61, %v16440_v9  ;;  %v16442_v47 = vunpack.c.h.bf16 %v16441_v29  ;;  %v4154_v0 = vrot.slane %v12418_v7, 1  ;;  %v16446_v61 = vld [vmem:[#allocation85_spill] sm:$0xff]  ;;  %v3457_v11 = vpop.xlane.xlu1 %3456  ;;  %vm16474_vm15 = vmmov %vm16445_vm0 }
 0x4de   :  { %5235 = vmatpush2.msra.mxu1 %v16439_v15  ;;  %9516 = vrsqrt.f32 %v3543_v35  ;;  %v3512_v28 = vmul.f32 0.00390625, %v3454_v17  ;;  %5073 = vmatprep.mubr.f32.mxu0 %v12547_v63  ;;  %v3916_v33 = vrot.slane %v12547_v63, 7  ;;  %v3692_v37 = vmul.f32 %v12034_v45, %v3617_v43  ;;  %vm16475_vm10 = vmmov %vm16445_vm0 }
 0x4df   :  { %5236 = vmatprep.subr.mxu1 %v16442_v47  ;;  %v16443_v49 = vunpack.c.l.bf16 %v16441_v29  ;;  %4811 = vmatmul.mubr.f32.gmra.mxu1 %v3911_v51  ;;  %v3914_v20 = vrot.slane %v12554_v32, 7  ;;  %v3691_v23 = vmul.f32 %v12031_v21, %v3616_v2  ;;  %v16444_v62 = vunpack.c.h.bf16 %v12115_v22  ;;  %v16453_v47 = vld [vmem:[#allocation101_spill] sm:$0xff]  ;;  %vm16491_vm12 = vmmov %vm16445_vm0 }
 0x4e0   :  { %v12570_v7 = vsel %vm16445_vm0, %v4150_v18, %v4154_v0  ;;  %v4160_v14 = vrot.slane %v12440_v3, 1  ;;  %v3544_v44 = vadd.f32 1e-05, %v3512_v28  ;;  %5074 = vmatmul.mubr.f32.gmra.mxu0 %v12554_v32  ;;  %v3917_v4 = vsel %vm715_vm7, %v3912_v38, %v3916_v33  ;;  %v16450_v38 = vld [vmem:[#allocation100_spill] sm:$0xff]  ;;  %vm16492_vm2 = vmmov %vm16445_vm0 }
 0x4e1   :  { %5237 = vmatpush2.msra.mxu1 %v16443_v49  ;;  %v12576_v10 = vadd.f32 %v12044_v30, %v3692_v37  ;;  %v3619_v25 = vmul.f32 %v9511_v13, %v16446_v61  ;;  %v16447_v53 = vunpack.c.l.bf16 %v12115_v22  ;;  %8600 = vmatprep.mubr.msk.f32.mxu1 %vm10453_vm11, %v3917_v4  ;;  %v3915_v18 = vsel %vm715_vm7, %v3910_v60, %v3914_v20  ;;  %v9513_v9 = vpop.eup %9512 }
 0x4e2   :  { %5238 = vmatprep.subr.mxu1 %v16444_v62  ;;  %v12585_v3 = vadd.f32 %v12037_v50, %v3691_v23  ;;  %v3618_v36 = vmul.f32 %v9511_v13, %v16449_v5  ;;  %v16451_v43 = vunpack.c.h.bf16 %v16450_v38  ;;  %v4158_v15 = vrot.slane %v12449_v1, 1 }
 0x4e3   :  { %5239 = vmatpush2.msra.mxu1 %v16447_v53  ;;  %9518 = vrsqrt.f32 %v3544_v44  ;;  %v3513_v17 = vmul.f32 0.00390625, %v3457_v11  ;;  %5079 = vmatprep.mubr.f32.mxu0 %v12576_v10  ;;  %v3920_v22 = vrot.slane %v12576_v10, 7  ;;  %v3694_v51 = vmul.f32 %v12034_v45, %v3619_v25  ;;  %v16457_v44 = vld [vmem:[#allocation87_spill] sm:$0xff]  ;;  %v16459_v25 = vld [vmem:[#allocation86_spill] sm:$0xff] }
 0x4e4   :  { %5240 = vmatprep.subr.mxu1 %v16451_v43  ;;  %v16452_v60 = vunpack.c.l.bf16 %v16450_v38  ;;  %8602 = vmatmul.mubr.msk.f32.gmra.mxu1 %vm10453_vm11, %v3915_v18  ;;  %v3918_v2 = vrot.slane %v12585_v3, 7  ;;  %v3693_v29 = vmul.f32 %v12031_v21, %v3618_v36  ;;  %v16454_v28 = vunpack.c.h.bf16 %v16453_v47  ;;  %vm16464_vm11 = vmmov %vm16445_vm0 }
 0x4e5   :  { %v12605_v37 = vsel %vm16455_vm13, %v4156_v40, %v4160_v14  ;;  %v12610_v49 = vsel %vm16456_vm1, %v4154_v0, %v4158_v15  ;;  %v3545_v13 = vadd.f32 1e-05, %v3513_v17  ;;  %5080 = vmatmul.mubr.f32.gmra.mxu0 %v12585_v3  ;;  %v3921_v23 = vsel %vm715_vm7, %v3916_v33, %v3920_v22  ;;  %v3460_v40 = vpop.xlane.xlu0 %3459  ;;  %v16462_v17 = vld [vmem:[#allocation102_spill] sm:$0xff]  ;;  %vm16506_vm13 = vmmov %vm16445_vm0 }
 0x4e6   :  { %5241 = vmatpush2.msra.mxu1 %v16452_v60  ;;  %v12615_v62 = vadd.f32 %v12044_v30, %v3694_v51  ;;  %v3621_v4 = vmul.f32 %v9513_v9, %v16457_v44  ;;  %v16458_v19 = vunpack.c.l.bf16 %v16453_v47  ;;  %4822 = vmatprep.mubr.f32.mxu1 %v3921_v23  ;;  %v3919_v61 = vsel %vm715_vm7, %v3914_v20, %v3918_v2  ;;  %v9515_v36 = vpop.eup %9514  ;;  %v16465_v47 = vld [vmem:[#allocation89_spill] sm:$0xff]  ;;  %v3463_v23 = vpop.xlane.xlu1 %3462  ;;  %v16478_v44 = vld [vmem:[#allocation90_spill] sm:$0xff]  ;;  %vm16511_vm1 = vmmov %vm16445_vm0 }
 0x4e7   :  { %5242 = vmatprep.subr.mxu1 %v16454_v28  ;;  %v12622_v0 = vadd.f32 %v12037_v50, %v3693_v29  ;;  %v3620_v53 = vmul.f32 %v9513_v9, %v16459_v25  ;;  %v16460_v11 = vunpack.c.h.bf16 %v12130_v55  ;;  %v4164_v33 = vrot.slane %v12479_v52, 1 }
 0x4e8   :  { %5243 = vmatpush2.msra.mxu1 %v16458_v19  ;;  %9520 = vrsqrt.f32 %v3545_v13  ;;  %v3514_v35 = vmul.f32 0.00390625, %v3460_v40  ;;  %5085 = vmatprep.mubr.f32.mxu0 %v12615_v62  ;;  %v3924_v18 = vrot.slane %v12615_v62, 7  ;;  %v3696_v5 = vmul.f32 %v12034_v45, %v3621_v4  ;;  %v16468_v4 = vld [vmem:[#allocation88_spill] sm:$0xff] }
 0x4e9   :  { %5244 = vmatprep.subr.mxu1 %v16460_v11  ;;  %v16461_v20 = vunpack.c.l.bf16 %v12130_v55  ;;  %4823 = vmatmul.mubr.f32.gmra.mxu1 %v3919_v61  ;;  %v3922_v38 = vrot.slane %v12622_v0, 7  ;;  %v3695_v43 = vmul.f32 %v12031_v21, %v3620_v53  ;;  %v16463_v51 = vunpack.c.h.bf16 %v16462_v17 }
 0x4ea   :  { %v12638_v52 = vsel %vm16464_vm11, %v4160_v14, %v4164_v33  ;;  %v4162_v60 = vrot.slane %v12486_v57, 1  ;;  %v3546_v9 = vadd.f32 1e-05, %v3514_v35  ;;  %5086 = vmatmul.mubr.f32.gmra.mxu0 %v12622_v0  ;;  %v3925_v55 = vsel %vm715_vm7, %v3920_v22, %v3924_v18  ;;  %v16469_v22 = vld [vmem:[#allocation77_spill] sm:$0xff]  ;;  %vm16517_vm11 = vmmov %vm16445_vm0 }
 0x4eb   :  { %5245 = vmatpush2.msra.mxu1 %v16461_v20  ;;  %v12644_v29 = vadd.f32 %v12044_v30, %v3696_v5  ;;  %v3623_v28 = vmul.f32 %v9515_v36, %v16465_v47  ;;  %v16466_v13 = vunpack.c.l.bf16 %v16462_v17  ;;  %8604 = vmatprep.mubr.msk.f32.mxu1 %vm16155_vm9, %v3925_v55  ;;  %v3923_v14 = vsel %vm715_vm7, %v3918_v2, %v3922_v38  ;;  %v9517_v35 = vpop.eup %9516 }
 0x4ec   :  { %5246 = vmatprep.subr.mxu1 %v16463_v51  ;;  %v12653_v57 = vadd.f32 %v12037_v50, %v3695_v43  ;;  %v3622_v19 = vmul.f32 %v9515_v36, %v16468_v4  ;;  %v16470_v40 = vunpack.c.h.bf16 %v16469_v22  ;;  %v4168_v61 = vrot.slane %v12508_v26, 1  ;;  %v16472_v36 = vld [vmem:[#allocation78_spill] sm:$0xff]  ;;  %v16479_v4 = vld [vmem:[#allocation103_spill] sm:$0xff] }
 0x4ed   :  { %5247 = vmatpush2.msra.mxu1 %v16466_v13  ;;  %9522 = vrsqrt.f32 %v3546_v9  ;;  %v3515_v25 = vmul.f32 0.00390625, %v3463_v23  ;;  %5091 = vmatprep.mubr.f32.mxu0 %v12644_v29  ;;  %v3928_v53 = vrot.slane %v12644_v29, 7  ;;  %v3698_v11 = vmul.f32 %v12034_v45, %v3623_v28  ;;  %v16476_v28 = vld [vmem:[#allocation91_spill] sm:$0xff] }
 0x4ee   :  { %5248 = vmatprep.subr.mxu1 %v16470_v40  ;;  %v16471_v2 = vunpack.c.l.bf16 %v16469_v22  ;;  %8606 = vmatmul.mubr.msk.f32.gmra.mxu1 %vm16155_vm9, %v3923_v14  ;;  %v3926_v5 = vrot.slane %v12653_v57, 7  ;;  %v3697_v20 = vmul.f32 %v12031_v21, %v3622_v19  ;;  %v16473_v43 = vunpack.c.h.bf16 %v16472_v36  ;;  %vm16484_vm9 = vmmov %vm16445_vm0 }
 0x4ef   :  { %v12673_v17 = vsel %vm16474_vm15, %v4158_v15, %v4162_v60  ;;  %v12678_v51 = vsel %vm16475_vm10, %v4164_v33, %v4168_v61  ;;  %v3547_v9 = vadd.f32 1e-05, %v3515_v25  ;;  %5092 = vmatmul.mubr.f32.gmra.mxu0 %v12653_v57  ;;  %v3929_v55 = vsel %vm715_vm7, %v3924_v18, %v3928_v53  ;;  %v3466_v15 = vpop.xlane.xlu0 %3465  ;;  %vm16522_vm15 = vmmov %vm16445_vm0 }
 0x4f0   :  { %5249 = vmatpush2.msra.mxu1 %v16471_v2  ;;  %v12683_v47 = vadd.f32 %v12044_v30, %v3698_v11  ;;  %v3625_v13 = vmul.f32 %v9517_v35, %v16476_v28  ;;  %v16477_v1 = vunpack.c.l.bf16 %v16472_v36  ;;  %4834 = vmatprep.mubr.f32.mxu1 %v3929_v55  ;;  %v3927_v23 = vsel %vm715_vm7, %v3922_v38, %v3926_v5  ;;  %v9519_v11 = vpop.eup %9518 }
 0x4f1   :  { %5250 = vmatprep.subr.mxu1 %v16473_v43  ;;  %v12690_v33 = vadd.f32 %v12037_v50, %v3697_v20  ;;  %v3624_v14 = vmul.f32 %v9517_v35, %v16478_v44  ;;  %v16480_v19 = vunpack.c.h.bf16 %v16479_v4  ;;  %v4166_v18 = vrot.slane %v12517_v54, 1  ;;  %v16482_v20 = vld [vmem:[#allocation104_spill] sm:$0xff] }
 0x4f2   :  { %5251 = vmatpush2.msra.mxu1 %v16477_v1  ;;  %9524 = vrsqrt.f32 %v3547_v9  ;;  %v3516_v22 = vmul.f32 0.00390625, %v3466_v15  ;;  %5097 = vmatprep.mubr.f32.mxu0 %v12683_v47  ;;  %v3932_v40 = vrot.slane %v12683_v47, 7  ;;  %v3700_v25 = vmul.f32 %v12034_v45, %v3625_v13  ;;  %v16485_v13 = vld [vmem:[#allocation93_spill] sm:$0xff] }
 0x4f3   :  { %5252 = vmatprep.subr.mxu1 %v16480_v19  ;;  %v16481_v38 = vunpack.c.l.bf16 %v16479_v4  ;;  %4835 = vmatmul.mubr.f32.gmra.mxu1 %v3927_v23  ;;  %v3930_v2 = vrot.slane %v12690_v33, 7  ;;  %v3699_v35 = vmul.f32 %v12031_v21, %v3624_v14  ;;  %v16483_v36 = vunpack.c.h.bf16 %v16482_v20  ;;  %v3469_v23 = vpop.xlane.xlu1 %3468  ;;  %v16488_v14 = vld [vmem:[#allocation92_spill] sm:$0xff] }
 0x4f4   :  { %v12706_v54 = vsel %vm16484_vm9, %v4162_v60, %v4166_v18  ;;  %v4172_v43 = vrot.slane %v12547_v63, 1  ;;  %v3548_v9 = vadd.f32 1e-05, %v3516_v22  ;;  %5098 = vmatmul.mubr.f32.gmra.mxu0 %v12690_v33  ;;  %v3933_v55 = vsel %vm715_vm7, %v3928_v53, %v3932_v40  ;;  %vm16532_vm9 = vmmov %vm16445_vm0 }
 0x4f5   :  { %5253 = vmatpush2.msra.mxu1 %v16481_v38  ;;  %v12712_v28 = vadd.f32 %v12044_v30, %v3700_v25  ;;  %v3627_v1 = vmul.f32 %v9519_v11, %v16485_v13  ;;  %v16486_v15 = vunpack.c.l.bf16 %v16482_v20  ;;  %8608 = vmatprep.mubr.msk.f32.mxu1 %vm16160_vm14, %v3933_v55  ;;  %v3931_v60 = vsel %vm715_vm7, %v3926_v5, %v3930_v2  ;;  %v16494_v13 = vld [vmem:[#allocation95_spill] sm:$0xff] }
 0x4f6   :  { %5254 = vmatprep.subr.mxu1 %v16483_v36  ;;  %v12721_v63 = vadd.f32 %v12037_v50, %v3699_v35  ;;  %v3626_v4 = vmul.f32 %v9519_v11, %v16488_v14  ;;  %v16489_v53 = vunpack.c.h.bf16 %v12181_v27  ;;  %v4170_v19 = vrot.slane %v12554_v32, 1  ;;  %v9521_v35 = vpop.eup %9520 }
 0x4f7   :  { %5255 = vmatpush2.msra.mxu1 %v16486_v15  ;;  %9526 = vrsqrt.f32 %v3548_v9  ;;  %v3517_v22 = vmul.f32 0.00390625, %v3469_v23  ;;  %5103 = vmatprep.mubr.f32.mxu0 %v12712_v28  ;;  %v3936_v25 = vrot.slane %v12712_v28, 7  ;;  %v3702_v38 = vmul.f32 %v12034_v45, %v3627_v1  ;;  %v3472_v15 = vpop.xlane.xlu0 %3471  ;;  %v16495_v23 = vld [vmem:[#allocation94_spill] sm:$0xff] }
 0x4f8   :  { %5256 = vmatprep.subr.mxu1 %v16489_v53  ;;  %v16490_v5 = vunpack.c.l.bf16 %v12181_v27  ;;  %8610 = vmatmul.mubr.msk.f32.gmra.mxu1 %vm16160_vm14, %v3931_v60  ;;  %v3934_v11 = vrot.slane %v12721_v63, 7  ;;  %v3701_v20 = vmul.f32 %v12031_v21, %v3626_v4  ;;  %v12739_v32 = vsel %vm16491_vm12, %v4168_v61, %v4172_v43  ;;  %vm16496_vm14 = vmmov %vm16445_vm0 }
 0x4f9   :  { %v12742_v36 = vsel %vm16492_vm2, %v4166_v18, %v4170_v19  ;;  %v3549_v9 = vadd.f32 1e-05, %v3517_v22  ;;  %5104 = vmatmul.mubr.f32.gmra.mxu0 %v12721_v63  ;;  %v3937_v27 = vsel %vm715_vm7, %v3932_v40, %v3936_v25  ;;  %v12747_v55 = vadd.f32 %v12044_v30, %v3702_v38  ;;  %vm16533_vm12 = vmmov %vm16445_vm0 }
 0x4fa   :  { %5257 = vmatpush2.msra.mxu1 %v16490_v5  ;;  %16493 = vst [vmem:[#allocation28_spill] sm:$0xff] %v12742_v36  ;;  %v3629_v1 = vmul.f32 %v9521_v35, %v16494_v13  ;;  %4846 = vmatprep.mubr.f32.mxu1 %v3937_v27  ;;  %v3935_v26 = vsel %vm715_vm7, %v3930_v2, %v3934_v11  ;;  %v4176_v44 = vrot.slane %v12576_v10, 1  ;;  %v3518_v60 = vmul.f32 0.00390625, %v3472_v15  ;;  %v9523_v4 = vpop.eup %9522  ;;  %v3475_v27 = vpop.xlane.xlu1 %3474  ;;  %vm16537_vm2 = vmmov %vm16445_vm0 }
 0x4fb   :  { %v12752_v61 = vadd.f32 %v12037_v50, %v3701_v20  ;;  %v3628_v18 = vmul.f32 %v9521_v35, %v16495_v23  ;;  %9528 = vrsqrt.f32 %v3549_v9  ;;  %5109 = vmatprep.mubr.f32.mxu0 %v12747_v55  ;;  %v3940_v40 = vrot.slane %v12747_v55, 7  ;;  %v16498_v20 = vld [vmem:[#allocation54_spill] sm:$0xff] }
 0x4fc   :  { %v3704_v14 = vmul.f32 %v12034_v45, %v3629_v1  ;;  %4847 = vmatmul.mubr.f32.gmra.mxu1 %v3935_v26  ;;  %v12762_v22 = vsel %vm16496_vm14, %v4172_v43, %v4176_v44  ;;  %v4174_v38 = vrot.slane %v12585_v3, 1  ;;  %v3550_v10 = vadd.f32 1e-05, %v3518_v60  ;;  %v16500_v3 = vld [vmem:[#allocation96_spill] sm:$0xff] }
 0x4fd   :  { %v3938_v53 = vrot.slane %v12752_v61, 7  ;;  %v3703_v2 = vmul.f32 %v12031_v21, %v3628_v18  ;;  %16497 = vst [vmem:[#allocation31_spill] sm:$0xff] %v12762_v22  ;;  %5110 = vmatmul.mubr.f32.gmra.mxu0 %v12752_v61  ;;  %v3941_v5 = vsel %vm715_vm7, %v3936_v25, %v3940_v40  ;;  %v3631_v9 = vmul.f32 %v9523_v4, %v16498_v20  ;;  %v16502_v20 = vld [vmem:[#allocation56_spill] sm:$0xff] }
 0x4fe   :  { %v12768_v35 = vadd.f32 %v12044_v30, %v3704_v14  ;;  %8612 = vmatprep.mubr.msk.f32.mxu1 %vm16165_vm6, %v3941_v5  ;;  %v3630_v15 = vmul.f32 %v9523_v4, %v16500_v3  ;;  %v12779_v26 = vsel %vm16445_vm0, %v4170_v19, %v4174_v38  ;;  %9530 = vrsqrt.f32 %v3550_v10 }
 0x4ff   :  { %v3939_v1 = vsel %vm715_vm7, %v3934_v11, %v3938_v53  ;;  %v12775_v43 = vadd.f32 %v12037_v50, %v3703_v2  ;;  %16501 = vst [vmem:[#allocation34_spill] sm:$0xff] %v12779_v26  ;;  %v3519_v25 = vmul.f32 0.00390625, %v3475_v27  ;;  %v3706_v18 = vmul.f32 %v12034_v45, %v3631_v9  ;;  %v9525_v60 = vpop.eup %9524  ;;  %v3478_v27 = vpop.xlane.xlu0 %3477 }
 0x500   :  { %5115 = vmatprep.mubr.f32.mxu0 %v12768_v35  ;;  %v3944_v23 = vrot.slane %v12768_v35, 7  ;;  %8614 = vmatmul.mubr.msk.f32.gmra.mxu1 %vm16165_vm6, %v3939_v1  ;;  %v3705_v14 = vmul.f32 %v12031_v21, %v3630_v15  ;;  %v4180_v4 = vrot.slane %v12615_v62, 1  ;;  %v4178_v19 = vrot.slane %v12622_v0, 1  ;;  %v16503_v62 = vld [vmem:[#allocation55_spill] sm:$0xff]  ;;  %vm16504_vm6 = vmmov %vm16445_vm0 }
 0x501   :  { %v3942_v11 = vrot.slane %v12775_v43, 7  ;;  %v3551_v2 = vadd.f32 1e-05, %v3519_v25  ;;  %5116 = vmatmul.mubr.f32.gmra.mxu0 %v12775_v43  ;;  %v12793_v5 = vadd.f32 %v12044_v30, %v3706_v18  ;;  %v3633_v9 = vmul.f32 %v9525_v60, %v16502_v20 }
 0x502   :  { %v3945_v10 = vsel %vm715_vm7, %v3940_v40, %v3944_v23  ;;  %v12798_v1 = vadd.f32 %v12037_v50, %v3705_v14  ;;  %v3632_v3 = vmul.f32 %v9525_v60, %v16503_v62  ;;  %v12802_v0 = vsel %vm16504_vm6, %v4176_v44, %v4180_v4  ;;  %vm16543_vm6 = vmmov %vm16445_vm0 }
 0x503   :  { %4858 = vmatprep.mubr.f32.mxu1 %v3945_v10  ;;  %v3943_v13 = vsel %vm715_vm7, %v3938_v53, %v3942_v11  ;;  %16505 = vst [vmem:[#allocation79_spill] sm:$0xff] %v12802_v0  ;;  %9532 = vrsqrt.f32 %v3551_v2  ;;  %v3520_v15 = vmul.f32 0.00390625, %v3478_v27  ;;  %5121 = vmatprep.mubr.f32.mxu0 %v12793_v5  ;;  %v3948_v40 = vrot.slane %v12793_v5, 7  ;;  %v3484_v62 = vpop.xlane.xlu0 %3483 }
 0x504   :  { %v3708_v25 = vmul.f32 %v12034_v45, %v3633_v9  ;;  %v9527_v18 = vpop.eup %9526  ;;  %4859 = vmatmul.mubr.f32.gmra.mxu1 %v3943_v13  ;;  %v3946_v53 = vrot.slane %v12798_v1, 7  ;;  %v3707_v14 = vmul.f32 %v12031_v21, %v3632_v3  ;;  %v12810_v10 = vsel %vm16506_vm13, %v4174_v38, %v4178_v19  ;;  %v16508_v9 = vld [vmem:[#allocation58_spill] sm:$0xff]  ;;  %v3481_v13 = vpop.xlane.xlu1 %3480  ;;  %vm16547_vm13 = vmmov %vm16445_vm0 }
 0x505   :  { %16507 = vst [vmem:[#allocation37_spill] sm:$0xff] %v12810_v10  ;;  %v4184_v44 = vrot.slane %v12644_v29, 1  ;;  %v3552_v60 = vadd.f32 1e-05, %v3520_v15  ;;  %5122 = vmatmul.mubr.f32.gmra.mxu0 %v12798_v1  ;;  %v3949_v2 = vsel %vm715_vm7, %v3944_v23, %v3948_v40  ;;  %v3635_v27 = vmul.f32 %v9527_v18, %v16508_v9  ;;  %v16510_v29 = vld [vmem:[#allocation57_spill] sm:$0xff] }
 0x506   :  { %v12816_v20 = vadd.f32 %v12044_v30, %v3708_v25  ;;  %8616 = vmatprep.mubr.msk.f32.mxu1 %vm16170_vm5, %v3949_v2  ;;  %v3947_v3 = vsel %vm715_vm7, %v3942_v11, %v3946_v53  ;;  %v12823_v38 = vadd.f32 %v12037_v50, %v3707_v14  ;;  %v3634_v15 = vmul.f32 %v9527_v18, %v16510_v29 }
 0x507   :  { %v12827_v10 = vsel %vm16511_vm1, %v4180_v4, %v4184_v44  ;;  %9534 = vrsqrt.f32 %v3552_v60  ;;  %v3521_v23 = vmul.f32 0.00390625, %v3481_v13  ;;  %v3710_v9 = vmul.f32 %v12034_v45, %v3635_v27  ;;  %v16513_v27 = vld [vmem:[#allocation60_spill] sm:$0xff]  ;;  %vm16548_vm1 = vmmov %vm16445_vm0 }
 0x508   :  { %16512 = vst [vmem:[#allocation80_spill] sm:$0xff] %v12827_v10  ;;  %5127 = vmatprep.mubr.f32.mxu0 %v12816_v20  ;;  %v3952_v25 = vrot.slane %v12816_v20, 7  ;;  %v9529_v0 = vpop.eup %9528  ;;  %8618 = vmatmul.mubr.msk.f32.gmra.mxu1 %vm16170_vm5, %v3947_v3  ;;  %v3950_v11 = vrot.slane %v12823_v38, 7  ;;  %v3709_v14 = vmul.f32 %v12031_v21, %v3634_v15  ;;  %v4182_v18 = vrot.slane %v12653_v57, 1  ;;  %v16514_v57 = vld [vmem:[#allocation59_spill] sm:$0xff]  ;;  %vm16515_vm5 = vmmov %vm16445_vm0 }
 0x509   :  { %v4188_v4 = vrot.slane %v12683_v47, 1  ;;  %v3553_v60 = vadd.f32 1e-05, %v3521_v23  ;;  %5128 = vmatmul.mubr.f32.gmra.mxu0 %v12823_v38  ;;  %v12841_v13 = vadd.f32 %v12044_v30, %v3710_v9  ;;  %v3637_v29 = vmul.f32 %v9529_v0, %v16513_v27 }
 0x50a   :  { %v3953_v2 = vsel %vm715_vm7, %v3948_v40, %v3952_v25  ;;  %v3951_v3 = vsel %vm715_vm7, %v3946_v53, %v3950_v11  ;;  %v12846_v15 = vadd.f32 %v12037_v50, %v3709_v14  ;;  %v3636_v10 = vmul.f32 %v9529_v0, %v16514_v57 }
 0x50b   :  { %4870 = vmatprep.mubr.f32.mxu1 %v3953_v2  ;;  %v12850_v47 = vsel %vm16515_vm5, %v4178_v19, %v4182_v18  ;;  %9536 = vrsqrt.f32 %v3553_v60  ;;  %v3522_v23 = vmul.f32 0.00390625, %v3484_v62  ;;  %5133 = vmatprep.mubr.f32.mxu0 %v12841_v13  ;;  %v3956_v40 = vrot.slane %v12841_v13, 7  ;;  %v9531_v2 = vpop.eup %9530  ;;  %vm16550_vm5 = vmmov %vm16445_vm0 }
 0x50c   :  { %16516 = vst [vmem:[#allocation40_spill] sm:$0xff] %v12850_v47  ;;  %v3712_v9 = vmul.f32 %v12034_v45, %v3637_v29  ;;  %4871 = vmatmul.mubr.f32.gmra.mxu1 %v3951_v3  ;;  %v3954_v53 = vrot.slane %v12846_v15, 7  ;;  %v3711_v14 = vmul.f32 %v12031_v21, %v3636_v10  ;;  %v12858_v27 = vsel %vm16517_vm11, %v4184_v44, %v4188_v4  ;;  %v16519_v29 = vld [vmem:[#allocation62_spill] sm:$0xff]  ;;  %v3487_v3 = vpop.xlane.xlu1 %3486  ;;  %vm16552_vm11 = vmmov %vm16445_vm0 }
 0x50d   :  { %16518 = vst [vmem:[#allocation42_spill] sm:$0xff] %v12858_v27  ;;  %v4186_v19 = vrot.slane %v12690_v33, 1  ;;  %v3554_v0 = vadd.f32 1e-05, %v3522_v23  ;;  %5134 = vmatmul.mubr.f32.gmra.mxu0 %v12846_v15  ;;  %v3957_v60 = vsel %vm715_vm7, %v3952_v25, %v3956_v40  ;;  %v3639_v57 = vmul.f32 %v9531_v2, %v16519_v29  ;;  %v16521_v33 = vld [vmem:[#allocation61_spill] sm:$0xff] }
 0x50e   :  { %v12864_v62 = vadd.f32 %v12044_v30, %v3712_v9  ;;  %8620 = vmatprep.mubr.msk.f32.mxu1 %vm16175_vm4, %v3957_v60  ;;  %v3955_v10 = vsel %vm715_vm7, %v3950_v11, %v3954_v53  ;;  %v12871_v44 = vadd.f32 %v12037_v50, %v3711_v14  ;;  %v3638_v23 = vmul.f32 %v9531_v2, %v16521_v33  ;;  %v3490_v33 = vpop.xlane.xlu0 %3489 }
 0x50f   :  { %v12875_v27 = vsel %vm16522_vm15, %v4182_v18, %v4186_v19  ;;  %9538 = vrsqrt.f32 %v3554_v0  ;;  %v3523_v25 = vmul.f32 0.00390625, %v3487_v3  ;;  %v3714_v29 = vmul.f32 %v12034_v45, %v3639_v57  ;;  %v16524_v3 = vld [vmem:[#allocation64_spill] sm:$0xff] }
 0x510   :  { %16523 = vst [vmem:[#allocation81_spill] sm:$0xff] %v12875_v27  ;;  %5139 = vmatprep.mubr.f32.mxu0 %v12864_v62  ;;  %v3960_v9 = vrot.slane %v12864_v62, 7  ;;  %v9533_v26 = vpop.eup %9532  ;;  %8622 = vmatmul.mubr.msk.f32.gmra.mxu1 %vm16175_vm4, %v3955_v10  ;;  %v3958_v11 = vrot.slane %v12871_v44, 7  ;;  %v3713_v14 = vmul.f32 %v12031_v21, %v3638_v23  ;;  %v4192_v2 = vrot.slane %v12712_v28, 1  ;;  %v16525_v23 = vld [vmem:[#allocation63_spill] sm:$0xff]  ;;  %vm16526_vm4 = vmmov %vm16445_vm0 }
 0x511   :  { %v3555_v18 = vadd.f32 1e-05, %v3523_v25  ;;  %5140 = vmatmul.mubr.f32.gmra.mxu0 %v12871_v44  ;;  %v12888_v60 = vadd.f32 %v12044_v30, %v3714_v29  ;;  %v3641_v57 = vmul.f32 %v9533_v26, %v16524_v3  ;;  %v3640_v27 = vmul.f32 %v9533_v26, %v16525_v23  ;;  %v16528_v23 = vld [vmem:[#allocation66_spill] sm:$0xff] }
 0x512   :  { %v3961_v0 = vsel %vm715_vm7, %v3956_v40, %v3960_v9  ;;  %v3959_v47 = vsel %vm715_vm7, %v3954_v53, %v3958_v11  ;;  %v12893_v10 = vadd.f32 %v12037_v50, %v3713_v14  ;;  %v12897_v28 = vsel %vm16526_vm4, %v4188_v4, %v4192_v2  ;;  %vm16558_vm4 = vmmov %vm16445_vm0 }
 0x513   :  { %4882 = vmatprep.mubr.f32.mxu1 %v3961_v0  ;;  %16527 = vst [vmem:[#allocation97_spill] sm:$0xff] %v12897_v28  ;;  %9540 = vrsqrt.f32 %v3555_v18  ;;  %v3524_v25 = vmul.f32 0.00390625, %v3490_v33  ;;  %5145 = vmatprep.mubr.f32.mxu0 %v12888_v60  ;;  %v3964_v40 = vrot.slane %v12888_v60, 7  ;;  %v3716_v29 = vmul.f32 %v12034_v45, %v3641_v57  ;;  %v3493_v28 = vpop.xlane.xlu1 %3492 }
 0x514   :  { %v9535_v0 = vpop.eup %9534  ;;  %4883 = vmatmul.mubr.f32.gmra.mxu1 %v3959_v47  ;;  %v3962_v53 = vrot.slane %v12893_v10, 7  ;;  %v3715_v14 = vmul.f32 %v12031_v21, %v3640_v27  ;;  %v4190_v3 = vrot.slane %v12721_v63, 1  ;;  %v4196_v26 = vrot.slane %v12747_v55, 1  ;;  %v16529_v47 = vld [vmem:[#allocation49_spill] sm:$0xff] }
 0x515   :  { %v3556_v4 = vadd.f32 1e-05, %v3524_v25  ;;  %5146 = vmatmul.mubr.f32.gmra.mxu0 %v12893_v10  ;;  %v3965_v18 = vsel %vm715_vm7, %v3960_v9, %v3964_v40  ;;  %v12909_v33 = vadd.f32 %v12044_v30, %v3716_v29  ;;  %v3643_v57 = vmul.f32 %v9535_v0, %v16528_v23  ;;  %v16531_v55 = vld [vmem:[#allocation65_spill] sm:$0xff] }
 0x516   :  { %vm16530_vm10 = vnez %v16529_v47  ;;  %v3963_v27 = vsel %vm715_vm7, %v3958_v11, %v3962_v53  ;;  %v12916_v63 = vadd.f32 %v12037_v50, %v3715_v14  ;;  %v3642_v25 = vmul.f32 %v9535_v0, %v16531_v55  ;;  %v16536_v55 = vld [vmem:[#allocation67_spill] sm:$0xff] }
 0x517   :  { %8624 = vmatprep.mubr.msk.f32.mxu1 %vm16530_vm10, %v3965_v18  ;;  %v12920_v22 = vsel %vm16532_vm9, %v4186_v19, %v4190_v3  ;;  %9542 = vrsqrt.f32 %v3556_v4  ;;  %v3525_v9 = vmul.f32 0.00390625, %v3493_v28  ;;  %5151 = vmatprep.mubr.f32.mxu0 %v12909_v33  ;;  %v3968_v29 = vrot.slane %v12909_v33, 7  ;;  %v16535_v18 = vld [vmem:[#allocation68_spill] sm:$0xff]  ;;  %vm16564_vm9 = vmmov %vm16445_vm0 }
 0x518   :  { %v3718_v23 = vmul.f32 %v12034_v45, %v3643_v57  ;;  %v9537_v36 = vpop.eup %9536  ;;  %8626 = vmatmul.mubr.msk.f32.gmra.mxu1 %vm16530_vm10, %v3963_v27  ;;  %v3966_v11 = vrot.slane %v12916_v63, 7  ;;  %v3717_v14 = vmul.f32 %v12031_v21, %v3642_v25  ;;  %v12930_v0 = vsel %vm16533_vm12, %v4192_v2, %v4196_v26  ;;  %vm16560_vm10 = vmmov %vm16445_vm0 }
 0x519   :  { %16534 = vst [vmem:[#allocation98_spill] sm:$0xff] %v12930_v0  ;;  %v3557_v19 = vadd.f32 1e-05, %v3525_v9  ;;  %5152 = vmatmul.mubr.f32.gmra.mxu0 %v12916_v63  ;;  %v3969_v28 = vsel %vm715_vm7, %v3964_v40, %v3968_v29  ;;  %v3645_v57 = vmul.f32 %v9537_v36, %v16535_v18  ;;  %v3644_v25 = vmul.f32 %v9537_v36, %v16536_v55  ;;  %v16539_v55 = vld [vmem:[#allocation69_spill] sm:$0xff]  ;;  %v16540_v0 = vld [vmem:[#allocation50_spill] sm:$0xff]  ;;  %vm16565_vm12 = vmmov %vm16445_vm0 }
 0x51a   :  { %v12935_v4 = vadd.f32 %v12044_v30, %v3718_v23  ;;  %4894 = vmatprep.mubr.f32.mxu1 %v3969_v28  ;;  %v3967_v47 = vsel %vm715_vm7, %v3962_v53, %v3966_v11  ;;  %v12940_v27 = vadd.f32 %v12037_v50, %v3717_v14  ;;  %v4194_v2 = vrot.slane %v12752_v61, 1 }
 0x51b   :  { %9544 = vrsqrt.f32 %v3557_v19  ;;  %v3720_v9 = vmul.f32 %v12034_v45, %v3645_v57  ;;  %v4200_v23 = vrot.slane %v12768_v35, 1  ;;  %v3719_v14 = vmul.f32 %v12031_v21, %v3644_v25  ;;  %v16538_v57 = vld [vmem:[#allocation70_spill] sm:$0xff] }
 0x51c   :  { %5157 = vmatprep.mubr.f32.mxu0 %v12935_v4  ;;  %v3972_v40 = vrot.slane %v12935_v4, 7  ;;  %v9539_v18 = vpop.eup %9538  ;;  %4895 = vmatmul.mubr.f32.gmra.mxu1 %v3967_v47  ;;  %v3970_v53 = vrot.slane %v12940_v27, 7  ;;  %v12951_v28 = vsel %vm16537_vm2, %v4190_v3, %v4194_v2  ;;  %v4198_v36 = vrot.slane %v12775_v43, 1  ;;  %vm16566_vm2 = vmmov %vm16445_vm0 }
 0x51d   :  { %5158 = vmatmul.mubr.f32.gmra.mxu0 %v12940_v27  ;;  %v12957_v19 = vadd.f32 %v12044_v30, %v3720_v9  ;;  %v3647_v35 = vmul.f32 %v9539_v18, %v16538_v57  ;;  %v3646_v47 = vmul.f32 %v9539_v18, %v16539_v55  ;;  %vm16541_vm14 = vnez %v16540_v0  ;;  %v16545_v0 = vld [vmem:[#allocation72_spill] sm:$0xff] }
 0x51e   :  { %v3973_v61 = vsel %vm715_vm7, %v3968_v29, %v3972_v40  ;;  %v3971_v25 = vsel %vm715_vm7, %v3966_v11, %v3970_v53  ;;  %v12965_v3 = vadd.f32 %v12037_v50, %v3719_v14  ;;  %v12968_v43 = vsel %vm16445_vm0, %v4196_v26, %v4200_v23 }
 0x51f   :  { %8628 = vmatprep.mubr.msk.f32.mxu1 %vm16541_vm14, %v3973_v61  ;;  %16542 = vst [vmem:[#allocation83_spill] sm:$0xff] %v12968_v43  ;;  %v12971_v29 = vsel %vm16543_vm6, %v4194_v2, %v4198_v36  ;;  %5163 = vmatprep.mubr.f32.mxu0 %v12957_v19  ;;  %v3976_v9 = vrot.slane %v12957_v19, 7  ;;  %v3722_v18 = vmul.f32 %v12034_v45, %v3647_v35  ;;  %v4204_v61 = vrot.slane %v12793_v5, 1  ;;  %vm16570_vm6 = vmmov %vm16548_vm1 }
 0x520   :  { %16544 = vst [vmem:[#allocation82_spill] sm:$0xff] %v12971_v29  ;;  %v3721_v57 = vmul.f32 %v12031_v21, %v3646_v47  ;;  %v9541_v11 = vpop.eup %9540  ;;  %8630 = vmatmul.mubr.msk.f32.gmra.mxu1 %vm16541_vm14, %v3971_v25  ;;  %v3974_v26 = vrot.slane %v12965_v3, 7  ;;  %v4202_v14 = vrot.slane %v12798_v1, 1  ;;  %v4208_v2 = vrot.slane %v12816_v20, 1  ;;  %v16546_v1 = vld [vmem:[#allocation71_spill] sm:$0xff]  ;;  %vm16567_vm14 = vmmov %vm16445_vm0 }
 0x521   :  { %v4206_v55 = vrot.slane %v12823_v38, 1  ;;  %5164 = vmatmul.mubr.f32.gmra.mxu0 %v12965_v3  ;;  %v3977_v35 = vsel %vm715_vm7, %v3972_v40, %v3976_v9  ;;  %v12987_v47 = vadd.f32 %v12044_v30, %v3722_v18  ;;  %v3649_v25 = vmul.f32 %v9541_v11, %v16545_v0 }
 0x522   :  { %v12990_v5 = vadd.f32 %v12037_v50, %v3721_v57  ;;  %4906 = vmatprep.mubr.f32.mxu1 %v3977_v35  ;;  %v3975_v29 = vsel %vm715_vm7, %v3970_v53, %v3974_v26  ;;  %v3648_v43 = vmul.f32 %v9541_v11, %v16546_v1  ;;  %v12996_v20 = vsel %vm16547_vm13, %v4200_v23, %v4204_v61  ;;  %vm16571_vm13 = vmmov %vm16548_vm1 }
 0x523   :  { %v12999_v38 = vsel %vm16548_vm1, %v4198_v36, %v4202_v14  ;;  %5169 = vmatprep.mubr.f32.mxu0 %v12987_v47  ;;  %v3980_v40 = vrot.slane %v12987_v47, 7  ;;  %v3724_v57 = vmul.f32 %v12034_v45, %v3649_v25  ;;  %v13006_v35 = vsel %vm16550_vm5, %v4204_v61, %v4208_v2  ;;  %vm16572_vm5 = vmmov %vm16548_vm1 }
 0x524   :  { %16549 = vst [vmem:[#allocation99_spill] sm:$0xff] %v12999_v38  ;;  %v3978_v18 = vrot.slane %v12990_v5, 7  ;;  %16551 = vst [vmem:[#allocation85_spill] sm:$0xff] %v13006_v35  ;;  %v9543_v53 = vpop.eup %9542  ;;  %4907 = vmatmul.mubr.f32.gmra.mxu1 %v3975_v29  ;;  %v3723_v11 = vmul.f32 %v12031_v21, %v3648_v43  ;;  %v13010_v23 = vsel %vm16552_vm11, %v4202_v14, %v4206_v55  ;;  %v4212_v36 = vrot.slane %v12841_v13, 1  ;;  %v16554_v35 = vld [vmem:[#allocation74_spill] sm:$0xff]  ;;  %v16555_v38 = vld [vmem:[#allocation51_spill] sm:$0xff] }
 0x525   :  { %16553 = vst [vmem:[#allocation43_spill] sm:$0xff] %v13010_v23  ;;  %v4210_v0 = vrot.slane %v12846_v15, 1  ;;  %5170 = vmatmul.mubr.f32.gmra.mxu0 %v12990_v5  ;;  %v3981_v1 = vsel %vm715_vm7, %v3976_v9, %v3980_v40  ;;  %v13018_v61 = vadd.f32 %v12044_v30, %v3724_v57  ;;  %v3651_v29 = vmul.f32 %v9543_v53, %v16554_v35  ;;  %v16557_v13 = vld [vmem:[#allocation73_spill] sm:$0xff]  ;;  %vm16573_vm11 = vmmov %vm16548_vm1 }
 0x526   :  { %v3979_v25 = vsel %vm715_vm7, %v3974_v26, %v3978_v18  ;;  %vm16556_vm15 = vnez %v16555_v38  ;;  %v13024_v43 = vadd.f32 %v12037_v50, %v3723_v11  ;;  %v3650_v14 = vmul.f32 %v9543_v53, %v16557_v13 }
 0x527   :  { %8632 = vmatprep.mubr.msk.f32.mxu1 %vm16556_vm15, %v3981_v1  ;;  %v13028_v15 = vsel %vm16558_vm4, %v4208_v2, %v4212_v36  ;;  %v13031_v9 = vsel %vm16560_vm10, %v4206_v55, %v4210_v0  ;;  %5175 = vmatprep.mubr.f32.mxu0 %v13018_v61  ;;  %v3984_v26 = vrot.slane %v13018_v61, 7  ;;  %v3726_v57 = vmul.f32 %v12034_v45, %v3651_v29  ;;  %vm16575_vm4 = vmmov %vm16548_vm1 }
 0x528   :  { %16559 = vst [vmem:[#allocation84_spill] sm:$0xff] %v13028_v15  ;;  %16561 = vst [vmem:[#allocation100_spill] sm:$0xff] %v13031_v9  ;;  %v4216_v35 = vrot.slane %v12864_v62, 1  ;;  %v4214_v1 = vrot.slane %v12871_v44, 1  ;;  %v9545_v11 = vpop.eup %9544  ;;  %8634 = vmatmul.mubr.msk.f32.gmra.mxu1 %vm16556_vm15, %v3979_v25  ;;  %v3982_v2 = vrot.slane %v13024_v43, 7  ;;  %v3725_v53 = vmul.f32 %v12031_v21, %v3650_v14  ;;  %v16562_v9 = vld [vmem:[#allocation76_spill] sm:$0xff] }
 0x529   :  { %v4220_v55 = vrot.slane %v12888_v60, 1  ;;  %v4218_v13 = vrot.slane %v12893_v10, 1  ;;  %5176 = vmatmul.mubr.f32.gmra.mxu0 %v13024_v43  ;;  %v3985_v29 = vsel %vm715_vm7, %v3980_v40, %v3984_v26  ;;  %v3801_v62 = vadd.f32 %v12044_v30, %v3726_v57  ;;  %v16563_v15 = vld [vmem:[#allocation75_spill] sm:$0xff]  ;;  %vm16574_vm15 = vmmov %vm16548_vm1 }
 0x52a   :  { %v3653_v44 = vmul.f32 %v9545_v11, %v16562_v9  ;;  %v3652_v23 = vmul.f32 %v9545_v11, %v16563_v15  ;;  %4918 = vmatprep.mubr.f32.mxu1 %v3985_v29  ;;  %v3983_v38 = vsel %vm715_vm7, %v3978_v18, %v3982_v2  ;;  %v3800_v25 = vadd.f32 %v12037_v50, %v3725_v53  ;;  %vm16576_vm10 = vmmov %vm16548_vm1 }
 0x52b   :  { %v13052_v14 = vsel %vm16564_vm9, %v4212_v36, %v4216_v35  ;;  %v13055_v60 = vsel %vm16565_vm12, %v4210_v0, %v4214_v1  ;;  %5181 = vmatprep.mubr.f32.mxu0 %v3801_v62  ;;  %v3988_v10 = vrot.slane %v3801_v62, 7  ;;  %v13060_v9 = vsel %vm16566_vm2, %v4216_v35, %v4220_v55  ;;  %vm16577_vm9 = vmmov %vm16548_vm1 }
 0x52c   :  { %v3728_v40 = vmul.f32 %v12034_v45, %v3653_v44  ;;  %v3727_v57 = vmul.f32 %v12031_v21, %v3652_v23  ;;  %4919 = vmatmul.mubr.f32.gmra.mxu1 %v3983_v38  ;;  %v3986_v15 = vrot.slane %v3800_v25, 7  ;;  %v13063_v18 = vsel %vm16567_vm14, %v4214_v1, %v4218_v13  ;;  %v16568_v23 = vld [vmem:[#allocation52_spill] sm:$0xff]  ;;  %vm16579_vm12 = vmmov %vm16548_vm1 }
 0x52d   :  { %v4224_v36 = vrot.slane %v12909_v33, 1  ;;  %v4222_v11 = vrot.slane %v12916_v63, 1  ;;  %5182 = vmatmul.mubr.f32.gmra.mxu0 %v3800_v25  ;;  %v3989_v0 = vsel %vm715_vm7, %v3984_v26, %v3988_v10  ;;  %v4228_v45 = vrot.slane %v12935_v4, 1  ;;  %vm16580_vm2 = vmmov %vm16548_vm1 }
 0x52e   :  { %v13069_v53 = vadd.f32 %v12044_v30, %v3728_v40  ;;  %v13072_v21 = vadd.f32 %v12037_v50, %v3727_v57  ;;  %vm16569_vm0 = vnez %v16568_v23  ;;  %v3987_v35 = vsel %vm715_vm7, %v3982_v2, %v3986_v15  ;;  %vm16581_vm14 = vmmov %vm16548_vm1 }
 0x52f   :  { %8636 = vmatprep.mubr.msk.f32.mxu1 %vm16569_vm0, %v3989_v0  ;;  %v13079_v33 = vsel %vm16570_vm6, %v4220_v55, %v4224_v36  ;;  %v13082_v63 = vsel %vm16571_vm13, %v4218_v13, %v4222_v11  ;;  %v4226_v26 = vrot.slane %v12940_v27, 1  ;;  %v13089_v4 = vsel %vm16548_vm1, %v4224_v36, %v4228_v45 }
 0x530   :  { %5187 = vmatprep.mubr.f32.mxu0 %v13069_v53  ;;  %v3992_v50 = vrot.slane %v13069_v53, 7  ;;  %v3990_v30 = vrot.slane %v13072_v21, 7  ;;  %v4232_v1 = vrot.slane %v12957_v19, 1  ;;  %8638 = vmatmul.mubr.msk.f32.gmra.mxu1 %vm16569_vm0, %v3987_v35  ;;  %v4230_v55 = vrot.slane %v12965_v3, 1  ;;  %vm16582_vm0 = vmmov %vm16548_vm1 }
 0x531   :  { %v13095_v2 = vsel %vm16572_vm5, %v4222_v11, %v4226_v26  ;;  %v4236_v27 = vrot.slane %v12987_v47, 1  ;;  %v4234_v13 = vrot.slane %v12990_v5, 1  ;;  %5188 = vmatmul.mubr.f32.gmra.mxu0 %v13072_v21  ;;  %v4240_v38 = vrot.slane %v13018_v61, 1 }
 0x532   :  { %v3993_v29 = vsel %vm715_vm7, %v3988_v10, %v3992_v50  ;;  %v3991_v44 = vsel %vm715_vm7, %v3986_v15, %v3990_v30  ;;  %v13104_v19 = vsel %vm16573_vm11, %v4228_v45, %v4232_v1  ;;  %v13108_v40 = vsel %vm16574_vm15, %v4226_v26, %v4230_v55  ;;  %vm16578_vm7 = vmmov %vm16548_vm1  ;;  %v16585_v45 = vld [vmem:[#allocation22_spill] sm:$0xff] }
 0x533   :  { %4930 = vmatprep.mubr.f32.mxu1 %v3993_v29  ;;  %v13111_v3 = vsel %vm16575_vm4, %v4232_v1, %v4236_v27  ;;  %v13114_v47 = vsel %vm16576_vm10, %v4230_v55, %v4234_v13  ;;  %v4238_v5 = vrot.slane %v13024_v43, 1  ;;  %v13118_v10 = vsel %vm16577_vm9, %v4236_v27, %v4240_v38  ;;  %v16611_v30 = vld [vmem:[#allocation98_spill] sm:$0xff] }
 0x534   :  { %v4244_v57 = vrot.slane %v3801_v62, 1  ;;  %v4242_v15 = vrot.slane %v3800_v25, 1  ;;  %v4248_v36 = vrot.slane %v13069_v53, 1  ;;  %4931 = vmatmul.mubr.f32.gmra.mxu1 %v3991_v44  ;;  %v15833_v11 = vrot.slane %v13072_v21, 1  ;;  %v16612_v1 = vld [vmem:[#allocation30_spill] sm:$0xff] }
 0x535   :  { %v13122_v61 = vsel %vm16578_vm7, %v4234_v13, %v4238_v5  ;;  %5258 = vmatprep.mubr.f32.mxu1 %v12228_v34  ;;  %v16583_v34 = vld [vmem:[#allocation21_spill] sm:$0xff]  ;;  %vm16586_vm13 = vnez %v16585_v45  ;;  %vm16613_vm9 = vnez %v16612_v1 }
 0x536   :  { %v13127_v0 = vsel %vm16579_vm12, %v4240_v38, %v4244_v57  ;;  %v13130_v43 = vsel %vm16580_vm2, %v4238_v5, %v4242_v15  ;;  %v13135_v62 = vsel %vm16581_vm14, %v4244_v57, %v4248_v36  ;;  %v13140_v25 = vsel %vm16582_vm0, %v4242_v15, %v15833_v11  ;;  %v16614_v57 = vld [vmem:[#allocation83_spill] sm:$0xff]  ;;  %v16623_v1 = vld [vmem:[#allocation33_spill] sm:$0xff] }
 0x537   :  { %vm16584_vm6 = vnez %v16583_v34  ;;  %vm16624_vm12 = vnez %v16623_v1 }
 0x538   :  { %5259 = vmatmul.mubr.f32.vlgmr.msra.gmra.mxu1 %v12263_v46  ;;  %v16587_v46 = vld [vmem:[#allocation23_spill] sm:$0xff] }
 0x539   :  { %8640 = vmatprep.mubr.msk.f32.mxu1 %vm16584_vm6, %v12268_v39  ;;  %vm16588_vm1 = vnez %v16587_v46  ;;  %v16589_v39 = vld [vmem:[#allocation24_spill] sm:$0xff] }
 0x53a   :  { %vm16590_vm5 = vnez %v16589_v39 }
 0x53c   :  { %8642 = vmatmul.mubr.msk.f32.gmra.mxu1 %vm16584_vm6, %v12298_v59  ;;  %v16591_v59 = vld [vmem:[#allocation25_spill] sm:$0xff]  ;;  %vm16642_vm6 = vcmask 1046528  }
 0x53d   :  { %5270 = vmatprep.mubr.f32.mxu1 %v12333_v12  ;;  %vm16592_vm11 = vnez %v16591_v59  ;;  %v16593_v12 = vld [vmem:[#allocation26_spill] sm:$0xff] }
 0x53e   :  { %vm16594_vm15 = vnez %v16593_v12  ;;  %v16615_v59 = vld [vmem:[#allocation82_spill] sm:$0xff] }
 0x540   :  { %5271 = vmatmul.mubr.f32.gmra.mxu1 %v12338_v16  ;;  %v16595_v16 = vld [vmem:[#allocation28_spill] sm:$0xff] }
 0x541   :  { %8644 = vmatprep.mubr.msk.f32.mxu1 %vm16586_vm13, %v12366_v6  ;;  %v16596_v6 = vld [vmem:[#allocation31_spill] sm:$0xff] }
 0x544   :  { %8646 = vmatmul.mubr.msk.f32.gmra.mxu1 %vm16586_vm13, %v12401_v42  ;;  %v16597_v42 = vld [vmem:[#allocation34_spill] sm:$0xff] }
 0x545   :  { %5282 = vmatprep.mubr.f32.mxu1 %v12406_v56  ;;  %v16598_v56 = vld [vmem:[#allocation79_spill] sm:$0xff] }
 0x548   :  { %5283 = vmatmul.mubr.f32.gmra.mxu1 %v12434_v31  ;;  %v16599_v31 = vld [vmem:[#allocation27_spill] sm:$0xff] }
 0x549   :  { %8648 = vmatprep.mubr.msk.f32.mxu1 %vm16588_vm1, %v12469_v24  ;;  %vm16600_vm4 = vnez %v16599_v31  ;;  %v16601_v24 = vld [vmem:[#allocation37_spill] sm:$0xff] }
 0x54c   :  { %8650 = vmatmul.mubr.msk.f32.gmra.mxu1 %vm16588_vm1, %v12474_v58  ;;  %v16602_v58 = vld [vmem:[#allocation80_spill] sm:$0xff] }
 0x54d   :  { %5294 = vmatprep.mubr.f32.mxu1 %v12502_v48  ;;  %v16603_v48 = vld [vmem:[#allocation40_spill] sm:$0xff] }
 0x550   :  { %5295 = vmatmul.mubr.f32.gmra.mxu1 %v12537_v41  ;;  %v16604_v41 = vld [vmem:[#allocation42_spill] sm:$0xff] }
 0x551   :  { %8652 = vmatprep.mubr.msk.f32.mxu1 %vm16590_vm5, %v12542_v8  ;;  %v16605_v8 = vld [vmem:[#allocation29_spill] sm:$0xff] }
 0x552   :  { %vm16606_vm10 = vnez %v16605_v8 }
 0x554   :  { %8654 = vmatmul.mubr.msk.f32.gmra.mxu1 %vm16590_vm5, %v12570_v7  ;;  %v4668_v7 = vld [vmem:[%s15507_s10] sm:$0x3] }
 0x555   :  { %5306 = vmatprep.mubr.f32.mxu1 %v12605_v37  ;;  %v16607_v37 = vld [vmem:[#allocation81_spill] sm:$0xff] }
 0x558   :  { %5307 = vmatmul.mubr.f32.gmra.mxu1 %v12610_v49 }
 0x559   :  { %8656 = vmatprep.mubr.msk.f32.mxu1 %vm16592_vm11, %v12638_v52  ;;  %v16608_v52 = vld [vmem:[#allocation20_spill] sm:$0xff] }
 0x55c   :  { %8658 = vmatmul.mubr.msk.f32.gmra.mxu1 %vm16592_vm11, %v12673_v17  ;;  %v13209_v17 = vrot.slane %v4668_v7, %v16608_v52 }
 0x55d   :  { %5318 = vmatprep.mubr.f32.mxu1 %v12678_v51  ;;  %v16609_v51 = vld [vmem:[#allocation97_spill] sm:$0xff] }
 0x560   :  { %5319 = vmatmul.mubr.f32.gmra.mxu1 %v12706_v54 }
 0x561   :  { %8660 = vmatprep.mubr.msk.f32.mxu1 %vm16594_vm15, %v12739_v32  ;;  %v16610_v32 = vld [vmem:[#allocation53_spill] sm:$0xff] }
 0x562   :  { %v13213_v23 = vrot.slane %v4668_v7, %v16610_v32  ;;  %v16619_v7 = vld [vmem:[#allocation85_spill] sm:$0xff]  ;;  %v16644_v32 = vrot.slane %v13072_v21, 1 }
 0x564   :  { %8662 = vmatmul.mubr.msk.f32.gmra.mxu1 %vm16594_vm15, %v16595_v16  ;;  %v5003_v49 = vpop.f32.mrf.mxu0 }
 0x565   :  { %5330 = vmatprep.mubr.f32.mxu1 %v16596_v6 }
 0x566   :  { %v5005_v54 = vpop.f32.mrf.mxu0 }
 0x567   :  { %v4746_v35 = vpop.f32.mrf.mxu1 }
 0x568   :  { %5331 = vmatmul.mubr.f32.gmra.mxu1 %v16597_v42  ;;  %v4747_v26 = vadd.f32 %v4746_v35, %v13209_v17  ;;  %v5009_v50 = vpop.f32.mrf.mxu0 }
 0x569   :  { %8664 = vmatprep.mubr.msk.f32.mxu1 %vm16600_vm4, %v16598_v56  ;;  %v4748_v55 = vpop.f32.mrf.mxu1 }
 0x56a   :  { %v4749_v27 = vadd.f32 %v4748_v55, %v13213_v23  ;;  %v13221_v13 = vadd.f32 %v5003_v49, %v4747_v26  ;;  %v5011_v29 = vpop.f32.mrf.mxu0  ;;  %v16620_v26 = vld [vmem:[#allocation43_spill] sm:$0xff] }
 0x56c   :  { %8666 = vmatmul.mubr.msk.f32.gmra.mxu1 %vm16600_vm4, %v16601_v24  ;;  %v13226_v38 = vadd.f32 %v5005_v54, %v4749_v27 }
 0x56d   :  { %5342 = vmatprep.mubr.f32.mxu1 %v16602_v58  ;;  %v5015_v5 = vpop.f32.mrf.mxu0 }
 0x56e   :  { %v4752_v44 = vpop.f32.mrf.mxu1 }
 0x56f   :  { %v5017_v45 = vpop.f32.mrf.mxu0 }
 0x570   :  { %5343 = vmatmul.mubr.f32.gmra.mxu1 %v16603_v48  ;;  %v4754_v15 = vpop.f32.mrf.mxu1  ;;  %v16618_v48 = vld [vmem:[#allocation99_spill] sm:$0xff] }
 0x571   :  { %8668 = vmatprep.mubr.msk.f32.mxu1 %vm16606_vm10, %v16604_v41  ;;  %v4755_v34 = vadd.f32 %v4754_v15, %v13213_v23  ;;  %v5021_v16 = vpop.f32.mrf.mxu0 }
 0x572   :  { %v4758_v39 = vpop.f32.mrf.mxu1 }
 0x573   :  { %v4759_v12 = vadd.f32 %v4758_v39, %v13209_v17  ;;  %v13238_v6 = vadd.f32 %v5011_v29, %v4755_v34  ;;  %v5023_v31 = vpop.f32.mrf.mxu0  ;;  %v16628_v39 = vld [vmem:[#allocation35_spill] sm:$0xff] }
 0x574   :  { %8670 = vmatmul.mubr.msk.f32.gmra.mxu1 %vm16606_vm10, %v16607_v37  ;;  %v4760_v42 = vpop.f32.mrf.mxu1  ;;  %vm16629_vm2 = vnez %v16628_v39 }
 0x575   :  { %5354 = vmatprep.mubr.f32.mxu1 %v16609_v51  ;;  %v4761_v56 = vadd.f32 %v4760_v42, %v13213_v23  ;;  %v13241_v24 = vadd.f32 %v5015_v5, %v4759_v12 }
 0x576   :  { %v13247_v8 = vpop.f32.mrf.mxu0 }
 0x577   :  { %v4764_v58 = vpop.f32.mrf.mxu1 }
 0x578   :  { %5355 = vmatmul.mubr.f32.gmra.mxu1 %v12920_v22  ;;  %v4753_v22 = vadd.f32 %v4752_v44, %v13209_v17  ;;  %v4765_v41 = vadd.f32 %v4764_v58, %v13209_v17  ;;  %v13253_v51 = vpop.f32.mrf.mxu0 }
 0x579   :  { %8672 = vmatprep.mubr.msk.f32.mxu1 %vm16613_vm9, %v16611_v30  ;;  %v4766_v37 = vpop.f32.mrf.mxu1  ;;  %v16622_v30 = vld [vmem:[#allocation84_spill] sm:$0xff] }
 0x57a   :  { %v13231_v46 = vadd.f32 %v5009_v50, %v4753_v22  ;;  %v4767_v49 = vadd.f32 %v4766_v37, %v13213_v23  ;;  %v13255_v54 = vadd.f32 %v5021_v16, %v4765_v41  ;;  %v16626_v22 = vld [vmem:[#allocation100_spill] sm:$0xff] }
 0x57c   :  { %8674 = vmatmul.mubr.msk.f32.gmra.mxu1 %vm16613_vm9, %v12951_v28  ;;  %v16616_v28 = vld [vmem:[#allocation32_spill] sm:$0xff]  ;;  %v13257_v35 = vpop.f32.mrf.mxu1  ;;  %v13265_v55 = vadd.f32 %v5023_v31, %v4767_v49 }
 0x57d   :  { %5366 = vmatprep.mubr.f32.mxu1 %v16614_v57  ;;  %vm16617_vm7 = vnez %v16616_v28  ;;  %v13260_v50 = vpop.f32.mrf.mxu0 }
 0x57e   :  { %16621 = vst [vmem:[#allocation101_spill] sm:$0xff] %v13260_v50  ;;  %v13267_v27 = vpop.f32.mrf.mxu1 }
 0x57f   :  { %v13269_v29 = vpop.f32.mrf.mxu0 }
 0x580   :  { %5367 = vmatmul.mubr.f32.gmra.mxu1 %v16615_v59  ;;  %16625 = vst [vmem:[#allocation87_spill] sm:$0xff] %v13269_v29 }
 0x581   :  { %8676 = vmatprep.mubr.msk.f32.mxu1 %vm16617_vm7, %v12996_v20  ;;  %v13250_v20 = vadd.f32 %v5017_v45, %v4761_v56  ;;  %v13271_v44 = vpop.f32.mrf.mxu1  ;;  %v16632_v56 = vld [vmem:[#allocation36_spill] sm:$0xff] }
 0x582   :  { %v13276_v5 = vpop.f32.mrf.mxu0  ;;  %vm16633_vm14 = vnez %v16632_v56 }
 0x583   :  { %v13279_v57 = vpop.f32.mrf.mxu1 }
 0x584   :  { %8678 = vmatmul.mubr.msk.f32.gmra.mxu1 %vm16617_vm7, %v16618_v48  ;;  %v13281_v15 = vpop.f32.mrf.mxu0 }
 0x585   :  { %5378 = vmatprep.mubr.f32.mxu1 %v16619_v7  ;;  %v16636_v7 = vld [vmem:[#allocation38_spill] sm:$0xff] }
 0x586   :  { %v13283_v34 = vpop.f32.mrf.mxu1  ;;  %vm16637_vm0 = vnez %v16636_v7 }
 0x587   :  { %v13286_v45 = vpop.f32.mrf.mxu0 }
 0x588   :  { %5379 = vmatmul.mubr.f32.gmra.mxu1 %v16620_v26  ;;  %16627 = vst [vmem:[#allocation86_spill] sm:$0xff] %v13286_v45  ;;  %v13291_v59 = vpop.f32.mrf.mxu1 }
 0x589   :  { %8680 = vmatprep.mubr.msk.f32.mxu1 %vm16624_vm12, %v16622_v30  ;;  %v13293_v12 = vpop.f32.mrf.mxu0 }
 0x58a   :  { %16630 = vst [vmem:[#allocation102_spill] sm:$0xff] %v13293_v12 }
 0x58b   :  { %v13295_v16 = vpop.f32.mrf.mxu1 }
 0x58c   :  { %8682 = vmatmul.mubr.msk.f32.gmra.mxu1 %vm16624_vm12, %v16626_v22 }
 0x58d   :  { %5390 = vmatprep.mubr.f32.mxu1 %v13052_v14  ;;  %v13300_v14 = vpop.f32.mrf.mxu0 }
 0x58f   :  { %v13305_v28 = vpop.f32.mrf.mxu0 }
 0x590   :  { %5391 = vmatmul.mubr.f32.gmra.mxu1 %v13055_v60  ;;  %v13303_v60 = vpop.f32.mrf.mxu1 }
 0x591   :  { %8684 = vmatprep.mubr.msk.f32.mxu1 %vm16629_vm2, %v13060_v9  ;;  %v13310_v9 = vpop.f32.mrf.mxu0 }
 0x592   :  { %v13307_v42 = vpop.f32.mrf.mxu1  ;;  %16631 = vst [vmem:[#allocation89_spill] sm:$0xff] %v13310_v9 }
 0x594   :  { %8686 = vmatmul.mubr.msk.f32.gmra.mxu1 %vm16629_vm2, %v13063_v18  ;;  %v13315_v31 = vpop.f32.mrf.mxu1  ;;  %v13317_v18 = vpop.f32.mrf.mxu0 }
 0x595   :  { %5402 = vmatprep.mubr.f32.mxu1 %v13079_v33  ;;  %16634 = vst [vmem:[#allocation44_spill] sm:$0xff] %v13317_v18 }
 0x596   :  { %v13319_v58 = vpop.f32.mrf.mxu1  ;;  %v13324_v33 = vpop.f32.mrf.mxu0 }
 0x598   :  { %5403 = vmatmul.mubr.f32.gmra.mxu1 %v13082_v63  ;;  %v13327_v63 = vpop.f32.mrf.mxu1  ;;  %v13329_v48 = vpop.f32.mrf.mxu0 }
 0x599   :  { %8688 = vmatprep.mubr.msk.f32.mxu1 %vm16633_vm14, %v13089_v4 }
 0x59a   :  { %v13331_v41 = vpop.f32.mrf.mxu1 }
 0x59b   :  { %v13334_v4 = vpop.f32.mrf.mxu0 }
 0x59c   :  { %8690 = vmatmul.mubr.msk.f32.gmra.mxu1 %vm16633_vm14, %v13095_v2  ;;  %16635 = vst [vmem:[#allocation88_spill] sm:$0xff] %v13334_v4  ;;  %v13339_v37 = vpop.f32.mrf.mxu1 }
 0x59d   :  { %5414 = vmatprep.mubr.f32.mxu1 %v13104_v19  ;;  %v13341_v2 = vpop.f32.mrf.mxu0 }
 0x59e   :  { %16638 = vst [vmem:[#allocation77_spill] sm:$0xff] %v13341_v2 }
 0x59f   :  { %v13343_v49 = vpop.f32.mrf.mxu1 }
 0x5a0   :  { %5415 = vmatmul.mubr.f32.gmra.mxu1 %v13108_v40  ;;  %16639 = vst [vmem:[#allocation78_spill] sm:$0xff] %v13343_v49  ;;  %v13348_v19 = vpop.f32.mrf.mxu0 }
 0x5a1   :  { %8692 = vmatprep.mubr.msk.f32.mxu1 %vm16637_vm0, %v13111_v3  ;;  %v13351_v40 = vpop.f32.mrf.mxu1 }
 0x5a2   :  { %v13353_v26 = vpop.f32.mrf.mxu0 }
 0x5a4   :  { %8694 = vmatmul.mubr.msk.f32.gmra.mxu1 %vm16637_vm0, %v13114_v47  ;;  %v13355_v30 = vpop.f32.mrf.mxu1 }
 0x5a5   :  { %5426 = vmatprep.mubr.f32.mxu1 %v13118_v10  ;;  %v13358_v3 = vpop.f32.mrf.mxu0 }
 0x5a6   :  { %16640 = vst [vmem:[#allocation91_spill] sm:$0xff] %v13358_v3  ;;  %v13363_v22 = vpop.f32.mrf.mxu1 }
 0x5a7   :  { %v13365_v47 = vpop.f32.mrf.mxu0 }
 0x5a8   :  { %5427 = vmatmul.mubr.f32.gmra.mxu1 %v13122_v61 }
 0x5a9   :  { %8696 = vmatprep.mubr.msk.f32.mxu1 %vm16196_vm8, %v13127_v0  ;;  %v13367_v39 = vpop.f32.mrf.mxu1  ;;  %v4315_v0 = vsel %vm16642_vm6, %v4248_v36, 0.0 }
 0x5aa   :  { %v13372_v10 = vpop.f32.mrf.mxu0 }
 0x5ab   :  { %v13375_v61 = vpop.f32.mrf.mxu1 }
 0x5ac   :  { %8698 = vmatmul.mubr.msk.f32.gmra.mxu1 %vm16196_vm8, %v13130_v43  ;;  %v13377_v56 = vpop.f32.mrf.mxu0  ;;  %vm16645_vm8 = vmmov %vm16642_vm6 }
 0x5ad   :  { %5438 = vmatprep.mubr.f32.mxu1 %v13135_v62  ;;  %v4314_v52 = vsel %vm16645_vm8, %v16644_v32, 0.0 }
 0x5ae   :  { %v13379_v7 = vpop.f32.mrf.mxu1 }
 0x5af   :  { %v13385_v11 = vpop.f32.mrf.mxu0 }
 0x5b0   :  { %5439 = vmatmul.mubr.f32.gmra.mxu1 %v13140_v25  ;;  %v13389_v43 = vpop.f32.mrf.mxu1 }
 0x5b1   :  { %8700 = vmatprep.mubr.msk.f32.mxu1 %vm16199_vm3, %v4315_v0  ;;  %v13391_v62 = vpop.f32.mrf.mxu0 }
 0x5b3   :  { %v13396_v50 = vpop.f32.mrf.mxu1 }
 0x5b4   :  { %8702 = vmatmul.mubr.msk.f32.gmra.mxu1 %vm16199_vm3, %v4314_v52  ;;  %v5099_v53 = vpop.f32.mrf.mxu0  ;;  %vm6521_vm3 = vcmask 130048  }
 0x5b5   :  { %v13400_v36 = vpop.f32.mrf.mxu1 }
 0x5b6   :  { %v13402_v25 = vpop.f32.mrf.mxu0 }
 0x5b7   :  { %16646 = vst [vmem:[#allocation90_spill] sm:$0xff] %v13402_v25 }
 0x5b8   :  { %v4842_v29 = vpop.f32.mrf.mxu1 }
 0x5b9   :  { %v4843_v0 = vadd.f32 %v4842_v29, %v13209_v17  ;;  %v5105_v45 = vpop.f32.mrf.mxu0 }
 0x5ba   :  { %v13405_v12 = vpop.f32.mrf.mxu1 }
 0x5bb   :  { %v13407_v9 = vpop.f32.mrf.mxu0  ;;  %v13409_v21 = vadd.f32 %v5099_v53, %v4843_v0 }
 0x5bc   :  { %16647 = vst [vmem:[#allocation103_spill] sm:$0xff] %v13407_v9  ;;  %v4848_v32 = vpop.f32.mrf.mxu1 }
 0x5bd   :  { %16648 = vst [vmem:[#allocation104_spill] sm:$0xff] %v13409_v21  ;;  %v4849_v18 = vadd.f32 %v4848_v32, %v13209_v17  ;;  %v5111_v1 = vpop.f32.mrf.mxu0 }
 0x5be   :  { %v13412_v52 = vpop.f32.mrf.mxu1 }
 0x5bf   :  { %16649 = vst [vmem:[#allocation93_spill] sm:$0xff] %v13412_v52  ;;  %v13414_v4 = vadd.f32 %v5105_v45, %v4849_v18  ;;  %v13417_v2 = vpop.f32.mrf.mxu0 }
 0x5c0   :  { %v4854_v3 = vpop.f32.mrf.mxu1  ;;  %16650 = vst [vmem:[#allocation45_spill] sm:$0xff] %v13417_v2 }
 0x5c1   :  { %v4855_v25 = vadd.f32 %v4854_v3, %v13209_v17  ;;  %v5117_v0 = vpop.f32.mrf.mxu0 }
 0x5c2   :  { %v13419_v29 = vpop.f32.mrf.mxu1 }
 0x5c3   :  { %v13421_v49 = vadd.f32 %v5111_v1, %v4855_v25 }
 0x5c4   :  { %v4860_v9 = vpop.f32.mrf.mxu1 }
 0x5c5   :  { %16651 = vst [vmem:[#allocation92_spill] sm:$0xff] %v13421_v49  ;;  %v4861_v53 = vadd.f32 %v4860_v9, %v13209_v17 }
 0x5c6   :  { %v13424_v21 = vpop.f32.mrf.mxu1 }
 0x5c7   :  { %v13426_v32 = vadd.f32 %v5117_v0, %v4861_v53 }
 0x5c8   :  { %v13428_v52 = vpop.f32.mrf.mxu1 }
 0x5c9   :  { %16652 = vst [vmem:[#allocation95_spill] sm:$0xff] %v13426_v32  ;;  %16653 = vst [vmem:[#allocation94_spill] sm:$0xff] %v13428_v52  ;;  %v4773_v32 = vadd.f32 %v13267_v27, %v13213_v23  ;;  %v4797_v27 = vadd.f32 %v13315_v31, %v13213_v23 }
 0x5ca   :  { %v13430_v45 = vpop.f32.mrf.mxu1 }
 0x5cb   :  { %16654 = vst [vmem:[#allocation54_spill] sm:$0xff] %v13430_v45 }
 0x5cc   :  { %v13432_v18 = vpop.f32.mrf.mxu1 }
 0x5cd   :  { %16655 = vst [vmem:[#allocation46_spill] sm:$0xff] %v13432_v18 }
 0x5ce   :  { %v13434_v3 = vpop.f32.mrf.mxu1 }
 0x5cf   :  { %16656 = vst [vmem:[#allocation96_spill] sm:$0xff] %v13434_v3 }
 0x5d0   :  { %v13436_v2 = vpop.f32.mrf.mxu1 }
 0x5d1   :  { %16657 = vst [vmem:[#allocation56_spill] sm:$0xff] %v13436_v2 }
 0x5d2   :  { %v13438_v25 = vpop.f32.mrf.mxu1 }
 0x5d3   :  { %16658 = vst [vmem:[#allocation55_spill] sm:$0xff] %v13438_v25 }
 0x5d4   :  { %v13440_v1 = vpop.f32.mrf.mxu1 }
 0x5d5   :  { %16659 = vst [vmem:[#allocation58_spill] sm:$0xff] %v13440_v1 }
 0x5d6   :  { %v13442_v9 = vpop.f32.mrf.mxu1 }
 0x5d7   :  { %16660 = vst [vmem:[#allocation47_spill] sm:$0xff] %v13442_v9 }
 0x5d8   :  { %v13444_v49 = vpop.f32.mrf.mxu1 }
 0x5d9   :  { %16661 = vst [vmem:[#allocation57_spill] sm:$0xff] %v13444_v49 }
 0x5da   :  { %v13446_v53 = vpop.f32.mrf.mxu1 }
 0x5db   :  { %16662 = vst [vmem:[#allocation60_spill] sm:$0xff] %v13446_v53 }
 0x5dc   :  { %v13448_v0 = vpop.f32.mrf.mxu1 }
 0x5dd   :  { %16663 = vst [vmem:[#allocation59_spill] sm:$0xff] %v13448_v0 }
 0x5de   :  { %v13450_v52 = vpop.f32.mrf.mxu1 }
 0x5df   :  { %16664 = vst [vmem:[#allocation62_spill] sm:$0xff] %v13450_v52 }
 0x5e0   :  { %v13452_v45 = vpop.f32.mrf.mxu1 }
 0x5e1   :  { %16665 = vst [vmem:[#allocation48_spill] sm:$0xff] %v13452_v45 }
 0x5e2   :  { %v13454_v18 = vpop.f32.mrf.mxu1 }
 0x5e3   :  { %16666 = vst [vmem:[#allocation61_spill] sm:$0xff] %v13454_v18 }
 0x5e4   :  { %v13456_v3 = vpop.f32.mrf.mxu1 }
 0x5e5   :  { %16667 = vst [vmem:[#allocation64_spill] sm:$0xff] %v13456_v3 }
 0x5e6   :  { %v13458_v2 = vpop.f32.mrf.mxu1 }
 0x5e7   :  { %16668 = vst [vmem:[#allocation63_spill] sm:$0xff] %v13458_v2 }
 0x5e8   :  { %v13460_v25 = vpop.f32.mrf.mxu1 }
 0x5e9   :  { %16669 = vst [vmem:[#allocation66_spill] sm:$0xff] %v13460_v25 }
 0x5ea   :  { %v13462_v1 = vpop.f32.mrf.mxu1 }
 0x5eb   :  { %16670 = vst [vmem:[#allocation49_spill] sm:$0xff] %v13462_v1 }
 0x5ec   :  { %v13464_v9 = vpop.f32.mrf.mxu1 }
 0x5ed   :  { %16671 = vst [vmem:[#allocation65_spill] sm:$0xff] %v13464_v9 }
 0x5ee   :  { %v13466_v49 = vpop.f32.mrf.mxu1 }
 0x5ef   :  { %16672 = vst [vmem:[#allocation68_spill] sm:$0xff] %v13466_v49 }
 0x5f0   :  { %v13468_v53 = vpop.f32.mrf.mxu1 }
 0x5f1   :  { %16673 = vst [vmem:[#allocation67_spill] sm:$0xff] %v13468_v53 }
 0x5f2   :  { %v13470_v0 = vpop.f32.mrf.mxu1 }
 0x5f3   :  { %16674 = vst [vmem:[#allocation70_spill] sm:$0xff] %v13470_v0 }
 0x5f4   :  { %v13472_v52 = vpop.f32.mrf.mxu1 }
 0x5f5   :  { %16675 = vst [vmem:[#allocation69_spill] sm:$0xff] %v13472_v52 }
 0x5f6   :  { %v13474_v45 = vpop.f32.mrf.mxu1 }
 0x5f7   :  { %16676 = vst [vmem:[#allocation50_spill] sm:$0xff] %v13474_v45 }
 0x5f8   :  { %v5260_v18 = vpop.f32.mrf.mxu1 }
 0x5f9   :  { %v13477_v3 = vadd.f32 %v5260_v18, %v13221_v13 }
 0x5fa   :  { %v5262_v2 = vpop.f32.mrf.mxu1 }
 0x5fb   :  { %16677 = vst [vmem:[#allocation72_spill] sm:$0xff] %v13477_v3  ;;  %v13480_v25 = vadd.f32 %v5262_v2, %v13226_v38 }
 0x5fc   :  { %v5266_v1 = vpop.f32.mrf.mxu1 }
 0x5fd   :  { %16678 = vst [vmem:[#allocation71_spill] sm:$0xff] %v13480_v25  ;;  %v13483_v9 = vadd.f32 %v5266_v1, %v13231_v46 }
 0x5fe   :  { %v5268_v49 = vpop.f32.mrf.mxu1 }
 0x5ff   :  { %16679 = vst [vmem:[#allocation74_spill] sm:$0xff] %v13483_v9  ;;  %v13486_v53 = vadd.f32 %v5268_v49, %v13238_v6 }
 0x600   :  { %v5272_v0 = vpop.f32.mrf.mxu1 }
 0x601   :  { %16680 = vst [vmem:[#allocation51_spill] sm:$0xff] %v13486_v53  ;;  %v13489_v52 = vadd.f32 %v5272_v0, %v13241_v24 }
 0x602   :  { %v5274_v45 = vpop.f32.mrf.mxu1 }
 0x603   :  { %16681 = vst [vmem:[#allocation73_spill] sm:$0xff] %v13489_v52  ;;  %v13492_v13 = vadd.f32 %v5274_v45, %v13250_v20  ;;  %v13512_v45 = vpop.f32.mrf.mxu0 }
 0x604   :  { %v5278_v18 = vpop.f32.mrf.mxu1  ;;  %16689 = vst [vmem:[#allocation25_spill] sm:$0xff] %v13512_v45  ;;  %v4785_v45 = vadd.f32 %v13291_v59, %v13213_v23  ;;  %v13566_v59 = vadd.f32 %v13253_v51, %v4773_v32  ;;  %v13585_v51 = vadd.f32 %v13303_v60, %v13213_v23 }
 0x605   :  { %16682 = vst [vmem:[#allocation76_spill] sm:$0xff] %v13492_v13  ;;  %v13495_v38 = vadd.f32 %v5278_v18, %v13255_v54 }
 0x606   :  { %v5280_v2 = vpop.f32.mrf.mxu1  ;;  %v13590_v31 = vadd.f32 %v13281_v15, %v4785_v45  ;;  %v4809_v15 = vadd.f32 %v13339_v37, %v13213_v23  ;;  %v4815_v37 = vadd.f32 %v13351_v40, %v13213_v23 }
 0x607   :  { %16683 = vst [vmem:[#allocation75_spill] sm:$0xff] %v13495_v38  ;;  %v13498_v46 = vadd.f32 %v5280_v2, %v13265_v55  ;;  %v13518_v55 = vpop.f32.mrf.mxu0 }
 0x608   :  { %v13500_v1 = vpop.f32.mrf.mxu1  ;;  %16692 = vst [vmem:[#allocation31_spill] sm:$0xff] %v13518_v55  ;;  %v5066_v40 = vadd.f32 %v13329_v48, %v4809_v15 }
 0x609   :  { %16684 = vst [vmem:[#allocation52_spill] sm:$0xff] %v13498_v46  ;;  %16685 = vst [vmem:[#allocation21_spill] sm:$0xff] %v13500_v1  ;;  %v13524_v53 = vpop.f32.mrf.mxu0  ;;  %v4795_v1 = vadd.f32 %v13307_v42, %v13209_v17  ;;  %v13570_v42 = vadd.f32 %v13279_v57, %v13213_v23  ;;  %v4819_v57 = vadd.f32 %v13355_v30, %v13209_v17 }
 0x60a   :  { %v13502_v6 = vpop.f32.mrf.mxu1  ;;  %16693 = vst [vmem:[#allocation34_spill] sm:$0xff] %v13524_v53  ;;  %v4771_v53 = vadd.f32 %v13257_v35, %v13209_v17  ;;  %v13558_v35 = vadd.f32 %v13271_v44, %v13209_v17  ;;  %v4833_v44 = vadd.f32 %v13389_v43, %v13213_v23  ;;  %v4807_v43 = vadd.f32 %v13331_v41, %v13209_v17 }
 0x60b   :  { %16686 = vst [vmem:[#allocation22_spill] sm:$0xff] %v13502_v6  ;;  %v13530_v46 = vpop.f32.mrf.mxu0  ;;  %v4827_v30 = vadd.f32 %v13375_v61, %v13213_v23  ;;  %v5054_v41 = vadd.f32 %v13305_v28, %v4797_v27  ;;  %v4825_v61 = vadd.f32 %v13367_v39, %v13209_v17  ;;  %v5076_v28 = vadd.f32 %v13348_v19, %v4819_v57 }
 0x60c   :  { %v13504_v49 = vpop.f32.mrf.mxu1  ;;  %16694 = vst [vmem:[#allocation79_spill] sm:$0xff] %v13530_v46  ;;  %v4783_v46 = vadd.f32 %v13283_v34, %v13209_v17  ;;  %v13563_v34 = vadd.f32 %v13247_v8, %v4771_v53  ;;  %v13581_v8 = vadd.f32 %v13295_v16, %v13209_v17  ;;  %v5052_v16 = vadd.f32 %v13300_v14, %v4795_v1 }
 0x60d   :  { %16687 = vst [vmem:[#allocation23_spill] sm:$0xff] %v13504_v49  ;;  %v13534_v13 = vpop.f32.mrf.mxu0  ;;  %v13602_v53 = vadd.f32 %v13319_v58, %v13209_v17  ;;  %v4803_v58 = vadd.f32 %v13327_v63, %v13213_v23  ;;  %v4845_v63 = vadd.f32 %v13405_v12, %v13213_v23  ;;  %v5084_v19 = vadd.f32 %v13365_v47, %v4827_v30  ;;  %v16705_v12 = vld [vmem:[#allocation77_spill] sm:$0xff] }
 0x60e   :  { %v13506_v24 = vpop.f32.mrf.mxu1  ;;  %16695 = vst [vmem:[#allocation27_spill] sm:$0xff] %v13534_v13  ;;  %v5072_v48 = vadd.f32 %v16705_v12, %v4815_v37 }
 0x60f   :  { %16688 = vst [vmem:[#allocation24_spill] sm:$0xff] %v13506_v24  ;;  %v13540_v24 = vpop.f32.mrf.mxu0 }
 0x610   :  { %v13508_v0 = vpop.f32.mrf.mxu1  ;;  %16696 = vst [vmem:[#allocation37_spill] sm:$0xff] %v13540_v24  ;;  %v4831_v24 = vadd.f32 %v13379_v7, %v13209_v17  ;;  %v4821_v7 = vadd.f32 %v13363_v22, %v13213_v23 }
 0x612   :  { %v13510_v20 = vpop.f32.mrf.mxu1  ;;  %v5088_v60 = vadd.f32 %v13372_v10, %v4831_v24  ;;  %v5078_v14 = vadd.f32 %v13353_v26, %v4821_v7  ;;  %v5090_v10 = vadd.f32 %v13377_v56, %v4833_v44  ;;  %v5064_v26 = vadd.f32 %v13324_v33, %v4807_v43 }
 0x614   :  { %v13514_v54 = vpop.f32.mrf.mxu1 }
 0x615   :  { %16690 = vst [vmem:[#allocation26_spill] sm:$0xff] %v13514_v54 }
 0x616   :  { %v13516_v18 = vpop.f32.mrf.mxu1 }
 0x617   :  { %16691 = vst [vmem:[#allocation28_spill] sm:$0xff] %v13516_v18  ;;  %v13554_v18 = vpop.f32.mrf.mxu0 }
 0x618   :  { %v13520_v2 = vpop.f32.mrf.mxu1  ;;  %16697 = vst [vmem:[#allocation80_spill] sm:$0xff] %v13554_v18  ;;  %v13577_v18 = vadd.f32 %v13276_v5, %v4783_v46  ;;  %v4837_v5 = vadd.f32 %v13396_v50, %v13209_v17  ;;  %v4839_v50 = vadd.f32 %v13400_v36, %v13213_v23 }
 0x619   :  { %v13596_v32 = vpop.f32.mrf.mxu0 }
 0x61a   :  { %v13522_v9 = vpop.f32.mrf.mxu1  ;;  %v5094_v56 = vadd.f32 %v13385_v11, %v4837_v5  ;;  %v5096_v57 = vadd.f32 %v13391_v62, %v4839_v50  ;;  %v16703_v11 = vld [vmem:[#allocation78_spill] sm:$0xff] }
 0x61b   :  { %v13622_v45 = vpop.f32.mrf.mxu0  ;;  %v4813_v43 = vadd.f32 %v16703_v11, %v13209_v17 }
 0x61c   :  { %v13526_v38 = vpop.f32.mrf.mxu1 }
 0x61d   :  { %v13647_v47 = vpop.f32.mrf.mxu0 }
 0x61e   :  { %v13528_v3 = vpop.f32.mrf.mxu1 }
 0x620   :  { %v13532_v25 = vpop.f32.mrf.mxu1 }
 0x622   :  { %v5322_v52 = vpop.f32.mrf.mxu1 }
 0x623   :  { %v13643_v5 = vadd.f32 %v5322_v52, %v5066_v40  ;;  %v16709_v52 = vld [vmem:[#allocation93_spill] sm:$0xff] }
 0x624   :  { %v13536_v49 = vpop.f32.mrf.mxu1 }
 0x625   :  { %16704 = vst [vmem:[#allocation98_spill] sm:$0xff] %v13643_v5 }
 0x626   :  { %v13538_v55 = vpop.f32.mrf.mxu1 }
 0x627   :  { %v13678_v12 = vadd.f32 %v13538_v55, %v5072_v48  ;;  %v4857_v55 = vadd.f32 %v13419_v29, %v13213_v23  ;;  %v16720_v48 = vld [vmem:[#allocation44_spill] sm:$0xff]  ;;  %v13710_v29 = vadd.f32 %v13510_v20, %v13590_v31 }
 0x628   :  { %v5332_v54 = vpop.f32.mrf.mxu1 }
 0x629   :  { %v13633_v7 = vadd.f32 %v5332_v54, %v5076_v28  ;;  %v16706_v54 = vld [vmem:[#allocation91_spill] sm:$0xff]  ;;  %v16711_v28 = vld [vmem:[#allocation90_spill] sm:$0xff]  ;;  %16717 = vst [vmem:[#allocation43_spill] sm:$0xff] %v13678_v12  ;;  %16724 = vst [vmem:[#allocation36_spill] sm:$0xff] %v13710_v29 }
 0x62a   :  { %v5334_v13 = vpop.f32.mrf.mxu1 }
 0x62b   :  { %v13625_v36 = vadd.f32 %v5334_v13, %v5078_v14  ;;  %16701 = vst [vmem:[#allocation81_spill] sm:$0xff] %v13633_v7  ;;  %v4851_v14 = vadd.f32 %v16709_v52, %v13213_v23  ;;  %v15857_v37 = vmax.f32 %v13633_v7, 0.0  ;;  %v16721_v52 = vld [vmem:[#allocation103_spill] sm:$0xff] }
 0x62c   :  { %v5338_v6 = vpop.f32.mrf.mxu1 }
 0x62d   :  { %16699 = vst [vmem:[#allocation42_spill] sm:$0xff] %v13625_v36  ;;  %v15854_v30 = vmax.f32 %v13625_v36, 0.0 }
 0x62e   :  { %v5340_v22 = vpop.f32.mrf.mxu1 }
 0x630   :  { %v5344_v46 = vpop.f32.mrf.mxu1 }
 0x631   :  { %v13612_v1 = vadd.f32 %v5344_v46, %v5088_v60  ;;  %v5082_v60 = vadd.f32 %v16706_v54, %v4825_v61  ;;  %v13650_v46 = vadd.f32 %v5340_v22, %v5084_v19  ;;  %v16713_v19 = vld [vmem:[#allocation104_spill] sm:$0xff]  ;;  %v5553_v54 = vadd.f32 %v15854_v30, %v15857_v37 }
 0x632   :  { %v5346_v24 = vpop.f32.mrf.mxu1 }
 0x633   :  { %16698 = vst [vmem:[#allocation40_spill] sm:$0xff] %v13612_v1  ;;  %v13627_v27 = vadd.f32 %v5346_v24, %v5090_v10  ;;  %v15863_v44 = vmax.f32 %v13612_v1, 0.0  ;;  %16707 = vst [vmem:[#allocation30_spill] sm:$0xff] %v13650_v46  ;;  %v13661_v10 = vadd.f32 %v13532_v25, %v5064_v26  ;;  %v5102_v24 = vadd.f32 %v16711_v28, %v4845_v63  ;;  %v16716_v26 = vld [vmem:[#allocation88_spill] sm:$0xff]  ;;  %v13680_v63 = vpop.f32.mrf.mxu0 }
 0x634   :  { %v5350_v39 = vpop.f32.mrf.mxu1  ;;  %v13665_v22 = vadd.f32 %v5338_v6, %v5082_v60  ;;  %v15842_v25 = vmax.f32 %v13643_v5, 0.0  ;;  %v5070_v11 = vadd.f32 %v16716_v26, %v4813_v43  ;;  %v15846_v60 = vmax.f32 %v13650_v46, 0.0  ;;  %v16772_v46 = vld [vmem:[#allocation54_spill] sm:$0xff] }
 0x635   :  { %16700 = vst [vmem:[#allocation29_spill] sm:$0xff] %v13627_v27  ;;  %v15862_v33 = vmax.f32 %v13627_v27, 0.0  ;;  %v13638_v13 = vadd.f32 %v5350_v39, %v5094_v56  ;;  %16710 = vst [vmem:[#allocation82_spill] sm:$0xff] %v13661_v10  ;;  %v13696_v43 = vadd.f32 %v13520_v2, %v5052_v16  ;;  %v15843_v28 = vmax.f32 %v13661_v10, 0.0  ;;  %v16725_v16 = vld [vmem:[#allocation89_spill] sm:$0xff] }
 0x636   :  { %v5352_v15 = vpop.f32.mrf.mxu1  ;;  %16712 = vst [vmem:[#allocation32_spill] sm:$0xff] %v13665_v22  ;;  %v15847_v26 = vmax.f32 %v13665_v22, 0.0  ;;  %v13896_v22 = vadd.f32 %v16772_v46, %v13213_v23  ;;  %v16776_v27 = vld [vmem:[#allocation61_spill] sm:$0xff]  ;;  %v16778_v46 = vld [vmem:[#allocation50_spill] sm:$0xff] }
 0x637   :  { %16702 = vst [vmem:[#allocation97_spill] sm:$0xff] %v13638_v13  ;;  %v5559_v62 = vadd.f32 %v15862_v33, %v15863_v44  ;;  %v13656_v50 = vadd.f32 %v5352_v15, %v5096_v57  ;;  %v15861_v56 = vmax.f32 %v13638_v13, 0.0  ;;  %v13673_v57 = vadd.f32 %v13522_v9, %v5054_v41  ;;  %16719 = vst [vmem:[#allocation33_spill] sm:$0xff] %v13696_v43  ;;  %v16761_v33 = vld [vmem:[#allocation75_spill] sm:$0xff]  ;;  %v16775_v13 = vld [vmem:[#allocation56_spill] sm:$0xff] }
 0x638   :  { %v5356_v61 = vpop.f32.mrf.mxu1  ;;  %v5060_v15 = vadd.f32 %v16720_v48, %v4803_v58  ;;  %v5058_v58 = vadd.f32 %v16725_v16, %v13602_v53  ;;  %v5556_v20 = vadd.f32 %v15846_v60, %v15847_v26  ;;  %v13735_v53 = vadd.f32 %v13508_v0, %v13577_v18 }
 0x639   :  { %16708 = vst [vmem:[#allocation83_spill] sm:$0xff] %v13656_v50  ;;  %v15860_v40 = vmax.f32 %v13656_v50, 0.0  ;;  %v13670_v39 = vadd.f32 %v5356_v61, %v16713_v19  ;;  %5560 = vadd.xlane.f32.xlu1 %v5559_v62  ;;  %16715 = vst [vmem:[#allocation85_spill] sm:$0xff] %v13673_v57  ;;  %v5108_v61 = vadd.f32 %v16721_v52, %v4851_v14  ;;  %v15844_v2 = vmax.f32 %v13673_v57, 0.0 }
 0x63a   :  { %v5358_v6 = vpop.f32.mrf.mxu1  ;;  %v13702_v19 = vadd.f32 %v13536_v49, %v5070_v11  ;;  %v13716_v14 = vadd.f32 %v13528_v3, %v5060_v15  ;;  %v13718_v11 = vpop.f32.mrf.mxu0  ;;  %v4863_v3 = vadd.f32 %v13424_v21, %v13213_v23  ;;  %16728 = vst [vmem:[#allocation41_spill] sm:$0xff] %v13735_v53  ;;  %v16730_v15 = vld [vmem:[#allocation45_spill] sm:$0xff]  ;;  %v15845_v52 = vmax.f32 %v13696_v43, 0.0  ;;  %v16734_v21 = vld [vmem:[#allocation22_spill] sm:$0xff] }
 0x63b   :  { %16714 = vst [vmem:[#allocation99_spill] sm:$0xff] %v13670_v39  ;;  %v5562_v9 = vadd.f32 %v15860_v40, %v15861_v56  ;;  %v13691_v41 = vadd.f32 %v5358_v6, %v5102_v24  ;;  %v15848_v6 = vmax.f32 %v13678_v12, 0.0  ;;  %v13742_v16 = vadd.f32 %v13526_v38, %v5058_v58  ;;  %v16770_v43 = vld [vmem:[#allocation94_spill] sm:$0xff] }
 0x63c   :  { %v5362_v62 = vpop.f32.mrf.mxu1  ;;  %16722 = vst [vmem:[#allocation100_spill] sm:$0xff] %v13702_v19  ;;  %16726 = vst [vmem:[#allocation38_spill] sm:$0xff] %v13716_v14  ;;  %v13750_v0 = vadd.f32 %v16734_v21, %v13566_v59  ;;  %v15849_v18 = vmax.f32 %v13710_v29, 0.0  ;;  %v13758_v58 = vpop.f32.mrf.mxu0  ;;  %v15875_v44 = vmax.f32 %v16761_v33, 0.0  ;;  %v13890_v12 = vadd.f32 %v16770_v43, %v13209_v17 }
 0x63d   :  { %16718 = vst [vmem:[#allocation84_spill] sm:$0xff] %v13691_v41  ;;  %v13706_v24 = vadd.f32 %v5362_v62, %v13414_v4  ;;  %5563 = vadd.xlane.f32.xlu0 %v5562_v9  ;;  %5554 = vadd.xlane.f32.xlu1 %v5553_v54  ;;  %v5547_v4 = vadd.f32 %v15842_v25, %v15843_v28  ;;  %v16729_v54 = vld [vmem:[#allocation102_spill] sm:$0xff]  ;;  %16731 = vst [vmem:[#allocation78_spill] sm:$0xff] %v13742_v16  ;;  %v15853_v26 = vmax.f32 %v13742_v16, 0.0 }
 0x63e   :  { %v5364_v49 = vpop.f32.mrf.mxu1  ;;  %v5048_v9 = vadd.f32 %v16729_v54, %v13585_v51  ;;  %v5114_v62 = vadd.f32 %v16730_v15, %v4857_v55  ;;  %16735 = vst [vmem:[#allocation91_spill] sm:$0xff] %v13750_v0  ;;  %v16736_v51 = vld [vmem:[#allocation86_spill] sm:$0xff]  ;;  %v16737_v54 = vld [vmem:[#allocation28_spill] sm:$0xff]  ;;  %v4879_v43 = vadd.f32 %v16775_v13, %v13209_v17  ;;  %v4905_v1 = vadd.f32 %v16776_v27, %v13213_v23 }
 0x63f   :  { %16723 = vst [vmem:[#allocation35_spill] sm:$0xff] %v13706_v24  ;;  %v13729_v31 = vadd.f32 %v5364_v49, %v5108_v61  ;;  %v15851_v61 = vmax.f32 %v13702_v19, 0.0  ;;  %v16732_v49 = vld [vmem:[#allocation92_spill] sm:$0xff]  ;;  %v5046_v55 = vadd.f32 %v16736_v51, %v13581_v8  ;;  %v16740_v8 = vld [vmem:[#allocation21_spill] sm:$0xff]  ;;  %v16769_v16 = vld [vmem:[#allocation70_spill] sm:$0xff] }
 0x640   :  { %v5368_v48 = vpop.f32.mrf.mxu1  ;;  %v13756_v15 = vadd.f32 %v16737_v54, %v5048_v9  ;;  %v13773_v9 = vadd.f32 %v16740_v8, %v13563_v34  ;;  %v16743_v54 = vld [vmem:[#allocation25_spill] sm:$0xff]  ;;  %v15855_v34 = vmax.f32 %v13750_v0, 0.0  ;;  %v16749_v8 = vld [vmem:[#allocation24_spill] sm:$0xff]  ;;  %v4929_v57 = vadd.f32 %v16769_v16, %v13213_v23 }
 0x641   :  { %16727 = vst [vmem:[#allocation39_spill] sm:$0xff] %v13729_v31  ;;  %v13746_v25 = vadd.f32 %v5368_v48, %v16732_v49  ;;  %5557 = vadd.xlane.f32.xlu0 %v5556_v20  ;;  %5548 = vadd.xlane.f32.xlu1 %v5547_v4  ;;  %v5541_v4 = vadd.f32 %v15844_v2, %v15845_v52  ;;  %v15852_v20 = vmax.f32 %v13716_v14, 0.0  ;;  %v16742_v49 = vld [vmem:[#allocation87_spill] sm:$0xff]  ;;  %v15850_v2 = vmax.f32 %v13735_v53, 0.0  ;;  %v16744_v52 = vld [vmem:[#allocation26_spill] sm:$0xff]  ;;  %v16768_v53 = vld [vmem:[#allocation49_spill] sm:$0xff] }
 0x642   :  { %16738 = vst [vmem:[#allocation93_spill] sm:$0xff] %v13756_v15  ;;  %v5370_v38 = vpop.f32.mrf.mxu1  ;;  %v5550_v59 = vadd.f32 %v15848_v6, %v15851_v61  ;;  %16741 = vst [vmem:[#allocation104_spill] sm:$0xff] %v13773_v9  ;;  %v5036_v21 = vadd.f32 %v16742_v49, %v13570_v42  ;;  %v5120_v28 = vadd.f32 %v16743_v54, %v4863_v3  ;;  %v16746_v6 = vld [vmem:[#allocation95_spill] sm:$0xff]  ;;  %v13792_v54 = vpop.f32.mrf.mxu0  ;;  %v16771_v19 = vld [vmem:[#allocation57_spill] sm:$0xff] }
 0x643   :  { %16733 = vst [vmem:[#allocation77_spill] sm:$0xff] %v13746_v25  ;;  %v13769_v48 = vadd.f32 %v5370_v38, %v5114_v62  ;;  %v13780_v60 = vadd.f32 %v16744_v52, %v5046_v55  ;;  %v16748_v38 = vld [vmem:[#allocation101_spill] sm:$0xff]  ;;  %v5535_v52 = vadd.f32 %v15849_v18, %v15850_v2  ;;  %v5544_v55 = vadd.f32 %v15852_v20, %v15853_v26  ;;  %v16754_v2 = vld [vmem:[#allocation76_spill] sm:$0xff] }
 0x644   :  { %v5374_v51 = vpop.f32.mrf.mxu1  ;;  %v5034_v42 = vadd.f32 %v16748_v38, %v13558_v35  ;;  %v13790_v49 = vadd.f32 %v16749_v8, %v5036_v21  ;;  %v16752_v21 = vld [vmem:[#allocation23_spill] sm:$0xff]  ;;  %v13814_v18 = vpop.f32.mrf.mxu0  ;;  %v15865_v61 = vmax.f32 %v16754_v2, 0.0  ;;  %v4917_v14 = vadd.f32 %v16768_v53, %v13213_v23  ;;  %v16774_v53 = vld [vmem:[#allocation69_spill] sm:$0xff] }
 0x645   :  { %16739 = vst [vmem:[#allocation90_spill] sm:$0xff] %v13769_v48  ;;  %16745 = vst [vmem:[#allocation88_spill] sm:$0xff] %v13780_v60  ;;  %v13784_v62 = vadd.f32 %v5374_v51, %v16746_v6  ;;  %5551 = vadd.xlane.f32.xlu0 %v5550_v59  ;;  %5542 = vadd.xlane.f32.xlu1 %v5541_v4  ;;  %v15858_v6 = vmax.f32 %v13756_v15, 0.0  ;;  %v15856_v59 = vmax.f32 %v13773_v9, 0.0  ;;  %v15859_v38 = vmax.f32 %v13780_v60, 0.0  ;;  %v16782_v25 = vld [vmem:[#allocation65_spill] sm:$0xff] }
 0x646   :  { %16750 = vst [vmem:[#allocation103_spill] sm:$0xff] %v13790_v49  ;;  %v5376_v3 = vpop.f32.mrf.mxu1  ;;  %v13809_v51 = vadd.f32 %v16752_v21, %v5034_v42  ;;  %v13832_v30 = vpop.f32.mrf.mxu0  ;;  %v4891_v5 = vadd.f32 %v16771_v19, %v13209_v17  ;;  %v4933_v50 = vadd.f32 %v16774_v53, %v13209_v17  ;;  %v16777_v19 = vld [vmem:[#allocation68_spill] sm:$0xff]  ;;  %v4935_v31 = vadd.f32 %v16778_v46, %v13213_v23 }
 0x647   :  { %16747 = vst [vmem:[#allocation44_spill] sm:$0xff] %v13784_v62  ;;  %v13803_v4 = vadd.f32 %v5376_v3, %v5120_v28  ;;  %v5529_v28 = vadd.f32 %v15855_v34, %v15856_v59  ;;  %v15868_v3 = vmax.f32 %v13790_v49, 0.0  ;;  %v5538_v42 = vadd.f32 %v15858_v6, %v15859_v38  ;;  %v16758_v34 = vld [vmem:[#allocation71_spill] sm:$0xff]  ;;  %v16759_v6 = vld [vmem:[#allocation52_spill] sm:$0xff] }
 0x648   :  { %v13805_v35 = vpop.f32.mrf.mxu1  ;;  %16753 = vst [vmem:[#allocation102_spill] sm:$0xff] %v13809_v51  ;;  %v15869_v20 = vmax.f32 %v13809_v51, 0.0  ;;  %v16763_v38 = vld [vmem:[#allocation51_spill] sm:$0xff]  ;;  %v4923_v24 = vadd.f32 %v16777_v19, %v13213_v23  ;;  %v16781_v53 = vld [vmem:[#allocation48_spill] sm:$0xff]  ;;  %v4921_v19 = vadd.f32 %v16782_v25, %v13209_v17  ;;  %v5148_v48 = vadd.f32 %v13647_v47, %v4891_v5 }
 0x649   :  { %16751 = vst [vmem:[#allocation89_spill] sm:$0xff] %v13803_v4  ;;  %5545 = vadd.xlane.f32.xlu0 %v5544_v55  ;;  %5536 = vadd.xlane.f32.xlu1 %v5535_v52  ;;  %v16756_v52 = vld [vmem:[#allocation73_spill] sm:$0xff]  ;;  %v15882_v2 = vmax.f32 %v16763_v38, 0.0  ;;  %v4903_v27 = vadd.f32 %v16781_v53, %v13209_v17  ;;  %v16784_v25 = vld [vmem:[#allocation64_spill] sm:$0xff] }
 0x64a   :  { %v13812_v8 = vpop.f32.mrf.mxu1  ;;  %v15866_v21 = vmax.f32 %v16756_v52, 0.0  ;;  %v5532_v40 = vadd.f32 %v15868_v3, %v15869_v20  ;;  %v13850_v52 = vpop.f32.mrf.mxu0  ;;  %v16764_v3 = vmax.f32 %v16759_v6, 0.0 }
 0x64c   :  { %v13826_v55 = vpop.f32.mrf.mxu1  ;;  %v5523_v37 = vadd.f32 %v15865_v61, %v15866_v21  ;;  %v16762_v61 = vmax.f32 %v16758_v34, 0.0  ;;  %v5526_v20 = vadd.f32 %v16764_v3, %v15875_v44  ;;  %v5171_v0 = vpop.f32.mrf.mxu0 }
 0x64d   :  { %16755 = vst [vmem:[#allocation45_spill] sm:$0xff] %v13826_v55  ;;  %5539 = vadd.xlane.f32.xlu0 %v5538_v42  ;;  %5530 = vadd.xlane.f32.xlu1 %v5529_v28  ;;  %v16760_v28 = vld [vmem:[#allocation72_spill] sm:$0xff] }
 0x64e   :  { %v13830_v26 = vpop.f32.mrf.mxu1  ;;  %v15873_v56 = vmax.f32 %v16760_v28, 0.0  ;;  %v5173_v3 = vpop.f32.mrf.mxu0 }
 0x64f   :  { %16757 = vst [vmem:[#allocation92_spill] sm:$0xff] %v13830_v26  ;;  %v5174_v4 = vadd.f32 %v5173_v3, %v4917_v14  ;;  %v5162_v3 = vadd.f32 %v13814_v18, %v4905_v1 }
 0x650   :  { %v13844_v42 = vpop.f32.mrf.mxu1  ;;  %v5517_v21 = vadd.f32 %v16762_v61, %v15873_v56 }
 0x651   :  { %5533 = vadd.xlane.f32.xlu0 %v5532_v40  ;;  %5524 = vadd.xlane.f32.xlu1 %v5523_v37  ;;  %v16766_v40 = vld [vmem:[#allocation74_spill] sm:$0xff] }
 0x652   :  { %v13848_v59 = vpop.f32.mrf.mxu1  ;;  %v15883_v37 = vmax.f32 %v16766_v40, 0.0 }
 0x654   :  { %v13861_v49 = vpop.f32.mrf.mxu1  ;;  %v5520_v61 = vadd.f32 %v15882_v2, %v15883_v37 }
 0x655   :  { %16765 = vst [vmem:[#allocation22_spill] sm:$0xff] %v13861_v49  ;;  %5527 = vadd.xlane.f32.xlu0 %v5526_v20  ;;  %5518 = vadd.xlane.f32.xlu1 %v5517_v21  ;;  %v5177_v20 = vpop.f32.mrf.mxu0 }
 0x656   :  { %v13864_v51 = vpop.f32.mrf.mxu1 }
 0x657   :  { %v5179_v33 = vpop.f32.mrf.mxu0 }
 0x658   :  { %v13870_v56 = vpop.f32.mrf.mxu1 }
 0x659   :  { %5521 = vadd.xlane.f32.xlu0 %v5520_v61  ;;  %v5183_v38 = vpop.f32.mrf.mxu0  ;;  %v16767_v61 = vld [vmem:[#allocation67_spill] sm:$0xff] }
 0x65a   :  { %v13872_v34 = vpop.f32.mrf.mxu1  ;;  %v4927_v60 = vadd.f32 %v16767_v61, %v13209_v17  ;;  %v16773_v61 = vld [vmem:[#allocation66_spill] sm:$0xff] }
 0x65b   :  { %v5185_v15 = vpop.f32.mrf.mxu0  ;;  %v4915_v36 = vadd.f32 %v16773_v61, %v13209_v17  ;;  %v16779_v61 = vld [vmem:[#allocation55_spill] sm:$0xff] }
 0x65c   :  { %v13874_v44 = vpop.f32.mrf.mxu1  ;;  %v5184_v16 = vadd.f32 %v5183_v38, %v4927_v60  ;;  %v4881_v39 = vadd.f32 %v16779_v61, %v13213_v23  ;;  %v5186_v60 = vadd.f32 %v5185_v15, %v4929_v57  ;;  %v16780_v38 = vld [vmem:[#allocation60_spill] sm:$0xff]  ;;  %v16783_v57 = vld [vmem:[#allocation63_spill] sm:$0xff] }
 0x65d   :  { %v5189_v7 = vpop.f32.mrf.mxu0  ;;  %v4893_v13 = vadd.f32 %v16780_v38, %v13213_v23  ;;  %v5172_v26 = vadd.f32 %v5171_v0, %v4915_v36  ;;  %v4911_v15 = vadd.f32 %v16783_v57, %v13213_v23  ;;  %v4909_v0 = vadd.f32 %v16784_v25, %v13209_v17 }
 0x65e   :  { %v13876_v28 = vpop.f32.mrf.mxu1 }
 0x65f   :  { %v5191_v55 = vpop.f32.mrf.mxu0 }
 0x660   :  { %v5416_v21 = vpop.f32.mrf.mxu1  ;;  %v5192_v38 = vadd.f32 %v5191_v55, %v4935_v31  ;;  %v16785_v31 = vld [vmem:[#allocation62_spill] sm:$0xff]  ;;  %v5168_v55 = vadd.f32 %v13850_v52, %v4911_v15  ;;  %v16788_v15 = vld [vmem:[#allocation37_spill] sm:$0xff] }
 0x661   :  { %v4899_v18 = vadd.f32 %v16785_v31, %v13213_v23 }
 0x662   :  { %v5418_v6 = vpop.f32.mrf.mxu1 }
 0x664   :  { %v13878_v9 = vpop.f32.mrf.mxu1 }
 0x666   :  { %v13880_v40 = vpop.f32.mrf.mxu1 }
 0x667   :  { %v13967_v52 = vadd.f32 %v13880_v40, %v5168_v55 }
 0x668   :  { %v5428_v2 = vpop.f32.mrf.mxu1 }
 0x669   :  { %v13928_v53 = vadd.f32 %v5428_v2, %v5172_v26 }
 0x66a   :  { %v5430_v37 = vpop.f32.mrf.mxu1 }
 0x66b   :  { %v13921_v49 = vadd.f32 %v5430_v37, %v5174_v4  ;;  %v5178_v4 = vadd.f32 %v5177_v20, %v4921_v19  ;;  %v15939_v37 = vmax.f32 %v13928_v53, 0.0 }
 0x66c   :  { %v5434_v29 = vpop.f32.mrf.mxu1 }
 0x66e   :  { %v5436_v10 = vpop.f32.mrf.mxu1 }
 0x670   :  { %v5440_v62 = vpop.f32.mrf.mxu1 }
 0x671   :  { %v13912_v41 = vadd.f32 %v5440_v62, %v5184_v16  ;;  %v5190_v62 = vadd.f32 %v5189_v7, %v4933_v50  ;;  %v5180_v16 = vadd.f32 %v5179_v33, %v4923_v24  ;;  %v5160_v7 = vadd.f32 %v13792_v54, %v4903_v27  ;;  %v16786_v27 = vld [vmem:[#allocation59_spill] sm:$0xff] }
 0x672   :  { %v5442_v46 = vpop.f32.mrf.mxu1  ;;  %v13937_v50 = vadd.f32 %v5418_v6, %v5162_v3  ;;  %v15938_v33 = vmax.f32 %v13921_v49, 0.0  ;;  %v5150_v54 = vadd.f32 %v13680_v63, %v4893_v13  ;;  %v4897_v19 = vadd.f32 %v16786_v27, %v13209_v17  ;;  %v16789_v3 = vld [vmem:[#allocation80_spill] sm:$0xff] }
 0x673   :  { %v13923_v14 = vadd.f32 %v5442_v46, %v5186_v60  ;;  %v15943_v5 = vmax.f32 %v13912_v41, 0.0  ;;  %v13940_v24 = vadd.f32 %v5436_v10, %v5180_v16  ;;  %v13951_v6 = vadd.f32 %v5416_v21, %v5160_v7  ;;  %v16790_v7 = vld [vmem:[#allocation58_spill] sm:$0xff] }
 0x674   :  { %v5446_v61 = vpop.f32.mrf.mxu1  ;;  %v13955_v10 = vadd.f32 %v5434_v29, %v5178_v4  ;;  %v13962_v46 = vadd.f32 %v13872_v34, %v5150_v54  ;;  %v15934_v63 = vmax.f32 %v13937_v50, 0.0  ;;  %v5166_v21 = vadd.f32 %v13832_v30, %v4909_v0 }
 0x675   :  { %v15942_v47 = vmax.f32 %v13923_v14, 0.0  ;;  %v13932_v36 = vadd.f32 %v5446_v61, %v5190_v62  ;;  %v5601_v29 = vadd.f32 %v15938_v33, %v15939_v37  ;;  %v15936_v13 = vmax.f32 %v13940_v24, 0.0  ;;  %v16787_v62 = vld [vmem:[#allocation47_spill] sm:$0xff]  ;;  %v16827_v33 = vld [vmem:[#allocation98_spill] sm:$0xff] }
 0x676   :  { %v5448_v1 = vpop.f32.mrf.mxu1  ;;  %v4887_v57 = vadd.f32 %v16787_v62, %v13213_v23  ;;  %v5136_v30 = vadd.f32 %v16788_v15, %v4879_v43  ;;  %v5138_v40 = vadd.f32 %v16789_v3, %v4881_v39  ;;  %v5156_v16 = vadd.f32 %v13758_v58, %v4899_v18 }
 0x677   :  { %v5607_v26 = vadd.f32 %v15942_v47, %v15943_v5  ;;  %v13946_v2 = vadd.f32 %v5448_v1, %v5192_v38  ;;  %v15941_v20 = vmax.f32 %v13932_v36, 0.0  ;;  %v13984_v61 = vadd.f32 %v13870_v56, %v5148_v48  ;;  %v16791_v1 = vld [vmem:[#allocation96_spill] sm:$0xff] }
 0x678   :  { %v15935_v38 = vmax.f32 %v13951_v6, 0.0  ;;  %v13988_v25 = vadd.f32 %v13878_v9, %v5166_v21  ;;  %v15937_v0 = vmax.f32 %v13955_v10, 0.0  ;;  %v4885_v4 = vadd.f32 %v16790_v7, %v13209_v17  ;;  %v16798_v7 = vld [vmem:[#allocation92_spill] sm:$0xff] }
 0x679   :  { %v15940_v60 = vmax.f32 %v13946_v2, 0.0  ;;  %5608 = vadd.xlane.f32.xlu1 %v5607_v26  ;;  %v13994_v43 = vadd.f32 %v13848_v59, %v5138_v40  ;;  %v15930_v39 = vmax.f32 %v13962_v46, 0.0  ;;  %v5154_v56 = vadd.f32 %v13718_v11, %v4897_v19  ;;  %v16792_v11 = vld [vmem:[#allocation31_spill] sm:$0xff] }
 0x67a   :  { %v13999_v58 = vadd.f32 %v13876_v28, %v5156_v16  ;;  %v5595_v48 = vadd.f32 %v15934_v63, %v15935_v38  ;;  %v15932_v9 = vmax.f32 %v13967_v52, 0.0  ;;  %v5604_v59 = vadd.f32 %v15936_v13, %v15937_v0  ;;  %v16793_v28 = vld [vmem:[#allocation34_spill] sm:$0xff]  ;;  %v16797_v40 = vld [vmem:[#allocation79_spill] sm:$0xff] }
 0x67b   :  { %v5610_v34 = vadd.f32 %v15940_v60, %v15941_v20  ;;  %v4875_v26 = vadd.f32 %v16791_v1, %v13213_v23  ;;  %v5124_v31 = vadd.f32 %v16792_v11, %v13890_v12  ;;  %v5126_v18 = vadd.f32 %v16793_v28, %v13896_v22  ;;  %v16794_v23 = vld [vmem:[#allocation46_spill] sm:$0xff]  ;;  %v16799_v1 = vld [vmem:[#allocation45_spill] sm:$0xff] }
 0x67c   :  { %v5144_v54 = vadd.f32 %v13622_v45, %v4887_v57  ;;  %v14018_v55 = vadd.f32 %v13844_v42, %v5136_v30  ;;  %v15931_v27 = vmax.f32 %v13984_v61, 0.0  ;;  %v14022_v19 = vadd.f32 %v13874_v44, %v5154_v56  ;;  %v16824_v38 = vld [vmem:[#allocation82_spill] sm:$0xff] }
 0x67d   :  { %5611 = vadd.xlane.f32.xlu0 %v5610_v34  ;;  %5602 = vadd.xlane.f32.xlu1 %v5601_v29  ;;  %v15933_v21 = vmax.f32 %v13988_v25, 0.0  ;;  %v4873_v12 = vadd.f32 %v16794_v23, %v13209_v17  ;;  %v14028_v29 = vadd.f32 %v13812_v8, %v5126_v18  ;;  %v15922_v45 = vmax.f32 %v13994_v43, 0.0  ;;  %v16795_v8 = vld [vmem:[#allocation27_spill] sm:$0xff] }
 0x67e   :  { %v5142_v22 = vadd.f32 %v13596_v32, %v4885_v4  ;;  %v14033_v42 = vadd.f32 %v13864_v51, %v5144_v54  ;;  %v5589_v44 = vadd.f32 %v15930_v39, %v15931_v27  ;;  %v15928_v34 = vmax.f32 %v13999_v58, 0.0  ;;  %v16796_v51 = vld [vmem:[#allocation22_spill] sm:$0xff] }
 0x67f   :  { %v5598_v17 = vadd.f32 %v15932_v9, %v15933_v21  ;;  %v5132_v62 = vadd.f32 %v16795_v8, %v4875_v26  ;;  %v14046_v57 = vadd.f32 %v13805_v35, %v5124_v31  ;;  %v15927_v32 = vmax.f32 %v14018_v55, 0.0  ;;  %v16800_v31 = vld [vmem:[#allocation90_spill] sm:$0xff] }
 0x680   :  { %v14050_v15 = vadd.f32 %v16796_v51, %v5142_v22  ;;  %v15929_v30 = vmax.f32 %v14022_v19, 0.0  ;;  %v15914_v3 = vmax.f32 %v14028_v29, 0.0  ;;  %v5130_v16 = vadd.f32 %v16797_v40, %v4873_v12  ;;  %v16801_v12 = vld [vmem:[#allocation77_spill] sm:$0xff] }
 0x681   :  { %5605 = vadd.xlane.f32.xlu0 %v5604_v59  ;;  %5596 = vadd.xlane.f32.xlu1 %v5595_v48  ;;  %v14056_v4 = vadd.f32 %v16798_v7, %v5132_v62  ;;  %v5583_v35 = vadd.f32 %v15922_v45, %v15927_v32  ;;  %v15920_v56 = vmax.f32 %v14033_v42, 0.0  ;;  %v15919_v59 = vmax.f32 %v14046_v57, 0.0  ;;  %v16803_v51 = vld [vmem:[#allocation89_spill] sm:$0xff]  ;;  %v16804_v7 = vld [vmem:[#allocation99_spill] sm:$0xff] }
 0x682   :  { %v5592_v48 = vadd.f32 %v15928_v34, %v15929_v30  ;;  %v14069_v26 = vadd.f32 %v16799_v1, %v5130_v16  ;;  %v15921_v11 = vmax.f32 %v14050_v15, 0.0  ;;  %v15912_v28 = vmax.f32 %v16800_v31, 0.0  ;;  %v16818_v30 = vld [vmem:[#allocation42_spill] sm:$0xff] }
 0x683   :  { %v5577_v18 = vadd.f32 %v15914_v3, %v15919_v59  ;;  %v15915_v54 = vmax.f32 %v14056_v4, 0.0  ;;  %v15913_v22 = vmax.f32 %v16801_v12, 0.0  ;;  %v15923_v40 = vmax.f32 %v16803_v51, 0.0  ;;  %v16807_v3 = vld [vmem:[#allocation35_spill] sm:$0xff] }
 0x684   :  { %v5586_v23 = vadd.f32 %v15920_v56, %v15921_v11  ;;  %v16810_v56 = vld [vmem:[#allocation29_spill] sm:$0xff]  ;;  %v16819_v39 = vmax.f32 %v16818_v30, 0.0  ;;  %v16825_v13 = vmax.f32 %v16824_v38, 0.0  ;;  %v16828_v37 = vmax.f32 %v16827_v33, 0.0  ;;  %v16829_v33 = vld [vmem:[#allocation100_spill] sm:$0xff] }
 0x685   :  { %5599 = vadd.xlane.f32.xlu0 %v5598_v17  ;;  %5590 = vadd.xlane.f32.xlu1 %v5589_v44  ;;  %v15916_v44 = vmax.f32 %v14069_v26, 0.0  ;;  %v16802_v17 = vld [vmem:[#allocation84_spill] sm:$0xff]  ;;  %v5571_v62 = vadd.f32 %v15912_v28, %v15913_v22  ;;  %v16811_v11 = vmax.f32 %v16810_v56, 0.0  ;;  %v16816_v56 = vld [vmem:[#allocation81_spill] sm:$0xff] }
 0x686   :  { %v15917_v8 = vmax.f32 %v16802_v17, 0.0 }
 0x687   :  { %v5580_v16 = vadd.f32 %v15915_v54, %v15916_v44  ;;  %v15926_v54 = vmax.f32 %v16807_v3, 0.0 }
 0x689   :  { %5593 = vadd.xlane.f32.xlu0 %v5592_v48  ;;  %5584 = vadd.xlane.f32.xlu1 %v5583_v35  ;;  %v15918_v35 = vmax.f32 %v16804_v7, 0.0  ;;  %v16805_v48 = vld [vmem:[#allocation44_spill] sm:$0xff] }
 0x68a   :  { %v15924_v1 = vmax.f32 %v16805_v48, 0.0 }
 0x68c   :  { %v5574_v22 = vadd.f32 %v15923_v40, %v15924_v1 }
 0x68d   :  { %5587 = vadd.xlane.f32.xlu0 %v5586_v23  ;;  %5578 = vadd.xlane.f32.xlu1 %v5577_v18  ;;  %v5565_v18 = vadd.f32 %v15917_v8, %v15918_v35  ;;  %v16806_v23 = vld [vmem:[#allocation39_spill] sm:$0xff]  ;;  %v16808_v8 = vld [vmem:[#allocation40_spill] sm:$0xff] }
 0x68e   :  { %v15925_v28 = vmax.f32 %v16806_v23, 0.0  ;;  %v16809_v35 = vmax.f32 %v16808_v8, 0.0  ;;  %v16814_v8 = vld [vmem:[#allocation83_spill] sm:$0xff] }
 0x691   :  { %5581 = vadd.xlane.f32.xlu0 %v5580_v16  ;;  %5572 = vadd.xlane.f32.xlu1 %v5571_v62  ;;  %v5568_v62 = vadd.f32 %v15925_v28, %v15926_v54  ;;  %v16812_v54 = vld [vmem:[#allocation97_spill] sm:$0xff] }
 0x695   :  { %5575 = vadd.xlane.f32.xlu0 %v5574_v22  ;;  %5566 = vadd.xlane.f32.xlu1 %v5565_v18 }
 0x699   :  { %5569 = vadd.xlane.f32.xlu0 %v5568_v62 }
 0x6c2   :  { %v5561_v16 = vpop.xlane.xlu1 %5560 }
 0x6c3   :  { %v5627_v44 = vmul.f32 0.00390625, %v5561_v16  ;;  %v16813_v16 = vmax.f32 %v16812_v54, 0.0 }
 0x6c5   :  { %v14112_v59 = vsub.f32 %v16809_v35, %v5627_v44  ;;  %v14116_v45 = vsub.f32 %v16811_v11, %v5627_v44  ;;  %v16815_v35 = vmax.f32 %v16814_v8, 0.0  ;;  %v16817_v11 = vmax.f32 %v16816_v56, 0.0 }
 0x6c6   :  { %v5564_v40 = vpop.xlane.xlu0 %5563  ;;  %v5555_v1 = vpop.xlane.xlu1 %5554 }
 0x6c7   :  { %v5737_v22 = vmul.f32 %v14112_v59, %v14112_v59  ;;  %v5738_v18 = vmul.f32 %v14116_v45, %v14116_v45  ;;  %v5628_v28 = vmul.f32 0.00390625, %v5564_v40  ;;  %v5625_v62 = vmul.f32 0.00390625, %v5555_v1 }
 0x6c9   :  { %v14124_v32 = vsub.f32 %v16813_v16, %v5628_v28  ;;  %v14128_v34 = vsub.f32 %v16815_v35, %v5628_v28  ;;  %v14132_v44 = vsub.f32 %v16817_v11, %v5625_v62  ;;  %v14136_v27 = vsub.f32 %v16819_v39, %v5625_v62  ;;  %v16820_v62 = vld [vmem:[#allocation32_spill] sm:$0xff] }
 0x6ca   :  { %v5558_v9 = vpop.xlane.xlu0 %5557  ;;  %v5549_v21 = vpop.xlane.xlu1 %5548  ;;  %v5815_v40 = vadd.f32 %v5738_v18, %v5737_v22  ;;  %v16821_v56 = vmax.f32 %v16820_v62, 0.0  ;;  %v16822_v18 = vld [vmem:[#allocation30_spill] sm:$0xff]  ;;  %v16835_v62 = vld [vmem:[#allocation33_spill] sm:$0xff] }
 0x6cb   :  { %v5739_v54 = vmul.f32 %v14124_v32, %v14124_v32  ;;  %v5740_v1 = vmul.f32 %v14128_v34, %v14128_v34  ;;  %v5733_v28 = vmul.f32 %v14132_v44, %v14132_v44  ;;  %v5734_v16 = vmul.f32 %v14136_v27, %v14136_v27 }
 0x6cc   :  { %v5626_v8 = vmul.f32 0.00390625, %v5558_v9  ;;  %v5623_v35 = vmul.f32 0.00390625, %v5549_v21  ;;  %5816 = vadd.xlane.f32.xlu1 %v5815_v40  ;;  %v16823_v11 = vmax.f32 %v16822_v18, 0.0 }
 0x6cd   :  { %v5818_v39 = vadd.f32 %v5740_v1, %v5739_v54  ;;  %v5809_v30 = vadd.f32 %v5734_v16, %v5733_v28 }
 0x6ce   :  { %v14148_v22 = vsub.f32 %v16821_v56, %v5626_v8  ;;  %v14152_v63 = vsub.f32 %v16823_v11, %v5626_v8  ;;  %v14156_v0 = vsub.f32 %v16825_v13, %v5623_v35  ;;  %v14160_v60 = vsub.f32 %v16828_v37, %v5623_v35  ;;  %v5552_v9 = vpop.xlane.xlu0 %5551  ;;  %v5543_v21 = vpop.xlane.xlu1 %5542  ;;  %v16832_v8 = vld [vmem:[#allocation43_spill] sm:$0xff]  ;;  %v16838_v11 = vld [vmem:[#allocation85_spill] sm:$0xff] }
 0x6cf   :  { %v5624_v40 = vmul.f32 0.00390625, %v5552_v9  ;;  %v5621_v54 = vmul.f32 0.00390625, %v5543_v21  ;;  %5819 = vadd.xlane.f32.xlu0 %v5818_v39  ;;  %v16830_v37 = vmax.f32 %v16829_v33, 0.0  ;;  %v16833_v35 = vmax.f32 %v16832_v8, 0.0 }
 0x6d0   :  { %16826 = vst [vmem:[#allocation86_spill] sm:$0xff] %v14156_v0  ;;  %v5735_v1 = vmul.f32 %v14148_v22, %v14148_v22  ;;  %v5736_v28 = vmul.f32 %v14152_v63, %v14152_v63  ;;  %v5729_v38 = vmul.f32 %v14156_v0, %v14156_v0  ;;  %v5730_v13 = vmul.f32 %v14160_v60, %v14160_v60  ;;  %v16850_v0 = vld [vmem:[#allocation36_spill] sm:$0xff] }
 0x6d1   :  { %5810 = vadd.xlane.f32.xlu1 %v5809_v30  ;;  %v14172_v16 = vsub.f32 %v16830_v37, %v5624_v40  ;;  %v14176_v39 = vsub.f32 %v16833_v35, %v5624_v40  ;;  %v16836_v56 = vmax.f32 %v16835_v62, 0.0  ;;  %v16839_v9 = vmax.f32 %v16838_v11, 0.0 }
 0x6d2   :  { %v5546_v20 = vpop.xlane.xlu0 %5545  ;;  %v5537_v47 = vpop.xlane.xlu1 %5536  ;;  %v5812_v5 = vadd.f32 %v5736_v28, %v5735_v1  ;;  %v5803_v30 = vadd.f32 %v5730_v13, %v5729_v38  ;;  %v16841_v1 = vld [vmem:[#allocation78_spill] sm:$0xff] }
 0x6d3   :  { %16831 = vst [vmem:[#allocation28_spill] sm:$0xff] %v14172_v16  ;;  %16834 = vst [vmem:[#allocation21_spill] sm:$0xff] %v14176_v39  ;;  %v14180_v18 = vsub.f32 %v16836_v56, %v5621_v54  ;;  %v14184_v21 = vsub.f32 %v16839_v9, %v5621_v54  ;;  %v5731_v33 = vmul.f32 %v14172_v16, %v14172_v16  ;;  %v5622_v35 = vmul.f32 0.00390625, %v5546_v20  ;;  %v16844_v13 = vld [vmem:[#allocation38_spill] sm:$0xff]  ;;  %v16847_v16 = vld [vmem:[#allocation41_spill] sm:$0xff] }
 0x6d4   :  { %v5732_v37 = vmul.f32 %v14176_v39, %v14176_v39  ;;  %v5619_v62 = vmul.f32 0.00390625, %v5537_v47  ;;  %5813 = vadd.xlane.f32.xlu0 %v5812_v5  ;;  %v16842_v28 = vmax.f32 %v16841_v1, 0.0  ;;  %v16845_v11 = vmax.f32 %v16844_v13, 0.0 }
 0x6d5   :  { %16837 = vst [vmem:[#allocation87_spill] sm:$0xff] %v14180_v18  ;;  %16840 = vst [vmem:[#allocation25_spill] sm:$0xff] %v14184_v21  ;;  %v5725_v40 = vmul.f32 %v14180_v18, %v14180_v18  ;;  %v5726_v8 = vmul.f32 %v14184_v21, %v14184_v21  ;;  %5804 = vadd.xlane.f32.xlu1 %v5803_v30  ;;  %v16848_v39 = vmax.f32 %v16847_v16, 0.0  ;;  %v16851_v21 = vmax.f32 %v16850_v0, 0.0  ;;  %v16853_v0 = vld [vmem:[#allocation88_spill] sm:$0xff] }
 0x6d6   :  { %v5806_v54 = vadd.f32 %v5732_v37, %v5731_v33  ;;  %v14196_v38 = vsub.f32 %v16842_v28, %v5622_v35  ;;  %v14200_v9 = vsub.f32 %v16845_v11, %v5622_v35  ;;  %v5540_v5 = vpop.xlane.xlu0 %5539  ;;  %v5531_v47 = vpop.xlane.xlu1 %5530  ;;  %v16856_v35 = vld [vmem:[#allocation93_spill] sm:$0xff]  ;;  %v16859_v28 = vld [vmem:[#allocation104_spill] sm:$0xff] }
 0x6d7   :  { %v5797_v56 = vadd.f32 %v5726_v8, %v5725_v40  ;;  %v14204_v18 = vsub.f32 %v16848_v39, %v5619_v62  ;;  %v14208_v20 = vsub.f32 %v16851_v21, %v5619_v62  ;;  %v5620_v30 = vmul.f32 0.00390625, %v5540_v5  ;;  %v16862_v5 = vld [vmem:[#allocation91_spill] sm:$0xff] }
 0x6d8   :  { %16843 = vst [vmem:[#allocation26_spill] sm:$0xff] %v14196_v38  ;;  %16846 = vst [vmem:[#allocation95_spill] sm:$0xff] %v14200_v9  ;;  %v5617_v33 = vmul.f32 0.00390625, %v5531_v47  ;;  %v5727_v37 = vmul.f32 %v14196_v38, %v14196_v38  ;;  %v5728_v40 = vmul.f32 %v14200_v9, %v14200_v9  ;;  %5807 = vadd.xlane.f32.xlu0 %v5806_v54  ;;  %v16854_v39 = vmax.f32 %v16853_v0, 0.0 }
 0x6d9   :  { %16849 = vst [vmem:[#allocation101_spill] sm:$0xff] %v14204_v18  ;;  %16852 = vst [vmem:[#allocation24_spill] sm:$0xff] %v14208_v20  ;;  %v5721_v8 = vmul.f32 %v14204_v18, %v14204_v18  ;;  %v5722_v16 = vmul.f32 %v14208_v20, %v14208_v20  ;;  %v16857_v62 = vmax.f32 %v16856_v35, 0.0  ;;  %v16860_v13 = vmax.f32 %v16859_v28, 0.0  ;;  %5798 = vadd.xlane.f32.xlu1 %v5797_v56 }
 0x6da   :  { %v14220_v21 = vsub.f32 %v16854_v39, %v5620_v30  ;;  %v16863_v47 = vmax.f32 %v16862_v5, 0.0  ;;  %v5534_v18 = vpop.xlane.xlu0 %5533  ;;  %v5525_v20 = vpop.xlane.xlu1 %5524  ;;  %v5800_v54 = vadd.f32 %v5728_v40, %v5727_v37  ;;  %v16865_v37 = vld [vmem:[#allocation102_spill] sm:$0xff] }
 0x6db   :  { %v14224_v1 = vsub.f32 %v16857_v62, %v5620_v30  ;;  %v14228_v11 = vsub.f32 %v16860_v13, %v5617_v33  ;;  %v5791_v9 = vadd.f32 %v5722_v16, %v5721_v8  ;;  %v5618_v62 = vmul.f32 0.00390625, %v5534_v18  ;;  %v16868_v16 = vld [vmem:[#allocation103_spill] sm:$0xff] }
 0x6dc   :  { %16855 = vst [vmem:[#allocation23_spill] sm:$0xff] %v14220_v21  ;;  %v14232_v38 = vsub.f32 %v16863_v47, %v5617_v33  ;;  %v5723_v0 = vmul.f32 %v14220_v21, %v14220_v21  ;;  %v5615_v33 = vmul.f32 0.00390625, %v5525_v20  ;;  %5801 = vadd.xlane.f32.xlu0 %v5800_v54  ;;  %v16866_v40 = vmax.f32 %v16865_v37, 0.0  ;;  %v16870_v47 = vld [vmem:[#allocation73_spill] sm:$0xff] }
 0x6dd   :  { %16858 = vst [vmem:[#allocation67_spill] sm:$0xff] %v14224_v1  ;;  %16861 = vst [vmem:[#allocation49_spill] sm:$0xff] %v14228_v11  ;;  %v5724_v30 = vmul.f32 %v14224_v1, %v14224_v1  ;;  %v5717_v39 = vmul.f32 %v14228_v11, %v14228_v11  ;;  %5792 = vadd.xlane.f32.xlu1 %v5791_v9  ;;  %v16869_v13 = vmax.f32 %v16868_v16, 0.0  ;;  %v16871_v21 = vmax.f32 %v16870_v47, 0.0  ;;  %v16873_v1 = vld [vmem:[#allocation76_spill] sm:$0xff] }
 0x6de   :  { %16864 = vst [vmem:[#allocation70_spill] sm:$0xff] %v14232_v38  ;;  %v5718_v35 = vmul.f32 %v14232_v38, %v14232_v38  ;;  %v14244_v8 = vsub.f32 %v16866_v40, %v5618_v62  ;;  %v16874_v38 = vmax.f32 %v16873_v1, 0.0  ;;  %v5528_v20 = vpop.xlane.xlu0 %5527  ;;  %v5519_v9 = vpop.xlane.xlu1 %5518  ;;  %v16876_v1 = vld [vmem:[#allocation75_spill] sm:$0xff]  ;;  %v16880_v16 = vld [vmem:[#allocation72_spill] sm:$0xff] }
 0x6df   :  { %v5794_v56 = vadd.f32 %v5724_v30, %v5723_v0  ;;  %v14248_v5 = vsub.f32 %v16869_v13, %v5618_v62  ;;  %v14252_v11 = vsub.f32 %v16871_v21, %v5615_v33  ;;  %v5616_v54 = vmul.f32 0.00390625, %v5528_v20  ;;  %v16882_v20 = vld [vmem:[#allocation71_spill] sm:$0xff] }
 0x6e0   :  { %v5785_v28 = vadd.f32 %v5718_v35, %v5717_v39  ;;  %16867 = vst [vmem:[#allocation94_spill] sm:$0xff] %v14244_v8  ;;  %v14256_v18 = vsub.f32 %v16874_v38, %v5615_v33  ;;  %v5613_v0 = vmul.f32 0.00390625, %v5519_v9  ;;  %v5719_v30 = vmul.f32 %v14244_v8, %v14244_v8  ;;  %v16878_v33 = vld [vmem:[#allocation52_spill] sm:$0xff] }
 0x6e1   :  { %16872 = vst [vmem:[#allocation57_spill] sm:$0xff] %v14252_v11  ;;  %v5720_v39 = vmul.f32 %v14248_v5, %v14248_v5  ;;  %v5713_v35 = vmul.f32 %v14252_v11, %v14252_v11  ;;  %5795 = vadd.xlane.f32.xlu0 %v5794_v56  ;;  %v16877_v38 = vmax.f32 %v16876_v1, 0.0  ;;  %v16879_v37 = vmax.f32 %v16878_v33, 0.0 }
 0x6e2   :  { %16875 = vst [vmem:[#allocation54_spill] sm:$0xff] %v14256_v18  ;;  %v5714_v21 = vmul.f32 %v14256_v18, %v14256_v18  ;;  %v16881_v13 = vmax.f32 %v16880_v16, 0.0  ;;  %v16883_v9 = vmax.f32 %v16882_v20, 0.0  ;;  %5786 = vadd.xlane.f32.xlu1 %v5785_v28  ;;  %v5522_v11 = vpop.xlane.xlu0 %5521  ;;  %v16884_v16 = vld [vmem:[#allocation74_spill] sm:$0xff] }
 0x6e3   :  { %v14268_v62 = vsub.f32 %v16877_v38, %v5616_v54  ;;  %v14272_v40 = vsub.f32 %v16879_v37, %v5616_v54  ;;  %v5788_v18 = vadd.f32 %v5720_v39, %v5719_v30  ;;  %v5614_v37 = vmul.f32 0.00390625, %v5522_v11 }
 0x6e4   :  { %v14276_v47 = vsub.f32 %v16881_v13, %v5613_v0  ;;  %v14280_v8 = vsub.f32 %v16883_v9, %v5613_v0  ;;  %v5779_v56 = vadd.f32 %v5714_v21, %v5713_v35  ;;  %v16885_v30 = vmax.f32 %v16884_v16, 0.0  ;;  %v16886_v35 = vld [vmem:[#allocation51_spill] sm:$0xff] }
 0x6e5   :  { %v5715_v1 = vmul.f32 %v14268_v62, %v14268_v62  ;;  %v5716_v38 = vmul.f32 %v14272_v40, %v14272_v40  ;;  %5789 = vadd.xlane.f32.xlu0 %v5788_v18  ;;  %v16887_v21 = vmax.f32 %v16886_v35, 0.0 }
 0x6e6   :  { %v5709_v54 = vmul.f32 %v14276_v47, %v14276_v47  ;;  %v5710_v33 = vmul.f32 %v14280_v8, %v14280_v8  ;;  %5780 = vadd.xlane.f32.xlu1 %v5779_v56  ;;  %v14292_v39 = vsub.f32 %v16885_v30, %v5614_v37 }
 0x6e7   :  { %v5782_v0 = vadd.f32 %v5716_v38, %v5715_v1  ;;  %v14296_v13 = vsub.f32 %v16887_v21, %v5614_v37  ;;  %v16888_v1 = vmax.f32 %v13912_v41, 0.0  ;;  %v16890_v21 = vmax.f32 %v13932_v36, 0.0 }
 0x6e8   :  { %v5773_v28 = vadd.f32 %v5710_v33, %v5709_v54  ;;  %v5711_v20 = vmul.f32 %v14292_v39, %v14292_v39  ;;  %v16889_v54 = vmax.f32 %v13923_v14, 0.0  ;;  %v16892_v41 = vmax.f32 %v13946_v2, 0.0 }
 0x6e9   :  { %v5712_v9 = vmul.f32 %v14296_v13, %v14296_v13  ;;  %5783 = vadd.xlane.f32.xlu0 %v5782_v0  ;;  %v16893_v14 = vmax.f32 %v13928_v53, 0.0 }
 0x6ea   :  { %5774 = vadd.xlane.f32.xlu1 %v5773_v28 }
 0x6eb   :  { %v5776_v11 = vadd.f32 %v5712_v9, %v5711_v20 }
 0x6ed   :  { %5777 = vadd.xlane.f32.xlu0 %v5776_v11 }
 0x702   :  { %v5609_v18 = vpop.xlane.xlu1 %5608 }
 0x703   :  { %v5643_v56 = vmul.f32 0.00390625, %v5609_v18  ;;  %v16895_v18 = vmax.f32 %v13921_v49, 0.0 }
 0x705   :  { %v14304_v38 = vsub.f32 %v16888_v1, %v5643_v56  ;;  %v14308_v33 = vsub.f32 %v16889_v54, %v5643_v56 }
 0x706   :  { %v5612_v37 = vpop.xlane.xlu0 %5611  ;;  %v5603_v16 = vpop.xlane.xlu1 %5602 }
 0x707   :  { %v5769_v30 = vmul.f32 %v14304_v38, %v14304_v38  ;;  %v5770_v0 = vmul.f32 %v14308_v33, %v14308_v33  ;;  %v5644_v28 = vmul.f32 0.00390625, %v5612_v37  ;;  %v5641_v35 = vmul.f32 0.00390625, %v5603_v16 }
 0x709   :  { %v14316_v20 = vsub.f32 %v16890_v21, %v5644_v28  ;;  %v14320_v9 = vsub.f32 %v16892_v41, %v5644_v28  ;;  %v14324_v11 = vsub.f32 %v16893_v14, %v5641_v35  ;;  %v14328_v56 = vsub.f32 %v16895_v18, %v5641_v35 }
 0x70a   :  { %v5606_v1 = vpop.xlane.xlu0 %5605  ;;  %v5597_v54 = vpop.xlane.xlu1 %5596  ;;  %v5863_v37 = vadd.f32 %v5770_v0, %v5769_v30  ;;  %v16897_v41 = vmax.f32 %v13955_v10, 0.0  ;;  %v16898_v0 = vmax.f32 %v13940_v24, 0.0  ;;  %v16899_v18 = vmax.f32 %v13951_v6, 0.0 }
 0x70b   :  { %16891 = vst [vmem:[#allocation66_spill] sm:$0xff] %v14316_v20  ;;  %16894 = vst [vmem:[#allocation69_spill] sm:$0xff] %v14324_v11  ;;  %v5771_v36 = vmul.f32 %v14316_v20, %v14316_v20  ;;  %v5772_v16 = vmul.f32 %v14320_v9, %v14320_v9  ;;  %v5765_v2 = vmul.f32 %v14324_v11, %v14324_v11  ;;  %v5642_v28 = vmul.f32 0.00390625, %v5606_v1 }
 0x70c   :  { %16896 = vst [vmem:[#allocation56_spill] sm:$0xff] %v14328_v56  ;;  %v5766_v53 = vmul.f32 %v14328_v56, %v14328_v56  ;;  %v5639_v21 = vmul.f32 0.00390625, %v5597_v54  ;;  %5864 = vadd.xlane.f32.xlu1 %v5863_v37  ;;  %v16900_v11 = vmax.f32 %v13937_v50, 0.0  ;;  %v16901_v50 = vmax.f32 %v13988_v25, 0.0 }
 0x70d   :  { %v5866_v49 = vadd.f32 %v5772_v16, %v5771_v36  ;;  %v14340_v30 = vsub.f32 %v16897_v41, %v5642_v28  ;;  %v14344_v14 = vsub.f32 %v16898_v0, %v5642_v28  ;;  %v16903_v28 = vmax.f32 %v13984_v61, 0.0 }
 0x70e   :  { %v5857_v35 = vadd.f32 %v5766_v53, %v5765_v2  ;;  %v14348_v20 = vsub.f32 %v16899_v18, %v5639_v21  ;;  %v14352_v56 = vsub.f32 %v16900_v11, %v5639_v21  ;;  %v5600_v1 = vpop.xlane.xlu0 %5599  ;;  %v5591_v54 = vpop.xlane.xlu1 %5590  ;;  %v16902_v2 = vmax.f32 %v13967_v52, 0.0 }
 0x70f   :  { %v5640_v37 = vmul.f32 0.00390625, %v5600_v1  ;;  %v5637_v36 = vmul.f32 0.00390625, %v5591_v54  ;;  %5867 = vadd.xlane.f32.xlu0 %v5866_v49  ;;  %v5767_v10 = vmul.f32 %v14340_v30, %v14340_v30  ;;  %v5768_v24 = vmul.f32 %v14344_v14, %v14344_v14 }
 0x710   :  { %v5761_v6 = vmul.f32 %v14348_v20, %v14348_v20  ;;  %v5762_v16 = vmul.f32 %v14352_v56, %v14352_v56  ;;  %5858 = vadd.xlane.f32.xlu1 %v5857_v35  ;;  %v16904_v49 = vmax.f32 %v13962_v46, 0.0 }
 0x711   :  { %v14364_v11 = vsub.f32 %v16901_v50, %v5640_v37  ;;  %v14368_v53 = vsub.f32 %v16902_v2, %v5640_v37  ;;  %v14372_v21 = vsub.f32 %v16903_v28, %v5637_v36  ;;  %v5860_v1 = vadd.f32 %v5768_v24, %v5767_v10 }
 0x712   :  { %v14376_v41 = vsub.f32 %v16904_v49, %v5637_v36  ;;  %v5594_v0 = vpop.xlane.xlu0 %5593  ;;  %v5585_v18 = vpop.xlane.xlu1 %5584  ;;  %v5851_v35 = vadd.f32 %v5762_v16, %v5761_v6  ;;  %v16905_v10 = vmax.f32 %v14022_v19, 0.0  ;;  %v16906_v6 = vmax.f32 %v13999_v58, 0.0 }
 0x713   :  { %v5763_v25 = vmul.f32 %v14364_v11, %v14364_v11  ;;  %v5764_v52 = vmul.f32 %v14368_v53, %v14368_v53  ;;  %v5757_v54 = vmul.f32 %v14372_v21, %v14372_v21  ;;  %v5638_v37 = vmul.f32 0.00390625, %v5594_v0  ;;  %5861 = vadd.xlane.f32.xlu0 %v5860_v1 }
 0x714   :  { %v5758_v61 = vmul.f32 %v14376_v41, %v14376_v41  ;;  %v5635_v46 = vmul.f32 0.00390625, %v5585_v18  ;;  %5852 = vadd.xlane.f32.xlu1 %v5851_v35  ;;  %v16907_v2 = vmax.f32 %v14018_v55, 0.0  ;;  %v16908_v49 = vmax.f32 %v13994_v43, 0.0 }
 0x715   :  { %v5854_v36 = vadd.f32 %v5764_v52, %v5763_v25  ;;  %v14388_v24 = vsub.f32 %v16905_v10, %v5638_v37  ;;  %v14392_v16 = vsub.f32 %v16906_v6, %v5638_v37  ;;  %v16909_v43 = vmax.f32 %v14050_v15, 0.0 }
 0x716   :  { %v5845_v50 = vadd.f32 %v5758_v61, %v5757_v54  ;;  %v14396_v28 = vsub.f32 %v16907_v2, %v5635_v46  ;;  %v14400_v0 = vsub.f32 %v16908_v49, %v5635_v46  ;;  %v5588_v18 = vpop.xlane.xlu0 %5587  ;;  %v5579_v1 = vpop.xlane.xlu1 %5578  ;;  %v16910_v61 = vmax.f32 %v14033_v42, 0.0 }
 0x717   :  { %v5636_v35 = vmul.f32 0.00390625, %v5588_v18  ;;  %v5633_v25 = vmul.f32 0.00390625, %v5579_v1  ;;  %v5759_v19 = vmul.f32 %v14388_v24, %v14388_v24  ;;  %v5760_v58 = vmul.f32 %v14392_v16, %v14392_v16  ;;  %5855 = vadd.xlane.f32.xlu0 %v5854_v36 }
 0x718   :  { %v5753_v52 = vmul.f32 %v14396_v28, %v14396_v28  ;;  %v5754_v55 = vmul.f32 %v14400_v0, %v14400_v0  ;;  %v16911_v46 = vmax.f32 %v14046_v57, 0.0  ;;  %v16912_v6 = vmax.f32 %v14028_v29, 0.0  ;;  %5846 = vadd.xlane.f32.xlu1 %v5845_v50 }
 0x719   :  { %v14412_v54 = vsub.f32 %v16909_v43, %v5636_v35  ;;  %v14416_v37 = vsub.f32 %v16910_v61, %v5636_v35  ;;  %v5848_v36 = vadd.f32 %v5760_v58, %v5759_v19  ;;  %v16913_v19 = vmax.f32 %v14069_v26, 0.0 }
 0x71a   :  { %v14420_v10 = vsub.f32 %v16911_v46, %v5633_v25  ;;  %v14424_v2 = vsub.f32 %v16912_v6, %v5633_v25  ;;  %v5582_v49 = vpop.xlane.xlu0 %5581  ;;  %v5573_v18 = vpop.xlane.xlu1 %5572  ;;  %v5839_v1 = vadd.f32 %v5754_v55, %v5753_v52  ;;  %v16914_v52 = vmax.f32 %v14056_v4, 0.0 }
 0x71b   :  { %v5755_v15 = vmul.f32 %v14412_v54, %v14412_v54  ;;  %v5756_v42 = vmul.f32 %v14416_v37, %v14416_v37  ;;  %v5634_v29 = vmul.f32 0.00390625, %v5582_v49  ;;  %v5631_v25 = vmul.f32 0.00390625, %v5573_v18  ;;  %5849 = vadd.xlane.f32.xlu0 %v5848_v36 }
 0x71c   :  { %v5749_v57 = vmul.f32 %v14420_v10, %v14420_v10  ;;  %v5750_v35 = vmul.f32 %v14424_v2, %v14424_v2  ;;  %5840 = vadd.xlane.f32.xlu1 %v5839_v1  ;;  %v16915_v61 = vmax.f32 %v16801_v12, 0.0  ;;  %v16916_v6 = vmax.f32 %v16800_v31, 0.0 }
 0x71d   :  { %v5842_v50 = vadd.f32 %v5756_v42, %v5755_v15  ;;  %v14436_v58 = vsub.f32 %v16913_v19, %v5634_v29  ;;  %v14440_v55 = vsub.f32 %v16914_v52, %v5634_v29  ;;  %v16917_v31 = vmax.f32 %v16805_v48, 0.0 }
 0x71e   :  { %v5833_v43 = vadd.f32 %v5750_v35, %v5749_v57  ;;  %v14444_v46 = vsub.f32 %v16915_v61, %v5631_v25  ;;  %v14448_v49 = vsub.f32 %v16916_v6, %v5631_v25  ;;  %v5576_v18 = vpop.xlane.xlu0 %5575  ;;  %v5567_v36 = vpop.xlane.xlu1 %5566  ;;  %v16918_v35 = vmax.f32 %v16803_v51, 0.0 }
 0x71f   :  { %v5632_v1 = vmul.f32 0.00390625, %v5576_v18  ;;  %v5629_v15 = vmul.f32 0.00390625, %v5567_v36  ;;  %v5751_v26 = vmul.f32 %v14436_v58, %v14436_v58  ;;  %v5752_v4 = vmul.f32 %v14440_v55, %v14440_v55  ;;  %5843 = vadd.xlane.f32.xlu0 %v5842_v50 }
 0x720   :  { %v5745_v42 = vmul.f32 %v14444_v46, %v14444_v46  ;;  %v5746_v12 = vmul.f32 %v14448_v49, %v14448_v49  ;;  %v16919_v25 = vmax.f32 %v16804_v7, 0.0  ;;  %v16921_v52 = vmax.f32 %v16802_v17, 0.0  ;;  %5834 = vadd.xlane.f32.xlu1 %v5833_v43 }
 0x721   :  { %v14460_v57 = vsub.f32 %v16917_v31, %v5632_v1  ;;  %v14464_v29 = vsub.f32 %v16918_v35, %v5632_v1  ;;  %v5836_v18 = vadd.f32 %v5752_v4, %v5751_v26  ;;  %v16924_v4 = vmax.f32 %v16806_v23, 0.0 }
 0x722   :  { %v14468_v19 = vsub.f32 %v16919_v25, %v5629_v15  ;;  %v14472_v61 = vsub.f32 %v16921_v52, %v5629_v15  ;;  %v5570_v6 = vpop.xlane.xlu0 %5569  ;;  %v5827_v50 = vadd.f32 %v5746_v12, %v5745_v42  ;;  %v16922_v15 = vmax.f32 %v16807_v3, 0.0  ;;  %v6180_v3 = vld [vmem:[%s15520_s23 + $0x8] sm:$0xff] }
 0x723   :  { %v5747_v48 = vmul.f32 %v14460_v57, %v14460_v57  ;;  %v5748_v51 = vmul.f32 %v14464_v29, %v14464_v29  ;;  %v5630_v1 = vmul.f32 0.00390625, %v5570_v6  ;;  %5837 = vadd.xlane.f32.xlu0 %v5836_v18  ;;  %6263 = vmatprep.mubr.f32.mxu0 %v6180_v3 }
 0x724   :  { %16920 = vst [vmem:[#allocation61_spill] sm:$0xff] %v14468_v19  ;;  %v5741_v36 = vmul.f32 %v14468_v19, %v14468_v19  ;;  %v5742_v7 = vmul.f32 %v14472_v61, %v14472_v61  ;;  %5828 = vadd.xlane.f32.xlu1 %v5827_v50 }
 0x725   :  { %v5830_v17 = vadd.f32 %v5748_v51, %v5747_v48  ;;  %v14484_v26 = vsub.f32 %v16922_v15, %v5630_v1  ;;  %v14488_v42 = vsub.f32 %v16924_v4, %v5630_v1  ;;  %v14500_v51 = vld [vmem:[%s15510_s13 + $0x78] sm:$0xff]  }
 0x726   :  { %v5821_v43 = vadd.f32 %v5742_v7, %v5741_v36  ;;  %16926 = vst [vmem:[#allocation55_spill] sm:$0xff] %v14500_v51  ;;  %v14505_v36 = vld [vmem:[%s15510_s13 + $0x38] sm:$0xff]   ;;  %v15967_v1 = vunpack.c.h.bf16 %v14500_v51 }
 0x727   :  { %16923 = vst [vmem:[#allocation68_spill] sm:$0xff] %v14484_v26  ;;  %16925 = vst [vmem:[#allocation50_spill] sm:$0xff] %v14488_v42  ;;  %v5743_v12 = vmul.f32 %v14484_v26, %v14484_v26  ;;  %v5744_v31 = vmul.f32 %v14488_v42, %v14488_v42  ;;  %5831 = vadd.xlane.f32.xlu0 %v5830_v17  ;;  %v15964_v3 = vunpack.c.l.bf16 %v14505_v36 }
 0x728   :  { %5822 = vadd.xlane.f32.xlu1 %v5821_v43  ;;  %16927 = vst [vmem:[#allocation60_spill] sm:$0xff] %v14505_v36  ;;  %v15966_v43 = vunpack.c.h.bf16 %v14505_v36  ;;  %9369 = vmatprep.subr.mxu1 %v15967_v1 }
 0x729   :  { %v5824_v35 = vadd.f32 %v5744_v31, %v5743_v12  ;;  %v15965_v12 = vunpack.c.l.bf16 %v14500_v51 }
 0x72a   :  { %9385 = vmatpush3.msra.mxu1 %v15966_v43 }
 0x72b   :  { %5825 = vadd.xlane.f32.xlu0 %v5824_v35  ;;  %9370 = vmatprep.subr.mxu1 %v15965_v12 }
 0x72c   :  { %9386 = vmatpush3.msra.mxu1 %v15964_v3 }
 0x755   :  { %v5817_v25 = vpop.xlane.xlu1 %5816 }
 0x756   :  { %v5883_v52 = vmul.f32 0.00390625, %v5817_v25  ;;  %v14516_v25 = vld [vmem:[%s15510_s13 + $0x70] sm:$0xff]  }
 0x757   :  { %16928 = vst [vmem:[#allocation48_spill] sm:$0xff] %v14516_v25 }
 0x758   :  { %v5915_v23 = vadd.f32 1e-05, %v5883_v52  ;;  %v5820_v6 = vpop.xlane.xlu0 %5819  ;;  %v14521_v52 = vld [vmem:[%s15510_s13 + $0x30] sm:$0xff]  }
 0x759   :  { %v5884_v18 = vmul.f32 0.00390625, %v5820_v6  ;;  %16929 = vst [vmem:[#allocation65_spill] sm:$0xff] %v14521_v52 }
 0x75a   :  { %v5811_v50 = vpop.xlane.xlu1 %5810  ;;  %9546 = vrsqrt.f32 %v5915_v23  ;;  %v15963_v23 = vunpack.c.h.bf16 %v14516_v25 }
 0x75b   :  { %v5881_v48 = vmul.f32 0.00390625, %v5811_v50  ;;  %v5916_v7 = vadd.f32 1e-05, %v5884_v18  ;;  %v15968_v50 = vunpack.c.h.bf16 %v14521_v52 }
 0x75c   :  { %9371 = vmatprep.subr.mxu1 %v15963_v23 }
 0x75d   :  { %v5913_v17 = vadd.f32 1e-05, %v5881_v48  ;;  %9548 = vrsqrt.f32 %v5916_v7  ;;  %v5814_v15 = vpop.xlane.xlu0 %5813  ;;  %v15969_v7 = vunpack.c.l.bf16 %v14516_v25  ;;  %9387 = vmatpush3.msra.mxu1 %v15968_v50 }
 0x75e   :  { %v5805_v4 = vpop.xlane.xlu1 %5804  ;;  %v5882_v31 = vmul.f32 0.00390625, %v5814_v15 }
 0x75f   :  { %9550 = vrsqrt.f32 %v5913_v17  ;;  %v5879_v35 = vmul.f32 0.00390625, %v5805_v4  ;;  %v15973_v4 = vunpack.c.l.bf16 %v14521_v52  ;;  %9372 = vmatprep.subr.mxu1 %v15969_v7  ;;  %v5516_v7 = vld [vmem:[%s15509_s12] sm:$0x3]  ;;  %s9934_s12 = smov 112  }
 0x760   :  { %v5914_v6 = vadd.f32 1e-05, %v5882_v31  ;;  %v14538_v31 = vld [vmem:[%s15510_s13 + $0x68] sm:$0xff]  }
 0x761   :  { %v5911_v18 = vadd.f32 1e-05, %v5879_v35  ;;  %v5808_v48 = vpop.xlane.xlu0 %5807  ;;  %16930 = vst [vmem:[#allocation63_spill] sm:$0xff] %v14538_v31  ;;  %v14543_v35 = vld [vmem:[%s15510_s13 + $0x28] sm:$0xff]   ;;  %9388 = vmatpush3.msra.mxu1 %v15973_v4  ;;  %v16936_v36 = vunpack.c.l.bf16 %v14538_v31 }
 0x762   :  { %9552 = vrsqrt.f32 %v5914_v6  ;;  %v5880_v17 = vmul.f32 0.00390625, %v5808_v48  ;;  %v5799_v15 = vpop.xlane.xlu1 %5798  ;;  %v5515_v6 = vld [vmem:[%s15508_s11] sm:$0x3]  ;;  %v15972_v48 = vunpack.c.h.bf16 %v14538_v31 }
 0x763   :  { %9554 = vrsqrt.f32 %v5911_v18  ;;  %v5877_v23 = vmul.f32 0.00390625, %v5799_v15  ;;  %v16935_v18 = vld [vmem:[#allocation53_spill] sm:$0xff] }
 0x764   :  { %v5912_v3 = vadd.f32 1e-05, %v5880_v17  ;;  %9373 = vmatprep.subr.mxu1 %v15972_v48  ;;  %v16931_v17 = vld [vmem:[#allocation20_spill] sm:$0xff]  ;;  %v14579_v52 = vrot.slane %v5515_v6, %v16935_v18 }
 0x765   :  { %v5909_v43 = vadd.f32 1e-05, %v5877_v23  ;;  %v5802_v1 = vpop.xlane.xlu0 %5801  ;;  %v14563_v25 = vrot.slane %v5515_v6, %v16931_v17  ;;  %v14569_v23 = vld [vmem:[%s15510_s13 + $0x60] sm:$0xff]   ;;  %v14590_v6 = vrot.slane %v5516_v7, %v16931_v17 }
 0x766   :  { %9556 = vrsqrt.f32 %v5912_v3  ;;  %v5878_v15 = vmul.f32 0.00390625, %v5802_v1  ;;  %v5793_v50 = vpop.xlane.xlu1 %5792  ;;  %16932 = vst [vmem:[#allocation64_spill] sm:$0xff] %v14569_v23  ;;  %v14574_v3 = vld [vmem:[%s15510_s13 + $0x20] sm:$0xff]   ;;  %v16934_v1 = vunpack.c.h.bf16 %v14543_v35  ;;  %v16938_v31 = vunpack.c.h.bf16 %v14569_v23 }
 0x767   :  { %16933 = vst [vmem:[#allocation62_spill] sm:$0xff] %v14574_v3  ;;  %v9547_v48 = vpop.eup %9546  ;;  %9558 = vrsqrt.f32 %v5909_v43  ;;  %v5875_v4 = vmul.f32 0.00390625, %v5793_v50  ;;  %v15985_v19 = vunpack.c.h.bf16 %v14574_v3 }
 0x768   :  { %9389 = vmatpush3.msra.mxu1 %v16934_v1  ;;  %v5910_v51 = vadd.f32 1e-05, %v5878_v15  ;;  %v5994_v26 = vmul.f32 %v9547_v48, %v14116_v45  ;;  %v5993_v42 = vmul.f32 %v9547_v48, %v14112_v59  ;;  %v16937_v1 = vunpack.c.l.bf16 %v14543_v35 }
 0x769   :  { %9374 = vmatprep.subr.mxu1 %v16936_v36  ;;  %v5907_v43 = vadd.f32 1e-05, %v5875_v4  ;;  %v14596_v59 = vrot.slane %v5516_v7, %v16935_v18  ;;  %v15988_v48 = vunpack.c.l.bf16 %v14574_v3  ;;  %v16939_v7 = vunpack.c.l.bf16 %v14569_v23 }
 0x76a   :  { %9390 = vmatpush3.msra.mxu1 %v16937_v1  ;;  %v5796_v50 = vpop.xlane.xlu0 %5795  ;;  %v9549_v36 = vpop.eup %9548  ;;  %9560 = vrsqrt.f32 %v5910_v51  ;;  %v14606_v51 = vld [vmem:[%s15510_s13 + $0x58] sm:$0xff]   ;;  %v6069_v18 = vmul.f32 %v14579_v52, %v5994_v26 }
 0x76b   :  { %9375 = vmatprep.subr.mxu1 %v16938_v31  ;;  %v5876_v45 = vmul.f32 0.00390625, %v5796_v50  ;;  %v5787_v15 = vpop.xlane.xlu1 %5786  ;;  %9562 = vrsqrt.f32 %v5907_v43  ;;  %v5996_v1 = vmul.f32 %v9549_v36, %v14128_v34  ;;  %v5995_v12 = vmul.f32 %v9549_v36, %v14124_v32 }
 0x76c   :  { %9391 = vmatpush3.msra.mxu1 %v15985_v19  ;;  %v9551_v4 = vpop.eup %9550  ;;  %v5873_v17 = vmul.f32 0.00390625, %v5787_v15  ;;  %v6068_v50 = vmul.f32 %v14563_v25, %v5993_v42  ;;  %v15991_v42 = vunpack.c.h.bf16 %v14606_v51 }
 0x76d   :  { %9376 = vmatprep.subr.mxu1 %v16939_v7  ;;  %v5908_v31 = vadd.f32 1e-05, %v5876_v45  ;;  %v5990_v43 = vmul.f32 %v9551_v4, %v14136_v27  ;;  %v6071_v36 = vmul.f32 %v14579_v52, %v5996_v1  ;;  %v6070_v15 = vmul.f32 %v14563_v25, %v5995_v12 }
 0x76e   :  { %9392 = vmatpush3.msra.mxu1 %v15988_v48  ;;  %v5905_v34 = vadd.f32 1e-05, %v5873_v17  ;;  %v5790_v32 = vpop.xlane.xlu0 %5789  ;;  %v5989_v19 = vmul.f32 %v9551_v4, %v14132_v44  ;;  %v6144_v12 = vadd.f32 %v14596_v59, %v6069_v18 }
 0x76f   :  { %9564 = vrsqrt.f32 %v5908_v31  ;;  %v5874_v7 = vmul.f32 0.00390625, %v5790_v32  ;;  %v5781_v45 = vpop.xlane.xlu1 %5780  ;;  %v6065_v26 = vmul.f32 %v14579_v52, %v5990_v43  ;;  %v9553_v23 = vpop.eup %9552  ;;  %v6146_v48 = vadd.f32 %v14596_v59, %v6071_v36  ;;  %9377 = vmatprep.subr.mxu1 %v15991_v42 }
 0x770   :  { %9566 = vrsqrt.f32 %v5905_v34  ;;  %v5871_v27 = vmul.f32 0.00390625, %v5781_v45  ;;  %v6145_v17 = vadd.f32 %v14590_v6, %v6070_v15  ;;  %v9555_v3 = vpop.eup %9554  ;;  %v5992_v44 = vmul.f32 %v9553_v23, %v14152_v63  ;;  %v16940_v45 = vld [vmem:[#allocation86_spill] sm:$0xff] }
 0x771   :  { %v5906_v1 = vadd.f32 1e-05, %v5874_v7  ;;  %v5991_v4 = vmul.f32 %v9553_v23, %v14148_v22  ;;  %6199 = vmatprep.subr.mxu0 %v6146_v48  ;;  %v6143_v34 = vadd.f32 %v14590_v6, %v6068_v50  ;;  %v6064_v32 = vmul.f32 %v14563_v25, %v5989_v19 }
 0x772   :  { %v5903_v31 = vadd.f32 1e-05, %v5871_v27  ;;  %v5784_v43 = vpop.xlane.xlu0 %5783  ;;  %v5986_v36 = vmul.f32 %v9555_v3, %v14160_v60  ;;  %6200 = vmatpush1.msra.mxu0 %v6145_v17  ;;  %v6067_v63 = vmul.f32 %v14579_v52, %v5992_v44  ;;  %v6140_v48 = vadd.f32 %v14596_v59, %v6065_v26  ;;  %v16941_v17 = vld [vmem:[#allocation21_spill] sm:$0xff] }
 0x773   :  { %9568 = vrsqrt.f32 %v5906_v1  ;;  %v5872_v15 = vmul.f32 0.00390625, %v5784_v43  ;;  %v5775_v7 = vpop.xlane.xlu1 %5774  ;;  %v6066_v22 = vmul.f32 %v14563_v25, %v5991_v4  ;;  %v9557_v23 = vpop.eup %9556  ;;  %6201 = vmatprep.subr.mxu0 %v6144_v12  ;;  %v5985_v50 = vmul.f32 %v9555_v3, %v16940_v45  ;;  %v16944_v45 = vld [vmem:[#allocation87_spill] sm:$0xff] }
 0x774   :  { %9570 = vrsqrt.f32 %v5903_v31  ;;  %v5869_v18 = vmul.f32 0.00390625, %v5775_v7  ;;  %v9559_v27 = vpop.eup %9558  ;;  %6202 = vmatpush1.msra.mxu0 %v6143_v34  ;;  %v6142_v60 = vadd.f32 %v14596_v59, %v6067_v63  ;;  %v5988_v43 = vmul.f32 %v9557_v23, %v16941_v17  ;;  %v16942_v31 = vld [vmem:[#allocation28_spill] sm:$0xff]  ;;  %v16943_v34 = vld [vmem:[#allocation25_spill] sm:$0xff] }
 0x775   :  { %v5904_v19 = vadd.f32 1e-05, %v5872_v15  ;;  %v6141_v1 = vadd.f32 %v14590_v6, %v6066_v22  ;;  %v6139_v4 = vadd.f32 %v14590_v6, %v6064_v32  ;;  %v5987_v7 = vmul.f32 %v9557_v23, %v16942_v31 }
 0x776   :  { %v5901_v44 = vadd.f32 1e-05, %v5869_v18  ;;  %v5778_v42 = vpop.xlane.xlu0 %5777  ;;  %v6061_v12 = vmul.f32 %v14579_v52, %v5986_v36  ;;  %6203 = vmatprep.subr.mxu0 %v6142_v60  ;;  %v6063_v3 = vmul.f32 %v14579_v52, %v5988_v43  ;;  %v5982_v15 = vmul.f32 %v9559_v27, %v16943_v34  ;;  %v16946_v60 = vld [vmem:[#allocation26_spill] sm:$0xff] }
 0x777   :  { %9572 = vrsqrt.f32 %v5904_v19  ;;  %v5870_v26 = vmul.f32 0.00390625, %v5778_v42  ;;  %v9561_v63 = vpop.eup %9560  ;;  %6204 = vmatpush1.msra.mxu0 %v6141_v1  ;;  %v6062_v22 = vmul.f32 %v14563_v25, %v5987_v7  ;;  %v6060_v18 = vmul.f32 %v14563_v25, %v5985_v50  ;;  %v16945_v42 = vld [vmem:[#allocation95_spill] sm:$0xff]  ;;  %v16947_v7 = vld [vmem:[#allocation24_spill] sm:$0xff] }
 0x778   :  { %9574 = vrsqrt.f32 %v5901_v44  ;;  %v5981_v32 = vmul.f32 %v9559_v27, %v16944_v45  ;;  %v9563_v17 = vpop.eup %9562  ;;  %6205 = vmatprep.subr.mxu0 %v6140_v48  ;;  %v6138_v36 = vadd.f32 %v14596_v59, %v6063_v3  ;;  %v5984_v19 = vmul.f32 %v9561_v63, %v16945_v42  ;;  %v14651_v44 = vld [vmem:[%s15510_s13 + $0x18] sm:$0xff]  }
 0x779   :  { %v5902_v23 = vadd.f32 1e-05, %v5870_v26  ;;  %v5983_v43 = vmul.f32 %v9561_v63, %v16946_v60  ;;  %6206 = vmatpush1.msra.mxu0 %v6139_v4  ;;  %v6137_v1 = vadd.f32 %v14590_v6, %v6062_v22  ;;  %v6136_v50 = vadd.f32 %v14596_v59, %v6061_v12  ;;  %v16948_v63 = vld [vmem:[#allocation101_spill] sm:$0xff] }
 0x77a   :  { %v6057_v27 = vmul.f32 %v14579_v52, %v5982_v15  ;;  %6207 = vmatprep.subr.mxu0 %v6138_v36  ;;  %v6059_v48 = vmul.f32 %v14579_v52, %v5984_v19  ;;  %v5978_v26 = vmul.f32 %v9563_v17, %v16947_v7  ;;  %v6135_v34 = vadd.f32 %v14590_v6, %v6060_v18  ;;  %v16949_v36 = vld [vmem:[#allocation67_spill] sm:$0xff]  ;;  %v16951_v18 = vld [vmem:[#allocation70_spill] sm:$0xff] }
 0x77b   :  { %9576 = vrsqrt.f32 %v5902_v23  ;;  %v6058_v31 = vmul.f32 %v14563_v25, %v5983_v43  ;;  %6208 = vmatpush1.msra.mxu0 %v6137_v1  ;;  %v6056_v4 = vmul.f32 %v14563_v25, %v5981_v32  ;;  %v5977_v22 = vmul.f32 %v9563_v17, %v16948_v63  ;;  %v16950_v19 = vld [vmem:[#allocation23_spill] sm:$0xff]  ;;  %v16952_v32 = vld [vmem:[#allocation49_spill] sm:$0xff] }
 0x77c   :  { %v9565_v3 = vpop.eup %9564  ;;  %v8876_v12 = vunpack.c.h.bf16 %v14651_v44  ;;  %6209 = vmatprep.subr.mxu0 %v6136_v50  ;;  %v6134_v15 = vadd.f32 %v14596_v59, %v6059_v48  ;;  %v6132_v43 = vadd.f32 %v14596_v59, %v6057_v27  ;;  %v6053_v48 = vmul.f32 %v14579_v52, %v5978_v26  ;;  %v16953_v26 = vld [vmem:[#allocation94_spill] sm:$0xff] }
 0x77d   :  { %v9567_v45 = vpop.eup %9566  ;;  %v6133_v23 = vadd.f32 %v14590_v6, %v6058_v31  ;;  %v5980_v42 = vmul.f32 %v9565_v3, %v16949_v36  ;;  %v5979_v60 = vmul.f32 %v9565_v3, %v16950_v19  ;;  %6210 = vmatpush1.msra.mxu0 %v6135_v34  ;;  %v6131_v3 = vadd.f32 %v14590_v6, %v6056_v4  ;;  %v16954_v19 = vld [vmem:[#allocation54_spill] sm:$0xff] }
 0x77e   :  { %v5974_v1 = vmul.f32 %v9567_v45, %v16951_v18  ;;  %v5973_v7 = vmul.f32 %v9567_v45, %v16952_v32  ;;  %6211 = vmatprep.subr.mxu0 %v6134_v15  ;;  %9393 = vmatpush3.msra.mxu1 %v8876_v12  ;;  %v6052_v27 = vmul.f32 %v14563_v25, %v5977_v22  ;;  %v8907_v34 = vunpack.c.l.bf16 %v14606_v51 }
 0x77f   :  { %v6055_v17 = vmul.f32 %v14579_v52, %v5980_v42  ;;  %v6054_v50 = vmul.f32 %v14563_v25, %v5979_v60  ;;  %6212 = vmatpush1.msra.mxu0 %v6133_v23  ;;  %v14685_v23 = vld [vmem:[%s15510_s13 + $0x50] sm:$0xff]   ;;  %v6128_v18 = vadd.f32 %v14596_v59, %v6053_v48 }
 0x780   :  { %v9569_v31 = vpop.eup %9568  ;;  %6213 = vmatprep.subr.mxu0 %v6132_v43  ;;  %v6049_v4 = vmul.f32 %v14579_v52, %v5974_v1  ;;  %v6048_v22 = vmul.f32 %v14563_v25, %v5973_v7  ;;  %v8875_v43 = vunpack.c.l.bf16 %v14651_v44  ;;  %9378 = vmatprep.subr.mxu1 %v8907_v34  ;;  %v6127_v7 = vadd.f32 %v14590_v6, %v6052_v27  ;;  %v6193_v44 = vld [vmem:[%s15520_s23 + $0x70] sm:$0xff] }
 0x781   :  { %v9571_v63 = vpop.eup %9570  ;;  %v6130_v45 = vadd.f32 %v14596_v59, %v6055_v17  ;;  %v6129_v15 = vadd.f32 %v14590_v6, %v6054_v50  ;;  %v5976_v36 = vmul.f32 %v9569_v31, %v14248_v5  ;;  %v5975_v42 = vmul.f32 %v9569_v31, %v16953_v26  ;;  %6214 = vmatpush1.msra.mxu0 %v6131_v3  ;;  %v14697_v17 = vld [vmem:[%s15510_s13 + $0x10] sm:$0xff]   ;;  %v16955_v50 = vld [vmem:[#allocation57_spill] sm:$0xff] }
 0x782   :  { %v5970_v60 = vmul.f32 %v9571_v63, %v16954_v19  ;;  %v5969_v31 = vmul.f32 %v9571_v63, %v16955_v50  ;;  %v8904_v48 = vunpack.c.h.bf16 %v14685_v23  ;;  %9394 = vmatpush3.msra.mxu1 %v8875_v43  ;;  %v6124_v27 = vadd.f32 %v14596_v59, %v6049_v4 }
 0x783   :  { %6215 = vmatprep.subr.mxu0 %v6130_v45  ;;  %v6051_v5 = vmul.f32 %v14579_v52, %v5976_v36  ;;  %v6050_v32 = vmul.f32 %v14563_v25, %v5975_v42  ;;  %v6123_v63 = vadd.f32 %v14590_v6, %v6048_v22  ;;  %v8872_v19 = vunpack.c.h.bf16 %v14697_v17 }
 0x784   :  { %v9573_v1 = vpop.eup %9572  ;;  %6216 = vmatpush1.msra.mxu0 %v6129_v15  ;;  %v6045_v15 = vmul.f32 %v14579_v52, %v5970_v60  ;;  %9379 = vmatprep.subr.mxu1 %v8904_v48  ;;  %v6044_v4 = vmul.f32 %v14563_v25, %v5969_v31  ;;  %v8903_v60 = vunpack.c.l.bf16 %v14685_v23 }
 0x785   :  { %v9575_v3 = vpop.eup %9574  ;;  %6217 = vmatprep.subr.mxu0 %v6128_v18  ;;  %v6126_v45 = vadd.f32 %v14596_v59, %v6051_v5  ;;  %v6125_v36 = vadd.f32 %v14590_v6, %v6050_v32  ;;  %v5972_v26 = vmul.f32 %v9573_v1, %v14272_v40  ;;  %v5971_v42 = vmul.f32 %v9573_v1, %v14268_v62  ;;  %v14720_v62 = vld [vmem:[%s15510_s13 + $0x48] sm:$0xff]  }
 0x786   :  { %6218 = vmatpush1.msra.mxu0 %v6127_v7  ;;  %v5966_v32 = vmul.f32 %v9575_v3, %v14280_v8  ;;  %v5965_v22 = vmul.f32 %v9575_v3, %v14276_v47  ;;  %v8871_v1 = vunpack.c.l.bf16 %v14697_v17  ;;  %v14731_v8 = vld [vmem:[%s15510_s13 + $0x8] sm:$0xff]   ;;  %9395 = vmatpush3.msra.mxu1 %v8872_v19  ;;  %v6120_v3 = vadd.f32 %v14596_v59, %v6045_v15  ;;  %v6195_v17 = vld [vmem:[%s15520_s23 + $0x80] sm:$0xff] }
 0x787   :  { %6219 = vmatprep.subr.mxu0 %v6126_v45  ;;  %v6047_v18 = vmul.f32 %v14579_v52, %v5972_v26  ;;  %v6046_v5 = vmul.f32 %v14563_v25, %v5971_v42  ;;  %v8900_v45 = vunpack.c.h.bf16 %v14720_v62  ;;  %9380 = vmatprep.subr.mxu1 %v8903_v60  ;;  %v16987_v23 = vunpack.c.l.bf16 %v14720_v62 }
 0x788   :  { %v9577_v40 = vpop.eup %9576  ;;  %6220 = vmatpush1.msra.mxu0 %v6125_v36  ;;  %v6041_v42 = vmul.f32 %v14579_v52, %v5966_v32  ;;  %9396 = vmatpush3.msra.mxu1 %v8871_v1 }
 0x789   :  { %6221 = vmatprep.subr.mxu0 %v6124_v27  ;;  %v6122_v7 = vadd.f32 %v14596_v59, %v6047_v18  ;;  %v6121_v50 = vadd.f32 %v14590_v6, %v6046_v5  ;;  %v5968_v31 = vmul.f32 %v9577_v40, %v14296_v13  ;;  %v5967_v47 = vmul.f32 %v9577_v40, %v14292_v39 }
 0x78a   :  { %6222 = vmatpush1.msra.mxu0 %v6123_v63  ;;  %v15994_v27 = vunpack.c.h.bf16 %v14731_v8  ;;  %v6119_v39 = vadd.f32 %v14590_v6, %v6044_v4  ;;  %v6040_v13 = vmul.f32 %v14563_v25, %v5965_v22  ;;  %v15993_v63 = vunpack.c.l.bf16 %v14720_v62  ;;  %9381 = vmatprep.subr.mxu1 %v8900_v45  ;;  %v8967_v62 = vld [vmem:[%s15510_s13 + $0x40] sm:$0xff]  }
 0x78b   :  { %6223 = vmatprep.subr.mxu0 %v6122_v7  ;;  %v6043_v36 = vmul.f32 %v14579_v52, %v5968_v31  ;;  %v6042_v26 = vmul.f32 %v14563_v25, %v5967_v47  ;;  %v15992_v5 = vunpack.c.l.bf16 %v14731_v8  ;;  %v6116_v32 = vadd.f32 %v14596_v59, %v6041_v42 }
 0x78c   :  { %6224 = vmatpush1.msra.mxu0 %v6121_v50  ;;  %9397 = vmatpush3.msra.mxu1 %v15994_v27  ;;  %v6115_v40 = vadd.f32 %v14590_v6, %v6040_v13  ;;  %v16958_v27 = vld [vmem:[#allocation69_spill] sm:$0xff] }
 0x78d   :  { %6225 = vmatprep.subr.mxu0 %v6120_v3  ;;  %v6118_v15 = vadd.f32 %v14596_v59, %v6043_v36  ;;  %v6117_v18 = vadd.f32 %v14590_v6, %v6042_v26  ;;  %9382 = vmatprep.subr.mxu1 %v15993_v63 }
 0x78e   :  { %6226 = vmatpush1.msra.mxu0 %v6119_v39  ;;  %9398 = vmatpush3.msra.mxu1 %v15992_v5 }
 0x78f   :  { %6227 = vmatprep.subr.mxu0 %v6118_v15 }
 0x790   :  { %6228 = vmatpush1.msra.mxu0 %v6117_v18 }
 0x791   :  { %6229 = vmatprep.subr.mxu0 %v6116_v32 }
 0x792   :  { %6230 = vmatpush1.msra.mxu0 %v6115_v40 }
 0x795   :  { %v5865_v4 = vpop.xlane.xlu1 %5864 }
 0x796   :  { %v5899_v22 = vmul.f32 0.00390625, %v5865_v4 }
 0x798   :  { %v5931_v7 = vadd.f32 1e-05, %v5899_v22  ;;  %v5868_v50 = vpop.xlane.xlu0 %5867 }
 0x799   :  { %v5900_v31 = vmul.f32 0.00390625, %v5868_v50  ;;  %v5859_v47 = vpop.xlane.xlu1 %5858 }
 0x79a   :  { %9578 = vrsqrt.f32 %v5931_v7  ;;  %v5897_v3 = vmul.f32 0.00390625, %v5859_v47 }
 0x79b   :  { %v5932_v36 = vadd.f32 1e-05, %v5900_v31 }
 0x79c   :  { %v5929_v26 = vadd.f32 1e-05, %v5897_v3  ;;  %v5862_v42 = vpop.xlane.xlu0 %5861 }
 0x79d   :  { %9580 = vrsqrt.f32 %v5932_v36  ;;  %v5853_v39 = vpop.xlane.xlu1 %5852  ;;  %v5898_v15 = vmul.f32 0.00390625, %v5862_v42 }
 0x79e   :  { %9582 = vrsqrt.f32 %v5929_v26  ;;  %v5895_v18 = vmul.f32 0.00390625, %v5853_v39 }
 0x79f   :  { %v5930_v5 = vadd.f32 1e-05, %v5898_v15 }
 0x7a0   :  { %v5927_v13 = vadd.f32 1e-05, %v5895_v18  ;;  %v5856_v32 = vpop.xlane.xlu0 %5855 }
 0x7a1   :  { %9584 = vrsqrt.f32 %v5930_v5  ;;  %v5896_v40 = vmul.f32 0.00390625, %v5856_v32  ;;  %v5847_v4 = vpop.xlane.xlu1 %5846 }
 0x7a2   :  { %9586 = vrsqrt.f32 %v5927_v13  ;;  %v5893_v22 = vmul.f32 0.00390625, %v5847_v4 }
 0x7a3   :  { %v5928_v50 = vadd.f32 1e-05, %v5896_v40 }
 0x7a4   :  { %v5925_v63 = vadd.f32 1e-05, %v5893_v22  ;;  %v5850_v7 = vpop.xlane.xlu0 %5849 }
 0x7a5   :  { %9588 = vrsqrt.f32 %v5928_v50  ;;  %v5894_v31 = vmul.f32 0.00390625, %v5850_v7  ;;  %v5841_v47 = vpop.xlane.xlu1 %5840  ;;  %v16956_v50 = vld [vmem:[#allocation66_spill] sm:$0xff] }
 0x7a6   :  { %9590 = vrsqrt.f32 %v5925_v63  ;;  %v5891_v36 = vmul.f32 0.00390625, %v5841_v47  ;;  %v16957_v47 = vld [vmem:[#allocation56_spill] sm:$0xff] }
 0x7a7   :  { %v9579_v3 = vpop.eup %9578  ;;  %v5926_v26 = vadd.f32 1e-05, %v5894_v31 }
 0x7a8   :  { %v6026_v42 = vmul.f32 %v9579_v3, %v14308_v33  ;;  %v6025_v39 = vmul.f32 %v9579_v3, %v14304_v38  ;;  %v5923_v15 = vadd.f32 1e-05, %v5891_v36  ;;  %v5844_v5 = vpop.xlane.xlu0 %5843 }
 0x7a9   :  { %9592 = vrsqrt.f32 %v5926_v26  ;;  %v5892_v13 = vmul.f32 0.00390625, %v5844_v5  ;;  %v5835_v32 = vpop.xlane.xlu1 %5834 }
 0x7aa   :  { %v9581_v18 = vpop.eup %9580  ;;  %9594 = vrsqrt.f32 %v5923_v15  ;;  %v5889_v4 = vmul.f32 0.00390625, %v5835_v32  ;;  %v6101_v31 = vmul.f32 %v14579_v52, %v6026_v42  ;;  %v6100_v33 = vmul.f32 %v14563_v25, %v6025_v39 }
 0x7ab   :  { %v9583_v40 = vpop.eup %9582  ;;  %v6028_v22 = vmul.f32 %v9581_v18, %v14320_v9  ;;  %v6027_v7 = vmul.f32 %v9581_v18, %v16956_v50  ;;  %v5924_v63 = vadd.f32 1e-05, %v5892_v13 }
 0x7ac   :  { %v6022_v38 = vmul.f32 %v9583_v40, %v16957_v47  ;;  %v5921_v3 = vadd.f32 1e-05, %v5889_v4  ;;  %v5838_v36 = vpop.xlane.xlu0 %5837  ;;  %v6021_v15 = vmul.f32 %v9583_v40, %v16958_v27 }
 0x7ad   :  { %v6103_v26 = vmul.f32 %v14579_v52, %v6028_v22  ;;  %v6102_v5 = vmul.f32 %v14563_v25, %v6027_v7  ;;  %9596 = vrsqrt.f32 %v5924_v63  ;;  %v5890_v32 = vmul.f32 0.00390625, %v5838_v36  ;;  %v5829_v9 = vpop.xlane.xlu1 %5828 }
 0x7ae   :  { %v6097_v18 = vmul.f32 %v14579_v52, %v6022_v38  ;;  %v9585_v13 = vpop.eup %9584  ;;  %9598 = vrsqrt.f32 %v5921_v3  ;;  %v5887_v42 = vmul.f32 0.00390625, %v5829_v9  ;;  %v6176_v22 = vadd.f32 %v14596_v59, %v6101_v31 }
 0x7af   :  { %v6178_v39 = vadd.f32 %v14596_v59, %v6103_v26  ;;  %v6177_v50 = vadd.f32 %v14590_v6, %v6102_v5  ;;  %v9587_v4 = vpop.eup %9586  ;;  %v5922_v47 = vadd.f32 1e-05, %v5890_v32  ;;  %v6024_v7 = vmul.f32 %v9585_v13, %v14344_v14 }
 0x7b0   :  { %v6023_v27 = vmul.f32 %v9585_v13, %v14340_v30  ;;  %v5919_v40 = vadd.f32 1e-05, %v5887_v42  ;;  %v5832_v63 = vpop.xlane.xlu0 %5831  ;;  %v6175_v38 = vadd.f32 %v14590_v6, %v6100_v33  ;;  %v6096_v3 = vmul.f32 %v14563_v25, %v6021_v15 }
 0x7b1   :  { %6231 = vmatprep.subr.mxu0 %v6178_v39  ;;  %v6018_v36 = vmul.f32 %v9587_v4, %v14352_v56  ;;  %9600 = vrsqrt.f32 %v5922_v47  ;;  %v5888_v26 = vmul.f32 0.00390625, %v5832_v63  ;;  %v5823_v5 = vpop.xlane.xlu1 %5822  ;;  %v6099_v32 = vmul.f32 %v14579_v52, %v6024_v7 }
 0x7b2   :  { %6232 = vmatpush2.msra.mxu0 %v6177_v50  ;;  %v6098_v31 = vmul.f32 %v14563_v25, %v6023_v27  ;;  %v9589_v14 = vpop.eup %9588  ;;  %9602 = vrsqrt.f32 %v5919_v40  ;;  %v5885_v30 = vmul.f32 0.00390625, %v5823_v5  ;;  %v6172_v9 = vadd.f32 %v14596_v59, %v6097_v18 }
 0x7b3   :  { %6233 = vmatprep.subr.mxu0 %v6176_v22  ;;  %v6017_v33 = vmul.f32 %v9587_v4, %v14348_v20  ;;  %v9591_v13 = vpop.eup %9590  ;;  %v5920_v15 = vadd.f32 1e-05, %v5888_v26  ;;  %v6174_v56 = vadd.f32 %v14596_v59, %v6099_v32  ;;  %v6020_v39 = vmul.f32 %v9589_v14, %v14368_v53 }
 0x7b4   :  { %6234 = vmatpush2.msra.mxu0 %v6175_v38  ;;  %v6173_v42 = vadd.f32 %v14590_v6, %v6098_v31  ;;  %v5917_v50 = vadd.f32 1e-05, %v5885_v30  ;;  %v5826_v47 = vpop.xlane.xlu0 %5825  ;;  %v6171_v7 = vadd.f32 %v14590_v6, %v6096_v3  ;;  %v6019_v27 = vmul.f32 %v9589_v14, %v14364_v11 }
 0x7b5   :  { %v6093_v22 = vmul.f32 %v14579_v52, %v6018_v36  ;;  %9604 = vrsqrt.f32 %v5920_v15  ;;  %v5886_v18 = vmul.f32 0.00390625, %v5826_v47  ;;  %6235 = vmatprep.subr.mxu0 %v6174_v56  ;;  %v6095_v20 = vmul.f32 %v14579_v52, %v6020_v39 }
 0x7b6   :  { %v6014_v4 = vmul.f32 %v9591_v13, %v14376_v41  ;;  %v9593_v40 = vpop.eup %9592  ;;  %9606 = vrsqrt.f32 %v5917_v50  ;;  %6236 = vmatpush2.msra.mxu0 %v6173_v42  ;;  %v6094_v53 = vmul.f32 %v14563_v25, %v6019_v27  ;;  %v6092_v63 = vmul.f32 %v14563_v25, %v6017_v33 }
 0x7b7   :  { %v6013_v38 = vmul.f32 %v9591_v13, %v14372_v21  ;;  %v9595_v3 = vpop.eup %9594  ;;  %v5918_v11 = vadd.f32 1e-05, %v5886_v18  ;;  %6237 = vmatprep.subr.mxu0 %v6172_v9  ;;  %v6170_v36 = vadd.f32 %v14596_v59, %v6095_v20  ;;  %v6016_v26 = vmul.f32 %v9593_v40, %v14392_v16 }
 0x7b8   :  { %v6015_v5 = vmul.f32 %v9593_v40, %v14388_v24  ;;  %6238 = vmatpush2.msra.mxu0 %v6171_v7  ;;  %v6169_v41 = vadd.f32 %v14590_v6, %v6094_v53  ;;  %v6168_v32 = vadd.f32 %v14596_v59, %v6093_v22  ;;  %v6089_v31 = vmul.f32 %v14579_v52, %v6014_v4 }
 0x7b9   :  { %9608 = vrsqrt.f32 %v5918_v11  ;;  %6239 = vmatprep.subr.mxu0 %v6170_v36  ;;  %v6091_v21 = vmul.f32 %v14579_v52, %v6016_v26  ;;  %v6010_v30 = vmul.f32 %v9595_v3, %v14400_v0  ;;  %v6167_v16 = vadd.f32 %v14590_v6, %v6092_v63 }
 0x7ba   :  { %v6090_v14 = vmul.f32 %v14563_v25, %v6015_v5  ;;  %v9597_v9 = vpop.eup %9596  ;;  %6240 = vmatpush2.msra.mxu0 %v6169_v41  ;;  %v6088_v24 = vmul.f32 %v14563_v25, %v6013_v38  ;;  %v6009_v33 = vmul.f32 %v9595_v3, %v14396_v28  ;;  %v6164_v50 = vadd.f32 %v14596_v59, %v6089_v31 }
 0x7bb   :  { %v9599_v13 = vpop.eup %9598  ;;  %6241 = vmatprep.subr.mxu0 %v6168_v32  ;;  %v6166_v15 = vadd.f32 %v14596_v59, %v6091_v21  ;;  %v6012_v42 = vmul.f32 %v9597_v9, %v14416_v37  ;;  %v6011_v39 = vmul.f32 %v9597_v9, %v14412_v54  ;;  %v6085_v7 = vmul.f32 %v14579_v52, %v6010_v30 }
 0x7bc   :  { %v6165_v56 = vadd.f32 %v14590_v6, %v6090_v14  ;;  %6242 = vmatpush2.msra.mxu0 %v6167_v16  ;;  %v6006_v0 = vmul.f32 %v9599_v13, %v14424_v2  ;;  %v6163_v22 = vadd.f32 %v14590_v6, %v6088_v24  ;;  %v6084_v37 = vmul.f32 %v14563_v25, %v6009_v33  ;;  %v16959_v24 = vld [vmem:[#allocation61_spill] sm:$0xff] }
 0x7bd   :  { %6243 = vmatprep.subr.mxu0 %v6166_v15  ;;  %v6087_v47 = vmul.f32 %v14579_v52, %v6012_v42  ;;  %v6086_v28 = vmul.f32 %v14563_v25, %v6011_v39  ;;  %v6005_v54 = vmul.f32 %v9599_v13, %v14420_v10  ;;  %v6160_v63 = vadd.f32 %v14596_v59, %v6085_v7  ;;  %v16960_v15 = vld [vmem:[#allocation50_spill] sm:$0xff]  ;;  %v16961_v42 = vld [vmem:[#allocation68_spill] sm:$0xff] }
 0x7be   :  { %v9601_v27 = vpop.eup %9600  ;;  %6244 = vmatpush2.msra.mxu0 %v6165_v56  ;;  %v6081_v53 = vmul.f32 %v14579_v52, %v6006_v0  ;;  %v6159_v36 = vadd.f32 %v14590_v6, %v6084_v37 }
 0x7bf   :  { %v9603_v18 = vpop.eup %9602  ;;  %6245 = vmatprep.subr.mxu0 %v6164_v50  ;;  %v6162_v2 = vadd.f32 %v14596_v59, %v6087_v47  ;;  %v6161_v20 = vadd.f32 %v14590_v6, %v6086_v28  ;;  %v6008_v4 = vmul.f32 %v9601_v27, %v14440_v55  ;;  %v6007_v40 = vmul.f32 %v9601_v27, %v14436_v58 }
 0x7c0   :  { %6246 = vmatpush2.msra.mxu0 %v6163_v22  ;;  %v6002_v3 = vmul.f32 %v9603_v18, %v14448_v49  ;;  %v6080_v55 = vmul.f32 %v14563_v25, %v6005_v54  ;;  %v6001_v58 = vmul.f32 %v9603_v18, %v14444_v46  ;;  %v6156_v49 = vadd.f32 %v14596_v59, %v6081_v53  ;;  %v16962_v18 = vld [vmem:[#allocation55_spill] sm:$0xff] }
 0x7c1   :  { %6247 = vmatprep.subr.mxu0 %v6162_v2  ;;  %v6083_v38 = vmul.f32 %v14579_v52, %v6008_v4  ;;  %v6082_v10 = vmul.f32 %v14563_v25, %v6007_v40  ;;  %v16963_v2 = vunpack.c.h.bf16 %v16962_v18  ;;  %v6184_v4 = vld [vmem:[%s15520_s23 + $0x28] sm:$0xff]  ;;  %v16966_v40 = vunpack.c.l.bf16 %v16962_v18 }
 0x7c2   :  { %v9605_v11 = vpop.eup %9604  ;;  %6248 = vmatpush2.msra.mxu0 %v6161_v20  ;;  %v6077_v46 = vmul.f32 %v14579_v52, %v6002_v3  ;;  %v6155_v16 = vadd.f32 %v14590_v6, %v6080_v55  ;;  %v16970_v3 = vld [vmem:[#allocation65_spill] sm:$0xff] }
 0x7c3   :  { %v9607_v26 = vpop.eup %9606  ;;  %6249 = vmatprep.subr.mxu0 %v6160_v63  ;;  %v6158_v5 = vadd.f32 %v14596_v59, %v6083_v38  ;;  %v6157_v41 = vadd.f32 %v14590_v6, %v6082_v10  ;;  %v6004_v32 = vmul.f32 %v9605_v11, %v14464_v29  ;;  %v6003_v31 = vmul.f32 %v9605_v11, %v14460_v57  ;;  %v16968_v63 = vld [vmem:[#allocation48_spill] sm:$0xff]  ;;  %v6183_v10 = vld [vmem:[%s15520_s23 + $0x20] sm:$0xff] }
 0x7c4   :  { %6250 = vmatpush2.msra.mxu0 %v6159_v36  ;;  %v5998_v30 = vmul.f32 %v9607_v26, %v14472_v61  ;;  %v6076_v29 = vmul.f32 %v14563_v25, %v6001_v58  ;;  %v5997_v57 = vmul.f32 %v9607_v26, %v16959_v24  ;;  %v6152_v61 = vadd.f32 %v14596_v59, %v6077_v46  ;;  %v6186_v36 = vld [vmem:[%s15520_s23 + $0x38] sm:$0xff]  ;;  %v16974_v26 = vld [vmem:[#allocation63_spill] sm:$0xff] }
 0x7c5   :  { %6251 = vmatprep.subr.mxu0 %v6158_v5  ;;  %v6079_v21 = vmul.f32 %v14579_v52, %v6004_v32  ;;  %v6078_v14 = vmul.f32 %v14563_v25, %v6003_v31  ;;  %v16969_v38 = vunpack.c.h.bf16 %v16968_v63  ;;  %v16971_v11 = vunpack.c.h.bf16 %v16970_v3  ;;  %v6188_v31 = vld [vmem:[%s15520_s23 + $0x48] sm:$0xff] }
 0x7c6   :  { %v9609_v9 = vpop.eup %9608  ;;  %6252 = vmatpush2.msra.mxu0 %v6157_v41  ;;  %v6073_v47 = vmul.f32 %v14579_v52, %v5998_v30  ;;  %v6151_v28 = vadd.f32 %v14590_v6, %v6076_v29  ;;  %v6072_v7 = vmul.f32 %v14563_v25, %v5997_v57  ;;  %v16972_v55 = vunpack.c.l.bf16 %v16968_v63  ;;  %v6185_v41 = vld [vmem:[%s15520_s23 + $0x30] sm:$0xff]  ;;  %v6187_v30 = vld [vmem:[%s15520_s23 + $0x40] sm:$0xff]  ;;  %v6190_v29 = vld [vmem:[%s15520_s23 + $0x58] sm:$0xff] }
 0x7c7   :  { %6253 = vmatprep.subr.mxu0 %v6156_v49  ;;  %v6154_v33 = vadd.f32 %v14596_v59, %v6079_v21  ;;  %v6153_v13 = vadd.f32 %v14590_v6, %v6078_v14  ;;  %v6000_v56 = vmul.f32 %v9609_v9, %v16960_v15  ;;  %v5999_v39 = vmul.f32 %v9609_v9, %v16961_v42  ;;  %v16979_v14 = vld [vmem:[#allocation64_spill] sm:$0xff]  ;;  %v16981_v9 = vld [vmem:[#allocation62_spill] sm:$0xff] }
 0x7c8   :  { %6254 = vmatpush2.msra.mxu0 %v6155_v16  ;;  %v6148_v37 = vadd.f32 %v14596_v59, %v6073_v47  ;;  %v6147_v54 = vadd.f32 %v14590_v6, %v6072_v7  ;;  %v16973_v58 = vunpack.c.l.bf16 %v16970_v3  ;;  %v16975_v5 = vunpack.c.h.bf16 %v16974_v26  ;;  %v6191_v15 = vld [vmem:[%s15520_s23 + $0x60] sm:$0xff] }
 0x7c9   :  { %6255 = vmatprep.subr.mxu0 %v6154_v33  ;;  %v6075_v0 = vmul.f32 %v14579_v52, %v6000_v56  ;;  %v6074_v50 = vmul.f32 %v14563_v25, %v5999_v39  ;;  %v6179_v52 = vld [vmem:[%s15520_s23] sm:$0xff]  ;;  %v6182_v25 = vld [vmem:[%s15520_s23 + $0x18] sm:$0xff]  ;;  %v16976_v32 = vunpack.c.h.bf16 %v14543_v35  ;;  %v16977_v49 = vunpack.c.l.bf16 %v16974_v26  ;;  %v6189_v33 = vld [vmem:[%s15520_s23 + $0x50] sm:$0xff] }
 0x7ca   :  { %6256 = vmatpush2.msra.mxu0 %v6153_v13  ;;  %v16978_v21 = vunpack.c.l.bf16 %v14543_v35  ;;  %v16980_v46 = vunpack.c.h.bf16 %v16979_v14  ;;  %v16982_v16 = vunpack.c.h.bf16 %v16981_v9  ;;  %v16983_v24 = vunpack.c.l.bf16 %v16979_v14  ;;  %v6192_v13 = vld [vmem:[%s15520_s23 + $0x68] sm:$0xff]  ;;  %v8926_v42 = vld [vmem:[%s15511_s14] sm:$0xff]  }
 0x7cb   :  { %6257 = vmatprep.subr.mxu0 %v6152_v61  ;;  %v6150_v27 = vadd.f32 %v14596_v59, %v6075_v0  ;;  %v6149_v22 = vadd.f32 %v14590_v6, %v6074_v50  ;;  %v6181_v59 = vld [vmem:[%s15520_s23 + $0x10] sm:$0xff]  ;;  %v16984_v35 = vunpack.c.l.bf16 %v16981_v9  ;;  %v16985_v57 = vunpack.c.h.bf16 %v14606_v51  ;;  %v6194_v51 = vld [vmem:[%s15520_s23 + $0x78] sm:$0xff] }
 0x7cc   :  { %6258 = vmatpush2.msra.mxu0 %v6151_v28  ;;  %v16964_v6 = vld [vmem:[#allocation60_spill] sm:$0xff]  ;;  %v14983_v39 = vunpack.c.h.bf16 %v8926_v42  ;;  %v14986_v50 = vunpack.c.l.bf16 %v8926_v42 }
 0x7cd   :  { %6259 = vmatprep.subr.mxu0 %v6150_v27  ;;  %v16965_v20 = vunpack.c.h.bf16 %v16964_v6  ;;  %v16967_v53 = vunpack.c.l.bf16 %v16964_v6  ;;  %v16989_v27 = vmov 0.0  }
 0x7ce   :  { %6260 = vmatpush2.msra.mxu0 %v6149_v22 }
 0x7cf   :  { %6261 = vmatprep.subr.mxu0 %v6148_v37 }
 0x7d0   :  { %6262 = vmatpush2.msra.mxu0 %v6147_v54 }
 0x7d1   :  { %6264 = vmatmul.mubr.f32.vlgmr.msra.gmra.mxu0 %v6179_v52  ;;  %9055 = vmatprep.subr.mxu0 %v16963_v2 }
 0x7d2   :  { %6269 = vmatprep.mubr.f32.mxu0 %v6182_v25  ;;  %9056 = vmatpush3.msra.mxu0 %v16965_v20 }
 0x7d3   :  { %9057 = vmatprep.subr.mxu0 %v16966_v40 }
 0x7d4   :  { %9058 = vmatpush3.msra.mxu0 %v16967_v53 }
 0x7d5   :  { %6270 = vmatmul.mubr.f32.gmra.mxu0 %v6181_v59  ;;  %9059 = vmatprep.subr.mxu0 %v16969_v38 }
 0x7d6   :  { %6275 = vmatprep.mubr.f32.mxu0 %v6184_v4  ;;  %9060 = vmatpush3.msra.mxu0 %v16971_v11 }
 0x7d7   :  { %9061 = vmatprep.subr.mxu0 %v16972_v55 }
 0x7d8   :  { %9062 = vmatpush3.msra.mxu0 %v16973_v58  ;;  %v15002_v58 = vld [vmem:[%s15513_s16] ss:$0 sm:$0xff] }
 0x7d9   :  { %6276 = vmatmul.mubr.f32.gmra.mxu0 %v6183_v10  ;;  %9063 = vmatprep.subr.mxu0 %v16975_v5 }
 0x7da   :  { %6281 = vmatprep.mubr.f32.mxu0 %v6186_v36  ;;  %9064 = vmatpush3.msra.mxu0 %v16976_v32 }
 0x7db   :  { %9065 = vmatprep.subr.mxu0 %v16977_v49 }
 0x7dc   :  { %9066 = vmatpush3.msra.mxu0 %v16978_v21 }
 0x7dd   :  { %6282 = vmatmul.mubr.f32.gmra.mxu0 %v6185_v41  ;;  %9067 = vmatprep.subr.mxu0 %v16980_v46 }
 0x7de   :  { %6287 = vmatprep.mubr.f32.mxu0 %v6188_v31  ;;  %9068 = vmatpush3.msra.mxu0 %v16982_v16 }
 0x7df   :  { %9069 = vmatprep.subr.mxu0 %v16983_v24 }
 0x7e0   :  { %9070 = vmatpush3.msra.mxu0 %v16984_v35 }
 0x7e1   :  { %6288 = vmatmul.mubr.f32.gmra.mxu0 %v6187_v30  ;;  %9071 = vmatprep.subr.mxu0 %v16985_v57 }
 0x7e2   :  { %6293 = vmatprep.mubr.f32.mxu0 %v6190_v29  ;;  %9072 = vmatpush3.msra.mxu0 %v8876_v12  ;;  %v16986_v12 = vunpack.c.h.bf16 %v14731_v8 }
 0x7e3   :  { %9073 = vmatprep.subr.mxu0 %v8907_v34  ;;  %v6196_v34 = vld [vmem:[%s15520_s23 + $0x88] sm:$0xff] }
 0x7e4   :  { %9074 = vmatpush3.msra.mxu0 %v8875_v43  ;;  %v16988_v43 = vunpack.c.l.bf16 %v14731_v8 }
 0x7e5   :  { %6294 = vmatmul.mubr.f32.gmra.mxu0 %v6189_v33  ;;  %9075 = vmatprep.subr.mxu0 %v8904_v48  ;;  %v6198_v48 = vld [vmem:[%s15520_s23 + $0x98] sm:$0xff] }
 0x7e6   :  { %6299 = vmatprep.mubr.f32.mxu0 %v6192_v13  ;;  %9076 = vmatpush3.msra.mxu0 %v8872_v19  ;;  %v6197_v19 = vld [vmem:[%s15520_s23 + $0x90] sm:$0xff] }
 0x7e7   :  { %9077 = vmatprep.subr.mxu0 %v8903_v60  ;;  %v8862_v60 = vld [vmem:[%s15510_s13] sm:$0xff]  }
 0x7e8   :  { %9078 = vmatpush3.msra.mxu0 %v8871_v1  ;;  %v8896_v1 = vunpack.c.h.bf16 %v8967_v62  ;;  %v8864_v8 = vunpack.c.h.bf16 %v8862_v60  ;;  %v8863_v56 = vunpack.c.l.bf16 %v8862_v60 }
 0x7e9   :  { %6300 = vmatmul.mubr.f32.gmra.mxu0 %v6191_v15  ;;  %9079 = vmatprep.subr.mxu0 %v8900_v45  ;;  %v8895_v45 = vunpack.c.l.bf16 %v8967_v62 }
 0x7ea   :  { %6305 = vmatprep.mubr.f32.mxu0 %v6194_v51  ;;  %9080 = vmatpush3.msra.mxu0 %v16986_v12 }
 0x7eb   :  { %9081 = vmatprep.subr.mxu0 %v16987_v23  ;;  %9383 = vmatprep.subr.mxu1 %v8896_v1 }
 0x7ec   :  { %9082 = vmatpush3.msra.mxu0 %v16988_v43  ;;  %9399 = vmatpush3.msra.mxu1 %v8864_v8 }
 0x7ed   :  { %6306 = vmatmul.mubr.f32.gmra.mxu0 %v6193_v44  ;;  %9083 = vmatprep.subr.mxu0 %v8896_v1  ;;  %v15037_v44 = vld [vmem:[%s15512_s15] ss:$0 sm:$0xff]  ;;  %s9933_s15 = smov 32  }
 0x7ee   :  { %6311 = vmatprep.mubr.f32.mxu0 %v6196_v34  ;;  %9084 = vmatpush3.msra.mxu0 %v8864_v8 }
 0x7ef   :  { %9085 = vmatprep.subr.mxu0 %v8895_v45  ;;  %9384 = vmatprep.subr.mxu1 %v8895_v45 }
 0x7f0   :  { %9086 = vmatpush3.msra.mxu0 %v8863_v56  ;;  %9400 = vmatpush3.msra.mxu1 %v8863_v56 }
 0x7f1   :  { %6312 = vmatmul.mubr.f32.gmra.mxu0 %v6195_v17  ;;  %9261 = vmatprep.subr.mxu0 %v14983_v39 }
 0x7f2   :  { %6317 = vmatprep.mubr.f32.mxu0 %v6198_v48 }
 0x7f5   :  { %6318 = vmatmul.mubr.f32.gmra.mxu0 %v6197_v19 }
 0x891   :  { %v6265_v61 = vpop.f32.mrf.mxu0 }
 0x893   :  { %v6267_v0 = vpop.f32.mrf.mxu0 }
 0x894   :  { %6463 = vmatprep.mubr.f32.mxu0 %v6267_v0 }
 0x895   :  { %v6271_v47 = vpop.f32.mrf.mxu0  ;;  %6464 = vmatmul.mubr.f32.vlgmr.msra.gmra.mxu0 %v6265_v61 }
 0x896   :  { %9262 = vmatpush3.msra.mxu0 %v14983_v39 }
 0x897   :  { %v6273_v28 = vpop.f32.mrf.mxu0  ;;  %9263 = vmatprep.subr.mxu0 %v14986_v50 }
 0x898   :  { %6468 = vmatprep.mubr.f32.mxu0 %v6273_v28  ;;  %9264 = vmatpush3.msra.mxu0 %v14986_v50 }
 0x899   :  { %6469 = vmatmul.mubr.f32.gmra.mxu0 %v6271_v47  ;;  %v6277_v7 = vpop.f32.mrf.mxu0  ;;  %9268 = vmatprep.subr.mxu0 %v14983_v39 }
 0x89a   :  { %9265 = vmatprep.mubr.f32.mxu0 %v16989_v27 }
 0x89b   :  { %v6279_v22 = vpop.f32.mrf.mxu0 }
 0x89c   :  { %6473 = vmatprep.mubr.f32.mxu1 %v6279_v22 }
 0x89d   :  { %9266 = vmatmul.mubr.f32.vlgmr.msra.gmra.mxu0 %v16989_v27  ;;  %v6283_v37 = vpop.f32.mrf.mxu0  ;;  %6474 = vmatmul.mubr.f32.vlgmr.msra.gmra.mxu1 %v6277_v7 }
 0x89e   :  { %9269 = vmatpush3.msra.mxu0 %v14983_v39 }
 0x89f   :  { %v6285_v54 = vpop.f32.mrf.mxu0  ;;  %9270 = vmatprep.subr.mxu0 %v14986_v50 }
 0x8a0   :  { %6478 = vmatprep.mubr.f32.mxu1 %v6285_v54  ;;  %9271 = vmatpush3.msra.mxu0 %v14986_v50 }
 0x8a1   :  { %v6289_v52 = vpop.f32.mrf.mxu0  ;;  %6479 = vmatmul.mubr.f32.gmra.mxu1 %v6283_v37  ;;  %9275 = vmatprep.subr.mxu0 %v14983_v39 }
 0x8a3   :  { %v6291_v25 = vpop.f32.mrf.mxu0 }
 0x8a4   :  { %6483 = vmatprep.mubr.f32.mxu1 %v6291_v25 }
 0x8a5   :  { %v6295_v18 = vpop.f32.mrf.mxu0  ;;  %6484 = vmatmul.mubr.f32.gmra.mxu1 %v6289_v52 }
 0x8a7   :  { %v6297_v2 = vpop.f32.mrf.mxu0 }
 0x8a8   :  { %6488 = vmatprep.mubr.f32.mxu1 %v6297_v2 }
 0x8a9   :  { %v6301_v59 = vpop.f32.mrf.mxu0  ;;  %6489 = vmatmul.mubr.f32.gmra.mxu1 %v6295_v18 }
 0x8ab   :  { %v6303_v6 = vpop.f32.mrf.mxu0 }
 0x8ac   :  { %6493 = vmatprep.mubr.f32.mxu1 %v6303_v6 }
 0x8ad   :  { %v6307_v20 = vpop.f32.mrf.mxu0  ;;  %6494 = vmatmul.mubr.f32.gmra.mxu1 %v6301_v59 }
 0x8af   :  { %v6309_v4 = vpop.f32.mrf.mxu0 }
 0x8b0   :  { %6498 = vmatprep.mubr.f32.mxu1 %v6309_v4 }
 0x8b1   :  { %v6313_v40 = vpop.f32.mrf.mxu0  ;;  %6499 = vmatmul.mubr.f32.gmra.mxu1 %v6307_v20 }
 0x8b3   :  { %v6315_v53 = vpop.f32.mrf.mxu0 }
 0x8b4   :  { %6503 = vmatprep.mubr.f32.mxu1 %v6315_v53 }
 0x8b5   :  { %6504 = vmatmul.mubr.f32.gmra.mxu1 %v6313_v40  ;;  %v6319_v63 = vpop.f32.mrf.mxu0 }
 0x8b7   :  { %v6321_v38 = vpop.f32.mrf.mxu0 }
 0x8b8   :  { %6508 = vmatprep.mubr.f32.mxu1 %v6321_v38 }
 0x8b9   :  { %6509 = vmatmul.mubr.f32.gmra.mxu1 %v6319_v63 }
 0x8ba   :  { %9319 = vmatprep.mubr.f32.mxu1 %v16989_v27 }
 0x955   :  { %v9087_v10 = vpop.f32.mrf.mxu0 }
 0x957   :  { %v9088_v3 = vpop.f32.mrf.mxu0 }
 0x958   :  { %v9089_v11 = vadd.f32 %v9088_v3, %v9087_v10 }
 0x959   :  { %v9090_v36 = vpop.f32.mrf.mxu0 }
 0x95a   :  { %v6466_v12 = vadd.f32 %v9089_v11, %v15037_v44 }
 0x95b   :  { %v9091_v55 = vpop.f32.mrf.mxu0 }
 0x95c   :  { %v9092_v26 = vadd.f32 %v9091_v55, %v9090_v36 }
 0x95d   :  { %v9267_v5 = vpop.f32.mrf.mxu0  ;;  %v15004_v41 = vpop.f32.mrf.mxu1 }
 0x95e   :  { %v6597_v32 = vadd.f32 %v9267_v5, %v15002_v58  ;;  %v6471_v34 = vadd.f32 %v9092_v26, %v15037_v44 }
 0x95f   :  { %v6591_v31 = vpop.f32.mrf.mxu0  ;;  %v15007_v49 = vpop.f32.mrf.mxu1 }
 0x960   :  { %v6592_v21 = vadd.f32 %v15002_v58, %v6591_v31  ;;  %6618 = vrot.lane.b32.xlu1 %v6597_v32, %s9932_s26  ;;  %v6601_v43 = vadd.f32 %v6597_v32, %v6471_v34  ;;  %v9095_v26 = vadd.f32 %v15007_v49, %v15004_v41 }
 0x961   :  { %v15011_v14 = vpop.f32.mrf.mxu1 }
 0x962   :  { %6616 = vrot.lane.b32.xlu0 %v6592_v21, %s9932_s26  ;;  %v6600_v23 = vadd.f32 %v6592_v21, %v6466_v12  ;;  %v8706_v48 = vmul.f32 -1.442695, %v6601_v43  ;;  %v6476_v32 = vadd.f32 %v9095_v26, %v15037_v44 }
 0x963   :  { %v15014_v46 = vpop.f32.mrf.mxu1 }
 0x964   :  { %v8705_v17 = vmul.f32 -1.442695, %v6600_v23  ;;  %v9098_v55 = vadd.f32 %v15014_v46, %v15011_v14 }
 0x965   :  { %v15016_v30 = vpop.f32.mrf.mxu1 }
 0x966   :  { %9610 = vpow2.f32 %v8705_v17  ;;  %v6481_v5 = vadd.f32 %v9098_v55, %v15037_v44 }
 0x967   :  { %v15018_v9 = vpop.f32.mrf.mxu1  ;;  %9612 = vpow2.f32 %v8706_v48 }
 0x969   :  { %v15020_v16 = vpop.f32.mrf.mxu1 }
 0x96b   :  { %v15022_v29 = vpop.f32.mrf.mxu1 }
 0x96d   :  { %v15024_v24 = vpop.f32.mrf.mxu1 }
 0x96f   :  { %v15026_v35 = vpop.f32.mrf.mxu1 }
 0x971   :  { %v15028_v57 = vpop.f32.mrf.mxu1 }
 0x973   :  { %v15030_v33 = vpop.f32.mrf.mxu1  ;;  %v9611_v19 = vpop.eup %9610 }
 0x974   :  { %v6608_v62 = vadd.f32 1.0, %v9611_v19  ;;  %v9613_v60 = vpop.eup %9612 }
 0x975   :  { %v9111_v13 = vpop.f32.mrf.mxu1  ;;  %v6609_v1 = vadd.f32 1.0, %v9613_v60 }
 0x976   :  { %9614 = vrcp.f32 %v6608_v62 }
 0x977   :  { %v9112_v15 = vpop.f32.mrf.mxu1  ;;  %9616 = vrcp.f32 %v6609_v1 }
 0x978   :  { %v15032_v51 = vadd.f32 %v9112_v15, %v9111_v13 }
 0x983   :  { %v9615_v8 = vpop.eup %9614 }
 0x984   :  { %v9617_v61 = vpop.eup %9616  ;;  %v6636_v52 = vsub.f32 1.0, %v9615_v8  ;;  %v6648_v18 = vmul.f32 0.0, %v9615_v8 }
 0x985   :  { %v6637_v6 = vsub.f32 1.0, %v9617_v61  ;;  %v6649_v4 = vmul.f32 0.0, %v9617_v61 }
 0x9d2   :  { %v6619_v42 = vpop.permute.xlu1 %6618 }
 0x9d3   :  { %v6623_v0 = vmul.f32 %v9617_v61, %v6619_v42 }
 0x9d4   :  { %v6617_v45 = vpop.permute.xlu0 %6616 }
 0x9d5   :  { %v6622_v56 = vmul.f32 %v9615_v8, %v6617_v45 }
 0x9d7   :  { %6626 = vrot.lane.b32.xlu1 %v6622_v56, %s9933_s15 }
 0x9db   :  { %6628 = vrot.lane.b32.xlu1 %v6623_v0, %s9933_s15 }
 0xa49   :  { %v6627_v47 = vpop.permute.xlu1 %6626 }
 0xa4a   :  { %v6632_v28 = vadd.f32 %v6627_v47, %v6466_v12 }
 0xa4c   :  { %9618 = vtanh.f32 %v6632_v28 }
 0xa4d   :  { %v6629_v7 = vpop.permute.xlu1 %6628 }
 0xa4e   :  { %v6633_v22 = vadd.f32 %v6629_v7, %v6471_v34 }
 0xa50   :  { %9620 = vtanh.f32 %v6633_v22 }
 0xa59   :  { %v9619_v37 = vpop.eup %9618 }
 0xa5a   :  { %6640 = vrot.lane.b32.xlu0 %v9619_v37, %s9934_s12 }
 0xa5d   :  { %v9621_v54 = vpop.eup %9620 }
 0xa5e   :  { %6642 = vrot.lane.b32.xlu1 %v9621_v54, %s9934_s12 }
 0xacc   :  { %v6641_v25 = vpop.permute.xlu0 %6640 }
 0xacd   :  { %v6646_v2 = vmul.f32 %v6641_v25, %v6636_v52 }
 0xacf   :  { %v15045_v59 = vadd.f32 %v6648_v18, %v6646_v2 }
 0xad0   :  { %v6643_v20 = vpop.permute.xlu1 %6642 }
 0xad1   :  { %v6647_v40 = vmul.f32 %v6643_v20, %v6637_v6  ;;  %6654 = vrot.lane.b32.xlu0 %v15045_v59, %s9934_s12  ;;  %v9104_v20 = vadd.f32 %v15022_v29, %v15020_v16 }
 0xad3   :  { %v6651_v53 = vadd.f32 %v6649_v4, %v6647_v40  ;;  %v9101_v4 = vadd.f32 %v15018_v9, %v15016_v30  ;;  %v6491_v40 = vadd.f32 %v9104_v20, %v15037_v44 }
 0xad5   :  { %6656 = vrot.lane.b32.xlu1 %v6651_v53, %s9934_s12 }
 0xb43   :  { %v15050_v63 = vpop.permute.xlu0 %6654 }
 0xb44   :  { %9272 = vmatprep.mubr.msk.f32.mxu0 %vm6521_vm3, %v15050_v63 }
 0xb47   :  { %v15054_v38 = vpop.permute.xlu1 %6656 }
 0xb48   :  { %9273 = vmatmul.mubr.msk.f32.vlgmr.msra.gmra.mxu0 %vm6521_vm3, %v15054_v38 }
 0xb49   :  { %9276 = vmatpush3.msra.mxu0 %v14983_v39 }
 0xb4a   :  { %9277 = vmatprep.subr.mxu0 %v14986_v50 }
 0xb4b   :  { %9278 = vmatpush3.msra.mxu0 %v14986_v50 }
 0xb4c   :  { %9282 = vmatprep.subr.mxu0 %v14983_v39 }
 0xc08   :  { %v9274_v10 = vpop.f32.mrf.mxu0 }
 0xc09   :  { %v6734_v3 = vadd.f32 %v9274_v10, %v15002_v58 }
 0xc0a   :  { %v6728_v11 = vpop.f32.mrf.mxu0 }
 0xc0b   :  { %v6729_v36 = vadd.f32 %v15002_v58, %v6728_v11  ;;  %6755 = vrot.lane.b32.xlu1 %v6734_v3, %s9932_s26  ;;  %v6738_v31 = vadd.f32 %v6734_v3, %v6481_v5 }
 0xc0d   :  { %6753 = vrot.lane.b32.xlu0 %v6729_v36, %s9932_s26  ;;  %v6737_v21 = vadd.f32 %v6729_v36, %v6476_v32  ;;  %v8710_v13 = vmul.f32 -1.442695, %v6738_v31 }
 0xc0f   :  { %v8709_v15 = vmul.f32 -1.442695, %v6737_v21  ;;  %9622 = vpow2.f32 %v8710_v13 }
 0xc11   :  { %9624 = vpow2.f32 %v8709_v15 }
 0xc1c   :  { %v9623_v12 = vpop.eup %9622 }
 0xc1d   :  { %v6746_v23 = vadd.f32 1.0, %v9623_v12 }
 0xc1e   :  { %v9625_v34 = vpop.eup %9624 }
 0xc1f   :  { %v6745_v43 = vadd.f32 1.0, %v9625_v34  ;;  %9626 = vrcp.f32 %v6746_v23 }
 0xc21   :  { %9628 = vrcp.f32 %v6745_v43 }
 0xc2c   :  { %v9627_v14 = vpop.eup %9626 }
 0xc2d   :  { %v6774_v56 = vsub.f32 1.0, %v9627_v14  ;;  %v6786_v61 = vmul.f32 %v9627_v14, %v6651_v53  ;;  %v6486_v53 = vadd.f32 %v9101_v4, %v15037_v44 }
 0xc2e   :  { %v9629_v41 = vpop.eup %9628 }
 0xc2f   :  { %v6773_v47 = vsub.f32 1.0, %v9629_v41  ;;  %v6785_v22 = vmul.f32 %v9629_v41, %v15045_v59 }
 0xc7d   :  { %v6756_v46 = vpop.permute.xlu1 %6755 }
 0xc7e   :  { %v6760_v17 = vmul.f32 %v9627_v14, %v6756_v46 }
 0xc7f   :  { %v6754_v49 = vpop.permute.xlu0 %6753 }
 0xc80   :  { %v6759_v48 = vmul.f32 %v9629_v41, %v6754_v49  ;;  %6765 = vrot.lane.b32.xlu1 %v6760_v17, %s9933_s15 }
 0xc82   :  { %6763 = vrot.lane.b32.xlu0 %v6759_v48, %s9933_s15 }
 0xcf2   :  { %v6766_v19 = vpop.permute.xlu1 %6765 }
 0xcf3   :  { %v6770_v62 = vadd.f32 %v6766_v19, %v6481_v5 }
 0xcf4   :  { %v6764_v60 = vpop.permute.xlu0 %6763 }
 0xcf5   :  { %9630 = vtanh.f32 %v6770_v62  ;;  %v6769_v1 = vadd.f32 %v6764_v60, %v6476_v32 }
 0xcf7   :  { %9632 = vtanh.f32 %v6769_v1 }
 0xd02   :  { %v9631_v8 = vpop.eup %9630 }
 0xd03   :  { %6779 = vrot.lane.b32.xlu1 %v9631_v8, %s9934_s12 }
 0xd04   :  { %v9633_v45 = vpop.eup %9632 }
 0xd05   :  { %6777 = vrot.lane.b32.xlu0 %v9633_v45, %s9934_s12 }
 0xd75   :  { %v6780_v42 = vpop.permute.xlu1 %6779 }
 0xd76   :  { %v6784_v0 = vmul.f32 %v6780_v42, %v6774_v56 }
 0xd77   :  { %v6778_v28 = vpop.permute.xlu0 %6777 }
 0xd78   :  { %v6788_v7 = vadd.f32 %v6786_v61, %v6784_v0  ;;  %v6783_v37 = vmul.f32 %v6778_v28, %v6773_v47  ;;  %v9110_v47 = vadd.f32 %v15030_v33, %v15028_v57 }
 0xd7a   :  { %v6787_v54 = vadd.f32 %v6785_v22, %v6783_v37  ;;  %6793 = vrot.lane.b32.xlu1 %v6788_v7, %s9934_s12  ;;  %v6501_v28 = vadd.f32 %v9110_v47, %v15037_v44 }
 0xd7c   :  { %6791 = vrot.lane.b32.xlu0 %v6787_v54, %s9934_s12 }
 0xdec   :  { %v15081_v25 = vpop.permute.xlu1 %6793 }
 0xdee   :  { %v15079_v52 = vpop.permute.xlu0 %6791 }
 0xdef   :  { %9279 = vmatprep.mubr.msk.f32.mxu0 %vm6521_vm3, %v15079_v52 }
 0xdf0   :  { %9280 = vmatmul.mubr.msk.f32.vlgmr.msra.gmra.mxu0 %vm6521_vm3, %v15081_v25 }
 0xdf1   :  { %9283 = vmatpush3.msra.mxu0 %v14983_v39 }
 0xdf2   :  { %9284 = vmatprep.subr.mxu0 %v14986_v50 }
 0xdf3   :  { %9285 = vmatpush3.msra.mxu0 %v14986_v50 }
 0xdf4   :  { %9289 = vmatprep.subr.mxu0 %v14983_v39 }
 0xeb0   :  { %v9281_v18 = vpop.f32.mrf.mxu0 }
 0xeb1   :  { %v6871_v2 = vadd.f32 %v9281_v18, %v15002_v58 }
 0xeb2   :  { %v6865_v59 = vpop.f32.mrf.mxu0 }
 0xeb3   :  { %v6866_v6 = vadd.f32 %v15002_v58, %v6865_v59  ;;  %6892 = vrot.lane.b32.xlu1 %v6871_v2, %s9932_s26  ;;  %v6875_v10 = vadd.f32 %v6871_v2, %v6491_v40 }
 0xeb5   :  { %6890 = vrot.lane.b32.xlu0 %v6866_v6, %s9932_s26  ;;  %v6874_v3 = vadd.f32 %v6866_v6, %v6486_v53  ;;  %v8714_v11 = vmul.f32 -1.442695, %v6875_v10 }
 0xeb7   :  { %v8713_v36 = vmul.f32 -1.442695, %v6874_v3  ;;  %9634 = vpow2.f32 %v8714_v11  ;;  %v8934_v11 = vld [vmem:[%s15515_s18] sm:$0xff]  }
 0xeb9   :  { %9636 = vpow2.f32 %v8713_v36  ;;  %v15139_v36 = vunpack.c.h.bf16 %v8934_v11 }
 0xebb   :  { %9315 = vmatprep.subr.mxu1 %v15139_v36 }
 0xebc   :  { %9316 = vmatpush3.msra.mxu1 %v15139_v36 }
 0xec4   :  { %v9635_v55 = vpop.eup %9634 }
 0xec5   :  { %v6883_v5 = vadd.f32 1.0, %v9635_v55  ;;  %v15141_v55 = vunpack.c.l.bf16 %v8934_v11 }
 0xec6   :  { %v9637_v26 = vpop.eup %9636 }
 0xec7   :  { %v6882_v32 = vadd.f32 1.0, %v9637_v26  ;;  %9638 = vrcp.f32 %v6883_v5  ;;  %9317 = vmatprep.subr.mxu1 %v15141_v55 }
 0xec8   :  { %9318 = vmatpush3.msra.mxu1 %v15141_v55 }
 0xec9   :  { %9640 = vrcp.f32 %v6882_v32  ;;  %9320 = vmatmul.mubr.f32.vlgmr.msra.gmra.mxu1 %v16989_v27  ;;  %9322 = vmatprep.subr.mxu1 %v15139_v36  ;;  %v8930_v32 = vld [vmem:[%s15514_s17] sm:$0xff]  }
 0xeca   :  { %9323 = vmatpush3.msra.mxu1 %v15139_v36 }
 0xecb   :  { %9324 = vmatprep.subr.mxu1 %v15141_v55 }
 0xecc   :  { %9325 = vmatpush3.msra.mxu1 %v15141_v55 }
 0xecd   :  { %9336 = vmatprep.subr.mxu1 %v15139_v36 }
 0xed4   :  { %v9639_v16 = vpop.eup %9638 }
 0xed5   :  { %v6911_v14 = vsub.f32 1.0, %v9639_v16  ;;  %v6923_v17 = vmul.f32 %v9639_v16, %v6788_v7 }
 0xed6   :  { %v9641_v30 = vpop.eup %9640 }
 0xed7   :  { %v6910_v49 = vsub.f32 1.0, %v9641_v30  ;;  %v6922_v62 = vmul.f32 %v9641_v30, %v6787_v54 }
 0xf25   :  { %v6893_v29 = vpop.permute.xlu1 %6892 }
 0xf26   :  { %v6897_v31 = vmul.f32 %v9639_v16, %v6893_v29  ;;  %v8932_v16 = vunpack.c.h.bf16 %v8930_v32 }
 0xf27   :  { %v6891_v9 = vpop.permute.xlu0 %6890 }
 0xf28   :  { %v6896_v21 = vmul.f32 %v9641_v30, %v6891_v9  ;;  %6902 = vrot.lane.b32.xlu1 %v6897_v31, %s9933_s15 }
 0xf2a   :  { %6900 = vrot.lane.b32.xlu0 %v6896_v21, %s9933_s15 }
 0xf9a   :  { %v6903_v13 = vpop.permute.xlu1 %6902 }
 0xf9b   :  { %v6907_v15 = vadd.f32 %v6903_v13, %v6491_v40 }
 0xf9c   :  { %v6901_v12 = vpop.permute.xlu0 %6900 }
 0xf9d   :  { %9642 = vtanh.f32 %v6907_v15  ;;  %v6906_v34 = vadd.f32 %v6901_v12, %v6486_v53 }
 0xf9f   :  { %9644 = vtanh.f32 %v6906_v34 }
 0xfaa   :  { %v9643_v23 = vpop.eup %9642 }
 0xfab   :  { %6916 = vrot.lane.b32.xlu1 %v9643_v23, %s9934_s12  ;;  %v15168_v23 = vpop.f32.mrf.mxu1 }
 0xfac   :  { %v9645_v43 = vpop.eup %9644 }
 0xfad   :  { %6914 = vrot.lane.b32.xlu0 %v9645_v43, %s9934_s12  ;;  %v15170_v43 = vpop.f32.mrf.mxu1 }
0x101d   :  { %v6917_v46 = vpop.permute.xlu1 %6916 }
0x101e   :  { %v6921_v41 = vmul.f32 %v6917_v46, %v6911_v14  ;;  %v15172_v14 = vld [vmem:[#allocation10] ss:$0 sm:$0xff]  ;;  %v9321_v46 = vpop.f32.mrf.mxu1 }
0x101f   :  { %v6915_v48 = vpop.permute.xlu0 %6914 }
0x1020   :  { %v15105_v19 = vadd.f32 %v6923_v17, %v6921_v41  ;;  %v6920_v60 = vmul.f32 %v6915_v48, %v6910_v49  ;;  %v7419_v17 = vadd.f32 %v9321_v46, %v15172_v14  ;;  %v7413_v41 = vpop.f32.mrf.mxu1 }
0x1021   :  { %v7414_v49 = vadd.f32 %v15172_v14, %v7413_v41 }
0x1022   :  { %v15107_v1 = vadd.f32 %v6922_v62, %v6920_v60  ;;  %6930 = vrot.lane.b32.xlu1 %v15105_v19, %s9934_s12 }
0x1024   :  { %6928 = vrot.lane.b32.xlu0 %v15107_v1, %s9934_s12 }
0x1094   :  { %v15115_v45 = vpop.permute.xlu1 %6930 }
0x1096   :  { %v15113_v8 = vpop.permute.xlu0 %6928 }
0x1097   :  { %9286 = vmatprep.mubr.msk.f32.mxu0 %vm6521_vm3, %v15113_v8 }
0x1098   :  { %9287 = vmatmul.mubr.msk.f32.vlgmr.msra.gmra.mxu0 %vm6521_vm3, %v15115_v45 }
0x1099   :  { %9290 = vmatpush3.msra.mxu0 %v14983_v39  ;;  %v9107_v39 = vadd.f32 %v15026_v35, %v15024_v24 }
0x109a   :  { %9291 = vmatprep.subr.mxu0 %v14986_v50 }
0x109b   :  { %9292 = vmatpush3.msra.mxu0 %v14986_v50  ;;  %v6496_v50 = vadd.f32 %v9107_v39, %v15037_v44 }
0x109c   :  { %9296 = vmatprep.subr.mxu0 %v8932_v16 }
0x1158   :  { %v9288_v56 = vpop.f32.mrf.mxu0 }
0x1159   :  { %v7008_v42 = vadd.f32 %v9288_v56, %v15002_v58 }
0x115a   :  { %v7002_v61 = vpop.f32.mrf.mxu0 }
0x115b   :  { %v7003_v0 = vadd.f32 %v15002_v58, %v7002_v61  ;;  %7029 = vrot.lane.b32.xlu1 %v7008_v42, %s9932_s26  ;;  %v7012_v7 = vadd.f32 %v7008_v42, %v6501_v28 }
0x115d   :  { %7027 = vrot.lane.b32.xlu0 %v7003_v0, %s9932_s26  ;;  %v7011_v22 = vadd.f32 %v7003_v0, %v6496_v50  ;;  %v8718_v37 = vmul.f32 -1.442695, %v7012_v7 }
0x115f   :  { %v8717_v54 = vmul.f32 -1.442695, %v7011_v22  ;;  %9646 = vpow2.f32 %v8718_v37 }
0x1161   :  { %9648 = vpow2.f32 %v8717_v54 }
0x116c   :  { %v9647_v18 = vpop.eup %9646 }
0x116d   :  { %v7020_v59 = vadd.f32 1.0, %v9647_v18 }
0x116e   :  { %v9649_v2 = vpop.eup %9648 }
0x116f   :  { %v7019_v6 = vadd.f32 1.0, %v9649_v2  ;;  %9650 = vrcp.f32 %v7020_v59 }
0x1171   :  { %9652 = vrcp.f32 %v7019_v6 }
0x117c   :  { %v9651_v57 = vpop.eup %9650 }
0x117d   :  { %v7048_v27 = vsub.f32 1.0, %v9651_v57  ;;  %v7060_v31 = vmul.f32 %v9651_v57, %v15105_v19  ;;  %v8931_v19 = vunpack.c.l.bf16 %v8930_v32 }
0x117e   :  { %v9653_v24 = vpop.eup %9652 }
0x117f   :  { %v7047_v9 = vsub.f32 1.0, %v9653_v24  ;;  %v7059_v15 = vmul.f32 %v9653_v24, %v15107_v1 }
0x11cd   :  { %v7030_v33 = vpop.permute.xlu1 %7029 }
0x11ce   :  { %v7034_v20 = vmul.f32 %v9651_v57, %v7030_v33 }
0x11cf   :  { %v7028_v35 = vpop.permute.xlu0 %7027 }
0x11d0   :  { %v7033_v4 = vmul.f32 %v9653_v24, %v7028_v35  ;;  %7039 = vrot.lane.b32.xlu1 %v7034_v20, %s9933_s15 }
0x11d2   :  { %7037 = vrot.lane.b32.xlu0 %v7033_v4, %s9933_s15 }
0x1242   :  { %v7040_v40 = vpop.permute.xlu1 %7039 }
0x1243   :  { %v7044_v53 = vadd.f32 %v7040_v40, %v6501_v28 }
0x1244   :  { %v7038_v10 = vpop.permute.xlu0 %7037 }
0x1245   :  { %9654 = vtanh.f32 %v7044_v53  ;;  %v7043_v3 = vadd.f32 %v7038_v10, %v6496_v50 }
0x1247   :  { %9656 = vtanh.f32 %v7043_v3 }
0x1252   :  { %v9655_v26 = vpop.eup %9654 }
0x1253   :  { %7053 = vrot.lane.b32.xlu1 %v9655_v26, %s9934_s12 }
0x1254   :  { %v9657_v5 = vpop.eup %9656 }
0x1255   :  { %7051 = vrot.lane.b32.xlu0 %v9657_v5, %s9934_s12 }
0x12c5   :  { %v7054_v29 = vpop.permute.xlu1 %7053 }
0x12c6   :  { %v7058_v30 = vmul.f32 %v7054_v29, %v7048_v27 }
0x12c7   :  { %v7052_v21 = vpop.permute.xlu0 %7051 }
0x12c8   :  { %v15159_v13 = vadd.f32 %v7060_v31, %v7058_v30  ;;  %v7057_v12 = vmul.f32 %v7052_v21, %v7047_v9  ;;  %v6506_v30 = vadd.f32 %v15032_v51, %v15037_v44 }
0x12ca   :  { %v15162_v34 = vadd.f32 %v7059_v15, %v7057_v12  ;;  %7067 = vrot.lane.b32.xlu1 %v15159_v13, %s9934_s12 }
0x12cc   :  { %7065 = vrot.lane.b32.xlu0 %v15162_v34, %s9934_s12 }
0x12ce   :  { %7440 = vrot.lane.b32.xlu1 %v7419_v17, %s9932_s26 }
0x12d0   :  { %7438 = vrot.lane.b32.xlu0 %v7414_v49, %s9932_s26 }
0x133c   :  { %v7068_v62 = vpop.permute.xlu1 %7067 }
0x133e   :  { %v7066_v48 = vpop.permute.xlu0 %7065 }
0x133f   :  { %9293 = vmatprep.mubr.msk.f32.mxu0 %vm6521_vm3, %v7066_v48 }
0x1340   :  { %9294 = vmatmul.mubr.msk.f32.vlgmr.msra.gmra.mxu0 %vm6521_vm3, %v7068_v62  ;;  %v7441_v50 = vpop.permute.xlu1 %7440 }
0x1341   :  { %9297 = vmatpush3.msra.mxu0 %v8932_v16  ;;  %9300 = vmatprep.mubr.msk.f32.mxu0 %vm6521_vm3, %v15050_v63 }
0x1342   :  { %9298 = vmatprep.subr.mxu0 %v8931_v19  ;;  %v7439_v54 = vpop.permute.xlu0 %7438 }
0x1343   :  { %9299 = vmatpush3.msra.mxu0 %v8931_v19 }
0x1344   :  { %9301 = vmatmul.mubr.msk.f32.vlgmr.msra.gmra.mxu0 %vm6521_vm3, %v15054_v38  ;;  %9329 = vmatprep.subr.mxu0 %v15139_v36 }
0x1345   :  { %9303 = vmatprep.mubr.msk.f32.mxu0 %vm6521_vm3, %v15079_v52  ;;  %9330 = vmatpush3.msra.mxu0 %v15139_v36  ;;  %v15202_v52 = vld [vmem:[%s15516_s19] ss:$0 sm:$0xff]  ;;  %s9935_s19 = smov 16  }
0x1346   :  { %9331 = vmatprep.subr.mxu0 %v15141_v55 }
0x1347   :  { %9332 = vmatpush3.msra.mxu0 %v15141_v55 }
0x1348   :  { %9304 = vmatmul.mubr.msk.f32.gmra.mxu0 %vm6521_vm3, %v15081_v25  ;;  %9343 = vmatprep.subr.mxu0 %v15139_v36 }
0x1349   :  { %9306 = vmatprep.mubr.msk.f32.mxu0 %vm6521_vm3, %v15113_v8 }
0x134c   :  { %9307 = vmatmul.mubr.msk.f32.gmra.mxu0 %vm6521_vm3, %v15115_v45 }
0x134d   :  { %9309 = vmatprep.mubr.msk.f32.mxu0 %vm6521_vm3, %v7066_v48 }
0x1350   :  { %9310 = vmatmul.mubr.msk.f32.gmra.mxu0 %vm6521_vm3, %v7068_v62 }
0x1400   :  { %v9295_v63 = vpop.f32.mrf.mxu0 }
0x1401   :  { %v7145_v32 = vadd.f32 %v9295_v63, %v15002_v58 }
0x1402   :  { %v7139_v38 = vpop.f32.mrf.mxu0 }
0x1403   :  { %v7140_v16 = vadd.f32 %v15002_v58, %v7139_v38  ;;  %v9116_v58 = vadd.f32 %v15170_v43, %v15168_v23 }
0x1404   :  { %v9302_v25 = vpop.f32.mrf.mxu0 }
0x1405   :  { %v7297_v60 = vadd.f32 %v9302_v25, %v15202_v52  ;;  %v6511_v31 = vadd.f32 %v9116_v58, %v15037_v44  ;;  %v7148_v21 = vadd.f32 %v7140_v16, %v6506_v30 }
0x1406   :  { %v7291_v1 = vpop.f32.mrf.mxu0 }
0x1407   :  { %v7423_v56 = vadd.f32 %v7419_v17, %v7297_v60  ;;  %v7292_v8 = vadd.f32 %v15202_v52, %v7291_v1  ;;  %v7149_v9 = vadd.f32 %v7145_v32, %v6511_v31  ;;  %v8721_v12 = vmul.f32 -1.442695, %v7148_v21 }
0x1409   :  { %v8736_v42 = vmul.f32 -1.442695, %v7423_v56  ;;  %v7422_v45 = vadd.f32 %v7414_v49, %v7292_v8  ;;  %v8722_v15 = vmul.f32 -1.442695, %v7149_v9 }
0x140b   :  { %9658 = vpow2.f32 %v8736_v42  ;;  %v8735_v61 = vmul.f32 -1.442695, %v7422_v45 }
0x140d   :  { %9660 = vpow2.f32 %v8735_v61 }
0x1418   :  { %v9659_v0 = vpop.eup %9658 }
0x1419   :  { %v7431_v47 = vadd.f32 1.0, %v9659_v0 }
0x141a   :  { %v9661_v39 = vpop.eup %9660 }
0x141b   :  { %9662 = vrcp.f32 %v7431_v47  ;;  %v7430_v28 = vadd.f32 1.0, %v9661_v39 }
0x141d   :  { %9664 = vrcp.f32 %v7430_v28 }
0x1428   :  { %v9663_v7 = vpop.eup %9662 }
0x1429   :  { %v7445_v22 = vmul.f32 %v9663_v7, %v7441_v50  ;;  %v7459_v24 = vsub.f32 1.0, %v9663_v7  ;;  %v7471_v4 = vmul.f32 0.0, %v9663_v7 }
0x142a   :  { %v9665_v37 = vpop.eup %9664 }
0x142b   :  { %v7444_v18 = vmul.f32 %v9665_v37, %v7439_v54  ;;  %7450 = vrot.lane.b32.xlu1 %v7445_v22, %s9933_s15  ;;  %v7458_v53 = vsub.f32 1.0, %v9665_v37  ;;  %v7470_v11 = vmul.f32 0.0, %v9665_v37 }
0x142d   :  { %7448 = vrot.lane.b32.xlu0 %v7444_v18, %s9933_s15 }
0x149d   :  { %v7451_v2 = vpop.permute.xlu1 %7450 }
0x149e   :  { %v7455_v59 = vadd.f32 %v7451_v2, %v7297_v60  ;;  %v9305_v60 = vpop.f32.mrf.mxu0 }
0x149f   :  { %v7449_v6 = vpop.permute.xlu0 %7448  ;;  %v7307_v56 = vadd.f32 %v9305_v60, %v15202_v52 }
0x14a0   :  { %9666 = vtanh.f32 %v7455_v59  ;;  %v7454_v57 = vadd.f32 %v7449_v6, %v7292_v8  ;;  %v7301_v1 = vpop.f32.mrf.mxu0 }
0x14a1   :  { %v7302_v8 = vadd.f32 %v15202_v52, %v7301_v1 }
0x14a2   :  { %9668 = vtanh.f32 %v7454_v57 }
0x14a3   :  { %9670 = vpow2.f32 %v8722_v15 }
0x14a4   :  { %9672 = vpow2.f32 %v8721_v12 }
0x14ad   :  { %v9667_v33 = vpop.eup %9666 }
0x14ae   :  { %7464 = vrot.lane.b32.xlu1 %v9667_v33, %s9934_s12 }
0x14af   :  { %v9669_v20 = vpop.eup %9668 }
0x14b0   :  { %7462 = vrot.lane.b32.xlu0 %v9669_v20, %s9934_s12  ;;  %v9671_v46 = vpop.eup %9670 }
0x14b1   :  { %v9673_v17 = vpop.eup %9672  ;;  %v7157_v41 = vadd.f32 1.0, %v9671_v46 }
0x14b2   :  { %v7156_v49 = vadd.f32 1.0, %v9673_v17 }
0x14b3   :  { %9674 = vrcp.f32 %v7157_v41 }
0x14b4   :  { %9676 = vrcp.f32 %v7156_v49 }
0x14c0   :  { %v9675_v51 = vpop.eup %9674 }
0x14c1   :  { %v9677_v38 = vpop.eup %9676 }
0x14c2   :  { %v7196_v21 = vmul.f32 %v9677_v38, %v15162_v34 }
0x1520   :  { %v7465_v35 = vpop.permute.xlu1 %7464 }
0x1521   :  { %v7469_v40 = vmul.f32 %v7465_v35, %v7459_v24 }
0x1522   :  { %v7463_v10 = vpop.permute.xlu0 %7462 }
0x1523   :  { %v15210_v3 = vadd.f32 %v7471_v4, %v7469_v40  ;;  %v7468_v26 = vmul.f32 %v7463_v10, %v7458_v53 }
0x1525   :  { %v15212_v5 = vadd.f32 %v7470_v11, %v7468_v26  ;;  %7478 = vrot.lane.b32.xlu1 %v15210_v3, %s9934_s12  ;;  %v7185_v11 = vsub.f32 1.0, %v9675_v51 }
0x1527   :  { %7476 = vrot.lane.b32.xlu0 %v15212_v5, %s9934_s12 }
0x1529   :  { %7166 = vrot.lane.b32.xlu1 %v7145_v32, %s9932_s26 }
0x152b   :  { %7164 = vrot.lane.b32.xlu0 %v7140_v16, %s9932_s26  ;;  %v7197_v16 = vmul.f32 %v9675_v51, %v15159_v13 }
0x1597   :  { %v15224_v29 = vpop.permute.xlu1 %7478 }
0x1599   :  { %v15222_v27 = vpop.permute.xlu0 %7476 }
0x159a   :  { %9326 = vmatprep.mubr.msk.f32.mxu1 %vm6521_vm3, %v15222_v27 }
0x159b   :  { %9327 = vmatmul.mubr.msk.f32.vlgmr.msra.gmra.mxu1 %vm6521_vm3, %v15224_v29  ;;  %v7167_v43 = vpop.permute.xlu1 %7166 }
0x159c   :  { %9337 = vmatpush3.msra.mxu1 %v15139_v36  ;;  %v7171_v63 = vmul.f32 %v9675_v51, %v7167_v43 }
0x159d   :  { %9338 = vmatprep.subr.mxu1 %v15141_v55  ;;  %v7165_v44 = vpop.permute.xlu0 %7164 }
0x159e   :  { %9339 = vmatpush3.msra.mxu1 %v15141_v55  ;;  %v7170_v25 = vmul.f32 %v9677_v38, %v7165_v44 }
0x165b   :  { %v9328_v48 = vpop.f32.mrf.mxu1 }
0x165c   :  { %v7556_v23 = vadd.f32 %v9328_v48, %v15172_v14 }
0x165d   :  { %v7550_v19 = vpop.f32.mrf.mxu1 }
0x165e   :  { %v7551_v62 = vadd.f32 %v15172_v14, %v7550_v19  ;;  %7577 = vrot.lane.b32.xlu1 %v7556_v23, %s9932_s26  ;;  %v7560_v42 = vadd.f32 %v7556_v23, %v7307_v56 }
0x1660   :  { %7575 = vrot.lane.b32.xlu0 %v7551_v62, %s9932_s26  ;;  %v7559_v45 = vadd.f32 %v7551_v62, %v7302_v8  ;;  %v8740_v61 = vmul.f32 -1.442695, %v7560_v42 }
0x1662   :  { %7176 = vrot.lane.b32.xlu1 %v7171_v63, %s9933_s15  ;;  %v8739_v0 = vmul.f32 -1.442695, %v7559_v45  ;;  %9678 = vpow2.f32 %v8740_v61 }
0x1664   :  { %7174 = vrot.lane.b32.xlu0 %v7170_v25, %s9933_s15  ;;  %9680 = vpow2.f32 %v8739_v0 }
0x166f   :  { %v9679_v47 = vpop.eup %9678 }
0x1670   :  { %v7568_v28 = vadd.f32 1.0, %v9679_v47 }
0x1671   :  { %v9681_v39 = vpop.eup %9680 }
0x1672   :  { %v7567_v50 = vadd.f32 1.0, %v9681_v39  ;;  %9682 = vrcp.f32 %v7568_v28 }
0x1674   :  { %9684 = vrcp.f32 %v7567_v50 }
0x167f   :  { %v9683_v7 = vpop.eup %9682 }
0x1680   :  { %v7596_v46 = vsub.f32 1.0, %v9683_v7  ;;  %v7608_v41 = vmul.f32 %v9683_v7, %v15210_v3 }
0x1681   :  { %v9685_v54 = vpop.eup %9684 }
0x1682   :  { %v7595_v13 = vsub.f32 1.0, %v9685_v54  ;;  %v7607_v43 = vmul.f32 %v9685_v54, %v15212_v5 }
0x16d0   :  { %v7578_v22 = vpop.permute.xlu1 %7577 }
0x16d1   :  { %v7582_v37 = vmul.f32 %v9683_v7, %v7578_v22 }
0x16d2   :  { %v7576_v18 = vpop.permute.xlu0 %7575 }
0x16d3   :  { %v7581_v2 = vmul.f32 %v9685_v54, %v7576_v18  ;;  %7587 = vrot.lane.b32.xlu1 %v7582_v37, %s9933_s15 }
0x16d4   :  { %v7177_v59 = vpop.permute.xlu1 %7176 }
0x16d5   :  { %v7181_v6 = vadd.f32 %v7177_v59, %v6511_v31  ;;  %7585 = vrot.lane.b32.xlu0 %v7581_v2, %s9933_s15  ;;  %v7184_v31 = vsub.f32 1.0, %v9677_v38  ;;  %v9308_v38 = vpop.f32.mrf.mxu0 }
0x16d6   :  { %v7175_v57 = vpop.permute.xlu0 %7174 }
0x16d7   :  { %9686 = vtanh.f32 %v7181_v6  ;;  %v7180_v33 = vadd.f32 %v7175_v57, %v6506_v30  ;;  %v7311_v25 = vpop.f32.mrf.mxu0 }
0x16d8   :  { %v7312_v0 = vadd.f32 %v15202_v52, %v7311_v25 }
0x16d9   :  { %9688 = vtanh.f32 %v7180_v33  ;;  %v15279_v60 = vpop.f32.mrf.mxu0 }
0x16db   :  { %v15281_v1 = vpop.f32.mrf.mxu0 }
0x16e4   :  { %v9687_v20 = vpop.eup %9686 }
0x16e5   :  { %7190 = vrot.lane.b32.xlu1 %v9687_v20, %s9934_s12 }
0x16e6   :  { %v9689_v24 = vpop.eup %9688 }
0x16e7   :  { %7188 = vrot.lane.b32.xlu0 %v9689_v24, %s9934_s12 }
0x1745   :  { %v7588_v35 = vpop.permute.xlu1 %7587 }
0x1746   :  { %v7592_v4 = vadd.f32 %v7588_v35, %v7307_v56 }
0x1747   :  { %v7586_v40 = vpop.permute.xlu0 %7585 }
0x1748   :  { %9690 = vtanh.f32 %v7592_v4  ;;  %v7591_v53 = vadd.f32 %v7586_v40, %v7302_v8 }
0x174a   :  { %9692 = vtanh.f32 %v7591_v53 }
0x1755   :  { %v9691_v10 = vpop.eup %9690 }
0x1756   :  { %7601 = vrot.lane.b32.xlu1 %v9691_v10, %s9934_s12 }
0x1757   :  { %v9693_v26 = vpop.eup %9692  ;;  %v7191_v32 = vpop.permute.xlu1 %7190 }
0x1758   :  { %v7195_v58 = vmul.f32 %v7191_v32, %v7185_v11  ;;  %7599 = vrot.lane.b32.xlu0 %v9693_v26, %s9934_s12 }
0x1759   :  { %v7189_v30 = vpop.permute.xlu0 %7188 }
0x175a   :  { %v7199_v9 = vadd.f32 %v7197_v16, %v7195_v58  ;;  %v7194_v15 = vmul.f32 %v7189_v30, %v7184_v31 }
0x175c   :  { %v7198_v12 = vadd.f32 %v7196_v21, %v7194_v15  ;;  %7219 = vrot.lane.b32.xlu1 %v7199_v9, %s9934_s12 }
0x175e   :  { %7217 = vrot.lane.b32.xlu0 %v7198_v12, %s9934_s12 }
0x17c8   :  { %v7602_v17 = vpop.permute.xlu1 %7601 }
0x17c9   :  { %v7606_v49 = vmul.f32 %v7602_v17, %v7596_v46 }
0x17ca   :  { %v7600_v48 = vpop.permute.xlu0 %7599 }
0x17cb   :  { %v15257_v23 = vadd.f32 %v7608_v41, %v7606_v49  ;;  %v7605_v19 = vmul.f32 %v7600_v48, %v7595_v13  ;;  %v7327_v13 = vadd.f32 %v15279_v60, %v15202_v52  ;;  %v7322_v48 = vadd.f32 %v15202_v52, %v15281_v1 }
0x17cd   :  { %v15260_v62 = vadd.f32 %v7607_v43, %v7605_v19  ;;  %7615 = vrot.lane.b32.xlu1 %v15257_v23, %s9934_s12 }
0x17ce   :  { %v7220_v51 = vpop.permute.xlu1 %7219 }
0x17cf   :  { %7613 = vrot.lane.b32.xlu0 %v15260_v62, %s9934_s12 }
0x17d0   :  { %v7218_v34 = vpop.permute.xlu0 %7217 }
0x17d1   :  { %9312 = vmatprep.mubr.msk.f32.mxu0 %vm6521_vm3, %v7218_v34 }
0x17d2   :  { %9313 = vmatmul.mubr.msk.f32.gmra.mxu0 %vm6521_vm3, %v7220_v51 }
0x183f   :  { %v15270_v63 = vpop.permute.xlu1 %7615 }
0x1841   :  { %v15268_v44 = vpop.permute.xlu0 %7613 }
0x1842   :  { %9333 = vmatprep.mubr.msk.f32.mxu0 %vm6521_vm3, %v15268_v44 }
0x1843   :  { %9334 = vmatmul.mubr.msk.f32.vlgmr.msra.gmra.mxu0 %vm6521_vm3, %v15270_v63 }
0x1844   :  { %9344 = vmatpush3.msra.mxu0 %v15139_v36 }
0x1845   :  { %9345 = vmatprep.subr.mxu0 %v15141_v55 }
0x1846   :  { %9346 = vmatpush3.msra.mxu0 %v15141_v55  ;;  %v7317_v55 = vadd.f32 %v9308_v38, %v15202_v52 }
0x1892   :  { %v15283_v56 = vpop.f32.mrf.mxu0 }
0x1894   :  { %v15285_v8 = vpop.f32.mrf.mxu0 }
0x1903   :  { %v9335_v42 = vpop.f32.mrf.mxu0 }
0x1904   :  { %v7693_v45 = vadd.f32 %v9335_v42, %v15172_v14 }
0x1905   :  { %v7687_v61 = vpop.f32.mrf.mxu0 }
0x1906   :  { %v7688_v36 = vadd.f32 %v15172_v14, %v7687_v61  ;;  %7714 = vrot.lane.b32.xlu1 %v7693_v45, %s9932_s26  ;;  %v7697_v47 = vadd.f32 %v7693_v45, %v7317_v55 }
0x1908   :  { %7712 = vrot.lane.b32.xlu0 %v7688_v36, %s9932_s26  ;;  %v7696_v39 = vadd.f32 %v7688_v36, %v7312_v0  ;;  %v8744_v28 = vmul.f32 -1.442695, %v7697_v47 }
0x190a   :  { %v8743_v50 = vmul.f32 -1.442695, %v7696_v39  ;;  %9694 = vpow2.f32 %v8744_v28 }
0x190c   :  { %9696 = vpow2.f32 %v8743_v50 }
0x1917   :  { %v9695_v7 = vpop.eup %9694 }
0x1918   :  { %v7705_v37 = vadd.f32 1.0, %v9695_v7 }
0x1919   :  { %v9697_v22 = vpop.eup %9696 }
0x191a   :  { %v7704_v54 = vadd.f32 1.0, %v9697_v22  ;;  %9698 = vrcp.f32 %v7705_v37 }
0x191c   :  { %9700 = vrcp.f32 %v7704_v54 }
0x1927   :  { %v9699_v18 = vpop.eup %9698 }
0x1928   :  { %v7733_v10 = vsub.f32 1.0, %v9699_v18  ;;  %v7745_v26 = vmul.f32 %v9699_v18, %v15257_v23 }
0x1929   :  { %v9701_v6 = vpop.eup %9700 }
0x192a   :  { %v7732_v16 = vsub.f32 1.0, %v9701_v6  ;;  %v7744_v30 = vmul.f32 %v9701_v6, %v15260_v62 }
0x1978   :  { %v7715_v2 = vpop.permute.xlu1 %7714 }
0x1979   :  { %v7719_v59 = vmul.f32 %v9699_v18, %v7715_v2 }
0x197a   :  { %v7713_v57 = vpop.permute.xlu0 %7712 }
0x197b   :  { %v7718_v33 = vmul.f32 %v9701_v6, %v7713_v57  ;;  %7724 = vrot.lane.b32.xlu1 %v7719_v59, %s9933_s15 }
0x197d   :  { %7722 = vrot.lane.b32.xlu0 %v7718_v33, %s9933_s15 }
0x19ed   :  { %v7725_v20 = vpop.permute.xlu1 %7724 }
0x19ee   :  { %v7729_v24 = vadd.f32 %v7725_v20, %v7317_v55 }
0x19ef   :  { %v7723_v35 = vpop.permute.xlu0 %7722 }
0x19f0   :  { %9702 = vtanh.f32 %v7729_v24  ;;  %v7728_v4 = vadd.f32 %v7723_v35, %v7312_v0 }
0x19f2   :  { %9704 = vtanh.f32 %v7728_v4 }
0x19fd   :  { %v9703_v40 = vpop.eup %9702 }
0x19fe   :  { %7738 = vrot.lane.b32.xlu1 %v9703_v40, %s9934_s12 }
0x19ff   :  { %v9705_v53 = vpop.eup %9704 }
0x1a00   :  { %7736 = vrot.lane.b32.xlu0 %v9705_v53, %s9934_s12 }
0x1a70   :  { %v7739_v11 = vpop.permute.xlu1 %7738 }
0x1a71   :  { %v7743_v32 = vmul.f32 %v7739_v11, %v7733_v10 }
0x1a72   :  { %v7737_v58 = vpop.permute.xlu0 %7736 }
0x1a73   :  { %v15298_v31 = vadd.f32 %v7745_v26, %v7743_v32  ;;  %v7742_v9 = vmul.f32 %v7737_v58, %v7732_v16  ;;  %v7337_v26 = vadd.f32 %v15283_v56, %v15202_v52  ;;  %v7332_v32 = vadd.f32 %v15202_v52, %v15285_v8 }
0x1a75   :  { %v15301_v21 = vadd.f32 %v7744_v30, %v7742_v9  ;;  %7752 = vrot.lane.b32.xlu1 %v15298_v31, %s9934_s12 }
0x1a77   :  { %7750 = vrot.lane.b32.xlu0 %v15301_v21, %s9934_s12 }
0x1ae7   :  { %v15309_v12 = vpop.permute.xlu1 %7752 }
0x1ae9   :  { %v15307_v15 = vpop.permute.xlu0 %7750 }
0x1aea   :  { %9340 = vmatprep.mubr.msk.f32.mxu1 %vm6521_vm3, %v15307_v15 }
0x1aeb   :  { %9341 = vmatmul.mubr.msk.f32.vlgmr.msra.gmra.mxu1 %vm6521_vm3, %v15309_v12 }
0x1bab   :  { %v9342_v46 = vpop.f32.mrf.mxu1 }
0x1bac   :  { %v7830_v17 = vadd.f32 %v9342_v46, %v15172_v14 }
0x1bad   :  { %v7824_v41 = vpop.f32.mrf.mxu1 }
0x1bae   :  { %v7825_v49 = vadd.f32 %v15172_v14, %v7824_v41  ;;  %7851 = vrot.lane.b32.xlu1 %v7830_v17, %s9932_s26  ;;  %v7834_v43 = vadd.f32 %v7830_v17, %v7327_v13 }
0x1bb0   :  { %7849 = vrot.lane.b32.xlu0 %v7825_v49, %s9932_s26  ;;  %v7833_v19 = vadd.f32 %v7825_v49, %v7322_v48  ;;  %v8748_v34 = vmul.f32 -1.442695, %v7834_v43 }
0x1bb2   :  { %v8747_v51 = vmul.f32 -1.442695, %v7833_v19  ;;  %9706 = vpow2.f32 %v8748_v34 }
0x1bb4   :  { %9708 = vpow2.f32 %v8747_v51 }
0x1bbf   :  { %v9707_v38 = vpop.eup %9706 }
0x1bc0   :  { %v7842_v42 = vadd.f32 1.0, %v9707_v38 }
0x1bc1   :  { %v9709_v25 = vpop.eup %9708 }
0x1bc2   :  { %v7841_v45 = vadd.f32 1.0, %v9709_v25  ;;  %9710 = vrcp.f32 %v7842_v42 }
0x1bc4   :  { %9712 = vrcp.f32 %v7841_v45 }
0x1bcf   :  { %v9711_v61 = vpop.eup %9710 }
0x1bd0   :  { %v7870_v37 = vsub.f32 1.0, %v9711_v61  ;;  %v7882_v18 = vmul.f32 %v9711_v61, %v15298_v31 }
0x1bd1   :  { %v9713_v0 = vpop.eup %9712 }
0x1bd2   :  { %v7869_v59 = vsub.f32 1.0, %v9713_v0  ;;  %v7881_v33 = vmul.f32 %v9713_v0, %v15301_v21 }
0x1c20   :  { %v7852_v36 = vpop.permute.xlu1 %7851 }
0x1c21   :  { %v7856_v55 = vmul.f32 %v9711_v61, %v7852_v36 }
0x1c22   :  { %v7850_v60 = vpop.permute.xlu0 %7849 }
0x1c23   :  { %v7855_v47 = vmul.f32 %v9713_v0, %v7850_v60  ;;  %7861 = vrot.lane.b32.xlu1 %v7856_v55, %s9933_s15 }
0x1c25   :  { %7859 = vrot.lane.b32.xlu0 %v7855_v47, %s9933_s15 }
0x1c95   :  { %v7862_v1 = vpop.permute.xlu1 %7861 }
0x1c96   :  { %v7866_v39 = vadd.f32 %v7862_v1, %v7327_v13 }
0x1c97   :  { %v7860_v28 = vpop.permute.xlu0 %7859 }
0x1c98   :  { %9714 = vtanh.f32 %v7866_v39  ;;  %v7865_v50 = vadd.f32 %v7860_v28, %v7322_v48  ;;  %v8040_v28 = vsel %vm6521_vm3, %v15222_v27, 0.0 }
0x1c9a   :  { %9716 = vtanh.f32 %v7865_v50  ;;  %v8043_v50 = vsel %vm6521_vm3, %v15224_v29, 0.0  ;;  %v8052_v29 = vsel %vm6521_vm3, %v15307_v15, 0.0 }
0x1ca5   :  { %v9715_v7 = vpop.eup %9714 }
0x1ca6   :  { %7875 = vrot.lane.b32.xlu1 %v9715_v7, %s9934_s12  ;;  %v8046_v7 = vsel %vm6521_vm3, %v15268_v44, 0.0 }
0x1ca7   :  { %v9717_v22 = vpop.eup %9716 }
0x1ca8   :  { %7873 = vrot.lane.b32.xlu0 %v9717_v22, %s9934_s12  ;;  %v8055_v22 = vsel %vm6521_vm3, %v15309_v12, 0.0 }
0x1d18   :  { %v7876_v54 = vpop.permute.xlu1 %7875 }
0x1d19   :  { %v7880_v2 = vmul.f32 %v7876_v54, %v7870_v37  ;;  %v8049_v37 = vsel %vm6521_vm3, %v15270_v63, 0.0 }
0x1d1a   :  { %v7874_v6 = vpop.permute.xlu0 %7873 }
0x1d1b   :  { %v15328_v57 = vadd.f32 %v7882_v18, %v7880_v2  ;;  %v7879_v20 = vmul.f32 %v7874_v6, %v7869_v59 }
0x1d1d   :  { %v15331_v24 = vadd.f32 %v7881_v33, %v7879_v20  ;;  %7889 = vrot.lane.b32.xlu1 %v15328_v57, %s9934_s12 }
0x1d1f   :  { %7887 = vrot.lane.b32.xlu0 %v15331_v24, %s9934_s12 }
0x1d8f   :  { %v15339_v4 = vpop.permute.xlu1 %7889 }
0x1d90   :  { %v8061_v27 = vsel %vm6521_vm3, %v15339_v4, 0.0 }
0x1d91   :  { %v15337_v35 = vpop.permute.xlu0 %7887 }
0x1d92   :  { %9347 = vmatprep.mubr.msk.f32.mxu0 %vm6521_vm3, %v15337_v35  ;;  %v8058_v44 = vsel %vm6521_vm3, %v15337_v35, 0.0 }
0x1d93   :  { %9348 = vmatmul.mubr.msk.f32.vlgmr.msra.gmra.mxu0 %vm6521_vm3, %v15339_v4 }
0x1e53   :  { %v9349_v40 = vpop.f32.mrf.mxu0 }
0x1e54   :  { %v7967_v53 = vadd.f32 %v9349_v40, %v15172_v14 }
0x1e55   :  { %v7961_v10 = vpop.f32.mrf.mxu0 }
0x1e56   :  { %v7962_v11 = vadd.f32 %v15172_v14, %v7961_v10  ;;  %7988 = vrot.lane.b32.xlu1 %v7967_v53, %s9932_s26  ;;  %v7971_v16 = vadd.f32 %v7967_v53, %v7337_v26 }
0x1e58   :  { %7986 = vrot.lane.b32.xlu0 %v7962_v11, %s9932_s26  ;;  %v7970_v58 = vadd.f32 %v7962_v11, %v7332_v32  ;;  %v8752_v30 = vmul.f32 -1.442695, %v7971_v16 }
0x1e5a   :  { %v8751_v9 = vmul.f32 -1.442695, %v7970_v58  ;;  %9718 = vpow2.f32 %v8752_v30 }
0x1e5c   :  { %9720 = vpow2.f32 %v8751_v9 }
0x1e67   :  { %v9719_v46 = vpop.eup %9718 }
0x1e68   :  { %v7979_v41 = vadd.f32 1.0, %v9719_v46 }
0x1e69   :  { %v9721_v17 = vpop.eup %9720 }
0x1e6a   :  { %v7978_v14 = vadd.f32 1.0, %v9721_v17  ;;  %9722 = vrcp.f32 %v7979_v41 }
0x1e6c   :  { %9724 = vrcp.f32 %v7978_v14 }
0x1e77   :  { %v9723_v49 = vpop.eup %9722 }
0x1e78   :  { %v8007_v42 = vsub.f32 1.0, %v9723_v49  ;;  %v8019_v61 = vmul.f32 %v9723_v49, %v15328_v57 }
0x1e79   :  { %v9725_v43 = vpop.eup %9724 }
0x1e7a   :  { %v8006_v55 = vsub.f32 1.0, %v9725_v43  ;;  %v8018_v47 = vmul.f32 %v9725_v43, %v15331_v24 }
0x1ec8   :  { %v7989_v13 = vpop.permute.xlu1 %7988 }
0x1ec9   :  { %v7993_v48 = vmul.f32 %v9723_v49, %v7989_v13 }
0x1eca   :  { %v7987_v56 = vpop.permute.xlu0 %7986 }
0x1ecb   :  { %v7992_v19 = vmul.f32 %v9725_v43, %v7987_v56  ;;  %7998 = vrot.lane.b32.xlu1 %v7993_v48, %s9933_s15 }
0x1ecd   :  { %7996 = vrot.lane.b32.xlu0 %v7992_v19, %s9933_s15 }
0x1f3d   :  { %v7999_v52 = vpop.permute.xlu1 %7998 }
0x1f3e   :  { %v8003_v8 = vadd.f32 %v7999_v52, %v7337_v26 }
0x1f3f   :  { %v7997_v34 = vpop.permute.xlu0 %7996 }
0x1f40   :  { %9726 = vtanh.f32 %v8003_v8  ;;  %v8002_v51 = vadd.f32 %v7997_v34, %v7332_v32 }
0x1f42   :  { %9728 = vtanh.f32 %v8002_v51 }
0x1f4d   :  { %v9727_v38 = vpop.eup %9726 }
0x1f4e   :  { %8012 = vrot.lane.b32.xlu1 %v9727_v38, %s9934_s12 }
0x1f4f   :  { %v9729_v25 = vpop.eup %9728 }
0x1f50   :  { %8010 = vrot.lane.b32.xlu0 %v9729_v25, %s9934_s12 }
0x1fc0   :  { %v8013_v45 = vpop.permute.xlu1 %8012 }
0x1fc1   :  { %v8017_v36 = vmul.f32 %v8013_v45, %v8007_v42 }
0x1fc2   :  { %v8011_v0 = vpop.permute.xlu0 %8010 }
0x1fc3   :  { %v15358_v60 = vadd.f32 %v8019_v61, %v8017_v36  ;;  %v8016_v1 = vmul.f32 %v8011_v0, %v8006_v55 }
0x1fc5   :  { %v15361_v39 = vadd.f32 %v8018_v47, %v8016_v1  ;;  %8028 = vrot.lane.b32.xlu1 %v15358_v60, %s9934_s12 }
0x1fc7   :  { %8026 = vrot.lane.b32.xlu0 %v15361_v39, %s9934_s12 }
0x1fe6   :  { %8041 = vadd.xlane.f32.xlu0 %v8040_v28 }
0x1fe9   :  { %8044 = vadd.xlane.f32.xlu1 %v8043_v50 }
0x1fea   :  { %8047 = vadd.xlane.f32.xlu0 %v8046_v7 }
0x1fed   :  { %8056 = vadd.xlane.f32.xlu1 %v8055_v22 }
0x1fee   :  { %8050 = vadd.xlane.f32.xlu0 %v8049_v37 }
0x1ff1   :  { %8062 = vadd.xlane.f32.xlu1 %v8061_v27 }
0x1ff2   :  { %8053 = vadd.xlane.f32.xlu0 %v8052_v29 }
0x1ff6   :  { %8059 = vadd.xlane.f32.xlu0 %v8058_v44 }
0x2037   :  { %v8029_v54 = vpop.permute.xlu1 %8028 }
0x2038   :  { %v8067_v12 = vsel %vm6521_vm3, %v8029_v54, 0.0  ;;  %v8754_v54 = vld [vmem:[#allocation13] ss:$0 sm:$0xff] }
0x2039   :  { %8068 = vadd.xlane.f32.xlu1 %v8067_v12  ;;  %v8027_v18 = vpop.permute.xlu0 %8026  ;;  %v8753_v12 = vld [vmem:[#allocation11] ss:$0 sm:$0xff] }
0x203a   :  { %v8064_v63 = vsel %vm6521_vm3, %v8027_v18, 0.0 }
0x203b   :  { %8065 = vadd.xlane.f32.xlu0 %v8064_v63 }
0x206f   :  { %v8042_v2 = vpop.xlane.xlu0 %8041 }
0x2070   :  { %v8071_v59 = vmul.f32 0.0625, %v8042_v2 }
0x2072   :  { %v15386_v6 = vsub.f32 %v15212_v5, %v8071_v59  ;;  %v8045_v33 = vpop.xlane.xlu1 %8044 }
0x2073   :  { %v8072_v15 = vmul.f32 0.0625, %v8045_v33  ;;  %v8048_v20 = vpop.xlane.xlu0 %8047 }
0x2074   :  { %v8091_v35 = vmul.f32 %v15386_v6, %v15386_v6  ;;  %v8073_v4 = vmul.f32 0.0625, %v8048_v20 }
0x2075   :  { %v15391_v40 = vsub.f32 %v15210_v3, %v8072_v15 }
0x2076   :  { %v8057_v53 = vpop.xlane.xlu1 %8056  ;;  %8111 = vrot.lane.b32.xlu0 %v8091_v35, %s9934_s12  ;;  %v15397_v11 = vsub.f32 %v15260_v62, %v8073_v4 }
0x2077   :  { %v8092_v10 = vmul.f32 %v15391_v40, %v15391_v40  ;;  %v8051_v5 = vpop.xlane.xlu0 %8050  ;;  %v8076_v16 = vmul.f32 0.0625, %v8057_v53 }
0x2078   :  { %v8074_v26 = vmul.f32 0.0625, %v8051_v5  ;;  %v8093_v32 = vmul.f32 %v15397_v11, %v15397_v11 }
0x2079   :  { %8113 = vrot.lane.b32.xlu1 %v8092_v10, %s9934_s12  ;;  %v15410_v62 = vsub.f32 %v15298_v31, %v8076_v16 }
0x207a   :  { %v15403_v3 = vsub.f32 %v15257_v23, %v8074_v26  ;;  %v8063_v30 = vpop.xlane.xlu1 %8062 }
0x207b   :  { %v8054_v58 = vpop.xlane.xlu0 %8053  ;;  %v8078_v41 = vmul.f32 0.0625, %v8063_v30  ;;  %v8096_v31 = vmul.f32 %v15410_v62, %v15410_v62 }
0x207c   :  { %v8075_v9 = vmul.f32 0.0625, %v8054_v58  ;;  %v8094_v17 = vmul.f32 %v15403_v3, %v15403_v3 }
0x207d   :  { %8115 = vrot.lane.b32.xlu1 %v8093_v32, %s9934_s12 }
0x207e   :  { %v15407_v46 = vsub.f32 %v15301_v21, %v8075_v9  ;;  %v15424_v21 = vsub.f32 %v15328_v57, %v8078_v41 }
0x207f   :  { %v8060_v14 = vpop.xlane.xlu0 %8059 }
0x2080   :  { %v8095_v23 = vmul.f32 %v15407_v46, %v15407_v46  ;;  %v8077_v49 = vmul.f32 0.0625, %v8060_v14  ;;  %v8098_v43 = vmul.f32 %v15424_v21, %v15424_v21 }
0x2081   :  { %8117 = vrot.lane.b32.xlu1 %v8094_v17, %s9934_s12 }
0x2082   :  { %v15418_v13 = vsub.f32 %v15331_v24, %v8077_v49  ;;  %8119 = vrot.lane.b32.xlu0 %v8095_v23, %s9934_s12 }
0x2084   :  { %v8097_v48 = vmul.f32 %v15418_v13, %v15418_v13 }
0x2085   :  { %8121 = vrot.lane.b32.xlu1 %v8096_v31, %s9934_s12  ;;  %v8248_v31 = vld [vmem:[%s15521_s24 + $0x8] sm:$0xff] }
0x2086   :  { %8123 = vrot.lane.b32.xlu0 %v8097_v48, %s9934_s12  ;;  %9350 = vmatprep.subr.mxu1 %v8248_v31  ;;  %v8247_v48 = vld [vmem:[%s15521_s24] sm:$0xff]  ;;  %s9936_s24 = smov [#allocation14]  }
0x2087   :  { %9351 = vmatpush3.msra.mxu1 %v8248_v31  ;;  %s8429_s28 = sshll.u32 %s9936_s24, 4  ;;  %s8430_s28 = int_to_ptr.vmem [resolvable:$true] %s8429_s28 }
0x2088   :  { %9352 = vmatprep.subr.mxu1 %v8247_v48  ;;  %s9890_s20 = scalar_lea.vmem %s8430_s28, 1280  ;;  %p9895_p8 = scmp.lt.s32.totalorder %s8430_s28, %s8430_s28 }
0x2089   :  { %8125 = vrot.lane.b32.xlu1 %v8098_v43, %s9934_s12  ;;  %9353 = vmatpush3.msra.mxu1 %v8247_v48  ;;  %p9891_p7 = scmp.ne.s32.totalorder %s8430_s28, %s9890_s20  ;;  %p9896_p9 = scmp.lt.s32.totalorder %s9890_s20, %s9890_s20 }
0x208b   :  { %p9897_p10 = por %p9896_p9, %p9895_p8 }
0x208d   :  { %p9898_p11 = pnand %p9897_p10, %p9891_p7 }
0x20c2   :  { %v8069_v24 = vpop.xlane.xlu1 %8068 }
0x20c3   :  { %v8080_v56 = vmul.f32 0.0625, %v8069_v24 }
0x20c4   :  { %v8066_v19 = vpop.xlane.xlu0 %8065 }
0x20c5   :  { %v15434_v52 = vsub.f32 %v15358_v60, %v8080_v56  ;;  %v8079_v57 = vmul.f32 0.0625, %v8066_v19 }
0x20c7   :  { %v8100_v8 = vmul.f32 %v15434_v52, %v15434_v52  ;;  %v15439_v34 = vsub.f32 %v15361_v39, %v8079_v57 }
0x20c9   :  { %v8099_v51 = vmul.f32 %v15439_v34, %v15439_v34  ;;  %8129 = vrot.lane.b32.xlu1 %v8100_v8, %s9934_s12 }
0x20cb   :  { %8127 = vrot.lane.b32.xlu0 %v8099_v51, %s9934_s12 }
0x20e8   :  { %v8112_v38 = vpop.permute.xlu0 %8111 }
0x20e9   :  { %v8141_v25 = vsel %vm6521_vm3, %v8112_v38, 0.0 }
0x20ea   :  { %8142 = vadd.xlane.f32.xlu0 %v8141_v25 }
0x20eb   :  { %v8114_v42 = vpop.permute.xlu1 %8113 }
0x20ec   :  { %v8144_v45 = vsel %vm6521_vm3, %v8114_v42, 0.0 }
0x20ed   :  { %8145 = vadd.xlane.f32.xlu1 %v8144_v45 }
0x20ef   :  { %v8116_v61 = vpop.permute.xlu1 %8115 }
0x20f0   :  { %v8147_v36 = vsel %vm6521_vm3, %v8116_v61, 0.0 }
0x20f1   :  { %8148 = vadd.xlane.f32.xlu0 %v8147_v36 }
0x20f3   :  { %v8118_v55 = vpop.permute.xlu1 %8117 }
0x20f4   :  { %v8150_v0 = vsel %vm6521_vm3, %v8118_v55, 0.0  ;;  %v8120_v60 = vpop.permute.xlu0 %8119 }
0x20f5   :  { %8151 = vadd.xlane.f32.xlu0 %v8150_v0  ;;  %v8153_v1 = vsel %vm6521_vm3, %v8120_v60, 0.0 }
0x20f7   :  { %v8122_v47 = vpop.permute.xlu1 %8121 }
0x20f8   :  { %v8156_v39 = vsel %vm6521_vm3, %v8122_v47, 0.0  ;;  %v8124_v28 = vpop.permute.xlu0 %8123 }
0x20f9   :  { %8157 = vadd.xlane.f32.xlu1 %v8156_v39  ;;  %8154 = vadd.xlane.f32.xlu0 %v8153_v1  ;;  %v8159_v7 = vsel %vm6521_vm3, %v8124_v28, 0.0 }
0x20fb   :  { %v8126_v50 = vpop.permute.xlu1 %8125 }
0x20fc   :  { %v8162_v22 = vsel %vm6521_vm3, %v8126_v50, 0.0 }
0x20fd   :  { %8163 = vadd.xlane.f32.xlu1 %v8162_v22  ;;  %8160 = vadd.xlane.f32.xlu0 %v8159_v7 }
0x213b   :  { %v8130_v37 = vpop.permute.xlu1 %8129 }
0x213c   :  { %v8168_v27 = vsel %vm6521_vm3, %v8130_v37, 0.0 }
0x213d   :  { %8169 = vadd.xlane.f32.xlu1 %v8168_v27  ;;  %v8128_v29 = vpop.permute.xlu0 %8127 }
0x213e   :  { %v8165_v44 = vsel %vm6521_vm3, %v8128_v29, 0.0 }
0x213f   :  { %8166 = vadd.xlane.f32.xlu0 %v8165_v44 }
0x214e   :  { %8234 = vrot.lane.b32.xlu1 %v8754_v54, %s9935_s19 }
0x2155   :  { %8216 = vrot.lane.b32.xlu0 %v8753_v12, %s9935_s19 }
0x2173   :  { %v8143_v18 = vpop.xlane.xlu0 %8142 }
0x2174   :  { %v8171_v15 = vmul.f32 0.0625, %v8143_v18 }
0x2176   :  { %v8146_v33 = vpop.xlane.xlu1 %8145  ;;  %v8181_v53 = vadd.f32 1e-05, %v8171_v15 }
0x2177   :  { %v8172_v35 = vmul.f32 0.0625, %v8146_v33 }
0x2178   :  { %9730 = vrsqrt.f32 %v8181_v53 }
0x2179   :  { %v8182_v26 = vadd.f32 1e-05, %v8172_v35 }
0x217a   :  { %v8149_v63 = vpop.xlane.xlu0 %8148 }
0x217b   :  { %v8173_v20 = vmul.f32 0.0625, %v8149_v63 }
0x217d   :  { %v8183_v5 = vadd.f32 1e-05, %v8173_v20 }
0x217e   :  { %v8152_v2 = vpop.xlane.xlu0 %8151 }
0x217f   :  { %v8174_v32 = vmul.f32 0.0625, %v8152_v2  ;;  %9732 = vrsqrt.f32 %v8183_v5 }
0x2180   :  { %9734 = vrsqrt.f32 %v8182_v26 }
0x2181   :  { %v8184_v9 = vadd.f32 1e-05, %v8174_v32 }
0x2182   :  { %v8155_v59 = vpop.xlane.xlu0 %8154  ;;  %v8158_v16 = vpop.xlane.xlu1 %8157 }
0x2183   :  { %v8175_v4 = vmul.f32 0.0625, %v8155_v59  ;;  %v8176_v17 = vmul.f32 0.0625, %v8158_v16 }
0x2185   :  { %v8185_v58 = vadd.f32 1e-05, %v8175_v4  ;;  %v8186_v23 = vadd.f32 1e-05, %v8176_v17  ;;  %v9731_v56 = vpop.eup %9730 }
0x2186   :  { %v8161_v10 = vpop.xlane.xlu0 %8160  ;;  %v8164_v14 = vpop.xlane.xlu1 %8163  ;;  %v8201_v36 = vmul.f32 %v9731_v56, %v15386_v6 }
0x2187   :  { %v8177_v30 = vmul.f32 0.0625, %v8161_v10  ;;  %9736 = vrsqrt.f32 %v8185_v58  ;;  %v8178_v49 = vmul.f32 0.0625, %v8164_v14 }
0x2188   :  { %9738 = vrsqrt.f32 %v8184_v9 }
0x2189   :  { %v8187_v41 = vadd.f32 1e-05, %v8177_v30  ;;  %v8188_v43 = vadd.f32 1e-05, %v8178_v49 }
0x218b   :  { %9740 = vrsqrt.f32 %v8187_v41 }
0x218c   :  { %9742 = vrsqrt.f32 %v8186_v23  ;;  %v9733_v57 = vpop.eup %9732 }
0x218d   :  { %v9735_v51 = vpop.eup %9734  ;;  %9744 = vrsqrt.f32 %v8188_v43  ;;  %v8203_v61 = vmul.f32 %v9733_v57, %v15397_v11 }
0x218e   :  { %v8202_v60 = vmul.f32 %v9735_v51, %v15391_v40 }
0x2194   :  { %v9737_v42 = vpop.eup %9736 }
0x2195   :  { %v9739_v47 = vpop.eup %9738  ;;  %v8205_v28 = vmul.f32 %v9737_v42, %v15407_v46 }
0x2196   :  { %v8204_v11 = vmul.f32 %v9739_v47, %v15403_v3 }
0x2198   :  { %v9741_v50 = vpop.eup %9740 }
0x2199   :  { %v8207_v6 = vmul.f32 %v9741_v50, %v15418_v13  ;;  %v9743_v40 = vpop.eup %9742 }
0x219a   :  { %v8206_v46 = vmul.f32 %v9743_v40, %v15410_v62  ;;  %v9745_v18 = vpop.eup %9744 }
0x219b   :  { %v8208_v3 = vmul.f32 %v9745_v18, %v15424_v21 }
0x21c6   :  { %v8170_v24 = vpop.xlane.xlu1 %8169 }
0x21c7   :  { %v8180_v19 = vmul.f32 0.0625, %v8170_v24 }
0x21c8   :  { %v8167_v8 = vpop.xlane.xlu0 %8166 }
0x21c9   :  { %v8190_v38 = vadd.f32 1e-05, %v8180_v19  ;;  %v8179_v25 = vmul.f32 0.0625, %v8167_v8 }
0x21ca   :  { %v8235_v0 = vpop.permute.xlu1 %8234 }
0x21cb   :  { %9746 = vrsqrt.f32 %v8190_v38  ;;  %v8189_v45 = vadd.f32 1e-05, %v8179_v25 }
0x21cc   :  { %v8217_v55 = vpop.permute.xlu0 %8216 }
0x21cd   :  { %9748 = vrsqrt.f32 %v8189_v45  ;;  %v8221_v1 = vmul.f32 %v8217_v55, %v8203_v61  ;;  %v8219_v39 = vmul.f32 %v8217_v55, %v8201_v36  ;;  %v8223_v37 = vmul.f32 %v8217_v55, %v8205_v28 }
0x21ce   :  { %v8220_v27 = vmul.f32 %v8217_v55, %v8202_v60  ;;  %v8225_v54 = vmul.f32 %v8217_v55, %v8207_v6  ;;  %v8222_v12 = vmul.f32 %v8217_v55, %v8204_v11  ;;  %v8224_v59 = vmul.f32 %v8217_v55, %v8206_v46 }
0x21cf   :  { %v8239_v7 = vadd.f32 %v8235_v0, %v8221_v1  ;;  %v8237_v22 = vadd.f32 %v8235_v0, %v8219_v39  ;;  %v8241_v29 = vadd.f32 %v8235_v0, %v8223_v37  ;;  %v8226_v35 = vmul.f32 %v8217_v55, %v8208_v3 }
0x21d0   :  { %v8238_v44 = vadd.f32 %v8235_v0, %v8220_v27  ;;  %v8243_v63 = vadd.f32 %v8235_v0, %v8225_v54  ;;  %v8240_v2 = vadd.f32 %v8235_v0, %v8222_v12  ;;  %v8242_v15 = vadd.f32 %v8235_v0, %v8224_v59 }
0x21d1   :  { %8263 = vrot.lane.b32.xlu0 %v8239_v7, %s9934_s12  ;;  %8259 = vrot.lane.b32.xlu1 %v8237_v22, %s9934_s12  ;;  %v8244_v10 = vadd.f32 %v8235_v0, %v8226_v35 }
0x21d5   :  { %8267 = vrot.lane.b32.xlu0 %v8241_v29, %s9934_s12  ;;  %8261 = vrot.lane.b32.xlu1 %v8238_v44, %s9934_s12 }
0x21d8   :  { %v9747_v33 = vpop.eup %9746 }
0x21d9   :  { %8271 = vrot.lane.b32.xlu0 %v8243_v63, %s9934_s12  ;;  %8265 = vrot.lane.b32.xlu1 %v8240_v2, %s9934_s12  ;;  %v8210_v4 = vmul.f32 %v9747_v33, %v15434_v52 }
0x21da   :  { %v9749_v13 = vpop.eup %9748 }
0x21db   :  { %v8209_v20 = vmul.f32 %v9749_v13, %v15439_v34  ;;  %v8228_v5 = vmul.f32 %v8217_v55, %v8210_v4 }
0x21dd   :  { %8269 = vrot.lane.b32.xlu1 %v8242_v15, %s9934_s12  ;;  %v8227_v62 = vmul.f32 %v8217_v55, %v8209_v20  ;;  %v8246_v26 = vadd.f32 %v8235_v0, %v8228_v5 }
0x21df   :  { %v8245_v53 = vadd.f32 %v8235_v0, %v8227_v62 }
0x21e1   :  { %8275 = vrot.lane.b32.xlu0 %v8245_v53, %s9934_s12  ;;  %8273 = vrot.lane.b32.xlu1 %v8244_v10, %s9934_s12 }
0x21e5   :  { %8277 = vrot.lane.b32.xlu1 %v8246_v26, %s9934_s12 }
0x2243   :  { %v8264_v21 = vpop.permute.xlu0 %8263  ;;  %v8260_v32 = vpop.permute.xlu1 %8259 }
0x2244   :  { %9354 = vmatprep.mubr.msk.f32.mxu1 %vm6521_vm3, %v8260_v32 }
0x2247   :  { %v8262_v34 = vpop.permute.xlu1 %8261  ;;  %v8268_v52 = vpop.permute.xlu0 %8267 }
0x2248   :  { %9355 = vmatmul.mubr.msk.f32.vlgmr.msra.gmra.mxu1 %vm6521_vm3, %v8262_v34 }
0x2249   :  { %9357 = vmatprep.mubr.msk.f32.mxu1 %vm6521_vm3, %v8264_v21 }
0x224b   :  { %v8266_v16 = vpop.permute.xlu1 %8265  ;;  %v8272_v58 = vpop.permute.xlu0 %8271 }
0x224c   :  { %9358 = vmatmul.mubr.msk.f32.gmra.mxu1 %vm6521_vm3, %v8266_v16 }
0x224d   :  { %9360 = vmatprep.mubr.msk.f32.mxu1 %vm6521_vm3, %v8268_v52 }
0x224f   :  { %v8270_v30 = vpop.permute.xlu1 %8269 }
0x2250   :  { %9361 = vmatmul.mubr.msk.f32.gmra.mxu1 %vm6521_vm3, %v8270_v30 }
0x2251   :  { %9363 = vmatprep.mubr.msk.f32.mxu1 %vm6521_vm3, %v8272_v58 }
0x2253   :  { %v8276_v9 = vpop.permute.xlu0 %8275  ;;  %v8274_v17 = vpop.permute.xlu1 %8273 }
0x2254   :  { %9364 = vmatmul.mubr.msk.f32.gmra.mxu1 %vm6521_vm3, %v8274_v17 }
0x2255   :  { %9366 = vmatprep.mubr.msk.f32.mxu1 %vm6521_vm3, %v8276_v9 }
0x2257   :  { %v8278_v41 = vpop.permute.xlu1 %8277 }
0x2258   :  { %9367 = vmatmul.mubr.msk.f32.gmra.mxu1 %vm6521_vm3, %v8278_v41 }
0x2308   :  { %v9356_v14 = vpop.f32.mrf.mxu1 }
0x2309   :  { %8415 = vst [vmem:[#allocation14 + $0x8] sm:$0xff] %v9356_v14 }
0x230a   :  { %v8365_v23 = vpop.f32.mrf.mxu1 }
0x230b   :  { %8414 = vst [vmem:[#allocation14] sm:$0xff] %v8365_v23 }
0x230c   :  { %v9359_v49 = vpop.f32.mrf.mxu1 }
0x230d   :  { %8417 = vst [vmem:[#allocation14 + $0x18] sm:$0xff] %v9359_v49 }
0x230e   :  { %v8375_v31 = vpop.f32.mrf.mxu1 }
0x230f   :  { %8416 = vst [vmem:[#allocation14 + $0x10] sm:$0xff] %v8375_v31 }
0x2310   :  { %v9362_v48 = vpop.f32.mrf.mxu1 }
0x2311   :  { %8419 = vst [vmem:[#allocation14 + $0x28] sm:$0xff] %v9362_v48 }
0x2312   :  { %v8385_v43 = vpop.f32.mrf.mxu1 }
0x2313   :  { %8418 = vst [vmem:[#allocation14 + $0x20] sm:$0xff] %v8385_v43 }
0x2314   :  { %v9365_v24 = vpop.f32.mrf.mxu1 }
0x2315   :  { %8421 = vst [vmem:[#allocation14 + $0x38] sm:$0xff] %v9365_v24 }
0x2316   :  { %v8395_v56 = vpop.f32.mrf.mxu1 }
0x2317   :  { %8420 = vst [vmem:[#allocation14 + $0x30] sm:$0xff] %v8395_v56 }
0x2318   :  { %v9368_v19 = vpop.f32.mrf.mxu1 }
0x2319   :  { %8423 = vst [vmem:[#allocation14 + $0x48] sm:$0xff] %v9368_v19 }
0x231a   :  { %v8405_v57 = vpop.f32.mrf.mxu1 }
0x231b   :  { %8422 = vst [vmem:[#allocation14 + $0x40] sm:$0xff] %v8405_v57 }
0x231c   :  { %9901 = shalt.err (!%p9898_p11)
}
0x231d   :  { %8435 = dma.vmem_to_hbm [thread:$0]  %s8430_s28, 1280, %s15522_s25, [#allocation4], %s9925_s5, %s9925_s5, %s9926_s0  }
0x231e   :  { %9918 = dma.done.wait [#allocation4], 1280  }
0x231f   :  { %9919 = vsyncadd [#allocation4], 4294966016 }
0x2320   :  { %8439 = vsyncpa [#allocation3], 1 }
0x2321   :  { %8440 = vsyncpa [#allocation6], 1 }
0x2322   :  { %8441 = vsyncpa [#allocation9], 1 }
0x2323   :  { %8442 = vsyncpa [#allocation12], 1 }
0x2324   :  { %8443 = vsyncpa [#allocation4], 1 }

</bundles_post_ra>
